<compile_context>
chip_gen: v6e
topology: v6e:2x2x1
jax: 0.10.0
libtpu: 0.0.40
codegen_flags: <defaults>
</compile_context>

<pallas_src>
import jax
import jax.numpy as jnp
from jax.experimental import pallas as pl
from jax.experimental.pallas import tpu as pltpu

OC = 30            # output channels per conv
KMAX = 7           # all convs are embedded in a 7x7 frame (pad = 3)
NTAPS = KMAX * KMAX  # 49


def _make_kernel(nb, H, W):
    HW = H * W

    def kernel(x_ref, w_ref, b_ref, o_ref):
        # x_ref: (nb, H+6, W+6)  zero-padded images (pad=3 each side)
        # w_ref: (90, 49)        combined (f5, f7, f3) weights in the 7x7 frame
        # b_ref: (90, 1)         combined biases
        # o_ref: (nb, 90, H*W)   NCHW output with spatial dims flattened (lane-dense)
        wmat = w_ref[...]                                   # (90, 49)
        bias = b_ref[...]                                   # (90, 1)

        # In-kernel im2col: 49 shifted slices per image, flattened to (49, HW).
        cols = []
        for b in range(nb):
            x = x_ref[b]                                    # (H+6, W+6)
            taps = [x[ki:ki + H, kj:kj + W]
                    for ki in range(KMAX) for kj in range(KMAX)]
            cols.append(jnp.stack(taps, axis=0).reshape(NTAPS, HW))
        patches = cols[0] if nb == 1 else jnp.concatenate(cols, axis=1)  # (49, nb*HW)

        # One MXU matmul computes all three convolutions for all nb images.
        y = jnp.dot(wmat, patches,
                    preferred_element_type=jnp.float32,
                    precision=jax.lax.Precision.HIGHEST)     # (90, nb*HW)
        y = jnp.maximum(y + bias, 0.0)                       # bias + ReLU (fused epilogue)

        # Store directly into the lane-dense NCHW-flattened output (no concat copy).
        for b in range(nb):
            o_ref[b] = y[:, b * HW:(b + 1) * HW].astype(o_ref.dtype)

    return kernel


def _combined_weights(params):
    """Zero-embed the 3x3 / 5x5 kernels into a centered 7x7 frame and flatten.

    Channel order is (f5, f7, f3) to match torch.cat((f5, f7, f3), dim=1)."""
    def embed(w, K):
        off = (KMAX - K) // 2          # 7->0, 5->1, 3->2  (== 3 - (K-1)//2)
        full = jnp.zeros((OC, KMAX, KMAX), w.dtype)
        return full.at[:, off:off + K, off:off + K].set(w)

    wmat = jnp.concatenate(
        [embed(params["w5"], 5), embed(params["w7"], 7), embed(params["w3"], 3)],
        axis=0).reshape(3 * OC, NTAPS)                                   # (90, 49)
    bias = jnp.concatenate(
        [params["b5"], params["b7"], params["b3"]], axis=0).reshape(3 * OC, 1)
    return wmat, bias


def spatial_net_forward(x, params, *, max_images_per_step=8):
    """x: (N, 1, H, W) float32 (NCHW, like PyTorch). Returns (N, 90, H, W)."""
    N, C, H, W = x.shape
    assert C == 1, "SpatialNet expects a single input channel"
    HW = H * W
    Hp, Wp = H + 6, W + 6

    # Batch several small images per grid step (amortizes per-step overhead).
    nb = 1
    for cand in range(min(N, max_images_per_step), 0, -1):
        if N % cand == 0:
            nb = cand
            break

    x_pad = jnp.pad(x[:, 0], ((0, 0), (3, 3), (3, 3)))       # (N, H+6, W+6)
    wmat, bias = _combined_weights(params)

    kernel = _make_kernel(nb, H, W)
    flops = 2 * N * HW * NTAPS * 3 * OC
    bytes_accessed = 4 * (x_pad.size + wmat.size + bias.size + N * 3 * OC * HW)

    out_flat = pl.pallas_call(
        kernel,
        out_shape=jax.ShapeDtypeStruct((N, 3 * OC, HW), x.dtype),
        grid=(N // nb,),
        in_specs=[
            pl.BlockSpec((nb, Hp, Wp), lambda n: (n, 0, 0)),
            pl.BlockSpec((3 * OC, NTAPS), lambda n: (0, 0)),
            pl.BlockSpec((3 * OC, 1), lambda n: (0, 0)),
        ],
        out_specs=pl.BlockSpec((nb, 3 * OC, HW), lambda n: (n, 0, 0)),
        compiler_params=pltpu.CompilerParams(dimension_semantics=("parallel",)),
        cost_estimate=pl.CostEstimate(flops=flops, transcendentals=0,
                                      bytes_accessed=bytes_accessed),
    )(x_pad, wmat, bias)

    # (N, 90, H*W) is contiguous NCHW -> free reshape, no transpose needed.
    return out_flat.reshape(N, 3 * OC, H, W)


def _init_params(key):
    k3, k5, k7, kb3, kb5, kb7 = jax.random.split(key, 6)
    return {
        "w3": 0.1 * jax.random.normal(k3, (OC, 3, 3), jnp.float32),
        "w5": 0.1 * jax.random.normal(k5, (OC, 5, 5), jnp.float32),
        "w7": 0.1 * jax.random.normal(k7, (OC, 7, 7), jnp.float32),
        "b3": 0.1 * jax.random.normal(kb3, (OC,), jnp.float32),
        "b5": 0.1 * jax.random.normal(kb5, (OC,), jnp.float32),
        "b7": 0.1 * jax.random.normal(kb7, (OC,), jnp.float32),
    }


def _reference_forward(x, params):
    """Pure-JAX reference matching PyTorch Conv2d semantics (NCHW / OIHW)."""
    def conv(w, b, pad):
        w4 = w[:, None, :, :]  # (O, 1, K, K)
        y = jax.lax.conv_general_dilated(
            x, w4, window_strides=(1, 1),
            padding=((pad, pad), (pad, pad)),
            dimension_numbers=("NCHW", "OIHW", "NCHW"),
        )
        return y + b[None, :, None, None]

    f3 = conv(params["w3"], params["b3"], 1)
    f5 = conv(params["w5"], params["b5"], 2)
    f7 = conv(params["w7"], params["b7"], 3)
    return jnp.maximum(jnp.concatenate([f5, f7, f3], axis=1), 0.0)


if __name__ == "__main__":
    key = jax.random.PRNGKey(0)
    kx, kp = jax.random.split(key)

    N, H, W = 2, 16, 16
    x = jax.random.normal(kx, (N, 1, H, W), jnp.float32)   # NCHW, C=1
    params = _init_params(kp)

    out = jax.block_until_ready(spatial_net_forward(x, params))
    ref = jax.block_until_ready(_reference_forward(x, params))

    assert out.shape == (N, 90, H, W), out.shape
    max_err = float(jnp.max(jnp.abs(out - ref)))
    assert jnp.allclose(out, ref, atol=1e-3, rtol=1e-3), max_err

    print("KERNEL_OK")
</pallas_src>

<mosaic_0001>
module attributes {stable_mosaic.version = 11 : i64} {
  func.func @kernel(%arg0: i32, %arg1: memref<2x22x22xf32, #tpu.memory_space<vmem>>, %arg2: memref<90x49xf32, #tpu.memory_space<vmem>>, %arg3: memref<90x1xf32, #tpu.memory_space<vmem>>, %arg4: memref<2x90x256xf32, #tpu.memory_space<vmem>>) attributes {dimension_semantics = [#tpu.dimension_semantics<parallel>], iteration_bounds = array<i64: 1>, scalar_prefetch = 0 : i64, scratch_operands = 0 : i64, tpu.core_type = #tpu.core_type<tc>, window_params = [{transform_indices = @transform_0, window_bounds = array<i64: 2, 22, 22>}, {pipeline_mode = #tpu.pipeline_mode<synchronous>, transform_indices = @transform_1, window_bounds = array<i64: 90, 49>}, {pipeline_mode = #tpu.pipeline_mode<synchronous>, transform_indices = @transform_2, window_bounds = array<i64: 90, 1>}, {transform_indices = @transform_3, window_bounds = array<i64: 2, 90, 256>}]} {
    %c0 = arith.constant 0 : index
    %c0_0 = arith.constant 0 : index
    %0 = vector.load %arg2[%c0, %c0_0] : memref<90x49xf32, #tpu.memory_space<vmem>>, vector<90x49xf32>
    %c0_1 = arith.constant 0 : index
    %c0_2 = arith.constant 0 : index
    %1 = vector.load %arg3[%c0_1, %c0_2] : memref<90x1xf32, #tpu.memory_space<vmem>>, vector<90x1xf32>
    %c0_3 = arith.constant 0 : index
    %c0_4 = arith.constant 0 : index
    %c0_5 = arith.constant 0 : index
    %2 = vector.load %arg1[%c0_3, %c0_4, %c0_5] : memref<2x22x22xf32, #tpu.memory_space<vmem>>, vector<1x22x22xf32>
    %3 = vector.shape_cast %2 : vector<1x22x22xf32> to vector<22x22xf32>
    %4 = vector.extract_strided_slice %3 {offsets = [0, 0], sizes = [16, 16], strides = [1, 1]} : vector<22x22xf32> to vector<16x16xf32>
    %5 = vector.extract_strided_slice %3 {offsets = [0, 1], sizes = [16, 16], strides = [1, 1]} : vector<22x22xf32> to vector<16x16xf32>
    %6 = vector.extract_strided_slice %3 {offsets = [0, 2], sizes = [16, 16], strides = [1, 1]} : vector<22x22xf32> to vector<16x16xf32>
    %7 = vector.extract_strided_slice %3 {offsets = [0, 3], sizes = [16, 16], strides = [1, 1]} : vector<22x22xf32> to vector<16x16xf32>
    %8 = vector.extract_strided_slice %3 {offsets = [0, 4], sizes = [16, 16], strides = [1, 1]} : vector<22x22xf32> to vector<16x16xf32>
    %9 = vector.extract_strided_slice %3 {offsets = [0, 5], sizes = [16, 16], strides = [1, 1]} : vector<22x22xf32> to vector<16x16xf32>
    %10 = vector.extract_strided_slice %3 {offsets = [0, 6], sizes = [16, 16], strides = [1, 1]} : vector<22x22xf32> to vector<16x16xf32>
    %11 = vector.extract_strided_slice %3 {offsets = [1, 0], sizes = [16, 16], strides = [1, 1]} : vector<22x22xf32> to vector<16x16xf32>
    %12 = vector.extract_strided_slice %3 {offsets = [1, 1], sizes = [16, 16], strides = [1, 1]} : vector<22x22xf32> to vector<16x16xf32>
    %13 = vector.extract_strided_slice %3 {offsets = [1, 2], sizes = [16, 16], strides = [1, 1]} : vector<22x22xf32> to vector<16x16xf32>
    %14 = vector.extract_strided_slice %3 {offsets = [1, 3], sizes = [16, 16], strides = [1, 1]} : vector<22x22xf32> to vector<16x16xf32>
    %15 = vector.extract_strided_slice %3 {offsets = [1, 4], sizes = [16, 16], strides = [1, 1]} : vector<22x22xf32> to vector<16x16xf32>
    %16 = vector.extract_strided_slice %3 {offsets = [1, 5], sizes = [16, 16], strides = [1, 1]} : vector<22x22xf32> to vector<16x16xf32>
    %17 = vector.extract_strided_slice %3 {offsets = [1, 6], sizes = [16, 16], strides = [1, 1]} : vector<22x22xf32> to vector<16x16xf32>
    %18 = vector.extract_strided_slice %3 {offsets = [2, 0], sizes = [16, 16], strides = [1, 1]} : vector<22x22xf32> to vector<16x16xf32>
    %19 = vector.extract_strided_slice %3 {offsets = [2, 1], sizes = [16, 16], strides = [1, 1]} : vector<22x22xf32> to vector<16x16xf32>
    %20 = vector.extract_strided_slice %3 {offsets = [2, 2], sizes = [16, 16], strides = [1, 1]} : vector<22x22xf32> to vector<16x16xf32>
    %21 = vector.extract_strided_slice %3 {offsets = [2, 3], sizes = [16, 16], strides = [1, 1]} : vector<22x22xf32> to vector<16x16xf32>
    %22 = vector.extract_strided_slice %3 {offsets = [2, 4], sizes = [16, 16], strides = [1, 1]} : vector<22x22xf32> to vector<16x16xf32>
    %23 = vector.extract_strided_slice %3 {offsets = [2, 5], sizes = [16, 16], strides = [1, 1]} : vector<22x22xf32> to vector<16x16xf32>
    %24 = vector.extract_strided_slice %3 {offsets = [2, 6], sizes = [16, 16], strides = [1, 1]} : vector<22x22xf32> to vector<16x16xf32>
    %25 = vector.extract_strided_slice %3 {offsets = [3, 0], sizes = [16, 16], strides = [1, 1]} : vector<22x22xf32> to vector<16x16xf32>
    %26 = vector.extract_strided_slice %3 {offsets = [3, 1], sizes = [16, 16], strides = [1, 1]} : vector<22x22xf32> to vector<16x16xf32>
    %27 = vector.extract_strided_slice %3 {offsets = [3, 2], sizes = [16, 16], strides = [1, 1]} : vector<22x22xf32> to vector<16x16xf32>
    %28 = vector.extract_strided_slice %3 {offsets = [3, 3], sizes = [16, 16], strides = [1, 1]} : vector<22x22xf32> to vector<16x16xf32>
    %29 = vector.extract_strided_slice %3 {offsets = [3, 4], sizes = [16, 16], strides = [1, 1]} : vector<22x22xf32> to vector<16x16xf32>
    %30 = vector.extract_strided_slice %3 {offsets = [3, 5], sizes = [16, 16], strides = [1, 1]} : vector<22x22xf32> to vector<16x16xf32>
    %31 = vector.extract_strided_slice %3 {offsets = [3, 6], sizes = [16, 16], strides = [1, 1]} : vector<22x22xf32> to vector<16x16xf32>
    %32 = vector.extract_strided_slice %3 {offsets = [4, 0], sizes = [16, 16], strides = [1, 1]} : vector<22x22xf32> to vector<16x16xf32>
    %33 = vector.extract_strided_slice %3 {offsets = [4, 1], sizes = [16, 16], strides = [1, 1]} : vector<22x22xf32> to vector<16x16xf32>
    %34 = vector.extract_strided_slice %3 {offsets = [4, 2], sizes = [16, 16], strides = [1, 1]} : vector<22x22xf32> to vector<16x16xf32>
    %35 = vector.extract_strided_slice %3 {offsets = [4, 3], sizes = [16, 16], strides = [1, 1]} : vector<22x22xf32> to vector<16x16xf32>
    %36 = vector.extract_strided_slice %3 {offsets = [4, 4], sizes = [16, 16], strides = [1, 1]} : vector<22x22xf32> to vector<16x16xf32>
    %37 = vector.extract_strided_slice %3 {offsets = [4, 5], sizes = [16, 16], strides = [1, 1]} : vector<22x22xf32> to vector<16x16xf32>
    %38 = vector.extract_strided_slice %3 {offsets = [4, 6], sizes = [16, 16], strides = [1, 1]} : vector<22x22xf32> to vector<16x16xf32>
    %39 = vector.extract_strided_slice %3 {offsets = [5, 0], sizes = [16, 16], strides = [1, 1]} : vector<22x22xf32> to vector<16x16xf32>
    %40 = vector.extract_strided_slice %3 {offsets = [5, 1], sizes = [16, 16], strides = [1, 1]} : vector<22x22xf32> to vector<16x16xf32>
    %41 = vector.extract_strided_slice %3 {offsets = [5, 2], sizes = [16, 16], strides = [1, 1]} : vector<22x22xf32> to vector<16x16xf32>
    %42 = vector.extract_strided_slice %3 {offsets = [5, 3], sizes = [16, 16], strides = [1, 1]} : vector<22x22xf32> to vector<16x16xf32>
    %43 = vector.extract_strided_slice %3 {offsets = [5, 4], sizes = [16, 16], strides = [1, 1]} : vector<22x22xf32> to vector<16x16xf32>
    %44 = vector.extract_strided_slice %3 {offsets = [5, 5], sizes = [16, 16], strides = [1, 1]} : vector<22x22xf32> to vector<16x16xf32>
    %45 = vector.extract_strided_slice %3 {offsets = [5, 6], sizes = [16, 16], strides = [1, 1]} : vector<22x22xf32> to vector<16x16xf32>
    %46 = vector.extract_strided_slice %3 {offsets = [6, 0], sizes = [16, 16], strides = [1, 1]} : vector<22x22xf32> to vector<16x16xf32>
    %47 = vector.extract_strided_slice %3 {offsets = [6, 1], sizes = [16, 16], strides = [1, 1]} : vector<22x22xf32> to vector<16x16xf32>
    %48 = vector.extract_strided_slice %3 {offsets = [6, 2], sizes = [16, 16], strides = [1, 1]} : vector<22x22xf32> to vector<16x16xf32>
    %49 = vector.extract_strided_slice %3 {offsets = [6, 3], sizes = [16, 16], strides = [1, 1]} : vector<22x22xf32> to vector<16x16xf32>
    %50 = vector.extract_strided_slice %3 {offsets = [6, 4], sizes = [16, 16], strides = [1, 1]} : vector<22x22xf32> to vector<16x16xf32>
    %51 = vector.extract_strided_slice %3 {offsets = [6, 5], sizes = [16, 16], strides = [1, 1]} : vector<22x22xf32> to vector<16x16xf32>
    %52 = vector.extract_strided_slice %3 {offsets = [6, 6], sizes = [16, 16], strides = [1, 1]} : vector<22x22xf32> to vector<16x16xf32>
    %53 = vector.shape_cast %4 : vector<16x16xf32> to vector<1x16x16xf32>
    %54 = vector.shape_cast %5 : vector<16x16xf32> to vector<1x16x16xf32>
    %55 = vector.shape_cast %6 : vector<16x16xf32> to vector<1x16x16xf32>
    %56 = vector.shape_cast %7 : vector<16x16xf32> to vector<1x16x16xf32>
    %57 = vector.shape_cast %8 : vector<16x16xf32> to vector<1x16x16xf32>
    %58 = vector.shape_cast %9 : vector<16x16xf32> to vector<1x16x16xf32>
    %59 = vector.shape_cast %10 : vector<16x16xf32> to vector<1x16x16xf32>
    %60 = vector.shape_cast %11 : vector<16x16xf32> to vector<1x16x16xf32>
    %61 = vector.shape_cast %12 : vector<16x16xf32> to vector<1x16x16xf32>
    %62 = vector.shape_cast %13 : vector<16x16xf32> to vector<1x16x16xf32>
    %63 = vector.shape_cast %14 : vector<16x16xf32> to vector<1x16x16xf32>
    %64 = vector.shape_cast %15 : vector<16x16xf32> to vector<1x16x16xf32>
    %65 = vector.shape_cast %16 : vector<16x16xf32> to vector<1x16x16xf32>
    %66 = vector.shape_cast %17 : vector<16x16xf32> to vector<1x16x16xf32>
    %67 = vector.shape_cast %18 : vector<16x16xf32> to vector<1x16x16xf32>
    %68 = vector.shape_cast %19 : vector<16x16xf32> to vector<1x16x16xf32>
    %69 = vector.shape_cast %20 : vector<16x16xf32> to vector<1x16x16xf32>
    %70 = vector.shape_cast %21 : vector<16x16xf32> to vector<1x16x16xf32>
    %71 = vector.shape_cast %22 : vector<16x16xf32> to vector<1x16x16xf32>
    %72 = vector.shape_cast %23 : vector<16x16xf32> to vector<1x16x16xf32>
    %73 = vector.shape_cast %24 : vector<16x16xf32> to vector<1x16x16xf32>
    %74 = vector.shape_cast %25 : vector<16x16xf32> to vector<1x16x16xf32>
    %75 = vector.shape_cast %26 : vector<16x16xf32> to vector<1x16x16xf32>
    %76 = vector.shape_cast %27 : vector<16x16xf32> to vector<1x16x16xf32>
    %77 = vector.shape_cast %28 : vector<16x16xf32> to vector<1x16x16xf32>
    %78 = vector.shape_cast %29 : vector<16x16xf32> to vector<1x16x16xf32>
    %79 = vector.shape_cast %30 : vector<16x16xf32> to vector<1x16x16xf32>
    %80 = vector.shape_cast %31 : vector<16x16xf32> to vector<1x16x16xf32>
    %81 = vector.shape_cast %32 : vector<16x16xf32> to vector<1x16x16xf32>
    %82 = vector.shape_cast %33 : vector<16x16xf32> to vector<1x16x16xf32>
    %83 = vector.shape_cast %34 : vector<16x16xf32> to vector<1x16x16xf32>
    %84 = vector.shape_cast %35 : vector<16x16xf32> to vector<1x16x16xf32>
    %85 = vector.shape_cast %36 : vector<16x16xf32> to vector<1x16x16xf32>
    %86 = vector.shape_cast %37 : vector<16x16xf32> to vector<1x16x16xf32>
    %87 = vector.shape_cast %38 : vector<16x16xf32> to vector<1x16x16xf32>
    %88 = vector.shape_cast %39 : vector<16x16xf32> to vector<1x16x16xf32>
    %89 = vector.shape_cast %40 : vector<16x16xf32> to vector<1x16x16xf32>
    %90 = vector.shape_cast %41 : vector<16x16xf32> to vector<1x16x16xf32>
    %91 = vector.shape_cast %42 : vector<16x16xf32> to vector<1x16x16xf32>
    %92 = vector.shape_cast %43 : vector<16x16xf32> to vector<1x16x16xf32>
    %93 = vector.shape_cast %44 : vector<16x16xf32> to vector<1x16x16xf32>
    %94 = vector.shape_cast %45 : vector<16x16xf32> to vector<1x16x16xf32>
    %95 = vector.shape_cast %46 : vector<16x16xf32> to vector<1x16x16xf32>
    %96 = vector.shape_cast %47 : vector<16x16xf32> to vector<1x16x16xf32>
    %97 = vector.shape_cast %48 : vector<16x16xf32> to vector<1x16x16xf32>
    %98 = vector.shape_cast %49 : vector<16x16xf32> to vector<1x16x16xf32>
    %99 = vector.shape_cast %50 : vector<16x16xf32> to vector<1x16x16xf32>
    %100 = vector.shape_cast %51 : vector<16x16xf32> to vector<1x16x16xf32>
    %101 = vector.shape_cast %52 : vector<16x16xf32> to vector<1x16x16xf32>
    %102 = tpu.concatenate %53, %54, %55, %56, %57, %58, %59, %60, %61, %62, %63, %64, %65, %66, %67, %68 in 0 : vector<1x16x16xf32>, vector<1x16x16xf32>, vector<1x16x16xf32>, vector<1x16x16xf32>, vector<1x16x16xf32>, vector<1x16x16xf32>, vector<1x16x16xf32>, vector<1x16x16xf32>, vector<1x16x16xf32>, vector<1x16x16xf32>, vector<1x16x16xf32>, vector<1x16x16xf32>, vector<1x16x16xf32>, vector<1x16x16xf32>, vector<1x16x16xf32>, vector<1x16x16xf32> -> vector<16x16x16xf32>
    %103 = tpu.concatenate %69, %70, %71, %72, %73, %74, %75, %76, %77, %78, %79, %80, %81, %82, %83, %84 in 0 : vector<1x16x16xf32>, vector<1x16x16xf32>, vector<1x16x16xf32>, vector<1x16x16xf32>, vector<1x16x16xf32>, vector<1x16x16xf32>, vector<1x16x16xf32>, vector<1x16x16xf32>, vector<1x16x16xf32>, vector<1x16x16xf32>, vector<1x16x16xf32>, vector<1x16x16xf32>, vector<1x16x16xf32>, vector<1x16x16xf32>, vector<1x16x16xf32>, vector<1x16x16xf32> -> vector<16x16x16xf32>
    %104 = tpu.concatenate %85, %86, %87, %88, %89, %90, %91, %92, %93, %94, %95, %96, %97, %98, %99, %100 in 0 : vector<1x16x16xf32>, vector<1x16x16xf32>, vector<1x16x16xf32>, vector<1x16x16xf32>, vector<1x16x16xf32>, vector<1x16x16xf32>, vector<1x16x16xf32>, vector<1x16x16xf32>, vector<1x16x16xf32>, vector<1x16x16xf32>, vector<1x16x16xf32>, vector<1x16x16xf32>, vector<1x16x16xf32>, vector<1x16x16xf32>, vector<1x16x16xf32>, vector<1x16x16xf32> -> vector<16x16x16xf32>
    %105 = tpu.concatenate %102, %103, %104, %101 in 0 : vector<16x16x16xf32>, vector<16x16x16xf32>, vector<16x16x16xf32>, vector<1x16x16xf32> -> vector<49x16x16xf32>
    %106 = vector.shape_cast %105 : vector<49x16x16xf32> to vector<49x256xf32>
    %c1 = arith.constant 1 : index
    %c0_6 = arith.constant 0 : index
    %c0_7 = arith.constant 0 : index
    %107 = vector.load %arg1[%c1, %c0_6, %c0_7] : memref<2x22x22xf32, #tpu.memory_space<vmem>>, vector<1x22x22xf32>
    %108 = vector.shape_cast %107 : vector<1x22x22xf32> to vector<22x22xf32>
    %109 = vector.extract_strided_slice %108 {offsets = [0, 0], sizes = [16, 16], strides = [1, 1]} : vector<22x22xf32> to vector<16x16xf32>
    %110 = vector.extract_strided_slice %108 {offsets = [0, 1], sizes = [16, 16], strides = [1, 1]} : vector<22x22xf32> to vector<16x16xf32>
    %111 = vector.extract_strided_slice %108 {offsets = [0, 2], sizes = [16, 16], strides = [1, 1]} : vector<22x22xf32> to vector<16x16xf32>
    %112 = vector.extract_strided_slice %108 {offsets = [0, 3], sizes = [16, 16], strides = [1, 1]} : vector<22x22xf32> to vector<16x16xf32>
    %113 = vector.extract_strided_slice %108 {offsets = [0, 4], sizes = [16, 16], strides = [1, 1]} : vector<22x22xf32> to vector<16x16xf32>
    %114 = vector.extract_strided_slice %108 {offsets = [0, 5], sizes = [16, 16], strides = [1, 1]} : vector<22x22xf32> to vector<16x16xf32>
    %115 = vector.extract_strided_slice %108 {offsets = [0, 6], sizes = [16, 16], strides = [1, 1]} : vector<22x22xf32> to vector<16x16xf32>
    %116 = vector.extract_strided_slice %108 {offsets = [1, 0], sizes = [16, 16], strides = [1, 1]} : vector<22x22xf32> to vector<16x16xf32>
    %117 = vector.extract_strided_slice %108 {offsets = [1, 1], sizes = [16, 16], strides = [1, 1]} : vector<22x22xf32> to vector<16x16xf32>
    %118 = vector.extract_strided_slice %108 {offsets = [1, 2], sizes = [16, 16], strides = [1, 1]} : vector<22x22xf32> to vector<16x16xf32>
    %119 = vector.extract_strided_slice %108 {offsets = [1, 3], sizes = [16, 16], strides = [1, 1]} : vector<22x22xf32> to vector<16x16xf32>
    %120 = vector.extract_strided_slice %108 {offsets = [1, 4], sizes = [16, 16], strides = [1, 1]} : vector<22x22xf32> to vector<16x16xf32>
    %121 = vector.extract_strided_slice %108 {offsets = [1, 5], sizes = [16, 16], strides = [1, 1]} : vector<22x22xf32> to vector<16x16xf32>
    %122 = vector.extract_strided_slice %108 {offsets = [1, 6], sizes = [16, 16], strides = [1, 1]} : vector<22x22xf32> to vector<16x16xf32>
    %123 = vector.extract_strided_slice %108 {offsets = [2, 0], sizes = [16, 16], strides = [1, 1]} : vector<22x22xf32> to vector<16x16xf32>
    %124 = vector.extract_strided_slice %108 {offsets = [2, 1], sizes = [16, 16], strides = [1, 1]} : vector<22x22xf32> to vector<16x16xf32>
    %125 = vector.extract_strided_slice %108 {offsets = [2, 2], sizes = [16, 16], strides = [1, 1]} : vector<22x22xf32> to vector<16x16xf32>
    %126 = vector.extract_strided_slice %108 {offsets = [2, 3], sizes = [16, 16], strides = [1, 1]} : vector<22x22xf32> to vector<16x16xf32>
    %127 = vector.extract_strided_slice %108 {offsets = [2, 4], sizes = [16, 16], strides = [1, 1]} : vector<22x22xf32> to vector<16x16xf32>
    %128 = vector.extract_strided_slice %108 {offsets = [2, 5], sizes = [16, 16], strides = [1, 1]} : vector<22x22xf32> to vector<16x16xf32>
    %129 = vector.extract_strided_slice %108 {offsets = [2, 6], sizes = [16, 16], strides = [1, 1]} : vector<22x22xf32> to vector<16x16xf32>
    %130 = vector.extract_strided_slice %108 {offsets = [3, 0], sizes = [16, 16], strides = [1, 1]} : vector<22x22xf32> to vector<16x16xf32>
    %131 = vector.extract_strided_slice %108 {offsets = [3, 1], sizes = [16, 16], strides = [1, 1]} : vector<22x22xf32> to vector<16x16xf32>
    %132 = vector.extract_strided_slice %108 {offsets = [3, 2], sizes = [16, 16], strides = [1, 1]} : vector<22x22xf32> to vector<16x16xf32>
    %133 = vector.extract_strided_slice %108 {offsets = [3, 3], sizes = [16, 16], strides = [1, 1]} : vector<22x22xf32> to vector<16x16xf32>
    %134 = vector.extract_strided_slice %108 {offsets = [3, 4], sizes = [16, 16], strides = [1, 1]} : vector<22x22xf32> to vector<16x16xf32>
    %135 = vector.extract_strided_slice %108 {offsets = [3, 5], sizes = [16, 16], strides = [1, 1]} : vector<22x22xf32> to vector<16x16xf32>
    %136 = vector.extract_strided_slice %108 {offsets = [3, 6], sizes = [16, 16], strides = [1, 1]} : vector<22x22xf32> to vector<16x16xf32>
    %137 = vector.extract_strided_slice %108 {offsets = [4, 0], sizes = [16, 16], strides = [1, 1]} : vector<22x22xf32> to vector<16x16xf32>
    %138 = vector.extract_strided_slice %108 {offsets = [4, 1], sizes = [16, 16], strides = [1, 1]} : vector<22x22xf32> to vector<16x16xf32>
    %139 = vector.extract_strided_slice %108 {offsets = [4, 2], sizes = [16, 16], strides = [1, 1]} : vector<22x22xf32> to vector<16x16xf32>
    %140 = vector.extract_strided_slice %108 {offsets = [4, 3], sizes = [16, 16], strides = [1, 1]} : vector<22x22xf32> to vector<16x16xf32>
    %141 = vector.extract_strided_slice %108 {offsets = [4, 4], sizes = [16, 16], strides = [1, 1]} : vector<22x22xf32> to vector<16x16xf32>
    %142 = vector.extract_strided_slice %108 {offsets = [4, 5], sizes = [16, 16], strides = [1, 1]} : vector<22x22xf32> to vector<16x16xf32>
    %143 = vector.extract_strided_slice %108 {offsets = [4, 6], sizes = [16, 16], strides = [1, 1]} : vector<22x22xf32> to vector<16x16xf32>
    %144 = vector.extract_strided_slice %108 {offsets = [5, 0], sizes = [16, 16], strides = [1, 1]} : vector<22x22xf32> to vector<16x16xf32>
    %145 = vector.extract_strided_slice %108 {offsets = [5, 1], sizes = [16, 16], strides = [1, 1]} : vector<22x22xf32> to vector<16x16xf32>
    %146 = vector.extract_strided_slice %108 {offsets = [5, 2], sizes = [16, 16], strides = [1, 1]} : vector<22x22xf32> to vector<16x16xf32>
    %147 = vector.extract_strided_slice %108 {offsets = [5, 3], sizes = [16, 16], strides = [1, 1]} : vector<22x22xf32> to vector<16x16xf32>
    %148 = vector.extract_strided_slice %108 {offsets = [5, 4], sizes = [16, 16], strides = [1, 1]} : vector<22x22xf32> to vector<16x16xf32>
    %149 = vector.extract_strided_slice %108 {offsets = [5, 5], sizes = [16, 16], strides = [1, 1]} : vector<22x22xf32> to vector<16x16xf32>
    %150 = vector.extract_strided_slice %108 {offsets = [5, 6], sizes = [16, 16], strides = [1, 1]} : vector<22x22xf32> to vector<16x16xf32>
    %151 = vector.extract_strided_slice %108 {offsets = [6, 0], sizes = [16, 16], strides = [1, 1]} : vector<22x22xf32> to vector<16x16xf32>
    %152 = vector.extract_strided_slice %108 {offsets = [6, 1], sizes = [16, 16], strides = [1, 1]} : vector<22x22xf32> to vector<16x16xf32>
    %153 = vector.extract_strided_slice %108 {offsets = [6, 2], sizes = [16, 16], strides = [1, 1]} : vector<22x22xf32> to vector<16x16xf32>
    %154 = vector.extract_strided_slice %108 {offsets = [6, 3], sizes = [16, 16], strides = [1, 1]} : vector<22x22xf32> to vector<16x16xf32>
    %155 = vector.extract_strided_slice %108 {offsets = [6, 4], sizes = [16, 16], strides = [1, 1]} : vector<22x22xf32> to vector<16x16xf32>
    %156 = vector.extract_strided_slice %108 {offsets = [6, 5], sizes = [16, 16], strides = [1, 1]} : vector<22x22xf32> to vector<16x16xf32>
    %157 = vector.extract_strided_slice %108 {offsets = [6, 6], sizes = [16, 16], strides = [1, 1]} : vector<22x22xf32> to vector<16x16xf32>
    %158 = vector.shape_cast %109 : vector<16x16xf32> to vector<1x16x16xf32>
    %159 = vector.shape_cast %110 : vector<16x16xf32> to vector<1x16x16xf32>
    %160 = vector.shape_cast %111 : vector<16x16xf32> to vector<1x16x16xf32>
    %161 = vector.shape_cast %112 : vector<16x16xf32> to vector<1x16x16xf32>
    %162 = vector.shape_cast %113 : vector<16x16xf32> to vector<1x16x16xf32>
    %163 = vector.shape_cast %114 : vector<16x16xf32> to vector<1x16x16xf32>
    %164 = vector.shape_cast %115 : vector<16x16xf32> to vector<1x16x16xf32>
    %165 = vector.shape_cast %116 : vector<16x16xf32> to vector<1x16x16xf32>
    %166 = vector.shape_cast %117 : vector<16x16xf32> to vector<1x16x16xf32>
    %167 = vector.shape_cast %118 : vector<16x16xf32> to vector<1x16x16xf32>
    %168 = vector.shape_cast %119 : vector<16x16xf32> to vector<1x16x16xf32>
    %169 = vector.shape_cast %120 : vector<16x16xf32> to vector<1x16x16xf32>
    %170 = vector.shape_cast %121 : vector<16x16xf32> to vector<1x16x16xf32>
    %171 = vector.shape_cast %122 : vector<16x16xf32> to vector<1x16x16xf32>
    %172 = vector.shape_cast %123 : vector<16x16xf32> to vector<1x16x16xf32>
    %173 = vector.shape_cast %124 : vector<16x16xf32> to vector<1x16x16xf32>
    %174 = vector.shape_cast %125 : vector<16x16xf32> to vector<1x16x16xf32>
    %175 = vector.shape_cast %126 : vector<16x16xf32> to vector<1x16x16xf32>
    %176 = vector.shape_cast %127 : vector<16x16xf32> to vector<1x16x16xf32>
    %177 = vector.shape_cast %128 : vector<16x16xf32> to vector<1x16x16xf32>
    %178 = vector.shape_cast %129 : vector<16x16xf32> to vector<1x16x16xf32>
    %179 = vector.shape_cast %130 : vector<16x16xf32> to vector<1x16x16xf32>
    %180 = vector.shape_cast %131 : vector<16x16xf32> to vector<1x16x16xf32>
    %181 = vector.shape_cast %132 : vector<16x16xf32> to vector<1x16x16xf32>
    %182 = vector.shape_cast %133 : vector<16x16xf32> to vector<1x16x16xf32>
    %183 = vector.shape_cast %134 : vector<16x16xf32> to vector<1x16x16xf32>
    %184 = vector.shape_cast %135 : vector<16x16xf32> to vector<1x16x16xf32>
    %185 = vector.shape_cast %136 : vector<16x16xf32> to vector<1x16x16xf32>
    %186 = vector.shape_cast %137 : vector<16x16xf32> to vector<1x16x16xf32>
    %187 = vector.shape_cast %138 : vector<16x16xf32> to vector<1x16x16xf32>
    %188 = vector.shape_cast %139 : vector<16x16xf32> to vector<1x16x16xf32>
    %189 = vector.shape_cast %140 : vector<16x16xf32> to vector<1x16x16xf32>
    %190 = vector.shape_cast %141 : vector<16x16xf32> to vector<1x16x16xf32>
    %191 = vector.shape_cast %142 : vector<16x16xf32> to vector<1x16x16xf32>
    %192 = vector.shape_cast %143 : vector<16x16xf32> to vector<1x16x16xf32>
    %193 = vector.shape_cast %144 : vector<16x16xf32> to vector<1x16x16xf32>
    %194 = vector.shape_cast %145 : vector<16x16xf32> to vector<1x16x16xf32>
    %195 = vector.shape_cast %146 : vector<16x16xf32> to vector<1x16x16xf32>
    %196 = vector.shape_cast %147 : vector<16x16xf32> to vector<1x16x16xf32>
    %197 = vector.shape_cast %148 : vector<16x16xf32> to vector<1x16x16xf32>
    %198 = vector.shape_cast %149 : vector<16x16xf32> to vector<1x16x16xf32>
    %199 = vector.shape_cast %150 : vector<16x16xf32> to vector<1x16x16xf32>
    %200 = vector.shape_cast %151 : vector<16x16xf32> to vector<1x16x16xf32>
    %201 = vector.shape_cast %152 : vector<16x16xf32> to vector<1x16x16xf32>
    %202 = vector.shape_cast %153 : vector<16x16xf32> to vector<1x16x16xf32>
    %203 = vector.shape_cast %154 : vector<16x16xf32> to vector<1x16x16xf32>
    %204 = vector.shape_cast %155 : vector<16x16xf32> to vector<1x16x16xf32>
    %205 = vector.shape_cast %156 : vector<16x16xf32> to vector<1x16x16xf32>
    %206 = vector.shape_cast %157 : vector<16x16xf32> to vector<1x16x16xf32>
    %207 = tpu.concatenate %158, %159, %160, %161, %162, %163, %164, %165, %166, %167, %168, %169, %170, %171, %172, %173 in 0 : vector<1x16x16xf32>, vector<1x16x16xf32>, vector<1x16x16xf32>, vector<1x16x16xf32>, vector<1x16x16xf32>, vector<1x16x16xf32>, vector<1x16x16xf32>, vector<1x16x16xf32>, vector<1x16x16xf32>, vector<1x16x16xf32>, vector<1x16x16xf32>, vector<1x16x16xf32>, vector<1x16x16xf32>, vector<1x16x16xf32>, vector<1x16x16xf32>, vector<1x16x16xf32> -> vector<16x16x16xf32>
    %208 = tpu.concatenate %174, %175, %176, %177, %178, %179, %180, %181, %182, %183, %184, %185, %186, %187, %188, %189 in 0 : vector<1x16x16xf32>, vector<1x16x16xf32>, vector<1x16x16xf32>, vector<1x16x16xf32>, vector<1x16x16xf32>, vector<1x16x16xf32>, vector<1x16x16xf32>, vector<1x16x16xf32>, vector<1x16x16xf32>, vector<1x16x16xf32>, vector<1x16x16xf32>, vector<1x16x16xf32>, vector<1x16x16xf32>, vector<1x16x16xf32>, vector<1x16x16xf32>, vector<1x16x16xf32> -> vector<16x16x16xf32>
    %209 = tpu.concatenate %190, %191, %192, %193, %194, %195, %196, %197, %198, %199, %200, %201, %202, %203, %204, %205 in 0 : vector<1x16x16xf32>, vector<1x16x16xf32>, vector<1x16x16xf32>, vector<1x16x16xf32>, vector<1x16x16xf32>, vector<1x16x16xf32>, vector<1x16x16xf32>, vector<1x16x16xf32>, vector<1x16x16xf32>, vector<1x16x16xf32>, vector<1x16x16xf32>, vector<1x16x16xf32>, vector<1x16x16xf32>, vector<1x16x16xf32>, vector<1x16x16xf32>, vector<1x16x16xf32> -> vector<16x16x16xf32>
    %210 = tpu.concatenate %207, %208, %209, %206 in 0 : vector<16x16x16xf32>, vector<16x16x16xf32>, vector<16x16x16xf32>, vector<1x16x16xf32> -> vector<49x16x16xf32>
    %211 = vector.shape_cast %210 : vector<49x16x16xf32> to vector<49x256xf32>
    %212 = tpu.concatenate %106, %211 in 1 : vector<49x256xf32>, vector<49x256xf32> -> vector<49x512xf32>
    %cst = arith.constant dense<0.000000e+00> : vector<90x512xf32>
    %213 = tpu.matmul %0, %212, %cst {dimension_numbers = #tpu.dot_dimension_numbers<[1], [0], [0], [1], [0, 0, 1, 1], [], []>, precision = #tpu.contract_precision<fp32>} : vector<90x49xf32>, vector<49x512xf32>, vector<90x512xf32> -> vector<90x512xf32>
    %214 = vector.broadcast %1 : vector<90x1xf32> to vector<90x512xf32>
    %215 = arith.addf %213, %214 : vector<90x512xf32>
    %cst_8 = arith.constant 0.000000e+00 : f32
    %216 = vector.broadcast %cst_8 : f32 to vector<90x512xf32>
    %217 = arith.maximumf %215, %216 : vector<90x512xf32>
    %218 = vector.extract_strided_slice %217 {offsets = [0, 0], sizes = [90, 256], strides = [1, 1]} : vector<90x512xf32> to vector<90x256xf32>
    %c0_9 = arith.constant 0 : index
    %c0_10 = arith.constant 0 : index
    %c0_11 = arith.constant 0 : index
    %219 = vector.load %arg4[%c0_9, %c0_10, %c0_11] : memref<2x90x256xf32, #tpu.memory_space<vmem>>, vector<1x90x256xf32>
    %220 = vector.shape_cast %219 : vector<1x90x256xf32> to vector<90x256xf32>
    %221 = vector.shape_cast %218 : vector<90x256xf32> to vector<1x90x256xf32>
    tpu.vector_store %arg4[%c0_9, %c0_10, %c0_11], %221 {strides = array<i32>} : memref<2x90x256xf32, #tpu.memory_space<vmem>>, vector<1x90x256xf32>,
    %222 = vector.extract_strided_slice %217 {offsets = [0, 256], sizes = [90, 256], strides = [1, 1]} : vector<90x512xf32> to vector<90x256xf32>
    %c1_12 = arith.constant 1 : index
    %c0_13 = arith.constant 0 : index
    %c0_14 = arith.constant 0 : index
    %223 = vector.load %arg4[%c1_12, %c0_13, %c0_14] : memref<2x90x256xf32, #tpu.memory_space<vmem>>, vector<1x90x256xf32>
    %224 = vector.shape_cast %223 : vector<1x90x256xf32> to vector<90x256xf32>
    %225 = vector.shape_cast %222 : vector<90x256xf32> to vector<1x90x256xf32>
    tpu.vector_store %arg4[%c1_12, %c0_13, %c0_14], %225 {strides = array<i32>} : memref<2x90x256xf32, #tpu.memory_space<vmem>>, vector<1x90x256xf32>,
    return
  }
  func.func @transform_0(%arg0: i32) -> (i32, i32, i32) {
    %c0_i32 = arith.constant 0 : i32
    %c0_i32_0 = arith.constant 0 : i32
    %c0_i32_1 = arith.constant 0 : i32
    return %arg0, %c0_i32, %c0_i32_0 : i32, i32, i32
  }
  func.func @transform_1(%arg0: i32) -> (i32, i32) {
    %c0_i32 = arith.constant 0 : i32
    %c0_i32_0 = arith.constant 0 : i32
    %c0_i32_1 = arith.constant 0 : i32
    return %c0_i32, %c0_i32_0 : i32, i32
  }
  func.func @transform_2(%arg0: i32) -> (i32, i32) {
    %c0_i32 = arith.constant 0 : i32
    %c0_i32_0 = arith.constant 0 : i32
    %c0_i32_1 = arith.constant 0 : i32
    return %c0_i32, %c0_i32_0 : i32, i32
  }
  func.func @transform_3(%arg0: i32) -> (i32, i32, i32) {
    %c0_i32 = arith.constant 0 : i32
    %c0_i32_0 = arith.constant 0 : i32
    %c0_i32_1 = arith.constant 0 : i32
    return %arg0, %c0_i32, %c0_i32_0 : i32, i32, i32
  }
}

</mosaic_0001>

<bundles_post_ra>
// kernel: tpu_custom_call.1
= control target key start
LH: loop header
LB: loop body
LE: loop exit
PB: predicated region body
PF: predicated region fallthrough
CT: control target
= control target key end

     0   :  { %s8122_s14 = smov 126   ;;  %s8123_s15 = smov 127   ;;  %vm80_vm0 = vcmask 1046528   ;;  %vm124_vm1 = vcmask 1045504   ;;  %v8132_v13 = vmov 1983009808   ;;  %v569_v15 = vlaneseq  ;;  %s14011_s0 = inlined_call_operand.vmem [shape: f32[2,22,22], index: 0, kind: input, shape index: {}]   ;;  %s14012_s1 = inlined_call_operand.vmem [shape: f32[90,49], index: 1, kind: input, shape index: {}]   ;;  %s14013_s2 = inlined_call_operand.vmem [shape: f32[90,1], index: 2, kind: input, shape index: {}]   ;;  %s14014_s3 = inlined_call_operand.vmem [shape: f32[2,90,256], index: 3, kind: output, shape index: {}]  }
   0x1   :  { %v8166_v0 = vld [vmem:[%s14011_s0] sm:$0xff]  ;;  %v8175_v1 = vld [vmem:[%s14011_s0 + $0x8] sm:$0xff]  ;;  %s8124_s18 = smov 125   ;;  %s8125_s19 = smov 124   ;;  %v8192_v2 = vld [vmem:[%s14011_s0 + $0x10] sm:$0x3f]  ;;  %v567_v14 = vunpack.c.l.s4 %v8132_v13 }
   0x2   :  { %49 = vrot.lane.b32.xlu1 %v8166_v0, %s8122_s14  ;;  %43 = vrot.lane.b32.xlu0 %v8166_v0, %s8123_s15  ;;  %s8126_s22 = smov 123   ;;  %v8199_v3 = vrot.slane %v8192_v2, 1  ;;  %v82_v4 = vrot.slane %v8175_v1, 1  ;;  %v81_v5 = vrot.slane %v8166_v0, 1  ;;  %s8127_s23 = smov 122   ;;  %v126_v8 = vrot.slane %v8175_v1, 2 }
   0x3   :  { %v8236_v9 = vrot.slane %v8192_v2, 2  ;;  %v125_v10 = vrot.slane %v8166_v0, 2  ;;  %s8128_s24 = smov 2   ;;  %s8129_s25 = smov 1   ;;  %v568_v18 = vunpack.c.0.s8 %v567_v14  ;;  %v570_v19 = vshrl.u32 %v569_v15, 7 }
   0x4   :  { %v8209_v6 = vsel %vm80_vm0, %v82_v4, %v8199_v3  ;;  %v8212_v7 = vsel %vm80_vm0, %v81_v5, %v82_v4  ;;  %s8130_s26 = smov 4   ;;  %s8131_s27 = smov 3   ;;  %v8133_v45 = vmov 1934713408   ;;  %vm375_vm2 = vcmask 1043456  }
   0x5   :  { %14418 = vst [vmem:[#allocation2_spill] sm:$0xff] %v8209_v6  ;;  %v8245_v11 = vsel %vm124_vm1, %v126_v8, %v8236_v9  ;;  %v8248_v12 = vsel %vm124_vm1, %v125_v10, %v126_v8  ;;  %v8339_v27 = vsub.s32 %v568_v18, %v570_v19  ;;  %v631_v46 = vunpack.c.l.s4 %v8133_v45  ;;  %s8135_s28 = smov 16   ;;  %s8136_s29 = smov 32  }
   0x6   :  { %51 = vrot.lane.b32.xlu1 %v8175_v1, %s8122_s14  ;;  %45 = vrot.lane.b32.xlu0 %v8175_v1, %s8123_s15  ;;  %14419 = vst [vmem:[#allocation3_spill] sm:$0xff] %v8245_v11  ;;  %vm552_vm3 = vcmask 1041408   ;;  %s8137_s5 = smov 48   ;;  %s8138_s6 = smov 64   ;;  %vm2686_vm4 = vcmask 130048   ;;  %vm2694_vm5 = vcmask 261120  }
   0x7   :  { %14422 = vst [vmem:[#allocation6_spill] sm:$0xff] %v8339_v27  ;;  %v632_v51 = vunpack.c.0.s8 %v631_v46  ;;  %s8139_s7 = smov 80   ;;  %s8140_s8 = smov 96   ;;  %vm2702_vm6 = vcmask 392192   ;;  %vm2710_vm7 = vcmask 523264   ;;  %vm2718_vm8 = vcmask 654336  }
   0x8   :  { %s8141_s9 = smov 112   ;;  %vm2726_vm9 = vcmask 785408   ;;  %vm2734_vm10 = vcmask 916480   ;;  %vm5631_vm11 = vcmask 1040384   ;;  %vm5594_vm12 = vcmask 400384  }
   0x9   :  { %v8398_v62 = vsub.s32 %v632_v51, %v570_v19 }
   0xa   :  { %57 = vrot.lane.b32.xlu1 %v8175_v1, %s8124_s18  ;;  %55 = vrot.lane.b32.xlu0 %v8166_v0, %s8124_s18 }
   0xb   :  { %14432 = vst [vmem:[#allocation16_spill] sm:$0xff] %v8398_v62 }
   0xe   :  { %63 = vrot.lane.b32.xlu1 %v8175_v1, %s8125_s19  ;;  %61 = vrot.lane.b32.xlu0 %v8166_v0, %s8125_s19 }
  0x12   :  { %69 = vrot.lane.b32.xlu1 %v8175_v1, %s8126_s22  ;;  %67 = vrot.lane.b32.xlu0 %v8166_v0, %s8126_s22 }
  0x16   :  { %75 = vrot.lane.b32.xlu1 %v8175_v1, %s8127_s23  ;;  %73 = vrot.lane.b32.xlu0 %v8166_v0, %s8127_s23 }
  0x1a   :  { %90 = vrot.lane.b32.xlu1 %v8209_v6, %s8123_s15  ;;  %88 = vrot.lane.b32.xlu0 %v8212_v7, %s8123_s15 }
  0x1e   :  { %96 = vrot.lane.b32.xlu1 %v8209_v6, %s8122_s14  ;;  %94 = vrot.lane.b32.xlu0 %v8212_v7, %s8122_s14 }
  0x22   :  { %102 = vrot.lane.b32.xlu1 %v8209_v6, %s8124_s18  ;;  %100 = vrot.lane.b32.xlu0 %v8212_v7, %s8124_s18 }
  0x26   :  { %108 = vrot.lane.b32.xlu1 %v8209_v6, %s8125_s19  ;;  %106 = vrot.lane.b32.xlu0 %v8212_v7, %s8125_s19 }
  0x2a   :  { %114 = vrot.lane.b32.xlu1 %v8209_v6, %s8126_s22  ;;  %112 = vrot.lane.b32.xlu0 %v8212_v7, %s8126_s22 }
  0x2e   :  { %120 = vrot.lane.b32.xlu1 %v8209_v6, %s8127_s23  ;;  %118 = vrot.lane.b32.xlu0 %v8212_v7, %s8127_s23 }
  0x32   :  { %134 = vrot.lane.b32.xlu1 %v8245_v11, %s8123_s15  ;;  %132 = vrot.lane.b32.xlu0 %v8248_v12, %s8123_s15 }
  0x36   :  { %140 = vrot.lane.b32.xlu1 %v8192_v2, %s8122_s14  ;;  %138 = vrot.lane.b32.xlu0 %v8192_v2, %s8123_s15 }
  0x3a   :  { %144 = vrot.lane.b32.xlu1 %v8192_v2, %s8125_s19  ;;  %142 = vrot.lane.b32.xlu0 %v8192_v2, %s8124_s18 }
  0x3e   :  { %148 = vrot.lane.b32.xlu1 %v8209_v6, %s8128_s24  ;;  %146 = vrot.lane.b32.xlu0 %v8212_v7, %s8128_s24 }
  0x42   :  { %152 = vrot.lane.b32.xlu1 %v8212_v7, %s8129_s25  ;;  %150 = vrot.lane.b32.xlu0 %v8199_v3, %s8128_s24 }
  0x46   :  { %156 = vrot.lane.b32.xlu1 %v8199_v3, %s8129_s25  ;;  %154 = vrot.lane.b32.xlu0 %v8209_v6, %s8129_s25 }
  0x4a   :  { %160 = vrot.lane.b32.xlu1 %v8199_v3, %s8122_s14  ;;  %158 = vrot.lane.b32.xlu0 %v8199_v3, %s8123_s15 }
  0x4e   :  { %164 = vrot.lane.b32.xlu1 %v8199_v3, %s8125_s19  ;;  %162 = vrot.lane.b32.xlu0 %v8199_v3, %s8124_s18 }
  0x52   :  { %166 = vrot.lane.b32.xlu0 %v8248_v12, %s8128_s24  ;;  %168 = vrot.lane.b32.xlu1 %v8245_v11, %s8128_s24 }
  0x56   :  { %170 = vrot.lane.b32.xlu0 %v8236_v9, %s8128_s24  ;;  %172 = vrot.lane.b32.xlu1 %v8248_v12, %s8129_s25 }
  0x5a   :  { %174 = vrot.lane.b32.xlu0 %v8245_v11, %s8129_s25  ;;  %176 = vrot.lane.b32.xlu1 %v8236_v9, %s8129_s25 }
  0x5e   :  { %178 = vrot.lane.b32.xlu0 %v8236_v9, %s8123_s15  ;;  %180 = vrot.lane.b32.xlu1 %v8212_v7, %s8130_s26 }
  0x62   :  { %184 = vrot.lane.b32.xlu1 %v8199_v3, %s8130_s26  ;;  %182 = vrot.lane.b32.xlu0 %v8209_v6, %s8130_s26 }
  0x66   :  { %188 = vrot.lane.b32.xlu1 %v8209_v6, %s8131_s27  ;;  %186 = vrot.lane.b32.xlu0 %v8212_v7, %s8131_s27 }
  0x6a   :  { %192 = vrot.lane.b32.xlu1 %v8248_v12, %s8130_s26  ;;  %190 = vrot.lane.b32.xlu0 %v8199_v3, %s8131_s27 }
  0x6e   :  { %196 = vrot.lane.b32.xlu1 %v8236_v9, %s8130_s26  ;;  %194 = vrot.lane.b32.xlu0 %v8245_v11, %s8130_s26 }
  0x72   :  { %200 = vrot.lane.b32.xlu1 %v8245_v11, %s8131_s27  ;;  %198 = vrot.lane.b32.xlu0 %v8248_v12, %s8131_s27 }
  0x74   :  { %v8318_v16 = vpop.permute.xlu1 %49  ;;  %v8320_v17 = vpop.permute.xlu0 %43 }
  0x75   :  { %v204_v22 = vrot.slane %v8320_v17, 2  ;;  %v209_v25 = vrot.slane %v8318_v16, 2  ;;  %v564_v28 = vcombine.low %v8166_v0, %v8318_v16 }
  0x76   :  { %279 = vrot.lane.b32.xlu1 %v8248_v12, %s8122_s14  ;;  %202 = vrot.lane.b32.xlu0 %v8236_v9, %s8131_s27 }
  0x77   :  { %v572_v35 = vrot.slane %v564_v28, %v8339_v27 }
  0x78   :  { %v8326_v20 = vpop.permute.xlu1 %51  ;;  %v8328_v21 = vpop.permute.xlu0 %45 }
  0x79   :  { %14420 = vst [vmem:[#allocation4_spill] sm:$0xff] %v8326_v20  ;;  %14421 = vst [vmem:[#allocation5_spill] sm:$0xff] %v8328_v21  ;;  %v205_v23 = vrot.slane %v8328_v21, 2  ;;  %v14017_v26 = vrot.slane %v8326_v20, 2  ;;  %v1429_v55 = vcombine.low %v8175_v1, %v8326_v20 }
  0x7a   :  { %281 = vrot.lane.b32.xlu0 %v8245_v11, %s8122_s14 }
  0x7b   :  { %v206_v24 = vsel %vm124_vm1, %v204_v22, %v205_v23  ;;  %v211_v34 = vsel %vm124_vm1, %v209_v25, %v14017_v26  ;;  %v1437_v10 = vrot.slane %v1429_v55, %v8339_v27 }
  0x7c   :  { %v8343_v29 = vpop.permute.xlu1 %57  ;;  %v8345_v30 = vpop.permute.xlu0 %55  ;;  %283 = vrot.lane.b32.xlu1 %v206_v24, %s8122_s14 }
  0x7d   :  { %14423 = vst [vmem:[#allocation7_spill] sm:$0xff] %v8343_v29  ;;  %14424 = vst [vmem:[#allocation8_spill] sm:$0xff] %v8345_v30  ;;  %v580_v31 = vcombine.low %v8320_v17, %v8345_v30  ;;  %v14016_v32 = vrot.slane %v8343_v29, 2  ;;  %v214_v33 = vrot.slane %v8345_v30, 2  ;;  %v1445_v57 = vcombine.low %v8328_v21, %v8343_v29 }
  0x7e   :  { %v386_v30 = vrot.slane %v8318_v16, 4 }
  0x7f   :  { %v588_v36 = vrot.slane %v580_v31, %v8339_v27  ;;  %v216_v42 = vsel %vm124_vm1, %v214_v33, %v14016_v32  ;;  %v1453_v13 = vrot.slane %v1445_v57, %v8339_v27 }
  0x80   :  { %v8357_v37 = vpop.permute.xlu1 %63  ;;  %v8359_v38 = vpop.permute.xlu0 %61  ;;  %287 = vrot.lane.b32.xlu1 %v211_v34, %s8122_s14 }
  0x81   :  { %14425 = vst [vmem:[#allocation9_spill] sm:$0xff] %v8357_v37  ;;  %14426 = vst [vmem:[#allocation10_spill] sm:$0xff] %v8359_v38  ;;  %v629_v39 = vcombine.high %v572_v35, %v588_v36  ;;  %v14015_v40 = vrot.slane %v8357_v37, 2  ;;  %v219_v41 = vrot.slane %v8359_v38, 2  ;;  %v628_v58 = vcombine.low %v572_v35, %v588_v36 }
  0x82   :  { %v1494_v34 = vcombine.high %v1437_v10, %v1453_v13 }
  0x83   :  { %v221_v47 = vsel %vm124_vm1, %v219_v41, %v14015_v40  ;;  %v8409_v18 = vrot.slane %v628_v58, %v8398_v62  ;;  %v8418_v24 = vrot.slane %v629_v39, %v8398_v62 }
  0x84   :  { %v8367_v43 = vpop.permute.xlu1 %69  ;;  %v8369_v44 = vpop.permute.xlu0 %67  ;;  %291 = vrot.lane.b32.xlu1 %v216_v42, %s8122_s14  ;;  %v8440_v46 = vrot.slane %v1494_v34, %v8398_v62 }
  0x85   :  { %14427 = vst [vmem:[#allocation11_spill] sm:$0xff] %v8367_v43  ;;  %14428 = vst [vmem:[#allocation12_spill] sm:$0xff] %v8369_v44  ;;  %v612_v48 = vcombine.low %v8369_v44, %v8212_v7  ;;  %v1477_v53 = vcombine.low %v8367_v43, %v8209_v6 }
  0x86   :  { %14434 = vst [vmem:[#allocation18_spill] sm:$0xff] %v8409_v18  ;;  %14441 = vst [vmem:[#allocation25_spill] sm:$0xff] %v8440_v46 }
  0x87   :  { %v620_v59 = vrot.slane %v612_v48, %v8339_v27  ;;  %v1485_v63 = vrot.slane %v1477_v53, %v8339_v27 }
  0x88   :  { %v8377_v49 = vpop.permute.xlu1 %75  ;;  %v8379_v50 = vpop.permute.xlu0 %73  ;;  %295 = vrot.lane.b32.xlu1 %v221_v47, %s8122_s14 }
  0x89   :  { %14429 = vst [vmem:[#allocation13_spill] sm:$0xff] %v8377_v49  ;;  %14430 = vst [vmem:[#allocation14_spill] sm:$0xff] %v8379_v50  ;;  %v596_v52 = vcombine.low %v8359_v38, %v8379_v50  ;;  %v1461_v54 = vcombine.low %v8357_v37, %v8377_v49  ;;  %v381_v50 = vrot.slane %v8320_v17, 4 }
  0x8b   :  { %v604_v56 = vrot.slane %v596_v52, %v8339_v27  ;;  %v1469_v4 = vrot.slane %v1461_v54, %v8339_v27 }
  0x8c   :  { %v8394_v60 = vpop.permute.xlu1 %90  ;;  %v8396_v61 = vpop.permute.xlu0 %88 }
  0x8d   :  { %14431 = vst [vmem:[#allocation15_spill] sm:$0xff] %v8394_v60  ;;  %v660_v5 = vcombine.low %v604_v56, %v620_v59  ;;  %v661_v8 = vcombine.high %v604_v56, %v620_v59  ;;  %v1526_v25 = vcombine.high %v1469_v4, %v1485_v63  ;;  %v1525_v51 = vcombine.low %v1469_v4, %v1485_v63 }
  0x8e   :  { %v1493_v56 = vcombine.low %v1437_v10, %v1453_v13 }
  0x8f   :  { %v8412_v19 = vrot.slane %v660_v5, %v8398_v62  ;;  %v8415_v22 = vrot.slane %v661_v8, %v8398_v62  ;;  %v8431_v41 = vrot.slane %v1526_v25, %v8398_v62  ;;  %v8457_v5 = vrot.slane %v1525_v51, %v8398_v62 }
  0x90   :  { %v8404_v14 = vpop.permute.xlu1 %96  ;;  %v8406_v15 = vpop.permute.xlu0 %94  ;;  %v8460_v8 = vrot.slane %v1493_v56, %v8398_v62 }
  0x91   :  { %14433 = vst [vmem:[#allocation17_spill] sm:$0xff] %v8404_v14  ;;  %14435 = vst [vmem:[#allocation19_spill] sm:$0xff] %v8412_v19 }
  0x92   :  { %14438 = vst [vmem:[#allocation22_spill] sm:$0xff] %v8431_v41  ;;  %14446 = vst [vmem:[#allocation30_spill] sm:$0xff] %v8457_v5 }
  0x93   :  { %14447 = vst [vmem:[#allocation31_spill] sm:$0xff] %v8460_v8 }
  0x94   :  { %v8426_v35 = vpop.permute.xlu1 %102  ;;  %v8428_v36 = vpop.permute.xlu0 %100 }
  0x95   :  { %14436 = vst [vmem:[#allocation20_spill] sm:$0xff] %v8426_v35  ;;  %14437 = vst [vmem:[#allocation21_spill] sm:$0xff] %v8428_v36  ;;  %v700_v39 = vcombine.low %v8396_v61, %v8428_v36 }
  0x97   :  { %v708_v52 = vrot.slane %v700_v39, %v8339_v27 }
  0x98   :  { %v8435_v42 = vpop.permute.xlu1 %108  ;;  %v8437_v45 = vpop.permute.xlu0 %106 }
  0x99   :  { %14439 = vst [vmem:[#allocation23_spill] sm:$0xff] %v8435_v42  ;;  %14440 = vst [vmem:[#allocation24_spill] sm:$0xff] %v8437_v45  ;;  %v716_v47 = vcombine.low %v8406_v15, %v8437_v45  ;;  %v1581_v48 = vcombine.low %v8404_v14, %v8435_v42 }
  0x9b   :  { %v724_v53 = vrot.slane %v716_v47, %v8339_v27  ;;  %v8508_v43 = vrot.slane %v1581_v48, %v8339_v27 }
  0x9c   :  { %v8448_v54 = vpop.permute.xlu1 %114  ;;  %v8450_v55 = vpop.permute.xlu0 %112 }
  0x9d   :  { %14442 = vst [vmem:[#allocation26_spill] sm:$0xff] %v8448_v54  ;;  %14443 = vst [vmem:[#allocation27_spill] sm:$0xff] %v8450_v55  ;;  %v765_v57 = vcombine.high %v708_v52, %v724_v53  ;;  %v732_v63 = vcombine.low %v8450_v55, %v8248_v12  ;;  %v764_v47 = vcombine.low %v708_v52, %v724_v53 }
  0x9e   :  { %v1597_v10 = vcombine.low %v8448_v54, %v8245_v11  ;;  %14453 = vst [vmem:[#allocation37_spill] sm:$0xff] %v8508_v43 }
  0x9f   :  { %v740_v51 = vrot.slane %v732_v63, %v8339_v27  ;;  %v8496_v49 = vrot.slane %v764_v47, %v8398_v62 }
  0xa0   :  { %v8452_v58 = vpop.permute.xlu1 %120  ;;  %v8454_v59 = vpop.permute.xlu0 %118 }
  0xa1   :  { %14444 = vst [vmem:[#allocation28_spill] sm:$0xff] %v8452_v58  ;;  %14445 = vst [vmem:[#allocation29_spill] sm:$0xff] %v8454_v59 }
  0xa2   :  { %14450 = vst [vmem:[#allocation34_spill] sm:$0xff] %v8496_v49 }
  0xa4   :  { %v8464_v4 = vpop.permute.xlu1 %134  ;;  %v8466_v25 = vpop.permute.xlu0 %132 }
  0xa5   :  { %14448 = vst [vmem:[#allocation32_spill] sm:$0xff] %v8464_v4  ;;  %v748_v13 = vcombine.low %v8454_v59, %v8466_v25  ;;  %v1613_v34 = vcombine.low %v8452_v58, %v8464_v4  ;;  %v14457_v58 = vrot.slane %v8343_v29, 2 }
  0xa7   :  { %v756_v39 = vrot.slane %v748_v13, %v8339_v27  ;;  %v1565_v13 = vcombine.low %v8394_v60, %v8426_v35  ;;  %v8488_v52 = vrot.slane %v1613_v34, %v8339_v27 }
  0xa8   :  { %v8476_v56 = vpop.permute.xlu1 %140  ;;  %v8478_v28 = vpop.permute.xlu0 %138 }
  0xa9   :  { %v207_v33 = vrot.slane %v8478_v28, 2  ;;  %v796_v31 = vcombine.low %v740_v51, %v756_v39  ;;  %v797_v40 = vcombine.high %v740_v51, %v756_v39  ;;  %14449 = vst [vmem:[#allocation33_spill] sm:$0xff] %v8488_v52  ;;  %v212_v53 = vrot.slane %v8476_v56, 2 }
  0xaa   :  { %v8502_v51 = vrot.slane %v765_v57, %v8398_v62  ;;  %v8520_v57 = vrot.slane %v1565_v13, %v8339_v27 }
  0xab   :  { %v208_v63 = vsel %vm124_vm1, %v205_v23, %v207_v33  ;;  %v8499_v39 = vrot.slane %v796_v31, %v8398_v62  ;;  %v8505_v34 = vrot.slane %v797_v40, %v8398_v62  ;;  %v8511_v23 = vrot.slane %v1597_v10, %v8339_v27 }
  0xac   :  { %v145_v32 = vpop.permute.xlu1 %144  ;;  %285 = vrot.lane.b32.xlu0 %v208_v63, %s8122_s14  ;;  %v143_v26 = vpop.permute.xlu0 %142  ;;  %14455 = vst [vmem:[#allocation39_spill] sm:$0xff] %v8520_v57  ;;  %v14456_v63 = vrot.slane %v8326_v20, 2  ;;  %v1629_v31 = vcombine.low %v8520_v57, %v8508_v43  ;;  %v235_v43 = vrot.slane %v8209_v6, 2 }
  0xad   :  { %14451 = vst [vmem:[#allocation35_spill] sm:$0xff] %v8499_v39  ;;  %14452 = vst [vmem:[#allocation36_spill] sm:$0xff] %v8505_v34  ;;  %v217_v40 = vrot.slane %v143_v26, 2  ;;  %v1661_v10 = vcombine.low %v8511_v23, %v8488_v52  ;;  %v222_v47 = vrot.slane %v145_v32, 2  ;;  %v237_v52 = vrot.slane %v8199_v3, 2 }
  0xae   :  { %14454 = vst [vmem:[#allocation38_spill] sm:$0xff] %v8511_v23  ;;  %v213_v48 = vsel %vm124_vm1, %v14456_v63, %v212_v53  ;;  %v8550_v57 = vrot.slane %v1629_v31, %v8398_v62  ;;  %v384_v34 = vrot.slane %v8478_v28, 4 }
  0xaf   :  { %v218_v53 = vsel %vm124_vm1, %v14457_v58, %v217_v40  ;;  %v8541_v46 = vrot.slane %v1661_v10, %v8398_v62  ;;  %v14460_v40 = vrot.slane %v8357_v37, 2 }
  0xb0   :  { %v8527_v54 = vpop.permute.xlu1 %148  ;;  %289 = vrot.lane.b32.xlu0 %v213_v48, %s8122_s14  ;;  %v8530_v33 = vpop.permute.xlu0 %146  ;;  %14459 = vst [vmem:[#allocation41_spill] sm:$0xff] %v8550_v57 }
  0xb1   :  { %v225_v13 = vrot.slane %v8527_v54, 2  ;;  %v224_v26 = vrot.slane %v8530_v33, 2  ;;  %14458 = vst [vmem:[#allocation40_spill] sm:$0xff] %v8541_v46  ;;  %v223_v10 = vsel %vm124_vm1, %v14460_v40, %v222_v47  ;;  %v239_v46 = vrot.slane %v8396_v61, 2 }
  0xb3   :  { %v226_v63 = vsel %vm124_vm1, %v224_v26, %v225_v13 }
  0xb4   :  { %v8543_v48 = vpop.permute.xlu1 %152  ;;  %293 = vrot.lane.b32.xlu0 %v218_v53, %s8122_s14  ;;  %299 = vrot.lane.b32.xlu1 %v226_v63, %s8122_s14  ;;  %v8547_v41 = vpop.permute.xlu0 %150  ;;  %v234_v63 = vrot.slane %v8212_v7, 2 }
  0xb5   :  { %v229_v32 = vrot.slane %v8543_v48, 2  ;;  %v227_v58 = vrot.slane %v8547_v41, 2 }
  0xb6   :  { %v236_v26 = vsel %vm124_vm1, %v234_v63, %v235_v43  ;;  %v245_v63 = vrot.slane %v8404_v14, 2 }
  0xb7   :  { %v228_v37 = vsel %vm124_vm1, %v225_v13, %v227_v58  ;;  %v240_v13 = vrot.slane %v8394_v60, 2 }
  0xb8   :  { %v8559_v29 = vpop.permute.xlu1 %156  ;;  %297 = vrot.lane.b32.xlu0 %v223_v10, %s8122_s14  ;;  %v8562_v53 = vpop.permute.xlu0 %154 }
  0xb9   :  { %v230_v31 = vrot.slane %v8562_v53, 2  ;;  %v232_v23 = vrot.slane %v8559_v29, 2 }
  0xbb   :  { %v231_v47 = vsel %vm124_vm1, %v229_v32, %v230_v31  ;;  %v233_v57 = vsel %vm124_vm1, %v230_v31, %v232_v23  ;;  %v241_v23 = vsel %vm124_vm1, %v239_v46, %v240_v13 }
  0xbc   :  { %v8570_v40 = vpop.permute.xlu1 %160  ;;  %301 = vrot.lane.b32.xlu0 %v228_v37, %s8122_s14  ;;  %303 = vrot.lane.b32.xlu1 %v231_v47, %s8122_s14  ;;  %v8574_v10 = vpop.permute.xlu0 %158  ;;  %v238_v37 = vsel %vm124_vm1, %v235_v43, %v237_v52  ;;  %v244_v47 = vrot.slane %v8406_v15, 2  ;;  %v250_v43 = vrot.slane %v8426_v35, 2  ;;  %v249_v52 = vrot.slane %v8428_v36, 2 }
  0xbd   :  { %v242_v8 = vrot.slane %v8574_v10, 2  ;;  %v247_v5 = vrot.slane %v8570_v40, 2 }
  0xbe   :  { %v251_v36 = vsel %vm124_vm1, %v249_v52, %v250_v43 }
  0xbf   :  { %v243_v55 = vsel %vm124_vm1, %v240_v13, %v242_v8  ;;  %v248_v35 = vsel %vm124_vm1, %v245_v63, %v247_v5 }
  0xc0   :  { %v165_v58 = vpop.permute.xlu1 %164  ;;  %305 = vrot.lane.b32.xlu0 %v233_v57, %s8122_s14  ;;  %v163_v32 = vpop.permute.xlu0 %162  ;;  %307 = vrot.lane.b32.xlu1 %v236_v26, %s8122_s14  ;;  %v246_v26 = vsel %vm124_vm1, %v244_v47, %v245_v63 }
  0xc1   :  { %v252_v47 = vrot.slane %v163_v32, 2  ;;  %v257_v13 = vrot.slane %v165_v58, 2 }
  0xc4   :  { %309 = vrot.lane.b32.xlu0 %v238_v37, %s8122_s14  ;;  %v8589_v31 = vpop.permute.xlu0 %166  ;;  %311 = vrot.lane.b32.xlu1 %v241_v23, %s8122_s14  ;;  %v8592_v57 = vpop.permute.xlu1 %168  ;;  %v255_v37 = vrot.slane %v8435_v42, 2  ;;  %v254_v23 = vrot.slane %v8437_v45, 2  ;;  %v253_v45 = vsel %vm124_vm1, %v250_v43, %v252_v47  ;;  %v270_v47 = vrot.slane %v8245_v11, 2 }
  0xc5   :  { %v260_v42 = vrot.slane %v8592_v57, 2 }
  0xc6   :  { %v256_v8 = vsel %vm124_vm1, %v254_v23, %v255_v37  ;;  %v258_v63 = vsel %vm124_vm1, %v255_v37, %v257_v13  ;;  %v269_v23 = vrot.slane %v8248_v12, 2 }
  0xc8   :  { %313 = vrot.lane.b32.xlu0 %v243_v55, %s8122_s14  ;;  %315 = vrot.lane.b32.xlu1 %v246_v26, %s8122_s14  ;;  %v8601_v46 = vpop.permute.xlu1 %172  ;;  %v8605_v44 = vpop.permute.xlu0 %170  ;;  %v259_v26 = vrot.slane %v8589_v31, 2  ;;  %v271_v13 = vsel %vm124_vm1, %v269_v23, %v270_v47 }
  0xc9   :  { %v262_v58 = vrot.slane %v8605_v44, 2 }
  0xca   :  { %v261_v52 = vsel %vm124_vm1, %v259_v26, %v260_v42  ;;  %v272_v26 = vrot.slane %v8236_v9, 2 }
  0xcb   :  { %v263_v59 = vsel %vm124_vm1, %v260_v42, %v262_v58  ;;  %v376_v58 = vrot.slane %v8166_v0, 4 }
  0xcc   :  { %317 = vrot.lane.b32.xlu0 %v248_v35, %s8122_s14  ;;  %319 = vrot.lane.b32.xlu1 %v251_v36, %s8122_s14  ;;  %v8611_v55 = vpop.permute.xlu1 %176  ;;  %v8617_v32 = vpop.permute.xlu0 %174  ;;  %v264_v36 = vrot.slane %v8601_v46, 2 }
  0xcd   :  { %v265_v5 = vrot.slane %v8617_v32, 2 }
  0xd0   :  { %321 = vrot.lane.b32.xlu0 %v253_v45, %s8122_s14  ;;  %323 = vrot.lane.b32.xlu1 %v256_v8, %s8122_s14  ;;  %v8621_v35 = vpop.permute.xlu1 %180  ;;  %v266_v45 = vsel %vm124_vm1, %v264_v36, %v265_v5  ;;  %v267_v8 = vrot.slane %v8611_v55, 2  ;;  %v8646_v38 = vpop.permute.xlu0 %178 }
  0xd2   :  { %v268_v36 = vsel %vm124_vm1, %v265_v5, %v267_v8  ;;  %v277_v5 = vrot.slane %v8646_v38, 2 }
  0xd4   :  { %325 = vrot.lane.b32.xlu0 %v258_v63, %s8122_s14  ;;  %327 = vrot.lane.b32.xlu1 %v261_v52, %s8122_s14  ;;  %v8630_v43 = vpop.permute.xlu1 %184  ;;  %v274_v63 = vrot.slane %v8466_v25, 2  ;;  %v275_v52 = vrot.slane %v8464_v4, 2 }
  0xd6   :  { %v276_v23 = vsel %vm124_vm1, %v274_v63, %v275_v52 }
  0xd8   :  { %329 = vrot.lane.b32.xlu0 %v263_v59, %s8122_s14  ;;  %331 = vrot.lane.b32.xlu1 %v266_v45, %s8122_s14  ;;  %v8639_v37 = vpop.permute.xlu1 %188  ;;  %v273_v59 = vsel %vm124_vm1, %v270_v47, %v272_v26  ;;  %v377_v45 = vrot.slane %v8175_v1, 4  ;;  %v278_v47 = vsel %vm124_vm1, %v275_v52, %v277_v5  ;;  %v382_v26 = vrot.slane %v8328_v21, 4 }
  0xda   :  { %v383_v52 = vsel %vm375_vm2, %v381_v50, %v382_v26  ;;  %v397_v50 = vrot.slane %v8639_v37, 4  ;;  %v401_v37 = vrot.slane %v8530_v33, 4  ;;  %v404_v33 = vrot.slane %v8547_v41, 4 }
  0xdb   :  { %v412_v41 = vrot.slane %v8209_v6, 4 }
  0xdc   :  { %333 = vrot.lane.b32.xlu0 %v268_v36, %s8122_s14  ;;  %335 = vrot.lane.b32.xlu1 %v271_v13, %s8122_s14  ;;  %v8650_v42 = vpop.permute.xlu1 %192  ;;  %v378_v13 = vsel %vm375_vm2, %v376_v58, %v377_v45  ;;  %v379_v36 = vrot.slane %v8192_v2, 4  ;;  %v387_v58 = vrot.slane %v8326_v20, 4  ;;  %v385_v20 = vsel %vm375_vm2, %v382_v26, %v384_v34 }
  0xdd   :  { %v402_v34 = vrot.slane %v8527_v54, 4 }
  0xdf   :  { %v403_v54 = vsel %vm375_vm2, %v401_v37, %v402_v34 }
  0xe0   :  { %337 = vrot.lane.b32.xlu0 %v273_v59, %s8122_s14  ;;  %339 = vrot.lane.b32.xlu1 %v276_v23, %s8122_s14  ;;  %v8659_v8 = vpop.permute.xlu1 %196  ;;  %v183_v59 = vpop.permute.xlu0 %182  ;;  %v380_v23 = vsel %vm375_vm2, %v377_v45, %v379_v36  ;;  %v389_v45 = vrot.slane %v8476_v56, 4  ;;  %v391_v36 = vrot.slane %v8621_v35, 4 }
  0xe1   :  { %v392_v21 = vrot.slane %v183_v59, 4 }
  0xe3   :  { %v393_v56 = vsel %vm375_vm2, %v391_v36, %v392_v21 }
  0xe4   :  { %341 = vrot.lane.b32.xlu0 %v278_v47, %s8122_s14  ;;  %456 = vrot.lane.b32.xlu1 %v378_v13, %s8125_s19  ;;  %v8667_v63 = vpop.permute.xlu1 %200  ;;  %v187_v13 = vpop.permute.xlu0 %186  ;;  %v388_v47 = vsel %vm375_vm2, %v386_v30, %v387_v58  ;;  %v390_v30 = vsel %vm375_vm2, %v387_v58, %v389_v45  ;;  %v407_v45 = vrot.slane %v8562_v53, 4  ;;  %v409_v53 = vrot.slane %v8559_v29, 4 }
  0xe5   :  { %v396_v28 = vrot.slane %v187_v13, 4  ;;  %v406_v13 = vrot.slane %v8543_v48, 4  ;;  %v417_v29 = vrot.slane %v8394_v60, 4 }
  0xe6   :  { %v410_v37 = vsel %vm375_vm2, %v407_v45, %v409_v53 }
  0xe8   :  { %458 = vrot.lane.b32.xlu0 %v380_v23, %s8125_s19  ;;  %460 = vrot.lane.b32.xlu1 %v383_v52, %s8125_s19  ;;  %v8677_v5 = vpop.permute.xlu1 %279  ;;  %v394_v52 = vrot.slane %v8630_v43, 4  ;;  %v191_v35 = vpop.permute.xlu0 %190 }
  0xe9   :  { %v399_v59 = vrot.slane %v191_v35, 4 }
  0xea   :  { %v395_v43 = vsel %vm375_vm2, %v392_v21, %v394_v52  ;;  %v411_v52 = vrot.slane %v8212_v7, 4 }
  0xeb   :  { %v400_v36 = vsel %vm375_vm2, %v397_v50, %v399_v59  ;;  %v416_v59 = vrot.slane %v8396_v61, 4 }
  0xec   :  { %462 = vrot.lane.b32.xlu0 %v385_v20, %s8125_s19  ;;  %464 = vrot.lane.b32.xlu1 %v388_v47, %s8125_s19  ;;  %v398_v20 = vsel %vm375_vm2, %v396_v28, %v397_v50  ;;  %v405_v50 = vsel %vm375_vm2, %v402_v34, %v404_v33  ;;  %v413_v35 = vsel %vm375_vm2, %v411_v52, %v412_v41  ;;  %v195_v34 = vpop.permute.xlu0 %194 }
  0xed   :  { %v427_v52 = vrot.slane %v195_v34, 4  ;;  %v441_v34 = vrot.slane %v8601_v46, 4 }
  0xee   :  { %v8686_v23 = vpop.permute.xlu1 %283 }
  0xf0   :  { %466 = vrot.lane.b32.xlu0 %v390_v30, %s8125_s19  ;;  %468 = vrot.lane.b32.xlu1 %v393_v56, %s8125_s19  ;;  %v408_v56 = vsel %vm375_vm2, %v406_v13, %v407_v45  ;;  %v422_v13 = vrot.slane %v8404_v14, 4  ;;  %v199_v33 = vpop.permute.xlu0 %198 }
  0xf1   :  { %v431_v53 = vrot.slane %v199_v33, 4  ;;  %v14054_v33 = vmov 0.0  }
  0xf2   :  { %v8696_v26 = vpop.permute.xlu1 %287  ;;  %5722 = vmatprep.mubr.f32.mxu0 %v14054_v33  ;;  %5989 = vmatprep.mubr.f32.mxu1 %v14054_v33 }
  0xf3   :  { %v836_v58 = vcombine.low %v8677_v5, %v8696_v26 }
  0xf4   :  { %470 = vrot.lane.b32.xlu0 %v395_v43, %s8125_s19  ;;  %472 = vrot.lane.b32.xlu1 %v398_v20, %s8125_s19  ;;  %v414_v20 = vrot.slane %v8199_v3, 4  ;;  %v418_v3 = vsel %vm375_vm2, %v416_v59, %v417_v29 }
  0xf5   :  { %v8715_v28 = vrot.slane %v836_v58, %v8339_v27  ;;  %v421_v58 = vrot.slane %v8406_v15, 4 }
  0xf6   :  { %v8704_v47 = vpop.permute.xlu1 %291  ;;  %v415_v43 = vsel %vm375_vm2, %v412_v41, %v414_v20  ;;  %v436_v20 = vrot.slane %v8589_v31, 4  ;;  %v446_v31 = vrot.slane %v8248_v12, 4 }
  0xf7   :  { %v852_v21 = vcombine.low %v8686_v23, %v8704_v47  ;;  %v423_v45 = vsel %vm375_vm2, %v421_v58, %v422_v13 }
  0xf8   :  { %474 = vrot.lane.b32.xlu0 %v400_v36, %s8125_s19  ;;  %476 = vrot.lane.b32.xlu1 %v403_v54, %s8125_s19  ;;  %v419_v54 = vrot.slane %v8574_v10, 4  ;;  %v426_v36 = vrot.slane %v8650_v42, 4  ;;  %v432_v10 = vrot.slane %v8667_v63, 4 }
  0xf9   :  { %v8718_v48 = vrot.slane %v852_v21, %v8339_v27  ;;  %v424_v21 = vrot.slane %v8570_v40, 4  ;;  %v203_v40 = vpop.permute.xlu0 %202 }
  0xfa   :  { %v420_v41 = vsel %vm375_vm2, %v417_v29, %v419_v54  ;;  %v433_v42 = vsel %vm375_vm2, %v431_v53, %v432_v10  ;;  %v434_v59 = vrot.slane %v203_v40, 4  ;;  %v439_v29 = vrot.slane %v8605_v44, 4 }
  0xfb   :  { %v901_v30 = vcombine.high %v8715_v28, %v8718_v48 }
  0xfc   :  { %478 = vrot.lane.b32.xlu0 %v405_v50, %s8125_s19  ;;  %480 = vrot.lane.b32.xlu1 %v408_v56, %s8125_s19  ;;  %v429_v50 = vrot.slane %v8659_v8, 4  ;;  %v425_v56 = vsel %vm375_vm2, %v422_v13, %v424_v21  ;;  %v435_v58 = vsel %vm375_vm2, %v432_v10, %v434_v59  ;;  %v444_v13 = vrot.slane %v8611_v55, 4 }
  0xfd   :  { %v8775_v46 = vpop.permute.xlu0 %281  ;;  %v452_v21 = vrot.slane %v8464_v4, 4  ;;  %v454_v10 = vrot.slane %v8646_v38, 4  ;;  %v8803_v38 = vpop.permute.xlu1 %295 }
  0xfe   :  { %v430_v63 = vsel %vm375_vm2, %v427_v52, %v429_v50  ;;  %14461 = vst [vmem:[#allocation42_spill] sm:$0xff] %v8775_v46 }
 0x100   :  { %482 = vrot.lane.b32.xlu0 %v410_v37, %s8125_s19  ;;  %484 = vrot.lane.b32.xlu1 %v413_v35, %s8125_s19  ;;  %v428_v35 = vsel %vm375_vm2, %v426_v36, %v427_v52  ;;  %v437_v37 = vrot.slane %v8592_v57, 4  ;;  %v447_v57 = vrot.slane %v8245_v11, 4  ;;  %v553_v52 = vrot.slane %v8166_v0, 6 }
 0x101   :  { %v455_v0 = vsel %vm375_vm2, %v452_v21, %v454_v10  ;;  %v8859_v10 = vrot.slane %v901_v30, %v8398_v62 }
 0x102   :  { %v438_v8 = vsel %vm375_vm2, %v436_v20, %v437_v37  ;;  %v440_v54 = vsel %vm375_vm2, %v437_v37, %v439_v29  ;;  %v829_v37 = vcombine.high %v8496_v49, %v8499_v39 }
 0x104   :  { %486 = vrot.lane.b32.xlu0 %v415_v43, %s8125_s19  ;;  %488 = vrot.lane.b32.xlu1 %v418_v3, %s8125_s19  ;;  %v442_v43 = vrot.slane %v8617_v32, 4  ;;  %v448_v32 = vsel %vm375_vm2, %v446_v31, %v447_v57  ;;  %v449_v3 = vrot.slane %v8236_v9, 4  ;;  %v554_v9 = vrot.slane %v8175_v1, 6 }
 0x105   :  { %v900_v31 = vcombine.low %v8715_v28, %v8718_v48 }
 0x106   :  { %v443_v44 = vsel %vm375_vm2, %v441_v34, %v442_v43  ;;  %v445_v55 = vsel %vm375_vm2, %v442_v43, %v444_v13  ;;  %v450_v36 = vsel %vm375_vm2, %v447_v57, %v449_v3  ;;  %v555_v50 = vsel %vm552_vm3, %v553_v52, %v554_v9 }
 0x107   :  { %v8850_v52 = vrot.slane %v900_v31, %v8398_v62 }
 0x108   :  { %490 = vrot.lane.b32.xlu0 %v420_v41, %s8125_s19  ;;  %492 = vrot.lane.b32.xlu1 %v423_v45, %s8125_s19  ;;  %v451_v45 = vrot.slane %v8466_v25, 4 }
 0x109   :  { %14470 = vst [vmem:[#allocation51_spill] sm:$0xff] %v8850_v52 }
 0x10a   :  { %v453_v53 = vsel %vm375_vm2, %v451_v45, %v452_v21 }
 0x10c   :  { %494 = vrot.lane.b32.xlu0 %v425_v56, %s8125_s19  ;;  %496 = vrot.lane.b32.xlu1 %v428_v35, %s8125_s19  ;;  %v556_v56 = vrot.slane %v8192_v2, 6 }
 0x10e   :  { %v557_v1 = vsel %vm552_vm3, %v554_v9, %v556_v56 }
 0x110   :  { %498 = vrot.lane.b32.xlu0 %v430_v63, %s8125_s19  ;;  %500 = vrot.lane.b32.xlu1 %v433_v42, %s8125_s19  ;;  %v693_v42 = vcombine.high %v8409_v18, %v8412_v19 }
 0x114   :  { %502 = vrot.lane.b32.xlu0 %v435_v58, %s8125_s19  ;;  %504 = vrot.lane.b32.xlu1 %v438_v8, %s8125_s19 }
 0x118   :  { %506 = vrot.lane.b32.xlu0 %v440_v54, %s8125_s19  ;;  %508 = vrot.lane.b32.xlu1 %v443_v44, %s8125_s19 }
 0x11c   :  { %510 = vrot.lane.b32.xlu0 %v445_v55, %s8125_s19  ;;  %512 = vrot.lane.b32.xlu1 %v448_v32, %s8125_s19 }
 0x11e   :  { %v8789_v41 = vpop.permute.xlu0 %285 }
 0x11f   :  { %14462 = vst [vmem:[#allocation43_spill] sm:$0xff] %v8789_v41 }
 0x120   :  { %514 = vrot.lane.b32.xlu0 %v450_v36, %s8125_s19  ;;  %516 = vrot.lane.b32.xlu1 %v453_v53, %s8125_s19 }
 0x122   :  { %v8797_v35 = vpop.permute.xlu0 %289 }
 0x123   :  { %14463 = vst [vmem:[#allocation44_spill] sm:$0xff] %v8797_v35  ;;  %v1701_v54 = vcombine.low %v8775_v46, %v8797_v35 }
 0x124   :  { %518 = vrot.lane.b32.xlu0 %v455_v0, %s8125_s19  ;;  %558 = vrot.lane.b32.xlu1 %v555_v50, %s8127_s23 }
 0x125   :  { %v8865_v50 = vrot.slane %v1701_v54, %v8339_v27 }
 0x126   :  { %v8805_v40 = vpop.permute.xlu0 %293  ;;  %v8811_v2 = vpop.permute.xlu1 %299 }
 0x127   :  { %14464 = vst [vmem:[#allocation45_spill] sm:$0xff] %v8805_v40  ;;  %v1717_v58 = vcombine.low %v8789_v41, %v8805_v40  ;;  %14472 = vst [vmem:[#allocation53_spill] sm:$0xff] %v8865_v50 }
 0x128   :  { %560 = vrot.lane.b32.xlu0 %v557_v1, %s8127_s23  ;;  %2301 = vrot.lane.b32.xlu1 %v693_v42, %s8135_s28 }
 0x129   :  { %v8845_v21 = vrot.slane %v1717_v58, %v8339_v27 }
 0x12a   :  { %v8813_v20 = vpop.permute.xlu0 %297 }
 0x12b   :  { %14465 = vst [vmem:[#allocation46_spill] sm:$0xff] %v8813_v20  ;;  %14469 = vst [vmem:[#allocation50_spill] sm:$0xff] %v8845_v21 }
 0x12c   :  { %2303 = vrot.lane.b32.xlu0 %v829_v37, %s8135_s28 }
 0x12e   :  { %v8818_v59 = vpop.permute.xlu1 %303  ;;  %v8820_v63 = vpop.permute.xlu0 %301 }
 0x12f   :  { %14466 = vst [vmem:[#allocation47_spill] sm:$0xff] %v8820_v63  ;;  %v868_v8 = vcombine.low %v8803_v38, %v8818_v59 }
 0x131   :  { %v876_v57 = vrot.slane %v868_v8, %v8339_v27  ;;  %v1765_v8 = vcombine.low %v8865_v50, %v8845_v21 }
 0x132   :  { %v8824_v29 = vpop.permute.xlu0 %305  ;;  %v8826_v34 = vpop.permute.xlu1 %307 }
 0x133   :  { %14467 = vst [vmem:[#allocation48_spill] sm:$0xff] %v8824_v29  ;;  %v884_v43 = vcombine.low %v8811_v2, %v8826_v34  ;;  %v1733_v44 = vcombine.low %v8813_v20, %v8824_v29 }
 0x135   :  { %v892_v13 = vrot.slane %v884_v43, %v8339_v27  ;;  %v8868_v56 = vrot.slane %v1733_v44, %v8339_v27 }
 0x136   :  { %v8840_v32 = vpop.permute.xlu0 %309  ;;  %v8842_v3 = vpop.permute.xlu1 %311 }
 0x137   :  { %14468 = vst [vmem:[#allocation49_spill] sm:$0xff] %v8840_v32  ;;  %v932_v55 = vcombine.low %v876_v57, %v892_v13  ;;  %v933_v45 = vcombine.high %v876_v57, %v892_v13  ;;  %v1749_v36 = vcombine.low %v8820_v63, %v8840_v32  ;;  %14473 = vst [vmem:[#allocation54_spill] sm:$0xff] %v8868_v56 }
 0x138   :  { %v8898_v13 = vrot.slane %v1765_v8, %v8398_v62 }
 0x139   :  { %v8853_v9 = vrot.slane %v932_v55, %v8398_v62  ;;  %v8862_v53 = vrot.slane %v933_v45, %v8398_v62  ;;  %v8871_v0 = vrot.slane %v1749_v36, %v8339_v27 }
 0x13a   :  { %v8873_v1 = vpop.permute.xlu0 %313  ;;  %v8875_v42 = vpop.permute.xlu1 %315  ;;  %14478 = vst [vmem:[#allocation59_spill] sm:$0xff] %v8898_v13 }
 0x13b   :  { %14471 = vst [vmem:[#allocation52_spill] sm:$0xff] %v8853_v9  ;;  %14474 = vst [vmem:[#allocation55_spill] sm:$0xff] %v8871_v0  ;;  %v965_v28 = vcombine.high %v8850_v52, %v8853_v9  ;;  %v1797_v43 = vcombine.low %v8868_v56, %v8871_v0 }
 0x13c   :  { %14475 = vst [vmem:[#allocation56_spill] sm:$0xff] %v8873_v1 }
 0x13d   :  { %2305 = vrot.lane.b32.xlu1 %v965_v28, %s8135_s28  ;;  %v8895_v57 = vrot.slane %v1797_v43, %v8398_v62 }
 0x13e   :  { %v8890_v58 = vpop.permute.xlu0 %317  ;;  %v8892_v31 = vpop.permute.xlu1 %319 }
 0x13f   :  { %14476 = vst [vmem:[#allocation57_spill] sm:$0xff] %v8890_v58  ;;  %14477 = vst [vmem:[#allocation58_spill] sm:$0xff] %v8895_v57  ;;  %v972_v54 = vcombine.low %v8842_v3, %v8892_v31 }
 0x141   :  { %v980_v28 = vrot.slane %v972_v54, %v8339_v27 }
 0x142   :  { %v8902_v44 = vpop.permute.xlu0 %321  ;;  %v8904_v55 = vpop.permute.xlu1 %323 }
 0x143   :  { %14479 = vst [vmem:[#allocation60_spill] sm:$0xff] %v8902_v44  ;;  %v988_v36 = vcombine.low %v8875_v42, %v8904_v55  ;;  %v1837_v60 = vcombine.low %v8873_v1, %v8902_v44 }
 0x145   :  { %v996_v43 = vrot.slane %v988_v36, %v8339_v27 }
 0x146   :  { %v8912_v30 = vpop.permute.xlu0 %325  ;;  %v8914_v8 = vpop.permute.xlu1 %327 }
 0x147   :  { %14480 = vst [vmem:[#allocation61_spill] sm:$0xff] %v8912_v30  ;;  %v1037_v37 = vcombine.high %v980_v28, %v996_v43  ;;  %v1853_v49 = vcombine.low %v8890_v58, %v8912_v30  ;;  %v1036_v9 = vcombine.low %v980_v28, %v996_v43 }
 0x149   :  { %v8945_v20 = vrot.slane %v1853_v49, %v8339_v27  ;;  %v8950_v28 = vrot.slane %v1036_v9, %v8398_v62 }
 0x14a   :  { %v8916_v48 = vpop.permute.xlu0 %329  ;;  %v8918_v33 = vpop.permute.xlu1 %331 }
 0x14b   :  { %14481 = vst [vmem:[#allocation62_spill] sm:$0xff] %v8916_v48  ;;  %14486 = vst [vmem:[#allocation67_spill] sm:$0xff] %v8945_v20 }
 0x14c   :  { %14487 = vst [vmem:[#allocation68_spill] sm:$0xff] %v8950_v28 }
 0x14e   :  { %v8920_v19 = vpop.permute.xlu0 %333  ;;  %v8922_v18 = vpop.permute.xlu1 %335 }
 0x14f   :  { %14482 = vst [vmem:[#allocation63_spill] sm:$0xff] %v8920_v19  ;;  %v1004_v45 = vcombine.low %v8914_v8, %v8922_v18 }
 0x151   :  { %v1012_v52 = vrot.slane %v1004_v45, %v8339_v27 }
 0x152   :  { %v8926_v39 = vpop.permute.xlu0 %337  ;;  %v8928_v54 = vpop.permute.xlu1 %339 }
 0x153   :  { %14483 = vst [vmem:[#allocation64_spill] sm:$0xff] %v8926_v39  ;;  %v1020_v36 = vcombine.low %v8918_v33, %v8928_v54  ;;  %v1869_v11 = vcombine.low %v8916_v48, %v8926_v39 }
 0x155   :  { %v1028_v6 = vrot.slane %v1020_v36, %v8339_v27  ;;  %v8956_v36 = vrot.slane %v1037_v37, %v8398_v62  ;;  %v8965_v49 = vrot.slane %v1869_v11, %v8339_v27 }
 0x156   :  { %v8940_v14 = vpop.permute.xlu0 %341  ;;  %v8942_v4 = vpop.permute.xlu1 %456 }
 0x157   :  { %14484 = vst [vmem:[#allocation65_spill] sm:$0xff] %v8940_v14  ;;  %14485 = vst [vmem:[#allocation66_spill] sm:$0xff] %v8942_v4  ;;  %v1068_v46 = vcombine.low %v1012_v52, %v1028_v6  ;;  %v1069_v35 = vcombine.high %v1012_v52, %v1028_v6  ;;  %v1885_v45 = vcombine.low %v8920_v19, %v8940_v14 }
 0x158   :  { %v8962_v6 = vrot.slane %v1837_v60, %v8339_v27  ;;  %14490 = vst [vmem:[#allocation71_spill] sm:$0xff] %v8965_v49 }
 0x159   :  { %v8953_v43 = vrot.slane %v1068_v46, %v8398_v62  ;;  %v8959_v29 = vrot.slane %v1069_v35, %v8398_v62  ;;  %v8968_v52 = vrot.slane %v1885_v45, %v8339_v27 }
 0x15a   :  { %14489 = vst [vmem:[#allocation70_spill] sm:$0xff] %v8962_v6  ;;  %v8970_v9 = vpop.permute.xlu0 %458  ;;  %v8972_v41 = vpop.permute.xlu1 %460  ;;  %v1901_v11 = vcombine.low %v8962_v6, %v8945_v20 }
 0x15b   :  { %14488 = vst [vmem:[#allocation69_spill] sm:$0xff] %v8953_v43  ;;  %14491 = vst [vmem:[#allocation72_spill] sm:$0xff] %v8968_v52  ;;  %v1101_v46 = vcombine.high %v8950_v28, %v8953_v43  ;;  %v1933_v37 = vcombine.low %v8965_v49, %v8968_v52 }
 0x15c   :  { %14492 = vst [vmem:[#allocation73_spill] sm:$0xff] %v8970_v9  ;;  %v8995_v60 = vrot.slane %v1901_v11, %v8398_v62 }
 0x15d   :  { %2307 = vrot.lane.b32.xlu0 %v1101_v46, %s8135_s28  ;;  %v8992_v35 = vrot.slane %v1933_v37, %v8398_v62 }
 0x15e   :  { %v8987_v40 = vpop.permute.xlu0 %462  ;;  %v8989_v63 = vpop.permute.xlu1 %464  ;;  %14496 = vst [vmem:[#allocation77_spill] sm:$0xff] %v8995_v60 }
 0x15f   :  { %14493 = vst [vmem:[#allocation74_spill] sm:$0xff] %v8987_v40  ;;  %14494 = vst [vmem:[#allocation75_spill] sm:$0xff] %v8989_v63  ;;  %v1108_v39 = vcombine.low %v8942_v4, %v8989_v63 }
 0x160   :  { %14495 = vst [vmem:[#allocation76_spill] sm:$0xff] %v8992_v35 }
 0x161   :  { %v9029_v14 = vrot.slane %v1108_v39, %v8339_v27 }
 0x162   :  { %v8997_v32 = vpop.permute.xlu0 %466  ;;  %v8999_v1 = vpop.permute.xlu1 %468 }
 0x163   :  { %14497 = vst [vmem:[#allocation78_spill] sm:$0xff] %v8997_v32  ;;  %v1124_v37 = vcombine.low %v8972_v41, %v8999_v1  ;;  %v1973_v50 = vcombine.low %v8970_v9, %v8997_v32 }
 0x165   :  { %v9020_v46 = vrot.slane %v1124_v37, %v8339_v27  ;;  %v9065_v32 = vrot.slane %v1973_v50, %v8339_v27 }
 0x166   :  { %v9003_v44 = vpop.permute.xlu0 %470  ;;  %v9005_v45 = vpop.permute.xlu1 %472 }
 0x167   :  { %14498 = vst [vmem:[#allocation79_spill] sm:$0xff] %v9003_v44  ;;  %14499 = vst [vmem:[#allocation80_spill] sm:$0xff] %v9005_v45  ;;  %v1989_v20 = vcombine.low %v8987_v40, %v9003_v44  ;;  %v1172_v37 = vcombine.low %v9029_v14, %v9020_v46 }
 0x168   :  { %14509 = vst [vmem:[#allocation90_spill] sm:$0xff] %v9065_v32 }
 0x169   :  { %v9054_v44 = vrot.slane %v1989_v20, %v8339_v27 }
 0x16a   :  { %v9007_v43 = vpop.permute.xlu0 %474  ;;  %v9009_v28 = vpop.permute.xlu1 %476 }
 0x16b   :  { %14500 = vst [vmem:[#allocation81_spill] sm:$0xff] %v9007_v43  ;;  %14506 = vst [vmem:[#allocation87_spill] sm:$0xff] %v9054_v44 }
 0x16e   :  { %v9013_v11 = vpop.permute.xlu0 %478  ;;  %v9015_v48 = vpop.permute.xlu1 %480 }
 0x16f   :  { %14501 = vst [vmem:[#allocation82_spill] sm:$0xff] %v9013_v11  ;;  %14502 = vst [vmem:[#allocation83_spill] sm:$0xff] %v9015_v48  ;;  %v1140_v58 = vcombine.low %v9005_v45, %v9015_v48 }
 0x171   :  { %v9038_v49 = vrot.slane %v1140_v58, %v8339_v27 }
 0x172   :  { %v9024_v30 = vpop.permute.xlu0 %482  ;;  %v9026_v19 = vpop.permute.xlu1 %484 }
 0x173   :  { %14503 = vst [vmem:[#allocation84_spill] sm:$0xff] %v9024_v30  ;;  %v1156_v6 = vcombine.low %v9009_v28, %v9026_v19  ;;  %v2005_v39 = vcombine.low %v9007_v43, %v9024_v30 }
 0x175   :  { %v9041_v52 = vrot.slane %v1156_v6, %v8339_v27  ;;  %v9059_v6 = vrot.slane %v1172_v37, %v8398_v62  ;;  %v9068_v43 = vrot.slane %v2005_v39, %v8339_v27 }
 0x176   :  { %v9047_v21 = vpop.permute.xlu0 %486  ;;  %v9049_v56 = vpop.permute.xlu1 %488 }
 0x177   :  { %14504 = vst [vmem:[#allocation85_spill] sm:$0xff] %v9047_v21  ;;  %14505 = vst [vmem:[#allocation86_spill] sm:$0xff] %v9049_v56  ;;  %v1204_v40 = vcombine.low %v9038_v49, %v9041_v52  ;;  %v2021_v58 = vcombine.low %v9013_v11, %v9047_v21 }
 0x178   :  { %14507 = vst [vmem:[#allocation88_spill] sm:$0xff] %v9059_v6  ;;  %14510 = vst [vmem:[#allocation91_spill] sm:$0xff] %v9068_v43 }
 0x179   :  { %v9062_v9 = vrot.slane %v1204_v40, %v8398_v62  ;;  %v9071_v30 = vrot.slane %v2021_v58, %v8339_v27  ;;  %v2037_v40 = vcombine.low %v9065_v32, %v9054_v44 }
 0x17a   :  { %v9073_v20 = vpop.permute.xlu0 %490  ;;  %v9075_v0 = vpop.permute.xlu1 %492 }
 0x17b   :  { %14508 = vst [vmem:[#allocation89_spill] sm:$0xff] %v9062_v9  ;;  %14511 = vst [vmem:[#allocation92_spill] sm:$0xff] %v9071_v30  ;;  %v1237_v37 = vcombine.high %v9059_v6, %v9062_v9  ;;  %v2069_v50 = vcombine.low %v9068_v43, %v9071_v30  ;;  %v9094_v60 = vrot.slane %v2037_v40, %v8398_v62 }
 0x17c   :  { %14512 = vst [vmem:[#allocation93_spill] sm:$0xff] %v9073_v20  ;;  %14513 = vst [vmem:[#allocation94_spill] sm:$0xff] %v9075_v0 }
 0x17d   :  { %2309 = vrot.lane.b32.xlu1 %v1237_v37, %s8135_s28  ;;  %v9091_v21 = vrot.slane %v2069_v50, %v8398_v62  ;;  %14517 = vst [vmem:[#allocation98_spill] sm:$0xff] %v9094_v60 }
 0x17e   :  { %v9086_v58 = vpop.permute.xlu0 %494  ;;  %v9088_v11 = vpop.permute.xlu1 %496 }
 0x17f   :  { %14514 = vst [vmem:[#allocation95_spill] sm:$0xff] %v9086_v58  ;;  %14515 = vst [vmem:[#allocation96_spill] sm:$0xff] %v9088_v11  ;;  %v1244_v30 = vcombine.low %v9049_v56, %v9088_v11 }
 0x180   :  { %14516 = vst [vmem:[#allocation97_spill] sm:$0xff] %v9091_v21 }
 0x181   :  { %v1252_v4 = vrot.slane %v1244_v30, %v8339_v27 }
 0x182   :  { %v9096_v35 = vpop.permute.xlu0 %498  ;;  %v9098_v32 = vpop.permute.xlu1 %500 }
 0x183   :  { %14518 = vst [vmem:[#allocation99_spill] sm:$0xff] %v9096_v35  ;;  %14519 = vst [vmem:[#allocation100_spill] sm:$0xff] %v9098_v32  ;;  %v1260_v40 = vcombine.low %v9075_v0, %v9098_v32 }
 0x185   :  { %v1268_v13 = vrot.slane %v1260_v40, %v8339_v27 }
 0x186   :  { %v9102_v44 = vpop.permute.xlu0 %502  ;;  %v9104_v39 = vpop.permute.xlu1 %504 }
 0x187   :  { %14520 = vst [vmem:[#allocation101_spill] sm:$0xff] %v9102_v44  ;;  %14521 = vst [vmem:[#allocation102_spill] sm:$0xff] %v9104_v39  ;;  %v1308_v11 = vcombine.low %v1252_v4, %v1268_v13 }
 0x18a   :  { %v9106_v9 = vpop.permute.xlu0 %506  ;;  %v9108_v6 = vpop.permute.xlu1 %508 }
 0x18b   :  { %14522 = vst [vmem:[#allocation103_spill] sm:$0xff] %v9106_v9 }
 0x18e   :  { %v9110_v50 = vpop.permute.xlu0 %510  ;;  %v9112_v43 = vpop.permute.xlu1 %512 }
 0x18f   :  { %14523 = vst [vmem:[#allocation104_spill] sm:$0xff] %v9110_v50  ;;  %14524 = vst [vmem:[#allocation105_spill] sm:$0xff] %v9112_v43  ;;  %v1276_v37 = vcombine.low %v9104_v39, %v9112_v43  ;;  %v2125_v43 = vcombine.low %v9086_v58, %v9102_v44  ;;  %v9160_v44 = vrot.slane %v1308_v11, %v8398_v62 }
 0x190   :  { %v1205_v11 = vcombine.high %v9038_v49, %v9041_v52  ;;  %v14532_v49 = vld [vmem:[#allocation36_spill] sm:$0xff] }
 0x191   :  { %v1284_v63 = vrot.slane %v1276_v37, %v8339_v27 }
 0x192   :  { %v9120_v60 = vpop.permute.xlu0 %514  ;;  %v9122_v21 = vpop.permute.xlu1 %516  ;;  %v9196_v52 = vrot.slane %v1205_v11, %v8398_v62  ;;  %v14539_v11 = vcombine.low %v8956_v36, %v8959_v29 }
 0x193   :  { %14525 = vst [vmem:[#allocation106_spill] sm:$0xff] %v9120_v60  ;;  %v1292_v57 = vcombine.low %v9108_v6, %v9122_v21  ;;  %v2141_v40 = vcombine.low %v9106_v9, %v9120_v60  ;;  %v9154_v9 = vrot.slane %v2125_v43, %v8339_v27 }
 0x195   :  { %v1300_v0 = vrot.slane %v1292_v57, %v8339_v27  ;;  %v2109_v57 = vcombine.low %v9073_v20, %v9096_v35  ;;  %v9157_v60 = vrot.slane %v2141_v40, %v8339_v27  ;;  %v14530_v35 = vmov 0.0  }
 0x196   :  { %v9130_v32 = vpop.permute.xlu0 %518  ;;  %v9132_v56 = vpop.permute.xlu1 %558 }
 0x197   :  { %14526 = vst [vmem:[#allocation107_spill] sm:$0xff] %v9130_v32  ;;  %v1340_v39 = vcombine.low %v1284_v63, %v1300_v0  ;;  %v2157_v45 = vcombine.low %v9110_v50, %v9130_v32  ;;  %v1387_v30 = vrot.slane %v9132_v56, %v8339_v27  ;;  %14529 = vst [vmem:[#allocation110_spill] sm:$0xff] %v9157_v60 }
 0x198   :  { %v9163_v20 = vrot.slane %v2109_v57, %v8339_v27  ;;  %v1341_v40 = vcombine.high %v1284_v63, %v1300_v0  ;;  %v14533_v63 = vcombine.low %v8502_v51, %v14532_v49 }
 0x199   :  { %v9145_v37 = vrot.slane %v2157_v45, %v8339_v27  ;;  %v9148_v48 = vrot.slane %v1340_v39, %v8398_v62  ;;  %v9151_v58 = vrot.slane %v1387_v30, %v8398_v62 }
 0x19a   :  { %v2173_v43 = vcombine.low %v9163_v20, %v9154_v9 }
 0x19b   :  { %14527 = vst [vmem:[#allocation108_spill] sm:$0xff] %v9148_v48  ;;  %14528 = vst [vmem:[#allocation109_spill] sm:$0xff] %v9151_v58  ;;  %v2205_v45 = vcombine.low %v9157_v60, %v9145_v37  ;;  %v1373_v39 = vcombine.high %v9160_v44, %v9148_v48  ;;  %v1425_v50 = vcombine.high %v9151_v58, %v14530_v35 }
 0x19c   :  { %v1173_v58 = vcombine.high %v9029_v14, %v9020_v46  ;;  %v1309_v60 = vcombine.high %v1252_v4, %v1268_v13  ;;  %v9193_v0 = vrot.slane %v2173_v43, %v8398_v62  ;;  %v9199_v14 = vrot.slane %v1341_v40, %v8398_v62  ;;  %v14534_v13 = vld [vmem:[#allocation8_spill] sm:$0xff] }
 0x19d   :  { %2311 = vrot.lane.b32.xlu0 %v1373_v39, %s8135_s28  ;;  %2313 = vrot.lane.b32.xlu1 %v1425_v50, %s8135_s28  ;;  %v9178_v57 = vrot.slane %v2205_v45, %v8398_v62  ;;  %v14531_v39 = vcombine.low %v8418_v24, %v8415_v22  ;;  %v581_v46 = vcombine.high %v8320_v17, %v14534_v13  ;;  %v14535_v50 = vld [vmem:[#allocation14_spill] sm:$0xff] }
 0x19e   :  { %v14536_v45 = vld [vmem:[#allocation10_spill] sm:$0xff]  ;;  %v14538_v43 = vcombine.low %v8859_v10, %v8862_v53  ;;  %v1187_v40 = vrot.slane %v1173_v58, %v8398_v62  ;;  %v9219_v17 = vrot.slane %v1309_v60, %v8398_v62  ;;  %v1395_v4 = vcombine.high %v1387_v30, %v14530_v35 }
 0x19f   :  { %v8115_v13 = vld [vmem:[%s14011_s0] sm:$0xff]  ;;  %v9234_v58 = vrot.slane %v581_v46, %v8339_v27  ;;  %v14543_v46 = vld [vmem:[#allocation21_spill] sm:$0xff] }
 0x1a0   :  { %v1374_v60 = vcombine.low %v9219_v17, %v9199_v14 }
 0x1a1   :  { %2329 = vrot.lane.b32.xlu0 %v14531_v39, %s8136_s29  ;;  %2331 = vrot.lane.b32.xlu1 %v14533_v63, %s8136_s29  ;;  %v597_v39 = vcombine.high %v14536_v45, %v14535_v50  ;;  %v14537_v63 = vld [vmem:[#allocation29_spill] sm:$0xff]  ;;  %v14540_v50 = vld [vmem:[#allocation12_spill] sm:$0xff] }
 0x1a2   :  { %v749_v32 = vcombine.high %v14537_v63, %v8466_v25  ;;  %v565_v25 = vcombine.high %v8115_v13, %v8318_v16  ;;  %v613_v45 = vcombine.high %v14540_v50, %v8212_v7  ;;  %v14541_v63 = vld [vmem:[#allocation27_spill] sm:$0xff]  ;;  %v14542_v16 = vld [vmem:[#allocation24_spill] sm:$0xff] }
 0x1a3   :  { %v9237_v48 = vrot.slane %v597_v39, %v8339_v27  ;;  %v717_v13 = vcombine.high %v8406_v15, %v14542_v16  ;;  %v701_v39 = vcombine.high %v8396_v61, %v14543_v46  ;;  %v1409_v15 = vrot.slane %v1395_v4, %v8398_v62  ;;  %v14548_v16 = vld [vmem:[#allocation80_spill] sm:$0xff] }
 0x1a4   :  { %v9242_v7 = vrot.slane %v749_v32, %v8339_v27  ;;  %v9250_v30 = vrot.slane %v613_v45, %v8339_v27  ;;  %v14544_v61 = vcombine.high %v8418_v24, %v8415_v22  ;;  %v853_v22 = vcombine.high %v8686_v23, %v8704_v47  ;;  %v14549_v46 = vld [vmem:[#allocation100_spill] sm:$0xff] }
 0x1a5   :  { %2333 = vrot.lane.b32.xlu0 %v14538_v43, %s8136_s29  ;;  %2335 = vrot.lane.b32.xlu1 %v14539_v11, %s8136_s29  ;;  %v733_v43 = vcombine.high %v14541_v63, %v8248_v12  ;;  %v1238_v11 = vcombine.low %v1187_v40, %v9196_v52  ;;  %v9247_v12 = vrot.slane %v565_v25, %v8339_v27 }
 0x1a6   :  { %v885_v63 = vcombine.high %v8811_v2, %v8826_v34  ;;  %v676_v25 = vcombine.low %v9237_v48, %v9250_v30  ;;  %v9265_v45 = vrot.slane %v717_v13, %v8339_v27  ;;  %v869_v2 = vcombine.high %v8803_v38, %v8818_v59 }
 0x1a7   :  { %v9255_v50 = vrot.slane %v733_v43, %v8339_v27  ;;  %v644_v32 = vcombine.low %v9247_v12, %v9234_v58  ;;  %v1021_v34 = vcombine.high %v8918_v33, %v8928_v54  ;;  %v9279_v43 = vrot.slane %v701_v39, %v8339_v27  ;;  %v14550_v39 = vld [vmem:[#allocation94_spill] sm:$0xff] }
 0x1a8   :  { %v9286_v24 = vrot.slane %v885_v63, %v8339_v27  ;;  %v1005_v38 = vcombine.high %v8914_v8, %v8922_v18  ;;  %v14546_v23 = vcombine.high %v8502_v51, %v14532_v49  ;;  %v9312_v47 = vrot.slane %v869_v2, %v8339_v27  ;;  %v14556_v2 = vld [vmem:[#allocation96_spill] sm:$0xff] }
 0x1a9   :  { %2337 = vrot.lane.b32.xlu0 %v1238_v11, %s8136_s29  ;;  %2339 = vrot.lane.b32.xlu1 %v1374_v60, %s8136_s29  ;;  %v812_v4 = vcombine.low %v9255_v50, %v9242_v7  ;;  %v837_v11 = vcombine.high %v8677_v5, %v8696_v26  ;;  %v989_v60 = vcombine.high %v8875_v42, %v8904_v55 }
 0x1aa   :  { %v9293_v33 = vrot.slane %v644_v32, %v8398_v62  ;;  %v780_v59 = vcombine.low %v9279_v43, %v9265_v45  ;;  %v14545_v5 = vcombine.high %v8859_v10, %v8862_v53  ;;  %v9306_v26 = vrot.slane %v676_v25, %v8398_v62  ;;  %v14555_v25 = vld [vmem:[#allocation66_spill] sm:$0xff] }
 0x1ab   :  { %v9309_v18 = vrot.slane %v812_v4, %v8398_v62  ;;  %v973_v42 = vcombine.high %v8842_v3, %v8892_v31  ;;  %v9317_v10 = vrot.slane %v1021_v34, %v8339_v27  ;;  %v1157_v53 = vcombine.high %v9009_v28, %v9026_v19  ;;  %v14547_v28 = vld [vmem:[#allocation83_spill] sm:$0xff]  ;;  %v14557_v34 = vld [vmem:[#allocation86_spill] sm:$0xff] }
 0x1ac   :  { %v9322_v51 = vrot.slane %v837_v11, %v8339_v27  ;;  %v9325_v55 = vrot.slane %v853_v22, %v8339_v27  ;;  %v1293_v8 = vcombine.high %v9108_v6, %v9122_v21  ;;  %v1239_v54 = vcombine.high %v1187_v40, %v9196_v52  ;;  %v14551_v6 = vld [vmem:[#allocation105_spill] sm:$0xff]  ;;  %v14552_v52 = vld [vmem:[#allocation102_spill] sm:$0xff] }
 0x1ad   :  { %2357 = vrot.lane.b32.xlu1 %v14544_v61, %s8137_s5  ;;  %2341 = vrot.lane.b32.xlu0 %v1409_v15, %s8136_s29  ;;  %v948_v3 = vcombine.low %v9312_v47, %v9286_v24  ;;  %v9333_v31 = vrot.slane %v989_v60, %v8339_v27  ;;  %v9336_v49 = vrot.slane %v1005_v38, %v8339_v27 }
 0x1ae   :  { %v1125_v19 = vcombine.high %v8972_v41, %v8999_v1  ;;  %v1141_v13 = vcombine.high %v14548_v16, %v14547_v28  ;;  %v1261_v21 = vcombine.high %v14550_v39, %v14549_v46  ;;  %v1277_v40 = vcombine.high %v14552_v52, %v14551_v6  ;;  %v14554_v1 = vld [vmem:[#allocation75_spill] sm:$0xff] }
 0x1af   :  { %v14553_v32 = vcombine.high %v8956_v36, %v8959_v29  ;;  %v9352_v63 = vrot.slane %v973_v42, %v8339_v27  ;;  %v1084_v41 = vcombine.low %v9336_v49, %v9317_v10  ;;  %v1109_v61 = vcombine.high %v14555_v25, %v14554_v1 }
 0x1b0   :  { %v9359_v4 = vrot.slane %v1157_v53, %v8339_v27  ;;  %v1245_v11 = vcombine.high %v14557_v34, %v14556_v2  ;;  %v9364_v22 = vrot.slane %v1293_v8, %v8339_v27  ;;  %v1375_v29 = vcombine.high %v9219_v17, %v9199_v14 }
 0x1b1   :  { %2361 = vrot.lane.b32.xlu1 %v14545_v5, %s8137_s5  ;;  %2359 = vrot.lane.b32.xlu0 %v14546_v23, %s8137_s5  ;;  %v1426_v36 = vcombine.high %v1409_v15, %v14530_v35  ;;  %v916_v60 = vcombine.low %v9322_v51, %v9325_v55  ;;  %v1052_v38 = vcombine.low %v9352_v63, %v9333_v31 }
 0x1b2   :  { %v9374_v5 = vrot.slane %v1125_v19, %v8339_v27  ;;  %v788_v23 = vrot.slane %v780_v59, %v8398_v62  ;;  %v9378_v42 = vrot.slane %v1141_v13, %v8339_v27  ;;  %v9381_v53 = vrot.slane %v1261_v21, %v8339_v27 }
 0x1b3   :  { %v9384_v14 = vrot.slane %v1277_v40, %v8339_v27  ;;  %v696_v17 = vcombine.low %v9293_v33, %v9306_v26  ;;  %v956_v59 = vrot.slane %v948_v3, %v8398_v62  ;;  %v1092_v8 = vrot.slane %v1084_v41, %v8398_v62 }
 0x1b4   :  { %v832_v15 = vcombine.low %v788_v23, %v9309_v18  ;;  %v1220_v19 = vcombine.low %v9378_v42, %v9359_v4  ;;  %v9399_v28 = vrot.slane %v1245_v11, %v8339_v27  ;;  %v924_v13 = vrot.slane %v916_v60, %v8398_v62 }
 0x1b5   :  { %2365 = vrot.lane.b32.xlu1 %v1239_v54, %s8137_s5  ;;  %2363 = vrot.lane.b32.xlu0 %v14553_v32, %s8137_s5  ;;  %v9394_v54 = vrot.slane %v1109_v61, %v8339_v27  ;;  %v1356_v16 = vcombine.low %v9384_v14, %v9364_v22  ;;  %v1060_v39 = vrot.slane %v1052_v38, %v8398_v62 }
 0x1b6   :  { %v1324_v3 = vcombine.low %v9399_v28, %v9381_v53  ;;  %v968_v21 = vcombine.low %v924_v13, %v956_v59  ;;  %v1380_v6 = vcombine.high %v9132_v56, %v14530_v35  ;;  %v1228_v40 = vrot.slane %v1220_v19, %v8398_v62 }
 0x1b7   :  { %v1188_v46 = vcombine.low %v9394_v54, %v9374_v5  ;;  %v1104_v52 = vcombine.low %v1060_v39, %v1092_v8  ;;  %v1364_v32 = vrot.slane %v1356_v16, %v8398_v62  ;;  %v697_v56 = vcombine.high %v9293_v33, %v9306_v26 }
 0x1b8   :  { %v1332_v1 = vrot.slane %v1324_v3, %v8398_v62  ;;  %v1394_v25 = vrot.slane %v1380_v6, %v8339_v27  ;;  %v969_v11 = vcombine.high %v924_v13, %v956_v59  ;;  %v813_v33 = vcombine.high %v9255_v50, %v9242_v7 }
 0x1b9   :  { %2367 = vrot.lane.b32.xlu0 %v1375_v29, %s8137_s5  ;;  %2369 = vrot.lane.b32.xlu1 %v1426_v36, %s8137_s5  ;;  %v1196_v41 = vrot.slane %v1188_v46, %v8398_v62  ;;  %v833_v29 = vcombine.high %v788_v23, %v9309_v18  ;;  %v677_v36 = vcombine.high %v9237_v48, %v9250_v30 }
 0x1ba   :  { %v1376_v2 = vcombine.low %v1332_v1, %v1364_v32  ;;  %v1417_v34 = vrot.slane %v1394_v25, %v8398_v62  ;;  %v1105_v60 = vcombine.high %v1060_v39, %v1092_v8  ;;  %v645_v38 = vcombine.high %v9247_v12, %v9234_v58 }
 0x1bb   :  { %v1240_v61 = vcombine.low %v1196_v41, %v1228_v40  ;;  %v1241_v26 = vcombine.high %v1196_v41, %v1228_v40  ;;  %v691_v18 = vrot.slane %v677_v36, %v8398_v62  ;;  %v827_v23 = vrot.slane %v813_v33, %v8398_v62  ;;  %v14559_v40 = vld [vmem:[#allocation31_spill] sm:$0xff]  ;;  %v14560_v41 = vld [vmem:[#allocation40_spill] sm:$0xff]  ;;  %v14565_v36 = vld [vmem:[#allocation77_spill] sm:$0xff] }
 0x1bc   :  { %v949_v48 = vcombine.high %v9312_v47, %v9286_v24  ;;  %v1085_v7 = vcombine.high %v9336_v49, %v9317_v10  ;;  %v1377_v30 = vcombine.high %v1332_v1, %v1364_v32  ;;  %v1427_v58 = vcombine.high %v1417_v34, %v14530_v35  ;;  %v14561_v1 = vld [vmem:[#allocation41_spill] sm:$0xff] }
 0x1bd   :  { %2385 = vrot.lane.b32.xlu0 %v696_v17, %s8138_s6  ;;  %2387 = vrot.lane.b32.xlu1 %v832_v15, %s8138_s6  ;;  %v781_v17 = vcombine.high %v9279_v43, %v9265_v45  ;;  %v917_v12 = vcombine.high %v9322_v51, %v9325_v55  ;;  %v659_v50 = vrot.slane %v645_v38, %v8398_v62  ;;  %v14567_v38 = vld [vmem:[#allocation38_spill] sm:$0xff] }
 0x1be   :  { %v1053_v43 = vcombine.high %v9352_v63, %v9333_v31  ;;  %v1221_v10 = vcombine.high %v9378_v42, %v9359_v4  ;;  %v1357_v49 = vcombine.high %v9384_v14, %v9364_v22  ;;  %v963_v51 = vrot.slane %v949_v48, %v8398_v62 }
 0x1bf   :  { %v795_v45 = vrot.slane %v781_v17, %v8398_v62  ;;  %v698_v24 = vcombine.low %v659_v50, %v691_v18  ;;  %v1099_v55 = vrot.slane %v1085_v7, %v8398_v62  ;;  %v931_v15 = vrot.slane %v917_v12, %v8398_v62  ;;  %v14570_v7 = vld [vmem:[#allocation97_spill] sm:$0xff] }
 0x1c0   :  { %v1189_v31 = vcombine.high %v9394_v54, %v9374_v5  ;;  %v1325_v63 = vcombine.high %v9399_v28, %v9381_v53  ;;  %v1067_v4 = vrot.slane %v1053_v43, %v8398_v62  ;;  %v1235_v14 = vrot.slane %v1221_v10, %v8398_v62 }
 0x1c1   :  { %2389 = vrot.lane.b32.xlu0 %v968_v21, %s8138_s6  ;;  %2391 = vrot.lane.b32.xlu1 %v1104_v52, %s8138_s6  ;;  %v834_v47 = vcombine.low %v795_v45, %v827_v23  ;;  %v970_v22 = vcombine.low %v931_v15, %v963_v51  ;;  %v1371_v59 = vrot.slane %v1357_v49, %v8398_v62  ;;  %v14558_v52 = vld [vmem:[#allocation30_spill] sm:$0xff] }
 0x1c2   :  { %v1106_v42 = vcombine.low %v1067_v4, %v1099_v55  ;;  %v1203_v5 = vrot.slane %v1189_v31, %v8398_v62  ;;  %v1339_v53 = vrot.slane %v1325_v63, %v8398_v62  ;;  %v1410_v8 = vcombine.high %v1394_v25, %v14530_v35  ;;  %v14577_v31 = vld [vmem:[#allocation25_spill] sm:$0xff] }
 0x1c3   :  { %v699_v28 = vcombine.high %v659_v50, %v691_v18  ;;  %v971_v13 = vcombine.high %v931_v15, %v963_v51  ;;  %v835_v46 = vcombine.high %v795_v45, %v827_v23  ;;  %v1107_v39 = vcombine.high %v1067_v4, %v1099_v55  ;;  %v14568_v18 = vld [vmem:[#allocation55_spill] sm:$0xff]  ;;  %v14569_v23 = vld [vmem:[#allocation54_spill] sm:$0xff]  ;;  %v14572_v50 = vld [vmem:[#allocation37_spill] sm:$0xff] }
 0x1c4   :  { %v1242_v54 = vcombine.low %v1203_v5, %v1235_v14  ;;  %v1378_v19 = vcombine.low %v1339_v53, %v1371_v59  ;;  %v1424_v16 = vrot.slane %v1410_v8, %v8398_v62  ;;  %v1243_v3 = vcombine.high %v1203_v5, %v1235_v14  ;;  %v14573_v45 = vld [vmem:[#allocation39_spill] sm:$0xff]  ;;  %v14576_v15 = vld [vmem:[#allocation22_spill] sm:$0xff]  ;;  %v9542_v8 = vpop.permute.xlu1 %2301 }
 0x1c5   :  { %2393 = vrot.lane.b32.xlu0 %v1240_v61, %s8138_s6  ;;  %2395 = vrot.lane.b32.xlu1 %v1376_v2, %s8138_s6  ;;  %v1379_v21 = vcombine.high %v1339_v53, %v1371_v59  ;;  %v1558_v32 = vcombine.high %v14559_v40, %v14558_v52  ;;  %v1694_v25 = vcombine.high %v14561_v1, %v14560_v41  ;;  %v561_v61 = vpop.permute.xlu0 %560  ;;  %v14578_v59 = vld [vmem:[#allocation110_spill] sm:$0xff]  ;;  %v14628_v41 = vld [vmem:[#allocation17_spill] sm:$0xff]  ;;  %v14629_v1 = vld [vmem:[#allocation3_spill] sm:$0xff] }
 0x1c6   :  { %v1428_v6 = vcombine.high %v1424_v16, %v14530_v35  ;;  %v2252_v2 = vrot.slane %v561_v61, %v8339_v27  ;;  %v1798_v48 = vcombine.high %v14569_v23, %v14568_v18  ;;  %v2238_v12 = vcombine.high %v9193_v0, %v9178_v57  ;;  %14579 = vst [vmem:[#allocation36_spill] sm:$0xff] %v9542_v8  ;;  %v14589_v18 = vld [vmem:[#allocation93_spill] sm:$0xff]  ;;  %v14620_v40 = vld [vmem:[#allocation46_spill] sm:$0xff]  ;;  %v14627_v8 = vld [vmem:[#allocation23_spill] sm:$0xff] }
 0x1c7   :  { %v1630_v43 = vcombine.high %v14573_v45, %v14572_v50  ;;  %v1559_v63 = vcombine.low %v14577_v31, %v14576_v15  ;;  %v2206_v5 = vcombine.high %v14578_v59, %v9145_v37  ;;  %v2245_v53 = vcombine.high %v561_v61, %v14530_v35  ;;  %v14585_v61 = vld [vmem:[#allocation103_spill] sm:$0xff] }
 0x1c8   :  { %v2260_v55 = vcombine.high %v2252_v2, %v14530_v35  ;;  %v9527_v4 = vrot.slane %v1798_v48, %v8398_v62 }
 0x1c9   :  { %2413 = vrot.lane.b32.xlu1 %v697_v56, %s8139_s7  ;;  %2397 = vrot.lane.b32.xlu0 %v1417_v34, %s8138_s6  ;;  %v14562_v56 = vld [vmem:[#allocation58_spill] sm:$0xff]  ;;  %v14563_v34 = vld [vmem:[#allocation59_spill] sm:$0xff]  ;;  %v2259_v37 = vrot.slane %v2245_v53, %v8339_v27 }
 0x1cb   :  { %v2282_v50 = vrot.slane %v2259_v37, %v8398_v62 }
 0x1cd   :  { %2417 = vrot.lane.b32.xlu1 %v969_v11, %s8139_s7  ;;  %2415 = vrot.lane.b32.xlu0 %v833_v29, %s8139_s7  ;;  %v1830_v11 = vcombine.high %v14563_v34, %v14562_v56  ;;  %v14564_v29 = vld [vmem:[#allocation76_spill] sm:$0xff] }
 0x1ce   :  { %v1966_v33 = vcombine.high %v14565_v36, %v14564_v29 }
 0x1d1   :  { %2421 = vrot.lane.b32.xlu1 %v1241_v26, %s8139_s7  ;;  %2419 = vrot.lane.b32.xlu0 %v1105_v60, %s8139_s7  ;;  %v9500_v26 = vrot.slane %v2252_v2, %v8398_v62  ;;  %v14566_v60 = vld [vmem:[#allocation33_spill] sm:$0xff] }
 0x1d2   :  { %v1662_v17 = vcombine.high %v14567_v38, %v14566_v60  ;;  %v14587_v60 = vld [vmem:[#allocation91_spill] sm:$0xff] }
 0x1d3   :  { %v2290_v49 = vcombine.high %v9500_v26, %v14530_v35 }
 0x1d4   :  { %v9521_v51 = vrot.slane %v1662_v17, %v8398_v62  ;;  %v14588_v17 = vld [vmem:[#allocation99_spill] sm:$0xff] }
 0x1d5   :  { %2423 = vrot.lane.b32.xlu0 %v1377_v30, %s8139_s7  ;;  %2425 = vrot.lane.b32.xlu1 %v1427_v58, %s8139_s7  ;;  %v14571_v30 = vld [vmem:[#allocation98_spill] sm:$0xff]  ;;  %v2110_v23 = vcombine.high %v14589_v18, %v14588_v17 }
 0x1d6   :  { %v2102_v58 = vcombine.high %v14571_v30, %v14570_v7 }
 0x1d7   :  { %v9592_v59 = vrot.slane %v2110_v23, %v8339_v27 }
 0x1d9   :  { %2441 = vrot.lane.b32.xlu0 %v698_v24, %s8140_s8  ;;  %2443 = vrot.lane.b32.xlu1 %v834_v47, %s8140_s8  ;;  %v14574_v24 = vld [vmem:[#allocation50_spill] sm:$0xff]  ;;  %v14575_v47 = vld [vmem:[#allocation53_spill] sm:$0xff] }
 0x1da   :  { %v1766_v10 = vcombine.high %v14575_v47, %v14574_v24  ;;  %v14591_v24 = vld [vmem:[#allocation90_spill] sm:$0xff] }
 0x1dd   :  { %2445 = vrot.lane.b32.xlu0 %v970_v22, %s8140_s8  ;;  %2447 = vrot.lane.b32.xlu1 %v1106_v42, %s8140_s8  ;;  %v9530_v22 = vrot.slane %v1630_v43, %v8398_v62  ;;  %v9535_v42 = vrot.slane %v1766_v10, %v8398_v62  ;;  %v14590_v43 = vld [vmem:[#allocation87_spill] sm:$0xff] }
 0x1de   :  { %v2038_v47 = vcombine.high %v14591_v24, %v14590_v43  ;;  %v14601_v24 = vld [vmem:[#allocation72_spill] sm:$0xff] }
 0x1df   :  { %v1695_v14 = vcombine.low %v9530_v22, %v9521_v51 }
 0x1e1   :  { %2449 = vrot.lane.b32.xlu0 %v1242_v54, %s8140_s8  ;;  %2451 = vrot.lane.b32.xlu1 %v1378_v19, %s8140_s8  ;;  %v1831_v54 = vcombine.low %v9535_v42, %v9527_v4  ;;  %v2274_v19 = vrot.slane %v2260_v55, %v8398_v62  ;;  %v14592_v55 = vld [vmem:[#allocation85_spill] sm:$0xff] }
 0x1e5   :  { %2469 = vrot.lane.b32.xlu1 %v699_v28, %s8141_s9  ;;  %2453 = vrot.lane.b32.xlu0 %v1424_v16, %s8140_s8  ;;  %v2174_v28 = vcombine.high %v9163_v20, %v9154_v9  ;;  %v14580_v16 = vld [vmem:[#allocation107_spill] sm:$0xff]  ;;  %v14584_v20 = vld [vmem:[#allocation106_spill] sm:$0xff] }
 0x1e6   :  { %v2142_v2 = vcombine.high %v14585_v61, %v14584_v20 }
 0x1e9   :  { %2473 = vrot.lane.b32.xlu1 %v971_v13, %s8141_s9  ;;  %2471 = vrot.lane.b32.xlu0 %v835_v46, %s8141_s9  ;;  %v14581_v13 = vld [vmem:[#allocation104_spill] sm:$0xff] }
 0x1ea   :  { %v2158_v46 = vcombine.high %v14581_v13, %v14580_v16  ;;  %v2292_v16 = vcombine.high %v2282_v50, %v14530_v35 }
 0x1ec   :  { %v9572_v48 = vrot.slane %v2158_v46, %v8339_v27  ;;  %v14594_v46 = vld [vmem:[#allocation79_spill] sm:$0xff] }
 0x1ed   :  { %2477 = vrot.lane.b32.xlu1 %v1243_v3, %s8141_s9  ;;  %2475 = vrot.lane.b32.xlu0 %v1107_v39, %s8141_s9  ;;  %v9554_v3 = vpop.permute.xlu0 %2303  ;;  %v9556_v39 = vpop.permute.xlu1 %2305 }
 0x1f1   :  { %2479 = vrot.lane.b32.xlu0 %v1379_v21, %s8141_s9  ;;  %2481 = vrot.lane.b32.xlu1 %v1428_v6, %s8141_s9  ;;  %v2291_v21 = vcombine.high %v2274_v19, %v14530_v35  ;;  %v2220_v6 = vrot.slane %v2206_v5, %v8398_v62 }
 0x1f5   :  { %2497 = vrot.lane.b32.xlu0 %v1558_v32, %s8135_s28  ;;  %2499 = vrot.lane.b32.xlu1 %v1694_v25, %s8135_s28  ;;  %v14582_v32 = vld [vmem:[#allocation101_spill] sm:$0xff]  ;;  %v14583_v25 = vld [vmem:[#allocation95_spill] sm:$0xff] }
 0x1f6   :  { %v2126_v9 = vcombine.high %v14583_v25, %v14582_v32  ;;  %v14596_v25 = vld [vmem:[#allocation84_spill] sm:$0xff] }
 0x1f8   :  { %v9582_v10 = vrot.slane %v2126_v9, %v8339_v27  ;;  %v14597_v9 = vld [vmem:[#allocation81_spill] sm:$0xff] }
 0x1f9   :  { %2501 = vrot.lane.b32.xlu0 %v1830_v11, %s8135_s28  ;;  %2503 = vrot.lane.b32.xlu1 %v1966_v33, %s8135_s28  ;;  %v2188_v11 = vrot.slane %v2174_v28, %v8398_v62  ;;  %v14586_v33 = vld [vmem:[#allocation92_spill] sm:$0xff]  ;;  %v2006_v20 = vcombine.high %v14597_v9, %v14596_v25  ;;  %v14605_v9 = vld [vmem:[#allocation65_spill] sm:$0xff] }
 0x1fa   :  { %v2070_v38 = vcombine.high %v14587_v60, %v14586_v33  ;;  %v2189_v61 = vcombine.low %v9592_v59, %v9582_v10  ;;  %v14599_v33 = vld [vmem:[#allocation73_spill] sm:$0xff] }
 0x1fb   :  { %v2239_v45 = vcombine.low %v2188_v11, %v2220_v6  ;;  %v2240_v13 = vcombine.high %v2188_v11, %v2220_v6 }
 0x1fc   :  { %v2084_v5 = vrot.slane %v2070_v38, %v8398_v62  ;;  %v2197_v43 = vrot.slane %v2189_v61, %v8398_v62 }
 0x1fd   :  { %2505 = vrot.lane.b32.xlu0 %v2102_v58, %s8135_s28  ;;  %2507 = vrot.lane.b32.xlu1 %v2238_v12, %s8135_s28  ;;  %v9574_v58 = vpop.permute.xlu0 %2307  ;;  %v9576_v12 = vpop.permute.xlu1 %2309 }
 0x201   :  { %2509 = vrot.lane.b32.xlu0 %v2290_v49, %s8135_s28  ;;  %2525 = vrot.lane.b32.xlu1 %v1559_v63, %s8136_s29  ;;  %v9585_v49 = vrot.slane %v2142_v2, %v8339_v27  ;;  %v14593_v63 = vld [vmem:[#allocation82_spill] sm:$0xff] }
 0x202   :  { %v14598_v2 = vld [vmem:[#allocation78_spill] sm:$0xff] }
 0x203   :  { %v2221_v53 = vcombine.low %v9585_v49, %v9572_v48  ;;  %v1974_v60 = vcombine.high %v14599_v33, %v14598_v2  ;;  %v2222_v33 = vcombine.high %v9585_v49, %v9572_v48  ;;  %v14611_v49 = vld [vmem:[#allocation60_spill] sm:$0xff] }
 0x205   :  { %2527 = vrot.lane.b32.xlu0 %v1695_v14, %s8136_s29  ;;  %2529 = vrot.lane.b32.xlu1 %v1831_v54, %s8136_s29  ;;  %v2022_v14 = vcombine.high %v14593_v63, %v14592_v55  ;;  %v2275_v54 = vcombine.high %v2259_v37, %v14530_v35  ;;  %v2052_v37 = vrot.slane %v2038_v47, %v8398_v62  ;;  %v14602_v47 = vld [vmem:[#allocation71_spill] sm:$0xff] }
 0x206   :  { %v2229_v23 = vrot.slane %v2221_v53, %v8398_v62  ;;  %v1934_v55 = vcombine.high %v14602_v47, %v14601_v24  ;;  %v9635_v63 = vrot.slane %v1974_v60, %v8339_v27 }
 0x207   :  { %v9615_v6 = vrot.slane %v2022_v14, %v8339_v27  ;;  %v2289_v17 = vrot.slane %v2275_v54, %v8398_v62  ;;  %v2103_v18 = vcombine.low %v2052_v37, %v2084_v5 }
 0x208   :  { %v1948_v2 = vrot.slane %v1934_v55, %v8398_v62  ;;  %v2242_v24 = vcombine.high %v2197_v43, %v2229_v23  ;;  %v2190_v55 = vcombine.high %v9592_v59, %v9582_v10  ;;  %v2236_v10 = vrot.slane %v2222_v33, %v8398_v62 }
 0x209   :  { %2537 = vrot.lane.b32.xlu0 %v2274_v19, %s8136_s29  ;;  %2565 = vrot.lane.b32.xlu1 %v2291_v21, %s8137_s5  ;;  %v14595_v21 = vld [vmem:[#allocation74_spill] sm:$0xff] }
 0x20a   :  { %v1990_v32 = vcombine.high %v14595_v21, %v14594_v46  ;;  %v14603_v46 = vld [vmem:[#allocation67_spill] sm:$0xff]  ;;  %v14604_v21 = vld [vmem:[#allocation70_spill] sm:$0xff] }
 0x20d   :  { %2593 = vrot.lane.b32.xlu0 %v2282_v50, %s8138_s6  ;;  %2535 = vrot.lane.b32.xlu1 %v2239_v45, %s8136_s29  ;;  %v9624_v50 = vrot.slane %v1990_v32, %v8339_v27  ;;  %v9627_v45 = vrot.slane %v2006_v20, %v8339_v27  ;;  %v1902_v32 = vcombine.high %v14604_v21, %v14603_v46  ;;  %v14606_v20 = vld [vmem:[#allocation63_spill] sm:$0xff]  ;;  %v14607_v46 = vld [vmem:[#allocation61_spill] sm:$0xff] }
 0x20e   :  { %v1886_v61 = vcombine.high %v14606_v20, %v14605_v9  ;;  %v14610_v9 = vld [vmem:[#allocation62_spill] sm:$0xff] }
 0x20f   :  { %v9598_v19 = vpop.permute.xlu0 %2311  ;;  %v9600_v28 = vpop.permute.xlu1 %2313  ;;  %v2085_v14 = vcombine.low %v9627_v45, %v9615_v6  ;;  %v2053_v25 = vcombine.low %v9635_v63, %v9624_v50  ;;  %v2086_v33 = vcombine.high %v9627_v45, %v9615_v6  ;;  %v14621_v6 = vld [vmem:[#allocation44_spill] sm:$0xff]  ;;  %v14622_v45 = vld [vmem:[#allocation42_spill] sm:$0xff] }
 0x211   :  { %2621 = vrot.lane.b32.xlu0 %v2292_v16, %s8139_s7  ;;  %2563 = vrot.lane.b32.xlu1 %v2240_v13, %s8137_s5  ;;  %v2241_v16 = vcombine.low %v2197_v43, %v2229_v23  ;;  %v2293_v13 = vcombine.high %v2289_v17, %v14530_v35  ;;  %v2093_v47 = vrot.slane %v2085_v14, %v8398_v62  ;;  %v14609_v35 = vld [vmem:[#allocation64_spill] sm:$0xff] }
 0x212   :  { %v1870_v20 = vcombine.high %v14610_v9, %v14609_v35  ;;  %v2061_v48 = vrot.slane %v2053_v25, %v8398_v62  ;;  %v9673_v23 = vrot.slane %v1886_v61, %v8339_v27  ;;  %v2204_v25 = vrot.slane %v2190_v55, %v8398_v62  ;;  %v14614_v61 = vld [vmem:[#allocation49_spill] sm:$0xff]  ;;  %v14619_v55 = vld [vmem:[#allocation48_spill] sm:$0xff] }
 0x213   :  { %v9617_v11 = vpop.permute.xlu0 %2329  ;;  %v9619_v38 = vpop.permute.xlu1 %2331 }
 0x214   :  { %14600 = vst [vmem:[#allocation8_spill] sm:$0xff] %v9617_v11 }
 0x215   :  { %2649 = vrot.lane.b32.xlu0 %v2289_v17, %s8140_s8  ;;  %2533 = vrot.lane.b32.xlu1 %v2103_v18, %s8136_s29  ;;  %v2104_v18 = vcombine.high %v2052_v37, %v2084_v5  ;;  %v14612_v5 = vld [vmem:[#allocation56_spill] sm:$0xff] }
 0x216   :  { %v1838_v37 = vcombine.high %v14612_v5, %v14611_v49 }
 0x217   :  { %v9639_v53 = vpop.permute.xlu0 %2333  ;;  %v9641_v54 = vpop.permute.xlu1 %2335 }
 0x219   :  { %2591 = vrot.lane.b32.xlu0 %v2241_v16, %s8138_s6  ;;  %2677 = vrot.lane.b32.xlu1 %v2293_v13, %s8141_s9  ;;  %v14608_v16 = vld [vmem:[#allocation57_spill] sm:$0xff]  ;;  %v1916_v13 = vrot.slane %v1902_v32, %v8398_v62  ;;  %v2105_v32 = vcombine.low %v2061_v48, %v2093_v47 }
 0x21a   :  { %v1854_v21 = vcombine.high %v14608_v16, %v14607_v46  ;;  %v1852_v16 = vrot.slane %v1838_v37, %v8339_v27  ;;  %v2054_v37 = vcombine.high %v9635_v63, %v9624_v50  ;;  %v2100_v50 = vrot.slane %v2086_v33, %v8398_v62  ;;  %v14623_v33 = vld [vmem:[#allocation32_spill] sm:$0xff] }
 0x21b   :  { %v9655_v60 = vpop.permute.xlu0 %2337  ;;  %v9657_v17 = vpop.permute.xlu1 %2339  ;;  %v1967_v35 = vcombine.low %v1916_v13, %v1948_v2  ;;  %v1968_v5 = vcombine.high %v1916_v13, %v1948_v2 }
 0x21c   :  { %v9681_v59 = vrot.slane %v1854_v21, %v8339_v27 }
 0x21d   :  { %2561 = vrot.lane.b32.xlu0 %v2104_v18, %s8137_s5  ;;  %2619 = vrot.lane.b32.xlu1 %v2242_v24, %s8139_s7  ;;  %v1884_v18 = vrot.slane %v1870_v20, %v8339_v27  ;;  %v14615_v24 = vld [vmem:[#allocation47_spill] sm:$0xff]  ;;  %v2243_v20 = vcombine.low %v2204_v25, %v2236_v10 }
 0x21e   :  { %v1750_v46 = vcombine.high %v14615_v24, %v14614_v61  ;;  %v1917_v61 = vcombine.low %v1852_v16, %v9681_v59  ;;  %v1702_v24 = vcombine.high %v14622_v45, %v14621_v6 }
 0x21f   :  { %v9675_v43 = vpop.permute.xlu0 %2341  ;;  %v9677_v14 = vpop.permute.xlu1 %2357  ;;  %v1949_v9 = vcombine.low %v1884_v18, %v9673_v23  ;;  %v1950_v6 = vcombine.high %v1884_v18, %v9673_v23  ;;  %v14631_v18 = vld [vmem:[#allocation20_spill] sm:$0xff] }
 0x220   :  { %14613 = vst [vmem:[#allocation14_spill] sm:$0xff] %v9677_v14  ;;  %v1734_v14 = vcombine.high %v14620_v40, %v14619_v55  ;;  %v9709_v2 = vrot.slane %v1750_v46, %v8339_v27  ;;  %v2106_v40 = vcombine.high %v2061_v48, %v2093_v47  ;;  %v1925_v46 = vrot.slane %v1917_v61, %v8398_v62  ;;  %v14624_v61 = vld [vmem:[#allocation28_spill] sm:$0xff] }
 0x221   :  { %2531 = vrot.lane.b32.xlu0 %v1967_v35, %s8136_s29  ;;  %2589 = vrot.lane.b32.xlu1 %v2105_v32, %s8138_s6  ;;  %v14617_v35 = vld [vmem:[#allocation45_spill] sm:$0xff]  ;;  %v14618_v32 = vld [vmem:[#allocation43_spill] sm:$0xff]  ;;  %v1957_v55 = vrot.slane %v1949_v9, %v8398_v62  ;;  %v9728_v47 = vrot.slane %v1702_v24, %v8339_v27 }
 0x222   :  { %v1718_v52 = vcombine.high %v14618_v32, %v14617_v35  ;;  %v2244_v32 = vcombine.high %v2204_v25, %v2236_v10 }
 0x223   :  { %v9693_v21 = vpop.permute.xlu0 %2359  ;;  %v9695_v49 = vpop.permute.xlu1 %2361 }
 0x224   :  { %14616 = vst [vmem:[#allocation10_spill] sm:$0xff] %v9693_v21  ;;  %v9718_v63 = vrot.slane %v1718_v52, %v8339_v27 }
 0x225   :  { %2647 = vrot.lane.b32.xlu0 %v2243_v20, %s8140_s8  ;;  %2559 = vrot.lane.b32.xlu1 %v1968_v5, %s8137_s5  ;;  %v9721_v20 = vrot.slane %v1734_v14, %v8339_v27  ;;  %v2068_v5 = vrot.slane %v2054_v37, %v8398_v62  ;;  %v1969_v14 = vcombine.low %v1925_v46, %v1957_v55 }
 0x226   :  { %v1781_v9 = vcombine.low %v9728_v47, %v9718_v63  ;;  %v1614_v37 = vcombine.high %v14624_v61, %v14623_v33  ;;  %v1918_v33 = vcombine.high %v1852_v16, %v9681_v59  ;;  %v14632_v61 = vld [vmem:[#allocation15_spill] sm:$0xff]  ;;  %v1964_v59 = vrot.slane %v1950_v6, %v8398_v62 }
 0x227   :  { %v9711_v13 = vpop.permute.xlu0 %2363  ;;  %v9713_v35 = vpop.permute.xlu1 %2365  ;;  %v1813_v48 = vcombine.low %v9721_v20, %v9709_v2  ;;  %v2107_v25 = vcombine.low %v2068_v5, %v2100_v50 }
 0x228   :  { %v1789_v23 = vrot.slane %v1781_v9, %v8398_v62  ;;  %v14633_v9 = vld [vmem:[#allocation2_spill] sm:$0xff] }
 0x229   :  { %2617 = vrot.lane.b32.xlu0 %v2106_v40, %s8139_s7  ;;  %2675 = vrot.lane.b32.xlu1 %v2244_v32, %s8141_s9  ;;  %v1832_v40 = vcombine.high %v9535_v42, %v9527_v4  ;;  %v1970_v32 = vcombine.high %v1925_v46, %v1957_v55  ;;  %v1821_v11 = vrot.slane %v1813_v48, %v8398_v62 }
 0x22a   :  { %v1566_v4 = vcombine.high %v14632_v61, %v14631_v18  ;;  %v9761_v42 = vrot.slane %v1614_v37, %v8339_v27  ;;  %v1932_v48 = vrot.slane %v1918_v33, %v8398_v62  ;;  %v14634_v37 = vld [vmem:[#allocation11_spill] sm:$0xff]  ;;  %v1696_v61 = vcombine.high %v9530_v22, %v9521_v51 }
 0x22b   :  { %v9732_v10 = vpop.permute.xlu0 %2367  ;;  %v9734_v52 = vpop.permute.xlu1 %2369 }
 0x22d   :  { %2587 = vrot.lane.b32.xlu0 %v1969_v14, %s8138_s6  ;;  %2645 = vrot.lane.b32.xlu1 %v2107_v25, %s8140_s8  ;;  %v1582_v14 = vcombine.high %v14628_v41, %v14627_v8  ;;  %v14630_v25 = vld [vmem:[#allocation26_spill] sm:$0xff]  ;;  %v2108_v8 = vcombine.high %v2068_v5, %v2100_v50  ;;  %v1580_v50 = vrot.slane %v1566_v4, %v8339_v27  ;;  %v14638_v4 = vld [vmem:[#allocation7_spill] sm:$0xff] }
 0x22e   :  { %v1598_v21 = vcombine.high %v14630_v25, %v14629_v1  ;;  %v1833_v1 = vcombine.low %v1789_v23, %v1821_v11  ;;  %v14636_v25 = vld [vmem:[#allocation9_spill] sm:$0xff]  ;;  %v1814_v5 = vcombine.high %v9721_v20, %v9709_v2  ;;  %v1782_v20 = vcombine.high %v9728_v47, %v9718_v63 }
 0x22f   :  { %v9743_v45 = vpop.permute.xlu0 %2385  ;;  %v9745_v24 = vpop.permute.xlu1 %2387  ;;  %v1596_v16 = vrot.slane %v1582_v14, %v8339_v27  ;;  %v1971_v14 = vcombine.low %v1932_v48, %v1964_v59 }
 0x230   :  { %14625 = vst [vmem:[#allocation29_spill] sm:$0xff] %v9743_v45  ;;  %14626 = vst [vmem:[#allocation12_spill] sm:$0xff] %v9745_v24  ;;  %v1612_v46 = vrot.slane %v1598_v21, %v8339_v27 }
 0x231   :  { %2557 = vrot.lane.b32.xlu0 %v1832_v40, %s8137_s5  ;;  %2615 = vrot.lane.b32.xlu1 %v1970_v32, %s8139_s7  ;;  %v1478_v40 = vcombine.high %v14634_v37, %v14633_v9  ;;  %v14635_v32 = vld [vmem:[#allocation13_spill] sm:$0xff]  ;;  %v1645_v2 = vcombine.low %v1580_v50, %v1596_v16 }
 0x232   :  { %v1462_v18 = vcombine.high %v14636_v25, %v14635_v32  ;;  %v1677_v33 = vcombine.low %v1612_v46, %v9761_v42  ;;  %v14639_v37 = vld [vmem:[#allocation5_spill] sm:$0xff] }
 0x233   :  { %v9763_v55 = vpop.permute.xlu0 %2389  ;;  %v9765_v41 = vpop.permute.xlu1 %2391  ;;  %v1446_v32 = vcombine.high %v14639_v37, %v14638_v4  ;;  %v1492_v51 = vrot.slane %v1478_v40, %v8339_v27  ;;  %v1828_v37 = vrot.slane %v1814_v5, %v8398_v62  ;;  %v1653_v40 = vrot.slane %v1645_v2, %v8398_v62 }
 0x234   :  { %v1476_v22 = vrot.slane %v1462_v18, %v8339_v27  ;;  %v1685_v4 = vrot.slane %v1677_v33, %v8398_v62  ;;  %v1796_v18 = vrot.slane %v1782_v20, %v8398_v62  ;;  %v1678_v2 = vcombine.high %v1612_v46, %v9761_v42 }
 0x235   :  { %2673 = vrot.lane.b32.xlu0 %v2108_v8, %s8141_s9  ;;  %2585 = vrot.lane.b32.xlu1 %v1833_v1, %s8138_s6  ;;  %v8116_v8 = vld [vmem:[%s14011_s0 + $0x8] sm:$0xff]  ;;  %v14637_v1 = vld [vmem:[#allocation4_spill] sm:$0xff]  ;;  %v1460_v47 = vrot.slane %v1446_v32, %v8339_v27  ;;  %v1646_v20 = vcombine.high %v1580_v50, %v1596_v16 }
 0x236   :  { %v1430_v9 = vcombine.high %v8116_v8, %v14637_v1  ;;  %v1834_v8 = vcombine.high %v1789_v23, %v1821_v11  ;;  %v1972_v1 = vcombine.high %v1932_v48, %v1964_v59  ;;  %v1697_v23 = vcombine.low %v1653_v40, %v1685_v4  ;;  %v9845_v16 = vld [vmem:[%s14011_s0 + $0x28] sm:$0x3f] }
 0x237   :  { %v9780_v6 = vpop.permute.xlu0 %2393  ;;  %v9782_v21 = vpop.permute.xlu1 %2395  ;;  %v1835_v59 = vcombine.low %v1796_v18, %v1828_v37 }
 0x238   :  { %v1444_v63 = vrot.slane %v1430_v9, %v8339_v27  ;;  %v1698_v9 = vcombine.high %v1653_v40, %v1685_v4  ;;  %v1836_v4 = vcombine.high %v1796_v18, %v1828_v37 }
 0x239   :  { %2643 = vrot.lane.b32.xlu0 %v1971_v14, %s8140_s8  ;;  %2555 = vrot.lane.b32.xlu1 %v1696_v61, %s8137_s5  ;;  %v1541_v14 = vcombine.low %v1476_v22, %v1492_v51 }
 0x23a   :  { %v1509_v48 = vcombine.low %v1444_v63, %v1460_v47  ;;  %v1510_v42 = vcombine.high %v1444_v63, %v1460_v47  ;;  %v9856_v47 = vrot.slane %v9845_v16, 1 }
 0x23b   :  { %v9799_v25 = vpop.permute.xlu0 %2397  ;;  %v9801_v45 = vpop.permute.xlu1 %2413  ;;  %v1549_v32 = vrot.slane %v1541_v14, %v8398_v62  ;;  %v1692_v14 = vrot.slane %v1678_v2, %v8398_v62 }
 0x23c   :  { %14640 = vst [vmem:[#allocation27_spill] sm:$0xff] %v9801_v45  ;;  %v1524_v63 = vrot.slane %v1510_v42, %v8398_v62  ;;  %14645 = vst [vmem:[#allocation80_spill] sm:$0xff] %v9856_v47 }
 0x23d   :  { %2613 = vrot.lane.b32.xlu0 %v1834_v8, %s8139_s7  ;;  %2671 = vrot.lane.b32.xlu1 %v1972_v1, %s8141_s9  ;;  %v14642_v8 = vcombine.high %v14577_v31, %v14576_v15  ;;  %v1517_v1 = vrot.slane %v1509_v48, %v8398_v62  ;;  %v1660_v15 = vrot.slane %v1646_v20, %v8398_v62  ;;  %v9840_v31 = vld [vmem:[%s14011_s0 + $0x20] sm:$0xff] }
 0x23e   :  { %v2835_v18 = vrot.slane %v9840_v31, 1 }
 0x23f   :  { %v9811_v61 = vpop.permute.xlu0 %2415  ;;  %v9813_v11 = vpop.permute.xlu1 %2417  ;;  %v1561_v40 = vcombine.low %v1517_v1, %v1549_v32  ;;  %v1700_v2 = vcombine.high %v1660_v15, %v1692_v14 }
 0x240   :  { %14641 = vst [vmem:[#allocation24_spill] sm:$0xff] %v9811_v61 }
 0x241   :  { %2583 = vrot.lane.b32.xlu0 %v1697_v23, %s8138_s6  ;;  %2641 = vrot.lane.b32.xlu1 %v1835_v59, %s8140_s8  ;;  %v1542_v23 = vcombine.high %v1476_v22, %v1492_v51  ;;  %v1699_v51 = vcombine.low %v1660_v15, %v1692_v14  ;;  %v1562_v22 = vcombine.high %v1517_v1, %v1549_v32  ;;  %v9871_v1 = vrot.slane %v9845_v16, 2 }
 0x242   :  { %v9867_v32 = vsel %vm80_vm0, %v2835_v18, %v9856_v47 }
 0x243   :  { %v9817_v5 = vpop.permute.xlu0 %2419  ;;  %v9819_v33 = vpop.permute.xlu1 %2421  ;;  %v1556_v37 = vrot.slane %v1542_v23, %v8398_v62  ;;  %14646 = vst [vmem:[#allocation100_spill] sm:$0xff] %v9867_v32  ;;  %14647 = vst [vmem:[#allocation94_spill] sm:$0xff] %v9871_v1 }
 0x245   :  { %2553 = vrot.lane.b32.xlu0 %v14642_v8, %s8137_s5  ;;  %2611 = vrot.lane.b32.xlu1 %v1698_v9, %s8139_s7  ;;  %v1563_v20 = vcombine.low %v1524_v63, %v1556_v37  ;;  %v2878_v8 = vrot.slane %v9840_v31, 2  ;;  %v1564_v34 = vcombine.high %v1524_v63, %v1556_v37  ;;  %v14659_v63 = vld [vmem:[#allocation109_spill] sm:$0xff] }
 0x247   :  { %v9829_v59 = vpop.permute.xlu0 %2423  ;;  %v9831_v27 = vpop.permute.xlu1 %2425 }
 0x249   :  { %2669 = vrot.lane.b32.xlu0 %v1836_v4, %s8141_s9  ;;  %2581 = vrot.lane.b32.xlu1 %v1561_v40, %s8138_s6  ;;  %v9883_v40 = vsel %vm124_vm1, %v2878_v8, %v9871_v1 }
 0x24a   :  { %14648 = vst [vmem:[#allocation105_spill] sm:$0xff] %v9883_v40 }
 0x24b   :  { %v9847_v46 = vpop.permute.xlu0 %2441  ;;  %v9849_v50 = vpop.permute.xlu1 %2443 }
 0x24c   :  { %14643 = vst [vmem:[#allocation21_spill] sm:$0xff] %v9847_v46  ;;  %14644 = vst [vmem:[#allocation83_spill] sm:$0xff] %v9849_v50 }
 0x24d   :  { %2639 = vrot.lane.b32.xlu0 %v1699_v51, %s8140_s8  ;;  %2609 = vrot.lane.b32.xlu1 %v1562_v22, %s8139_s7 }
 0x24f   :  { %v9859_v48 = vpop.permute.xlu0 %2445  ;;  %v9861_v9 = vpop.permute.xlu1 %2447 }
 0x251   :  { %2667 = vrot.lane.b32.xlu0 %v1700_v2, %s8141_s9  ;;  %2637 = vrot.lane.b32.xlu1 %v1563_v20, %s8140_s8 }
 0x253   :  { %v9873_v23 = vpop.permute.xlu0 %2449  ;;  %v9875_v4 = vpop.permute.xlu1 %2451 }
 0x255   :  { %2843 = vrot.lane.b32.xlu0 %v9867_v32, %s8123_s15  ;;  %2849 = vrot.lane.b32.xlu1 %v9867_v32, %s8122_s14 }
 0x257   :  { %v2454_v14 = vpop.permute.xlu0 %2453  ;;  %v9885_v42 = vpop.permute.xlu1 %2469 }
 0x258   :  { %14649 = vst [vmem:[#allocation102_spill] sm:$0xff] %v9885_v42  ;;  %v9916_v42 = vld [vmem:[%s14011_s0 + $0x18] sm:$0xff] }
 0x259   :  { %2886 = vrot.lane.b32.xlu0 %v9883_v40, %s8123_s15  ;;  %2910 = vrot.lane.b32.xlu1 %v9856_v47, %s8123_s15 }
 0x25b   :  { %v9891_v15 = vpop.permute.xlu0 %2471  ;;  %v9893_v51 = vpop.permute.xlu1 %2473 }
 0x25c   :  { %14650 = vst [vmem:[#allocation75_spill] sm:$0xff] %v9891_v15  ;;  %v2834_v15 = vrot.slane %v9916_v42, 1 }
 0x25d   :  { %2912 = vrot.lane.b32.xlu0 %v9856_v47, %s8122_s14  ;;  %2920 = vrot.lane.b32.xlu1 %v9883_v40, %s8128_s24 }
 0x25f   :  { %v9899_v22 = vpop.permute.xlu0 %2475  ;;  %v9901_v2 = vpop.permute.xlu1 %2477 }
 0x261   :  { %2922 = vrot.lane.b32.xlu0 %v9871_v1, %s8128_s24  ;;  %2926 = vrot.lane.b32.xlu1 %v9883_v40, %s8129_s25 }
 0x263   :  { %v9907_v20 = vpop.permute.xlu0 %2479  ;;  %v2482_v62 = vpop.permute.xlu1 %2481 }
 0x265   :  { %2928 = vrot.lane.b32.xlu0 %v9871_v1, %s8129_s25  ;;  %2930 = vrot.lane.b32.xlu1 %v9871_v1, %s8123_s15 }
 0x267   :  { %v9918_v46 = vpop.permute.xlu0 %2497  ;;  %v9920_v45 = vpop.permute.xlu1 %2499 }
 0x268   :  { %14651 = vst [vmem:[#allocation66_spill] sm:$0xff] %v9918_v46  ;;  %14652 = vst [vmem:[#allocation96_spill] sm:$0xff] %v9920_v45  ;;  %v9936_v46 = vsel %vm80_vm0, %v2834_v15, %v2835_v18  ;;  %v2877_v45 = vrot.slane %v9916_v42, 2 }
 0x269   :  { %2946 = vrot.lane.b32.xlu0 %v9883_v40, %s8130_s26  ;;  %2948 = vrot.lane.b32.xlu1 %v9871_v1, %s8130_s26  ;;  %14654 = vst [vmem:[#allocation76_spill] sm:$0xff] %v9936_v46 }
 0x26b   :  { %v9927_v50 = vpop.permute.xlu0 %2501  ;;  %v9929_v61 = vpop.permute.xlu1 %2503 }
 0x26c   :  { %14653 = vst [vmem:[#allocation86_spill] sm:$0xff] %v9927_v50 }
 0x26d   :  { %2952 = vrot.lane.b32.xlu0 %v9883_v40, %s8131_s27  ;;  %2954 = vrot.lane.b32.xlu1 %v9871_v1, %s8131_s27  ;;  %v9947_v40 = vsel %vm124_vm1, %v2877_v45, %v2878_v8  ;;  %v2693_v8 = vsel %vm2686_vm4, %v14659_v63, %v9600_v28 }
 0x26e   :  { %14655 = vst [vmem:[#allocation77_spill] sm:$0xff] %v9947_v40  ;;  %v2701_v15 = vsel %vm2694_vm5, %v2693_v8, %v9675_v43 }
 0x26f   :  { %v9939_v24 = vpop.permute.xlu0 %2505  ;;  %v9941_v56 = vpop.permute.xlu1 %2507 }
 0x271   :  { %2665 = vrot.lane.b32.xlu0 %v1564_v34, %s8141_s9  ;;  %2841 = vrot.lane.b32.xlu1 %v9936_v46, %s8123_s15 }
 0x273   :  { %v2510_v50 = vpop.permute.xlu0 %2509  ;;  %v9949_v1 = vpop.permute.xlu1 %2525 }
 0x274   :  { %14656 = vst [vmem:[#allocation33_spill] sm:$0xff] %v9949_v1  ;;  %v2709_v1 = vsel %vm2702_vm6, %v2701_v15, %v9734_v52  ;;  %v2748_v15 = vsel %vm2686_vm4, %v9500_v26, %v2510_v50 }
 0x275   :  { %2847 = vrot.lane.b32.xlu0 %v9936_v46, %s8122_s14  ;;  %2884 = vrot.lane.b32.xlu1 %v9947_v40, %s8123_s15 }
 0x277   :  { %v9955_v18 = vpop.permute.xlu0 %2527  ;;  %v9957_v37 = vpop.permute.xlu1 %2529 }
 0x278   :  { %14657 = vst [vmem:[#allocation38_spill] sm:$0xff] %v9955_v18  ;;  %14658 = vst [vmem:[#allocation55_spill] sm:$0xff] %v9957_v37  ;;  %v2717_v18 = vsel %vm2710_vm7, %v2709_v1, %v9799_v25 }
 0x279   :  { %2918 = vrot.lane.b32.xlu0 %v9947_v40, %s8128_s24  ;;  %2924 = vrot.lane.b32.xlu1 %v9947_v40, %s8129_s25  ;;  %v2725_v43 = vsel %vm2718_vm8, %v2717_v18, %v9831_v27 }
 0x27a   :  { %v2733_v8 = vsel %vm2726_vm9, %v2725_v43, %v2454_v14 }
 0x27b   :  { %v2538_v34 = vpop.permute.xlu0 %2537  ;;  %v2566_v45 = vpop.permute.xlu1 %2565  ;;  %v2741_v52 = vsel %vm2734_vm10, %v2733_v8, %v2482_v62 }
 0x27c   :  { %v5633_v27 = vsel %vm5631_vm11, %v2741_v52, 0  ;;  %v2755_v18 = vsel %vm2694_vm5, %v2748_v15, %v2538_v34 }
 0x27d   :  { %2944 = vrot.lane.b32.xlu0 %v9947_v40, %s8130_s26  ;;  %2950 = vrot.lane.b32.xlu1 %v9947_v40, %s8131_s27  ;;  %v9994_v40 = vand.u32 4294901760, %v5633_v27  ;;  %v2762_v62 = vsel %vm2702_vm6, %v2755_v18, %v2566_v45  ;;  %v14661_v45 = vld [vmem:[#allocation108_spill] sm:$0xff] }
 0x27f   :  { %v2594_v28 = vpop.permute.xlu0 %2593  ;;  %v2536_v63 = vpop.permute.xlu1 %2535  ;;  %14660 = vst [vmem:[#allocation54_spill] sm:$0xff] %v9994_v40  ;;  %v10005_v15 = vsub.f32 %v5633_v27, %v9994_v40 }
 0x280   :  { %v2769_v8 = vsel %vm2710_vm7, %v2762_v62, %v2594_v28  ;;  %v14662_v28 = vcombine.low %v9160_v44, %v14661_v45 }
 0x281   :  { %2799 = vrot.lane.b32.xlu0 %v9840_v31, %s8123_s15  ;;  %2805 = vrot.lane.b32.xlu1 %v9840_v31, %s8122_s14 }
 0x282   :  { %v2692_v18 = vsel %vm2686_vm4, %v14662_v28, %v9598_v19 }
 0x283   :  { %v2622_v25 = vpop.permute.xlu0 %2621  ;;  %v2564_v1 = vpop.permute.xlu1 %2563 }
 0x284   :  { %v2776_v26 = vsel %vm2718_vm8, %v2769_v8, %v2622_v25  ;;  %v2700_v25 = vsel %vm2694_vm5, %v2692_v18, %v9657_v17 }
 0x285   :  { %2890 = vrot.lane.b32.xlu0 %v9845_v16, %s8123_s15  ;;  %2892 = vrot.lane.b32.xlu1 %v9845_v16, %s8122_s14 }
 0x287   :  { %v2650_v14 = vpop.permute.xlu0 %2649  ;;  %v9992_v43 = vpop.permute.xlu1 %2533 }
 0x288   :  { %v2783_v50 = vsel %vm2726_vm9, %v2776_v26, %v2650_v14  ;;  %v2708_v14 = vsel %vm2702_vm6, %v2700_v25, %v9732_v10  ;;  %v14151_v26 = vand.u32 4294901760, %v10005_v15 }
 0x289   :  { %2900 = vrot.lane.b32.xlu0 %v9867_v32, %s8128_s24  ;;  %2902 = vrot.lane.b32.xlu1 %v9856_v47, %s8128_s24  ;;  %v2716_v19 = vsel %vm2710_vm7, %v2708_v14, %v9782_v21 }
 0x28a   :  { %v2724_v17 = vsel %vm2718_vm8, %v2716_v19, %v9829_v59  ;;  %v5882_v28 = vsub.f32 %v10005_v15, %v14151_v26  ;;  %v14665_v26 = vld [vmem:[#allocation88_spill] sm:$0xff] }
 0x28b   :  { %v2592_v34 = vpop.permute.xlu0 %2591  ;;  %v2678_v52 = vpop.permute.xlu1 %2677  ;;  %v2732_v10 = vsel %vm2726_vm9, %v2724_v17, %v9875_v4 }
 0x28c   :  { %v2790_v37 = vsel %vm2734_vm10, %v2783_v50, %v2678_v52  ;;  %v2740_v50 = vsel %vm2734_vm10, %v2732_v10, %v9907_v20  ;;  %v14664_v20 = vcombine.low %v9193_v0, %v9178_v57  ;;  %v5883_v10 = vand.u32 4294901760, %v5882_v28  ;;  %v14668_v28 = vld [vmem:[#allocation68_spill] sm:$0xff] }
 0x28d   :  { %v5636_v62 = vsel %vm5631_vm11, %v2790_v37, 0  ;;  %2906 = vrot.lane.b32.xlu0 %v9867_v32, %s8129_s25  ;;  %2908 = vrot.lane.b32.xlu1 %v9856_v47, %s8129_s25  ;;  %v10057_v4 = vand.u32 4294901760, %v2740_v50 }
 0x28e   :  { %v10020_v27 = vand.u32 4294901760, %v5636_v62  ;;  %v2747_v18 = vsel %vm2686_vm4, %v14664_v20, %v9941_v56  ;;  %v14669_v20 = vld [vmem:[#allocation69_spill] sm:$0xff] }
 0x28f   :  { %v10024_v8 = vpop.permute.xlu0 %2561  ;;  %v2620_v44 = vpop.permute.xlu1 %2619  ;;  %v2754_v25 = vsel %vm2694_vm5, %v2747_v18, %v2536_v63  ;;  %v10081_v56 = vsub.f32 %v2740_v50, %v10057_v4  ;;  %v14670_v18 = vcombine.low %v14668_v28, %v14669_v20 }
 0x290   :  { %14663 = vst [vmem:[#allocation97_spill] sm:$0xff] %v10020_v27  ;;  %v10029_v37 = vsub.f32 %v5636_v62, %v10020_v27  ;;  %5663 = vmatprep.subr.mxu0 %v10020_v27  ;;  %v2761_v17 = vsel %vm2702_vm6, %v2754_v25, %v2564_v1 }
 0x291   :  { %2934 = vrot.lane.b32.xlu0 %v9867_v32, %s8130_s26  ;;  %2936 = vrot.lane.b32.xlu1 %v9856_v47, %s8130_s26  ;;  %v2768_v57 = vsel %vm2710_vm7, %v2761_v17, %v2592_v34 }
 0x292   :  { %5665 = vmatpush1.msra.mxu0 %v9994_v40  ;;  %v14152_v21 = vand.u32 4294901760, %v10029_v37  ;;  %v2775_v63 = vsel %vm2718_vm8, %v2768_v57, %v2620_v44  ;;  %v14165_v44 = vand.u32 4294901760, %v10081_v56 }
 0x293   :  { %v10045_v52 = vpop.permute.xlu0 %2531  ;;  %v2590_v45 = vpop.permute.xlu1 %2589 }
 0x294   :  { %v5876_v59 = vsub.f32 %v10029_v37, %v14152_v21  ;;  %v14666_v21 = vld [vmem:[#allocation89_spill] sm:$0xff] }
 0x295   :  { %2940 = vrot.lane.b32.xlu0 %v9867_v32, %s8131_s27  ;;  %2942 = vrot.lane.b32.xlu1 %v9856_v47, %s8131_s27  ;;  %v14667_v40 = vcombine.low %v14665_v26, %v14666_v21 }
 0x296   :  { %v5877_v62 = vand.u32 4294901760, %v5876_v59 }
 0x297   :  { %v2648_v14 = vpop.permute.xlu0 %2647  ;;  %v10065_v19 = vpop.permute.xlu1 %2559  ;;  %v2691_v27 = vsel %vm2686_vm4, %v14667_v40, %v9576_v12 }
 0x298   :  { %5878 = vmatprep.subr.mxu1 %v5877_v62  ;;  %v2699_v0 = vsel %vm2694_vm5, %v2691_v27, %v9655_v60  ;;  %v2782_v40 = vsel %vm2726_vm9, %v2775_v63, %v2648_v14  ;;  %v14671_v14 = vcombine.low %v14571_v30, %v14570_v7 }
 0x299   :  { %2797 = vrot.lane.b32.xlu0 %v9916_v42, %s8123_s15  ;;  %2803 = vrot.lane.b32.xlu1 %v9916_v42, %s8122_s14  ;;  %v2707_v12 = vsel %vm2702_vm6, %v2699_v0, %v9713_v35 }
 0x29a   :  { %5884 = vmatpush1.msra.mxu1 %v5883_v10  ;;  %v2715_v26 = vsel %vm2710_vm7, %v2707_v12, %v9780_v6  ;;  %v2746_v17 = vsel %vm2686_vm4, %v14671_v14, %v9939_v24 }
 0x29b   :  { %v2618_v1 = vpop.permute.xlu0 %2617  ;;  %v2676_v34 = vpop.permute.xlu1 %2675  ;;  %v2723_v60 = vsel %vm2718_vm8, %v2715_v26, %v9819_v33  ;;  %v2753_v57 = vsel %vm2694_vm5, %v2746_v17, %v9992_v43 }
 0x29c   :  { %v2789_v21 = vsel %vm2734_vm10, %v2782_v40, %v2676_v34  ;;  %v2731_v35 = vsel %vm2726_vm9, %v2723_v60, %v9873_v23  ;;  %v2690_v23 = vsel %vm2686_vm4, %v14670_v18, %v9574_v58  ;;  %v5894_v58 = vsub.f32 %v10081_v56, %v14165_v44  ;;  %v14726_v44 = vld [vmem:[#allocation33_spill] sm:$0xff] }
 0x29d   :  { %v10092_v27 = vand.u32 4294901760, %v2789_v21  ;;  %2898 = vrot.lane.b32.xlu0 %v9936_v46, %s8128_s24  ;;  %2904 = vrot.lane.b32.xlu1 %v9936_v46, %s8129_s25  ;;  %v2739_v6 = vsel %vm2734_vm10, %v2731_v35, %v9901_v2  ;;  %v2698_v62 = vsel %vm2694_vm5, %v2690_v23, %v9641_v54  ;;  %v2760_v30 = vsel %vm2702_vm6, %v2753_v57, %v10024_v8 }
 0x29e   :  { %v10120_v25 = vand.u32 4294901760, %v2739_v6  ;;  %v2706_v10 = vsel %vm2702_vm6, %v2698_v62, %v9711_v13  ;;  %v2767_v13 = vsel %vm2710_vm7, %v2760_v30, %v2590_v45  ;;  %v5895_v40 = vand.u32 4294901760, %v5894_v58 }
 0x29f   :  { %v10104_v50 = vsub.f32 %v2789_v21, %v10092_v27  ;;  %v2588_v33 = vpop.permute.xlu0 %2587  ;;  %5667 = vmatprep.subr.mxu0 %v10092_v27  ;;  %v2646_v59 = vpop.permute.xlu1 %2645  ;;  %v2714_v7 = vsel %vm2710_vm7, %v2706_v10, %v9765_v41  ;;  %v2774_v8 = vsel %vm2718_vm8, %v2767_v13, %v2618_v1 }
 0x2a0   :  { %5669 = vmatpush1.msra.mxu0 %v10057_v4  ;;  %v2722_v24 = vsel %vm2718_vm8, %v2714_v7, %v9817_v5  ;;  %v10153_v41 = vsub.f32 %v2739_v6, %v10120_v25  ;;  %v2781_v45 = vsel %vm2726_vm9, %v2774_v8, %v2646_v59 }
 0x2a1   :  { %2932 = vrot.lane.b32.xlu0 %v9936_v46, %s8130_s26  ;;  %2938 = vrot.lane.b32.xlu1 %v9936_v46, %s8131_s27  ;;  %v14166_v2 = vand.u32 4294901760, %v10104_v50  ;;  %v2730_v12 = vsel %vm2726_vm9, %v2722_v24, %v9861_v9 }
 0x2a2   :  { %v2738_v5 = vsel %vm2734_vm10, %v2730_v12, %v9899_v22  ;;  %v14673_v22 = vcombine.low %v14565_v36, %v14564_v29  ;;  %v14163_v35 = vand.u32 4294901760, %v10153_v41  ;;  %v14674_v29 = vld [vmem:[#allocation51_spill] sm:$0xff]  ;;  %v14675_v36 = vld [vmem:[#allocation52_spill] sm:$0xff] }
 0x2a3   :  { %v10134_v0 = vpop.permute.xlu0 %2557  ;;  %v2616_v54 = vpop.permute.xlu1 %2615  ;;  %v5888_v63 = vsub.f32 %v10104_v50, %v14166_v2  ;;  %v10168_v9 = vand.u32 4294901760, %v2738_v5 }
 0x2a4   :  { %v2745_v1 = vsel %vm2686_vm4, %v14673_v22, %v9929_v61  ;;  %v14676_v61 = vcombine.low %v14674_v29, %v14675_v36  ;;  %v14681_v22 = vld [vmem:[#allocation59_spill] sm:$0xff] }
 0x2a5   :  { %2855 = vrot.lane.b32.xlu0 %v9867_v32, %s8124_s18  ;;  %2861 = vrot.lane.b32.xlu1 %v9867_v32, %s8125_s19  ;;  %v5889_v43 = vand.u32 4294901760, %v5888_v63  ;;  %14672 = vst [vmem:[#allocation98_spill] sm:$0xff] %v10168_v9  ;;  %v2752_v6 = vsel %vm2694_vm5, %v2745_v1, %v10045_v52  ;;  %v10201_v14 = vsub.f32 %v2738_v5, %v10168_v9  ;;  %v14682_v1 = vld [vmem:[#allocation58_spill] sm:$0xff]  ;;  %v14685_v36 = vld [vmem:[#allocation55_spill] sm:$0xff] }
 0x2a6   :  { %v2759_v18 = vsel %vm2702_vm6, %v2752_v6, %v10065_v19  ;;  %v2689_v23 = vsel %vm2686_vm4, %v14676_v61, %v9556_v39  ;;  %v5906_v39 = vsub.f32 %v10153_v41, %v14163_v35  ;;  %v14683_v6 = vcombine.low %v14681_v22, %v14682_v1 }
 0x2a7   :  { %v2674_v34 = vpop.permute.xlu0 %2673  ;;  %5890 = vmatprep.subr.mxu1 %v5889_v43  ;;  %v10159_v26 = vpop.permute.xlu1 %2585  ;;  %v2766_v52 = vsel %vm2710_vm7, %v2759_v18, %v2588_v33  ;;  %v2697_v19 = vsel %vm2694_vm5, %v2689_v23, %v9639_v53  ;;  %v14684_v18 = vld [vmem:[#allocation10_spill] sm:$0xff] }
 0x2a8   :  { %v2788_v21 = vsel %vm2734_vm10, %v2781_v45, %v2674_v34  ;;  %5896 = vmatpush1.msra.mxu1 %v5895_v40  ;;  %v2773_v17 = vsel %vm2718_vm8, %v2766_v52, %v2616_v54  ;;  %v2705_v33 = vsel %vm2702_vm6, %v2697_v19, %v9695_v49  ;;  %v5907_v13 = vand.u32 4294901760, %v5906_v39  ;;  %v14686_v52 = vld [vmem:[#allocation12_spill] sm:$0xff] }
 0x2a9   :  { %v10162_v60 = vand.u32 4294901760, %v2788_v21  ;;  %2914 = vrot.lane.b32.xlu0 %v9856_v47, %s8124_s18  ;;  %2916 = vrot.lane.b32.xlu1 %v9856_v47, %s8125_s19  ;;  %v2713_v63 = vsel %vm2710_vm7, %v2705_v33, %v9763_v55  ;;  %v14161_v55 = vand.u32 4294901760, %v10201_v14  ;;  %v14687_v39 = vld [vmem:[#allocation24_spill] sm:$0xff] }
 0x2aa   :  { %v2721_v7 = vsel %vm2718_vm8, %v2713_v63, %v9813_v11 }
 0x2ab   :  { %v10179_v59 = vsub.f32 %v2788_v21, %v10162_v60  ;;  %v2644_v28 = vpop.permute.xlu0 %2643  ;;  %5671 = vmatprep.subr.mxu0 %v10162_v60  ;;  %v10182_v20 = vpop.permute.xlu1 %2555  ;;  %v2729_v24 = vsel %vm2726_vm9, %v2721_v7, %v9859_v48  ;;  %v14678_v48 = vld [vmem:[#allocation35_spill] sm:$0xff]  ;;  %v14680_v21 = vld [vmem:[#allocation86_spill] sm:$0xff] }
 0x2ac   :  { %5673 = vmatpush1.msra.mxu0 %v10120_v25  ;;  %v2780_v58 = vsel %vm2726_vm9, %v2773_v17, %v2644_v28  ;;  %v2737_v43 = vsel %vm2734_vm10, %v2729_v24, %v9893_v51  ;;  %v2744_v28 = vsel %vm2686_vm4, %v14683_v6, %v14680_v21 }
 0x2ad   :  { %2853 = vrot.lane.b32.xlu0 %v9936_v46, %s8124_s18  ;;  %2859 = vrot.lane.b32.xlu1 %v9936_v46, %s8125_s19  ;;  %v14164_v62 = vand.u32 4294901760, %v10179_v59  ;;  %v10246_v34 = vand.u32 4294901760, %v2737_v43 }
 0x2af   :  { %v2614_v10 = vpop.permute.xlu0 %2613  ;;  %v2672_v57 = vpop.permute.xlu1 %2671  ;;  %v5900_v53 = vsub.f32 %v10179_v59, %v14164_v62 }
 0x2b0   :  { %v2787_v54 = vsel %vm2734_vm10, %v2780_v58, %v2672_v57 }
 0x2b1   :  { %v10218_v30 = vand.u32 4294901760, %v2787_v54  ;;  %2811 = vrot.lane.b32.xlu0 %v9840_v31, %s8124_s18  ;;  %v5901_v49 = vand.u32 4294901760, %v5900_v53  ;;  %2817 = vrot.lane.b32.xlu1 %v9840_v31, %s8125_s19  ;;  %v14677_v31 = vld [vmem:[#allocation34_spill] sm:$0xff]  ;;  %v14688_v53 = vld [vmem:[#allocation83_spill] sm:$0xff] }
 0x2b2   :  { %v14679_v40 = vcombine.low %v14677_v31, %v14678_v48 }
 0x2b3   :  { %v10230_v11 = vsub.f32 %v2787_v54, %v10218_v30  ;;  %v2584_v12 = vpop.permute.xlu0 %2583  ;;  %5675 = vmatprep.subr.mxu0 %v10218_v30  ;;  %5902 = vmatprep.subr.mxu1 %v5901_v49  ;;  %v2642_v8 = vpop.permute.xlu1 %2641  ;;  %v10280_v54 = vsub.f32 %v2737_v43, %v10246_v34  ;;  %v14689_v49 = vld [vmem:[#allocation75_spill] sm:$0xff]  ;;  %v14690_v43 = vld [vmem:[#allocation96_spill] sm:$0xff] }
 0x2b4   :  { %5677 = vmatpush1.msra.mxu0 %v10168_v9  ;;  %5908 = vmatpush1.msra.mxu1 %v5907_v13  ;;  %v2688_v5 = vsel %vm2686_vm4, %v14679_v40, %v9554_v3  ;;  %v5918_v3 = vsub.f32 %v10201_v14, %v14161_v55 }
 0x2b5   :  { %2894 = vrot.lane.b32.xlu0 %v9845_v16, %s8124_s18  ;;  %v14162_v51 = vand.u32 4294901760, %v10230_v11  ;;  %2896 = vrot.lane.b32.xlu1 %v9845_v16, %s8125_s19  ;;  %v2696_v45 = vsel %vm2694_vm5, %v2688_v5, %v9619_v38  ;;  %v2751_v16 = vsel %vm2694_vm5, %v2744_v28, %v14685_v36  ;;  %v14691_v5 = vld [vmem:[#allocation41_spill] sm:$0xff]  ;;  %v14159_v22 = vand.u32 4294901760, %v10280_v54 }
 0x2b6   :  { %v2704_v29 = vsel %vm2702_vm6, %v2696_v45, %v14684_v18  ;;  %v2758_v17 = vsel %vm2702_vm6, %v2751_v16, %v10134_v0  ;;  %v5919_v7 = vand.u32 4294901760, %v5918_v3 }
 0x2b7   :  { %v10260_v61 = vpop.permute.xlu0 %2553  ;;  %v2612_v38 = vpop.permute.xlu1 %2611  ;;  %v5912_v23 = vsub.f32 %v10230_v11, %v14162_v51  ;;  %v2712_v19 = vsel %vm2710_vm7, %v2704_v29, %v14686_v52  ;;  %v2765_v58 = vsel %vm2710_vm7, %v2758_v17, %v10159_v26  ;;  %v5930_v52 = vsub.f32 %v10280_v54, %v14159_v22  ;;  %v14721_v22 = vld [vmem:[#allocation31_spill] sm:$0xff] }
 0x2b8   :  { %v2720_v33 = vsel %vm2718_vm8, %v2712_v19, %v14687_v39  ;;  %v2772_v0 = vsel %vm2718_vm8, %v2765_v58, %v2614_v10  ;;  %v14692_v10 = vld [vmem:[#allocation40_spill] sm:$0xff] }
 0x2b9   :  { %2809 = vrot.lane.b32.xlu0 %v9916_v42, %s8124_s18  ;;  %v5913_v57 = vand.u32 4294901760, %v5912_v23  ;;  %2815 = vrot.lane.b32.xlu1 %v9916_v42, %s8125_s19  ;;  %v2728_v63 = vsel %vm2726_vm9, %v2720_v33, %v14688_v53  ;;  %v2779_v26 = vsel %vm2726_vm9, %v2772_v0, %v2642_v8  ;;  %v14693_v45 = vcombine.low %v14691_v5, %v14692_v10  ;;  %v14694_v8 = vld [vmem:[#allocation38_spill] sm:$0xff] }
 0x2ba   :  { %v2736_v24 = vsel %vm2734_vm10, %v2728_v63, %v14689_v49 }
 0x2bb   :  { %v2670_v13 = vpop.permute.xlu0 %2669  ;;  %5914 = vmatprep.subr.mxu1 %v5913_v57  ;;  %v10286_v31 = vpop.permute.xlu1 %2581  ;;  %v10291_v40 = vand.u32 4294901760, %v2736_v24  ;;  %v2743_v21 = vsel %vm2686_vm4, %v14693_v45, %v14690_v43  ;;  %v5931_v57 = vand.u32 4294901760, %v5930_v52  ;;  %v14703_v52 = vld [vmem:[#allocation19_spill] sm:$0xff] }
 0x2bc   :  { %v2786_v42 = vsel %vm2734_vm10, %v2779_v26, %v2670_v13  ;;  %5920 = vmatpush1.msra.mxu1 %v5919_v7  ;;  %v2750_v1 = vsel %vm2694_vm5, %v2743_v21, %v14694_v8 }
 0x2bd   :  { %v10289_v48 = vand.u32 4294901760, %v2786_v42  ;;  %v2757_v18 = vsel %vm2702_vm6, %v2750_v1, %v10182_v20  ;;  %v10313_v16 = vsub.f32 %v2736_v24, %v10291_v40  ;;  %v14_v1 = vld [vmem:[%s14012_s1] sm:$0xff] }
 0x2be   :  { %v2764_v29 = vsel %vm2710_vm7, %v2757_v18, %v2584_v12 }
 0x2bf   :  { %v10302_v6 = vsub.f32 %v2786_v42, %v10289_v48  ;;  %v2640_v28 = vpop.permute.xlu0 %2639  ;;  %5679 = vmatprep.subr.mxu0 %v10289_v48  ;;  %v10305_v3 = vpop.permute.xlu1 %2609  ;;  %14695 = vst [vmem:[#allocation37_spill] sm:$0xff] %v10313_v16  ;;  %v2771_v23 = vsel %vm2718_vm8, %v2764_v29, %v2612_v38  ;;  %v14157_v38 = vand.u32 4294901760, %v10313_v16  ;;  %v14701_v29 = vld [vmem:[#allocation36_spill] sm:$0xff] }
 0x2c0   :  { %5681 = vmatpush1.msra.mxu0 %v10246_v34  ;;  %v2778_v19 = vsel %vm2726_vm9, %v2771_v23, %v2640_v28  ;;  %v14702_v23 = vld [vmem:[#allocation18_spill] sm:$0xff] }
 0x2c1   :  { %v14160_v36 = vand.u32 4294901760, %v10302_v6  ;;  %v5942_v49 = vsub.f32 %v10313_v16, %v14157_v38  ;;  %v14715_v38 = vld [vmem:[#allocation102_spill] sm:$0xff] }
 0x2c3   :  { %v2668_v17 = vpop.permute.xlu0 %2667  ;;  %v10320_v39 = vpop.permute.xlu1 %2637  ;;  %v5924_v20 = vsub.f32 %v10302_v6, %v14160_v36  ;;  %v5943_v45 = vand.u32 4294901760, %v5942_v49  ;;  %v14722_v36 = vld [vmem:[#allocation30_spill] sm:$0xff] }
 0x2c4   :  { %v2785_v12 = vsel %vm2734_vm10, %v2778_v19, %v2668_v17  ;;  %v14704_v19 = vcombine.low %v14702_v23, %v14703_v52  ;;  %v14723_v55 = vcombine.low %v14721_v22, %v14722_v36 }
 0x2c5   :  { %v10326_v33 = vand.u32 4294901760, %v2785_v12  ;;  %v5925_v58 = vand.u32 4294901760, %v5924_v20 }
 0x2c6   :  { %v2687_v17 = vsel %vm2686_vm4, %v14704_v19, %v14701_v29  ;;  %v14711_v29 = vld [vmem:[#allocation27_spill] sm:$0xff]  ;;  %v14712_v19 = vld [vmem:[#allocation21_spill] sm:$0xff] }
 0x2c7   :  { %v10330_v53 = vsub.f32 %v2785_v12, %v10326_v33  ;;  %v10332_v63 = vpop.permute.xlu0 %2843  ;;  %5683 = vmatprep.subr.mxu0 %v10326_v33  ;;  %5926 = vmatprep.subr.mxu1 %v5925_v58  ;;  %v10335_v0 = vpop.permute.xlu1 %2849  ;;  %v5596_v12 = vsel %vm5594_vm12, %v14_v1, 0  ;;  %v14705_v58 = vld [vmem:[#allocation8_spill] sm:$0xff] }
 0x2c8   :  { %14696 = vst [vmem:[#allocation39_spill] sm:$0xff] %v10332_v63  ;;  %14697 = vst [vmem:[#allocation50_spill] sm:$0xff] %v10335_v0  ;;  %5685 = vmatpush1.msra.mxu0 %v10291_v40  ;;  %5932 = vmatpush1.msra.mxu1 %v5931_v57  ;;  %v14169_v43 = vrot.slane %v10332_v63, 4  ;;  %v14168_v18 = vrot.slane %v10335_v0, 4  ;;  %v2695_v57 = vsel %vm2694_vm5, %v2687_v17, %v14705_v58  ;;  %v10387_v1 = vand.u32 4294901760, %v5596_v12 }
 0x2c9   :  { %v14158_v7 = vand.u32 4294901760, %v10330_v53 }
 0x2ca   :  { %14710 = vst [vmem:[#allocation104_spill] sm:$0xff] %v10387_v1 }
 0x2cb   :  { %v10342_v24 = vpop.permute.xlu0 %2886  ;;  %v10344_v26 = vpop.permute.xlu1 %2910  ;;  %v5936_v13 = vsub.f32 %v10330_v53, %v14158_v7 }
 0x2cc   :  { %14698 = vst [vmem:[#allocation53_spill] sm:$0xff] %v10342_v24  ;;  %v3170_v42 = vrot.slane %v10344_v26, 4 }
 0x2cd   :  { %v5937_v5 = vand.u32 4294901760, %v5936_v13 }
 0x2ce   :  { %v3171_v10 = vsel %vm375_vm2, %v14169_v43, %v3170_v42  ;;  %v15_v42 = vld [vmem:[%s14012_s1 + $0x8] sm:$0xff] }
 0x2cf   :  { %v10354_v21 = vpop.permute.xlu0 %2912  ;;  %5938 = vmatprep.subr.mxu1 %v5937_v5  ;;  %3241 = vrot.lane.b32.xlu0 %v3171_v10, %s8125_s19  ;;  %v10357_v8 = vpop.permute.xlu1 %2920  ;;  %v14708_v5 = vld [vmem:[#allocation14_spill] sm:$0xff]  ;;  %v5599_v52 = vsel %vm5594_vm12, %v15_v42, 0 }
 0x2d0   :  { %14699 = vst [vmem:[#allocation22_spill] sm:$0xff] %v10354_v21  ;;  %14700 = vst [vmem:[#allocation25_spill] sm:$0xff] %v10357_v8  ;;  %v3175_v28 = vrot.slane %v10354_v21, 4  ;;  %5944 = vmatpush1.msra.mxu1 %v5943_v45  ;;  %v2703_v10 = vsel %vm2702_vm6, %v2695_v57, %v14708_v5  ;;  %v14709_v45 = vld [vmem:[#allocation29_spill] sm:$0xff]  ;;  %v16_v5 = vld [vmem:[%s14012_s1 + $0x10] sm:$0xff]  ;;  %v14171_v43 = vrot.slane %v10357_v8, 4 }
 0x2d2   :  { %v3176_v20 = vsel %vm375_vm2, %v14168_v18, %v3175_v28  ;;  %v2711_v28 = vsel %vm2710_vm7, %v2703_v10, %v14709_v45  ;;  %v10404_v10 = vsub.f32 %v5596_v12, %v10387_v1  ;;  %v10406_v45 = vand.u32 4294901760, %v5599_v52  ;;  %v14720_v12 = vld [vmem:[#allocation66_spill] sm:$0xff] }
 0x2d3   :  { %v10375_v49 = vpop.permute.xlu0 %2922  ;;  %3245 = vrot.lane.b32.xlu1 %v3176_v20, %s8125_s19  ;;  %v10378_v13 = vpop.permute.xlu1 %2926  ;;  %v2719_v23 = vsel %vm2718_vm8, %v2711_v28, %v14711_v29  ;;  %v2742_v51 = vsel %vm2686_vm4, %v14723_v55, %v14720_v12  ;;  %v14727_v12 = vld [vmem:[#allocation105_spill] sm:$0xff] }
 0x2d4   :  { %14706 = vst [vmem:[#allocation110_spill] sm:$0xff] %v10375_v49  ;;  %14707 = vst [vmem:[#allocation107_spill] sm:$0xff] %v10378_v13  ;;  %v2727_v17 = vsel %vm2726_vm9, %v2719_v23, %v14712_v19  ;;  %v5602_v23 = vsel %vm5594_vm12, %v16_v5, 0  ;;  %v3190_v35 = vrot.slane %v10375_v49, 4  ;;  %v2749_v22 = vsel %vm2694_vm5, %v2742_v51, %v14726_v44 }
 0x2d5   :  { %v2735_v57 = vsel %vm2734_vm10, %v2727_v17, %v14715_v38  ;;  %14716 = vst [vmem:[#allocation106_spill] sm:$0xff] %v10404_v10  ;;  %14717 = vst [vmem:[#allocation103_spill] sm:$0xff] %v10406_v45  ;;  %v10415_v38 = vand.u32 4294901760, %v10404_v10  ;;  %v10418_v17 = vsub.f32 %v5599_v52, %v10406_v45  ;;  %v10429_v62 = vand.u32 4294901760, %v5602_v23 }
 0x2d6   :  { %v10408_v42 = vand.u32 4294901760, %v2735_v57  ;;  %v2756_v18 = vsel %vm2702_vm6, %v2749_v22, %v10260_v61  ;;  %v3191_v61 = vsel %vm375_vm2, %v14171_v43, %v3190_v35  ;;  %v14178_v43 = vrot.slane %v10378_v13, 4 }
 0x2d7   :  { %v10394_v20 = vpop.permute.xlu0 %2928  ;;  %v10396_v58 = vpop.permute.xlu1 %2930  ;;  %14718 = vst [vmem:[#allocation92_spill] sm:$0xff] %v10415_v38  ;;  %14719 = vst [vmem:[#allocation91_spill] sm:$0xff] %v10418_v17  ;;  %v2763_v44 = vsel %vm2710_vm7, %v2756_v18, %v10286_v31  ;;  %v5726_v51 = vsub.f32 %v10404_v10, %v10415_v38  ;;  %v10465_v31 = vsub.f32 %v5602_v23, %v10429_v62 }
 0x2d8   :  { %14713 = vst [vmem:[#allocation101_spill] sm:$0xff] %v10394_v20  ;;  %14714 = vst [vmem:[#allocation95_spill] sm:$0xff] %v10396_v58  ;;  %v10435_v52 = vsub.f32 %v2735_v57, %v10408_v42 }
 0x2d9   :  { %14724 = vst [vmem:[#allocation99_spill] sm:$0xff] %v10429_v62  ;;  %14730 = vst [vmem:[#allocation90_spill] sm:$0xff] %v10465_v31 }
 0x2da   :  { %14725 = vst [vmem:[#allocation93_spill] sm:$0xff] %v10435_v52 }
 0x2db   :  { %v10410_v28 = vpop.permute.xlu0 %2946  ;;  %v2949_v29 = vpop.permute.xlu1 %2948 }
 0x2dc   :  { %v14167_v19 = vrot.slane %v10410_v28, 4  ;;  %v3180_v7 = vrot.slane %v2949_v29, 4  ;;  %v17_v29 = vld [vmem:[%s14012_s1 + $0x18] sm:$0xff] }
 0x2dd   :  { %v5605_v2 = vsel %vm5594_vm12, %v17_v29, 0 }
 0x2de   :  { %v3181_v5 = vsel %vm375_vm2, %v14167_v19, %v3180_v7  ;;  %v14728_v7 = vld [vmem:[#allocation94_spill] sm:$0xff]  ;;  %v10478_v23 = vand.u32 4294901760, %v5605_v2 }
 0x2df   :  { %v10439_v36 = vpop.permute.xlu0 %2952  ;;  %3249 = vrot.lane.b32.xlu0 %v3181_v5, %s8125_s19  ;;  %v2955_v55 = vpop.permute.xlu1 %2954  ;;  %v3200_v19 = vrot.slane %v14728_v7, 4  ;;  %v10453_v5 = vand.u32 4294901760, %v10418_v17  ;;  %v2770_v7 = vsel %vm2718_vm8, %v2763_v44, %v10305_v3  ;;  %v14732_v44 = vrot.slane %v14727_v12, 4 }
 0x2e0   :  { %v14172_v57 = vrot.slane %v10439_v36, 4  ;;  %v3185_v49 = vrot.slane %v2955_v55, 4  ;;  %v2777_v18 = vsel %vm2726_vm9, %v2770_v7, %v10320_v39  ;;  %v3195_v55 = vrot.slane %v10394_v20, 4  ;;  %14733 = vst [vmem:[#allocation82_spill] sm:$0xff] %v10478_v23 }
 0x2e1   :  { %14729 = vst [vmem:[#allocation87_spill] sm:$0xff] %v10453_v5  ;;  %v10483_v7 = vand.u32 4294901760, %v5726_v51  ;;  %v14745_v20 = vrot.slane %v10342_v24, 4 }
 0x2e2   :  { %v3186_v22 = vsel %vm375_vm2, %v14172_v57, %v3185_v49  ;;  %v3201_v49 = vsel %vm375_vm2, %v14732_v44, %v3200_v19  ;;  %v10493_v19 = vand.u32 4294901760, %v10465_v31  ;;  %v3205_v44 = vrot.slane %v10396_v58, 4 }
 0x2e3   :  { %v2666_v29 = vpop.permute.xlu0 %2665  ;;  %3257 = vrot.lane.b32.xlu0 %v3191_v61, %s8125_s19  ;;  %3253 = vrot.lane.b32.xlu1 %v3186_v22, %s8125_s19  ;;  %v10472_v3 = vpop.permute.xlu1 %2841  ;;  %14734 = vst [vmem:[#allocation79_spill] sm:$0xff] %v10483_v7  ;;  %v5737_v61 = vsub.f32 %v10418_v17, %v10453_v5  ;;  %v18_v22 = vld [vmem:[%s14012_s1 + $0x20] sm:$0xff]  ;;  %v3196_v5 = vsel %vm375_vm2, %v14178_v43, %v3195_v55  ;;  %v14742_v43 = vmov 0.0  }
 0x2e4   :  { %14731 = vst [vmem:[#allocation85_spill] sm:$0xff] %v10472_v3  ;;  %v2784_v35 = vsel %vm2734_vm10, %v2777_v18, %v2666_v29  ;;  %v3167_v18 = vrot.slane %v10472_v3, 4  ;;  %14735 = vst [vmem:[#allocation74_spill] sm:$0xff] %v10493_v19  ;;  %v10511_v29 = vsub.f32 %v5605_v2, %v10478_v23  ;;  %v14741_v2 = vrot.slane %v10332_v63, 4 }
 0x2e5   :  { %v10481_v39 = vand.u32 4294901760, %v2784_v35  ;;  %v10517_v58 = vand.u32 4294901760, %v5737_v61  ;;  %v5748_v61 = vsub.f32 %v10465_v31, %v10493_v19  ;;  %v3206_v17 = vsel %vm375_vm2, %v14745_v20, %v3205_v44 }
 0x2e6   :  { %14739 = vst [vmem:[#allocation73_spill] sm:$0xff] %v10511_v29  ;;  %v10551_v19 = vand.u32 4294901760, %v10511_v29 }
 0x2e7   :  { %v10497_v57 = vsub.f32 %v2784_v35, %v10481_v39  ;;  %v10499_v51 = vpop.permute.xlu0 %2847  ;;  %5687 = vmatprep.subr.mxu0 %v10481_v39  ;;  %3265 = vrot.lane.b32.xlu0 %v3201_v49, %s8125_s19  ;;  %v10506_v3 = vpop.permute.xlu1 %2884  ;;  %v5608_v35 = vsel %vm5594_vm12, %v18_v22, 0  ;;  %14740 = vst [vmem:[#allocation72_spill] sm:$0xff] %v10517_v58  ;;  %v3169_v22 = vsel %vm375_vm2, %v3167_v18, %v14741_v2 }
 0x2e8   :  { %14737 = vst [vmem:[#allocation81_spill] sm:$0xff] %v10499_v51  ;;  %14738 = vst [vmem:[#allocation78_spill] sm:$0xff] %v10506_v3  ;;  %3261 = vrot.lane.b32.xlu1 %v3196_v5, %s8125_s19  ;;  %5689 = vmatpush1.msra.mxu0 %v10408_v42  ;;  %v19_v5 = vld [vmem:[%s14012_s1 + $0x28] sm:$0xff]  ;;  %v10546_v63 = vand.u32 4294901760, %v5608_v35 }
 0x2e9   :  { %14736 = vst [vmem:[#allocation84_spill] sm:$0xff] %v10497_v57  ;;  %5728 = vmatmul.mubr.f32.vlgmr.msra.gmra.mxu0 %v10483_v7  ;;  %6094 = vmatprep.subr.mxu0 %v10029_v37  ;;  %v14743_v7 = vand.u32 4294901760, %v10435_v52  ;;  %v14747_v2 = vand.u32 4294901760, %v10497_v57  ;;  %14749 = vst [vmem:[#allocation65_spill] sm:$0xff] %v10551_v19  ;;  %v5611_v20 = vsel %vm5594_vm12, %v19_v5, 0  ;;  %v14751_v5 = vrot.slane %v10335_v0, 4 }
 0x2ea   :  { %6097 = vmatpush1.msra.mxu0 %v10005_v15  ;;  %5733 = vmatprep.mubr.f32.mxu0 %v14742_v43  ;;  %14748 = vst [vmem:[#allocation70_spill] sm:$0xff] %v10546_v63  ;;  %v10568_v31 = vsub.f32 %v5608_v35, %v10546_v63  ;;  %v10570_v38 = vand.u32 4294901760, %v5611_v20  ;;  %v21_v0 = vld [vmem:[%s14012_s1 + $0x38] sm:$0xff] }
 0x2eb   :  { %v5954_v49 = vsub.f32 %v10435_v52, %v14743_v7  ;;  %v10533_v55 = vpop.permute.xlu0 %2918  ;;  %6100 = vmatprep.subr.mxu0 %v10104_v50  ;;  %3239 = vrot.lane.b32.xlu0 %v3169_v22, %s8125_s19  ;;  %v10540_v18 = vpop.permute.xlu1 %2924  ;;  %v5948_v21 = vsub.f32 %v10497_v57, %v14747_v2  ;;  %v3172_v7 = vrot.slane %v10499_v51, 4  ;;  %v10558_v2 = vand.u32 4294901760, %v5748_v61 }
 0x2ec   :  { %14744 = vst [vmem:[#allocation71_spill] sm:$0xff] %v10533_v55  ;;  %14746 = vst [vmem:[#allocation67_spill] sm:$0xff] %v10540_v18  ;;  %3269 = vrot.lane.b32.xlu1 %v3206_v17, %s8125_s19  ;;  %6103 = vmatpush1.msra.mxu0 %v10081_v56  ;;  %v20_v17 = vld [vmem:[%s14012_s1 + $0x30] sm:$0xff] }
 0x2ed   :  { %5739 = vmatmul.mubr.f32.gmra.mxu0 %v10517_v58  ;;  %6106 = vmatprep.subr.mxu0 %v10179_v59  ;;  %v5949_v44 = vand.u32 4294901760, %v5948_v21  ;;  %v5955_v22 = vand.u32 4294901760, %v5954_v49  ;;  %14750 = vst [vmem:[#allocation63_spill] sm:$0xff] %v10558_v2  ;;  %v3174_v58 = vsel %vm375_vm2, %v3172_v7, %v14751_v5  ;;  %14752 = vst [vmem:[#allocation61_spill] sm:$0xff] %v10568_v31  ;;  %v5614_v35 = vsel %vm5594_vm12, %v20_v17, 0  ;;  %v14755_v7 = vld [vmem:[#allocation97_spill] sm:$0xff] }
 0x2ee   :  { %6109 = vmatpush1.msra.mxu0 %v10153_v41  ;;  %5744 = vmatprep.mubr.f32.mxu0 %v14742_v43  ;;  %14753 = vst [vmem:[#allocation57_spill] sm:$0xff] %v10570_v38  ;;  %v14757_v5 = vrot.slane %v10439_v36, 4  ;;  %v10596_v17 = vand.u32 4294901760, %v10568_v31  ;;  %v22_v36 = vld [vmem:[%s14012_s1 + $0x40] sm:$0xff] }
 0x2ef   :  { %v2945_v51 = vpop.permute.xlu0 %2944  ;;  %5950 = vmatprep.subr.mxu1 %v5949_v44  ;;  %6112 = vmatprep.subr.mxu0 %v10230_v11  ;;  %v2951_v21 = vpop.permute.xlu1 %2950  ;;  %v5759_v44 = vsub.f32 %v10511_v29, %v10551_v19  ;;  %v10606_v19 = vand.u32 4294901760, %v5614_v35  ;;  %v5620_v29 = vsel %vm5594_vm12, %v22_v36, 0  ;;  %v14772_v36 = vrot.slane %v10357_v8, 4 }
 0x2f0   :  { %v3177_v49 = vrot.slane %v2945_v51, 4  ;;  %3243 = vrot.lane.b32.xlu1 %v3174_v58, %s8125_s19  ;;  %v3182_v61 = vrot.slane %v2951_v21, 4  ;;  %5956 = vmatpush1.msra.mxu1 %v5955_v22  ;;  %v14754_v58 = vrot.slane %v10410_v28, 4  ;;  %14759 = vst [vmem:[#allocation60_spill] sm:$0xff] %v10596_v17  ;;  %v5617_v28 = vsel %vm5594_vm12, %v21_v0, 0 }
 0x2f1   :  { %6115 = vmatpush1.msra.mxu0 %v10201_v14  ;;  %5991 = vmatmul.mubr.f32.vlgmr.msra.gmra.mxu1 %v10387_v1  ;;  %14763 = vst [vmem:[#allocation47_spill] sm:$0xff] %v10606_v19  ;;  %v10615_v0 = vand.u32 4294901760, %v5617_v28 }
 0x2f2   :  { %5750 = vmatmul.mubr.f32.gmra.mxu0 %v10558_v2  ;;  %6118 = vmatprep.subr.mxu0 %v10302_v6  ;;  %v3179_v51 = vsel %vm375_vm2, %v3177_v49, %v14754_v58  ;;  %v3184_v21 = vsel %vm375_vm2, %v3182_v61, %v14757_v5  ;;  %v10599_v2 = vsub.f32 %v5611_v20, %v10570_v38  ;;  %v14761_v49 = vld [vmem:[#allocation54_spill] sm:$0xff]  ;;  %v10604_v58 = vand.u32 4294901760, %v5759_v44 }
 0x2f3   :  { %6282 = vmatprep.subr.mxu1 %v14755_v7  ;;  %6121 = vmatpush1.msra.mxu0 %v10280_v54  ;;  %v10588_v22 = vpop.permute.xlu0 %2799  ;;  %v10593_v1 = vpop.permute.xlu1 %2805  ;;  %14764 = vst [vmem:[#allocation45_spill] sm:$0xff] %v10615_v0  ;;  %v3187_v20 = vrot.slane %v10533_v55, 4  ;;  %v10633_v55 = vsub.f32 %v5614_v35, %v10606_v19  ;;  %v14771_v35 = vand.u32 4294901760, %v10029_v37  ;;  %v14775_v37 = vrot.slane %v10378_v13, 4 }
 0x2f4   :  { %14756 = vst [vmem:[#allocation64_spill] sm:$0xff] %v10588_v22  ;;  %14758 = vst [vmem:[#allocation62_spill] sm:$0xff] %v10593_v1  ;;  %6284 = vmatpush1.msra.mxu1 %v14761_v49  ;;  %6124 = vmatprep.subr.mxu0 %v10330_v53  ;;  %v10627_v5 = vand.u32 4294901760, %v10599_v2 }
 0x2f5   :  { %14760 = vst [vmem:[#allocation56_spill] sm:$0xff] %v10599_v2  ;;  %14762 = vst [vmem:[#allocation49_spill] sm:$0xff] %v10604_v58  ;;  %6286 = vmatprep.subr.mxu1 %v10092_v27  ;;  %3247 = vrot.lane.b32.xlu0 %v3179_v51, %s8125_s19  ;;  %v5770_v51 = vsub.f32 %v10568_v31, %v10596_v17  ;;  %v23_v31 = vld [vmem:[%s14012_s1 + $0x48] sm:$0xff] }
 0x2f6   :  { %3251 = vrot.lane.b32.xlu1 %v3184_v21, %s8125_s19  ;;  %5755 = vmatprep.mubr.f32.mxu0 %v14742_v43  ;;  %14767 = vst [vmem:[#allocation46_spill] sm:$0xff] %v10627_v5  ;;  %v3192_v21 = vrot.slane %v10540_v18, 4  ;;  %14768 = vst [vmem:[#allocation44_spill] sm:$0xff] %v10633_v55 }
 0x2f7   :  { %5996 = vmatprep.mubr.f32.mxu1 %v14742_v43  ;;  %6127 = vmatpush1.msra.mxu0 %v10313_v16  ;;  %v10620_v61 = vpop.permute.xlu0 %2890  ;;  %v10622_v44 = vpop.permute.xlu1 %2892  ;;  %v14769_v16 = vld [vmem:[#allocation77_spill] sm:$0xff]  ;;  %v10653_v18 = vand.u32 4294901760, %v5770_v51  ;;  %v10670_v51 = vand.u32 4294901760, %v10633_v55 }
 0x2f8   :  { %14765 = vst [vmem:[#allocation43_spill] sm:$0xff] %v10620_v61  ;;  %14766 = vst [vmem:[#allocation48_spill] sm:$0xff] %v10622_v44  ;;  %6288 = vmatpush1.msra.mxu1 %v10057_v4  ;;  %5761 = vmatmul.mubr.f32.gmra.mxu0 %v10604_v58  ;;  %v3197_v17 = vrot.slane %v14769_v16, 4  ;;  %v10645_v58 = vsub.f32 %v5617_v28, %v10615_v0  ;;  %v10661_v28 = vand.u32 4294901760, %v5620_v29 }
 0x2f9   :  { %5998 = vmatmul.mubr.f32.gmra.mxu1 %v10406_v45  ;;  %6130 = vmatprep.subr.mxu0 %v10497_v57  ;;  %v3189_v45 = vsel %vm375_vm2, %v3187_v20, %v14772_v36  ;;  %14773 = vst [vmem:[#allocation32_spill] sm:$0xff] %v10653_v18  ;;  %v3202_v20 = vrot.slane %v10506_v3, 4  ;;  %14776 = vst [vmem:[#allocation23_spill] sm:$0xff] %v10670_v51  ;;  %v5623_v36 = vsel %vm5594_vm12, %v23_v31, 0  ;;  %v10686_v31 = vld [vmem:[%s14011_s0 + $0x20] sm:$0xff] }
 0x2fa   :  { %6290 = vmatprep.subr.mxu1 %v10162_v60  ;;  %6133 = vmatpush1.msra.mxu0 %v10435_v52  ;;  %14770 = vst [vmem:[#allocation42_spill] sm:$0xff] %v10645_v58  ;;  %v5781_v52 = vsub.f32 %v10599_v2, %v10627_v5  ;;  %14774 = vst [vmem:[#allocation28_spill] sm:$0xff] %v10661_v28  ;;  %v14777_v5 = vrot.slane %v14727_v12, 4  ;;  %v10705_v8 = vand.u32 4294901760, %v5623_v36 }
 0x2fb   :  { %6292 = vmatpush1.msra.mxu1 %v10120_v25  ;;  %6471 = vmatprep.subr.mxu0 %v14771_v35  ;;  %v10655_v16 = vpop.permute.xlu0 %2900  ;;  %v10657_v57 = vpop.permute.xlu1 %2902  ;;  %v3194_v35 = vsel %vm375_vm2, %v3192_v21, %v14775_v37  ;;  %v8118_v37 = vld [vmem:[%s14011_s0 + $0x28] sm:$0x3f]  ;;  %v10703_v21 = vsub.f32 %v5620_v29, %v10661_v28  ;;  %v14783_v29 = vrot.slane %v10686_v31, 6 }
 0x2fc   :  { %6294 = vmatprep.subr.mxu1 %v10218_v30  ;;  %3255 = vrot.lane.b32.xlu0 %v3189_v45, %s8125_s19  ;;  %v3199_v2 = vsel %vm375_vm2, %v3197_v17, %v14777_v5  ;;  %v24_v45 = vld [vmem:[%s14012_s1 + $0x50] sm:$0xff]  ;;  %v3306_v17 = vrot.slane %v8118_v37, 6  ;;  %v10693_v5 = vand.u32 4294901760, %v10645_v58  ;;  %v3130_v13 = vrot.slane %v8118_v37, 4  ;;  %14780 = vst [vmem:[#allocation26_spill] sm:$0xff] %v10705_v8 }
 0x2fd   :  { %3259 = vrot.lane.b32.xlu1 %v3194_v35, %s8125_s19  ;;  %5766 = vmatprep.mubr.f32.mxu0 %v14742_v43  ;;  %14779 = vst [vmem:[#allocation3_spill] sm:$0xff] %v10703_v21  ;;  %v5792_v37 = vsub.f32 %v10633_v55, %v10670_v51  ;;  %v5626_v3 = vsel %vm5594_vm12, %v24_v45, 0 }
 0x2fe   :  { %6003 = vmatprep.mubr.f32.mxu1 %v14742_v43  ;;  %6296 = vmatpush1.msra.mxu1 %v10168_v9  ;;  %14778 = vst [vmem:[#allocation17_spill] sm:$0xff] %v10693_v5  ;;  %v10712_v9 = vand.u32 4294901760, %v5781_v52  ;;  %v5803_v52 = vsub.f32 %v10645_v58, %v10693_v5  ;;  %v10742_v5 = vand.u32 4294901760, %v5626_v3  ;;  %v3135_v58 = vrot.slane %v10620_v61, 4 }
 0x2ff   :  { %5772 = vmatmul.mubr.f32.gmra.mxu0 %v10653_v18  ;;  %6005 = vmatmul.mubr.f32.gmra.mxu1 %v10429_v62  ;;  %v10697_v35 = vpop.permute.xlu0 %2906  ;;  %v10700_v12 = vpop.permute.xlu1 %2908  ;;  %v14781_v18 = vrot.slane %v10342_v24, 4  ;;  %v10747_v55 = vand.u32 4294901760, %v5792_v37 }
 0x300   :  { %6298 = vmatprep.subr.mxu1 %v10289_v48  ;;  %3263 = vrot.lane.b32.xlu0 %v3199_v2, %s8125_s19  ;;  %14782 = vst [vmem:[#allocation20_spill] sm:$0xff] %v10712_v9  ;;  %v3307_v2 = vsel %vm552_vm3, %v14783_v29, %v3306_v17  ;;  %v10737_v17 = vand.u32 4294901760, %v10703_v21  ;;  %v10740_v29 = vsub.f32 %v5623_v36, %v10705_v8  ;;  %14787 = vst [vmem:[#allocation11_spill] sm:$0xff] %v10742_v5 }
 0x301   :  { %v3204_v62 = vsel %vm375_vm2, %v3202_v20, %v14781_v18  ;;  %6300 = vmatpush1.msra.mxu1 %v10246_v34  ;;  %5777 = vmatprep.mubr.f32.mxu0 %v14742_v43  ;;  %v25_v18 = vld [vmem:[%s14012_s1 + $0x58] sm:$0x3]  ;;  %14788 = vst [vmem:[#allocation13_spill] sm:$0xff] %v10747_v55  ;;  %v10770_v36 = vsub.f32 %v5626_v3, %v10742_v5  ;;  %v14793_v3 = vrot.slane %v10593_v1, 4 }
 0x302   :  { %3267 = vrot.lane.b32.xlu1 %v3204_v62, %s8125_s19  ;;  %6302 = vmatprep.subr.mxu1 %v10326_v33  ;;  %v14784_v62 = vrot.slane %v10686_v31, 4  ;;  %14785 = vst [vmem:[#allocation15_spill] sm:$0xff] %v10737_v17  ;;  %14786 = vst [vmem:[#allocation2_spill] sm:$0xff] %v10740_v29 }
 0x303   :  { %6010 = vmatprep.mubr.f32.mxu1 %v14742_v43  ;;  %6304 = vmatpush1.msra.mxu1 %v10291_v40  ;;  %v10734_v45 = vpop.permute.xlu0 %2934  ;;  %v2937_v51 = vpop.permute.xlu1 %2936  ;;  %14791 = vst [vmem:[#allocation7_spill] sm:$0xff] %v10770_v36 }
 0x304   :  { %v3131_v20 = vsel %vm375_vm2, %v14784_v62, %v3130_v13  ;;  %5783 = vmatmul.mubr.f32.gmra.mxu0 %v10712_v9  ;;  %6012 = vmatmul.mubr.f32.gmra.mxu1 %v10478_v23  ;;  %v3140_v13 = vrot.slane %v10622_v44, 4  ;;  %v5629_v62 = vsel %vm5594_vm12, %v25_v18, 0  ;;  %v14245_v9 = vrot.slane %v10588_v22, 4 }
 0x305   :  { %6306 = vmatprep.subr.mxu1 %v10481_v39  ;;  %3310 = vrot.lane.b32.xlu0 %v3307_v2, %s8127_s23  ;;  %v3145_v61 = vrot.slane %v2937_v51, 4  ;;  %v10757_v23 = vand.u32 4294901760, %v5803_v52  ;;  %v5814_v44 = vsub.f32 %v10703_v21, %v10737_v17  ;;  %v10778_v37 = vand.u32 4294901760, %v5629_v62 }
 0x306   :  { %6308 = vmatpush1.msra.mxu1 %v10408_v42  ;;  %3209 = vrot.lane.b32.xlu1 %v3131_v20, %s8125_s19  ;;  %v10767_v20 = vand.u32 4294901760, %v10740_v29  ;;  %v3141_v17 = vsel %vm375_vm2, %v14793_v3, %v3140_v13  ;;  %v10798_v51 = vand.u32 4294901760, %v10770_v36  ;;  %v3155_v13 = vrot.slane %v10657_v57, 4 }
 0x307   :  { %14789 = vst [vmem:[#allocation9_spill] sm:$0xff] %v10757_v23  ;;  %6660 = vmatprep.subr.mxu1 %v14755_v7  ;;  %5788 = vmatprep.mubr.f32.mxu0 %v14742_v43  ;;  %v10762_v2 = vpop.permute.xlu0 %2940  ;;  %v2943_v18 = vpop.permute.xlu1 %2942  ;;  %v3136_v7 = vsel %vm375_vm2, %v14245_v9, %v3135_v58  ;;  %14792 = vst [vmem:[#allocation5_spill] sm:$0xff] %v10778_v37 }
 0x308   :  { %14790 = vst [vmem:[#allocation4_spill] sm:$0xff] %v10767_v20  ;;  %6017 = vmatprep.mubr.f32.mxu1 %v14742_v43  ;;  %5794 = vmatmul.mubr.f32.gmra.mxu0 %v10747_v55  ;;  %v3150_v52 = vrot.slane %v2943_v18, 4  ;;  %v14794_v55 = vrot.slane %v10734_v45, 4  ;;  %v10791_v18 = vand.u32 4294901760, %v5814_v44  ;;  %14797 = vst [vmem:[#allocation88_spill] sm:$0xff] %v10798_v51  ;;  %v10807_v44 = vsub.f32 %v5629_v62, %v10778_v37  ;;  %v10823_v62 = vld [vmem:[%s14011_s0 + $0x18] sm:$0xff] }
 0x309   :  { %6019 = vmatmul.mubr.f32.gmra.mxu1 %v10546_v63  ;;  %3213 = vrot.lane.b32.xlu0 %v3136_v7, %s8125_s19  ;;  %v5825_v7 = vsub.f32 %v10740_v29, %v10767_v20  ;;  %v3160_v63 = vrot.slane %v10700_v12, 4 }
 0x30a   :  { %3217 = vrot.lane.b32.xlu1 %v3141_v17, %s8125_s19  ;;  %5799 = vmatprep.mubr.f32.mxu0 %v14742_v43  ;;  %v3146_v58 = vsel %vm375_vm2, %v14794_v55, %v3145_v61  ;;  %14795 = vst [vmem:[#allocation109_spill] sm:$0xff] %v10791_v18  ;;  %v14798_v55 = vrot.slane %v10762_v2, 4  ;;  %14799 = vst [vmem:[#allocation89_spill] sm:$0xff] %v10807_v44 }
 0x30b   :  { %6024 = vmatprep.mubr.f32.mxu1 %v14742_v43  ;;  %v10793_v9 = vpop.permute.xlu0 %2797  ;;  %v10815_v17 = vpop.permute.xlu1 %2803 }
 0x30c   :  { %14796 = vst [vmem:[#allocation108_spill] sm:$0xff] %v10793_v9  ;;  %5805 = vmatmul.mubr.f32.gmra.mxu0 %v10757_v23  ;;  %v3151_v61 = vsel %vm375_vm2, %v14798_v55, %v3150_v52  ;;  %14800 = vst [vmem:[#allocation68_spill] sm:$0xff] %v10815_v17  ;;  %v3165_v52 = vrot.slane %v9856_v47, 4  ;;  %v14801_v55 = vrot.slane %v10655_v16, 4  ;;  %v5836_v23 = vsub.f32 %v10770_v36, %v10798_v51 }
 0x30d   :  { %6026 = vmatmul.mubr.f32.gmra.mxu1 %v10570_v38  ;;  %3221 = vrot.lane.b32.xlu0 %v3146_v58, %s8125_s19  ;;  %v3303_v58 = vrot.slane %v10823_v62, 6  ;;  %v10830_v38 = vand.u32 4294901760, %v5825_v7  ;;  %v3127_v51 = vrot.slane %v10823_v62, 4  ;;  %v14807_v36 = vrot.slane %v10686_v31, 6 }
 0x30e   :  { %5810 = vmatprep.mubr.f32.mxu0 %v14742_v43  ;;  %6031 = vmatprep.mubr.f32.mxu1 %v14742_v43  ;;  %v3156_v3 = vsel %vm375_vm2, %v14801_v55, %v3155_v13  ;;  %v14804_v13 = vrot.slane %v9867_v32, 4  ;;  %v14805_v55 = vrot.slane %v10697_v35, 4 }
 0x30f   :  { %3225 = vrot.lane.b32.xlu1 %v3151_v61, %s8125_s19  ;;  %14802 = vst [vmem:[#allocation69_spill] sm:$0xff] %v10830_v38  ;;  %v10835_v61 = vand.u32 4294901760, %v10807_v44  ;;  %v10839_v20 = vpop.permute.xlu0 %2898  ;;  %v3305_v47 = vsel %vm552_vm3, %v3303_v58, %v14807_v36  ;;  %v3137_v58 = vrot.slane %v10815_v17, 4 }
 0x310   :  { %5816 = vmatmul.mubr.f32.gmra.mxu0 %v10791_v18  ;;  %v3166_v7 = vsel %vm375_vm2, %v14804_v13, %v3165_v52  ;;  %v3161_v18 = vsel %vm375_vm2, %v14805_v55, %v3160_v63  ;;  %v14808_v63 = vrot.slane %v10686_v31, 4 }
 0x311   :  { %14803 = vst [vmem:[#allocation51_spill] sm:$0xff] %v10835_v61  ;;  %6033 = vmatmul.mubr.f32.gmra.mxu1 %v10606_v19  ;;  %3229 = vrot.lane.b32.xlu0 %v3156_v3, %s8125_s19  ;;  %v10852_v3 = vpop.permute.xlu1 %2904  ;;  %v10854_v19 = vand.u32 4294901760, %v5836_v23  ;;  %v5847_v52 = vsub.f32 %v10807_v44, %v10835_v61 }
 0x312   :  { %5821 = vmatprep.mubr.f32.mxu0 %v14742_v43  ;;  %6038 = vmatprep.mubr.f32.mxu1 %v14742_v43  ;;  %v3129_v23 = vsel %vm375_vm2, %v3127_v51, %v14808_v63  ;;  %v14810_v51 = vrot.slane %v10588_v22, 4 }
 0x313   :  { %3233 = vrot.lane.b32.xlu1 %v3161_v18, %s8125_s19  ;;  %14806 = vst [vmem:[#allocation52_spill] sm:$0xff] %v10854_v19  ;;  %v3132_v18 = vrot.slane %v10793_v9, 4  ;;  %v2933_v13 = vpop.permute.xlu0 %2932  ;;  %v10871_v36 = vand.u32 4294901760, %v5847_v52  ;;  %v14811_v52 = vrot.slane %v10593_v1, 4 }
 0x314   :  { %5827 = vmatmul.mubr.f32.gmra.mxu0 %v10830_v38  ;;  %v14897_v38 = vld [vmem:[#allocation57_spill] sm:$0xff] }
 0x315   :  { %6040 = vmatmul.mubr.f32.gmra.mxu1 %v10615_v0  ;;  %3237 = vrot.lane.b32.xlu0 %v3166_v7, %s8125_s19  ;;  %14809 = vst [vmem:[#allocation34_spill] sm:$0xff] %v10871_v36  ;;  %v3142_v7 = vrot.slane %v2933_v13, 4  ;;  %v2939_v55 = vpop.permute.xlu1 %2938  ;;  %v3139_v63 = vsel %vm375_vm2, %v3137_v58, %v14811_v52  ;;  %v3152_v13 = vrot.slane %v10839_v20, 4  ;;  %v3157_v58 = vrot.slane %v10852_v3, 4 }
 0x316   :  { %5832 = vmatprep.mubr.f32.mxu0 %v14742_v43  ;;  %6045 = vmatprep.mubr.f32.mxu1 %v14742_v43  ;;  %v14817_v52 = vand.u32 4294901760, %v10081_v56 }
 0x317   :  { %3308 = vrot.lane.b32.xlu1 %v3305_v47, %s8127_s23  ;;  %v3134_v47 = vsel %vm375_vm2, %v3132_v18, %v14810_v51  ;;  %v14814_v51 = vrot.slane %v10762_v2, 4  ;;  %v14819_v2 = vand.u32 4294901760, %v10179_v59  ;;  %v14823_v59 = vand.u32 4294901760, %v10201_v14 }
 0x318   :  { %5838 = vmatmul.mubr.f32.gmra.mxu0 %v10854_v19  ;;  %v3147_v19 = vrot.slane %v2939_v55, 4  ;;  %v14813_v55 = vand.u32 4294901760, %v10005_v15 }
 0x319   :  { %6047 = vmatmul.mubr.f32.gmra.mxu1 %v10661_v28  ;;  %3207 = vrot.lane.b32.xlu0 %v3129_v23, %s8125_s19  ;;  %v14812_v23 = vrot.slane %v10734_v45, 4  ;;  %v14815_v45 = vand.u32 4294901760, %v10104_v50  ;;  %v14820_v50 = vand.u32 4294901760, %v10153_v41  ;;  %v10931_v41 = vpop.permute.xlu1 %2861 }
 0x31a   :  { %5843 = vmatprep.mubr.f32.mxu0 %v14742_v43  ;;  %6052 = vmatprep.mubr.f32.mxu1 %v14742_v43  ;;  %14824 = vst [vmem:[#allocation86_spill] sm:$0xff] %v10931_v41 }
 0x31b   :  { %3211 = vrot.lane.b32.xlu1 %v3134_v47, %s8125_s19  ;;  %v3144_v18 = vsel %vm375_vm2, %v3142_v7, %v14812_v23  ;;  %v3149_v47 = vsel %vm375_vm2, %v3147_v19, %v14814_v51  ;;  %v10906_v7 = vpop.permute.xlu0 %2855  ;;  %v14821_v19 = vrot.slane %v10697_v35, 4  ;;  %v3162_v23 = vrot.slane %v9936_v46, 4  ;;  %v14826_v51 = vld [vmem:[#allocation92_spill] sm:$0xff] }
 0x31c   :  { %5849 = vmatmul.mubr.f32.gmra.mxu0 %v10871_v36  ;;  %14816 = vst [vmem:[#allocation35_spill] sm:$0xff] %v10906_v7 }
 0x31d   :  { %6054 = vmatmul.mubr.f32.gmra.mxu1 %v10705_v8  ;;  %3215 = vrot.lane.b32.xlu0 %v3139_v63, %s8125_s19  ;;  %v14818_v63 = vrot.slane %v10655_v16, 4  ;;  %v3159_v56 = vsel %vm375_vm2, %v3157_v58, %v14821_v19 }
 0x31e   :  { %6059 = vmatprep.mubr.f32.mxu1 %v14742_v43  ;;  %6166 = vmatprep.mubr.f32.mxu0 %v14742_v43 }
 0x31f   :  { %3219 = vrot.lane.b32.xlu1 %v3144_v18, %s8125_s19  ;;  %v3154_v15 = vsel %vm375_vm2, %v3152_v13, %v14818_v63  ;;  %v14822_v18 = vand.u32 4294901760, %v10230_v11  ;;  %v2994_v13 = vrot.slane %v10344_v26, 2  ;;  %v2915_v58 = vpop.permute.xlu0 %2914  ;;  %v14827_v11 = vand.u32 4294901760, %v10280_v54  ;;  %v14832_v54 = vld [vmem:[#allocation37_spill] sm:$0xff] }
 0x320   :  { %6169 = vmatmul.mubr.f32.vlgmr.msra.gmra.mxu0 %v10404_v10  ;;  %v14829_v26 = vand.u32 4294901760, %v10330_v53  ;;  %v14890_v10 = vld [vmem:[#allocation99_spill] sm:$0xff] }
 0x321   :  { %6061 = vmatmul.mubr.f32.gmra.mxu1 %v10742_v5  ;;  %6475 = vmatpush1.msra.mxu0 %v14813_v55  ;;  %v14825_v55 = vand.u32 4294901760, %v10302_v6  ;;  %v14830_v6 = vld [vmem:[#allocation39_spill] sm:$0xff] }
 0x322   :  { %6479 = vmatprep.subr.mxu0 %v14815_v45  ;;  %3223 = vrot.lane.b32.xlu0 %v3149_v47, %s8125_s19  ;;  %v14828_v47 = vrot.slane %v9867_v32, 4  ;;  %v3002_v45 = vrot.slane %v10906_v7, 2  ;;  %v2992_v63 = vrot.slane %v14830_v6, 2 }
 0x323   :  { %6483 = vmatpush1.msra.mxu0 %v14817_v52  ;;  %6066 = vmatprep.mubr.f32.mxu1 %v14742_v43  ;;  %v3004_v52 = vrot.slane %v2915_v58, 2 }
 0x324   :  { %6487 = vmatprep.subr.mxu0 %v14819_v2  ;;  %3227 = vrot.lane.b32.xlu1 %v3154_v15, %s8125_s19  ;;  %v3164_v14 = vsel %vm375_vm2, %v3162_v23, %v14828_v47  ;;  %v14831_v15 = vld [vmem:[#allocation22_spill] sm:$0xff]  ;;  %v2995_v19 = vsel %vm124_vm1, %v2992_v63, %v2994_v13 }
 0x325   :  { %6068 = vmatmul.mubr.f32.gmra.mxu1 %v10778_v37  ;;  %6491 = vmatpush1.msra.mxu0 %v14820_v50  ;;  %v2999_v2 = vrot.slane %v14831_v15, 2  ;;  %v14833_v50 = vand.u32 4294901760, %v14832_v54  ;;  %v14843_v15 = vld [vmem:[#allocation94_spill] sm:$0xff]  ;;  %v14844_v54 = vld [vmem:[#allocation91_spill] sm:$0xff] }
 0x326   :  { %6495 = vmatprep.subr.mxu0 %v14822_v18  ;;  %3231 = vrot.lane.b32.xlu0 %v3159_v56, %s8125_s19  ;;  %v14836_v56 = vld [vmem:[#allocation50_spill] sm:$0xff]  ;;  %v2917_v18 = vpop.permute.xlu1 %2916 }
 0x327   :  { %6499 = vmatpush1.msra.mxu0 %v14823_v59  ;;  %6341 = vmatprep.mubr.f32.mxu1 %v14742_v43  ;;  %v2997_v23 = vrot.slane %v14836_v56, 2  ;;  %v3009_v13 = vrot.slane %v2917_v18, 2  ;;  %v14847_v18 = vld [vmem:[#allocation90_spill] sm:$0xff] }
 0x328   :  { %6503 = vmatprep.subr.mxu0 %v14825_v55  ;;  %3235 = vrot.lane.b32.xlu1 %v3164_v14, %s8125_s19  ;;  %v3007_v55 = vrot.slane %v10931_v41, 2  ;;  %v14841_v14 = vld [vmem:[#allocation25_spill] sm:$0xff] }
 0x329   :  { %6345 = vmatmul.mubr.f32.vlgmr.msra.gmra.mxu1 %v14826_v51  ;;  %6507 = vmatpush1.msra.mxu0 %v14827_v11  ;;  %v3000_v58 = vsel %vm124_vm1, %v2997_v23, %v2999_v2  ;;  %v14839_v11 = vld [vmem:[#allocation110_spill] sm:$0xff]  ;;  %v3024_v2 = vrot.slane %v14843_v15, 2 }
 0x32a   :  { %6662 = vmatpush1.msra.mxu1 %v14761_v49  ;;  %6511 = vmatprep.subr.mxu0 %v14829_v26  ;;  %v14834_v49 = vld [vmem:[#allocation84_spill] sm:$0xff]  ;;  %v3014_v47 = vrot.slane %v14839_v11, 2  ;;  %v14842_v26 = vld [vmem:[#allocation105_spill] sm:$0xff] }
 0x32b   :  { %6664 = vmatprep.subr.mxu1 %v10092_v27  ;;  %6515 = vmatpush1.msra.mxu0 %v14833_v50  ;;  %v14835_v53 = vand.u32 4294901760, %v14834_v49  ;;  %v14837_v27 = vld [vmem:[#allocation93_spill] sm:$0xff]  ;;  %v14846_v49 = vld [vmem:[#allocation107_spill] sm:$0xff] }
 0x32c   :  { %6666 = vmatpush1.msra.mxu1 %v10057_v4  ;;  %3065 = vrot.lane.b32.xlu0 %v2995_v19, %s8122_s14  ;;  %v14838_v59 = vand.u32 4294901760, %v14837_v27  ;;  %v3005_v4 = vsel %vm124_vm1, %v3002_v45, %v3004_v52  ;;  %v3012_v52 = vrot.slane %v14841_v14, 2  ;;  %v14845_v50 = vld [vmem:[#allocation101_spill] sm:$0xff]  ;;  %v14848_v27 = vld [vmem:[#allocation95_spill] sm:$0xff] }
 0x32d   :  { %6519 = vmatprep.subr.mxu0 %v14835_v53  ;;  %6668 = vmatprep.subr.mxu1 %v10162_v60  ;;  %v14840_v60 = vld [vmem:[#allocation98_spill] sm:$0xff]  ;;  %v3019_v19 = vrot.slane %v14845_v50, 2  ;;  %v3017_v53 = vrot.slane %v14846_v49, 2  ;;  %v14852_v11 = vld [vmem:[#allocation73_spill] sm:$0xff] }
 0x32e   :  { %6523 = vmatpush1.msra.mxu0 %v14838_v59  ;;  %6670 = vmatpush1.msra.mxu1 %v10120_v25  ;;  %v14262_v25 = vrot.slane %v14842_v26, 2  ;;  %v10995_v59 = vpop.permute.xlu0 %2853 }
 0x32f   :  { %6174 = vmatprep.mubr.f32.mxu0 %v14742_v43  ;;  %6672 = vmatprep.subr.mxu1 %v10218_v30  ;;  %v3010_v30 = vsel %vm124_vm1, %v3007_v55, %v3009_v13  ;;  %14849 = vst [vmem:[#allocation59_spill] sm:$0xff] %v10995_v59  ;;  %v3027_v13 = vrot.slane %v10342_v24, 2  ;;  %v3001_v15 = vrot.slane %v10995_v59, 2 }
 0x330   :  { %3069 = vrot.lane.b32.xlu1 %v3000_v58, %s8122_s14  ;;  %6674 = vmatpush1.msra.mxu1 %v14840_v60  ;;  %v14851_v58 = vld [vmem:[#allocation87_spill] sm:$0xff]  ;;  %v14854_v60 = vld [vmem:[#allocation81_spill] sm:$0xff] }
 0x331   :  { %3073 = vrot.lane.b32.xlu0 %v3005_v4, %s8122_s14  ;;  %6676 = vmatprep.subr.mxu1 %v10289_v48  ;;  %v3015_v48 = vsel %vm124_vm1, %v3012_v52, %v3014_v47  ;;  %v3020_v4 = vsel %vm124_vm1, %v3017_v53, %v3019_v19  ;;  %v2996_v14 = vrot.slane %v14854_v60, 2  ;;  %v14856_v19 = vld [vmem:[#allocation74_spill] sm:$0xff] }
 0x332   :  { %6177 = vmatmul.mubr.f32.gmra.mxu0 %v14844_v54  ;;  %6678 = vmatpush1.msra.mxu1 %v10246_v34  ;;  %v3025_v34 = vsel %vm124_vm1, %v14262_v25, %v3024_v2  ;;  %v11016_v50 = vpop.permute.xlu0 %2811 }
 0x333   :  { %6182 = vmatprep.mubr.f32.mxu0 %v14742_v43  ;;  %6680 = vmatprep.subr.mxu1 %v10326_v33  ;;  %v3029_v33 = vrot.slane %v14848_v27, 2  ;;  %14855 = vst [vmem:[#allocation10_spill] sm:$0xff] %v11016_v50  ;;  %v2998_v49 = vsel %vm124_vm1, %v2996_v14, %v2997_v23  ;;  %v14863_v23 = vld [vmem:[#allocation67_spill] sm:$0xff] }
 0x334   :  { %3077 = vrot.lane.b32.xlu1 %v3010_v30, %s8122_s14  ;;  %6682 = vmatpush1.msra.mxu1 %v10291_v40  ;;  %v14850_v40 = vld [vmem:[#allocation85_spill] sm:$0xff]  ;;  %v3016_v14 = vrot.slane %v14863_v23, 2 }
 0x335   :  { %3081 = vrot.lane.b32.xlu0 %v3015_v48, %s8122_s14  ;;  %6684 = vmatprep.subr.mxu1 %v10481_v39  ;;  %v2991_v39 = vrot.slane %v14850_v40, 2  ;;  %v3030_v47 = vsel %vm124_vm1, %v3027_v13, %v3029_v33  ;;  %v14857_v30 = vld [vmem:[#allocation61_spill] sm:$0xff]  ;;  %v3003_v33 = vsel %vm124_vm1, %v3001_v15, %v3002_v45 }
 0x336   :  { %6185 = vmatmul.mubr.f32.gmra.mxu0 %v14847_v18  ;;  %6686 = vmatpush1.msra.mxu1 %v10408_v42  ;;  %v11008_v42 = vpop.permute.xlu1 %2859  ;;  %v2895_v25 = vpop.permute.xlu0 %2894 }
 0x337   :  { %6190 = vmatprep.mubr.f32.mxu0 %v14742_v43  ;;  %6350 = vmatprep.mubr.f32.mxu1 %v14742_v43  ;;  %14853 = vst [vmem:[#allocation58_spill] sm:$0xff] %v11008_v42  ;;  %v2993_v2 = vsel %vm124_vm1, %v2991_v39, %v2992_v63  ;;  %v3006_v48 = vrot.slane %v11008_v42, 2  ;;  %v14859_v63 = vld [vmem:[#allocation71_spill] sm:$0xff]  ;;  %v14861_v39 = vld [vmem:[#allocation77_spill] sm:$0xff] }
 0x338   :  { %3085 = vrot.lane.b32.xlu1 %v3020_v4, %s8122_s14  ;;  %6354 = vmatmul.mubr.f32.gmra.mxu1 %v14851_v58  ;;  %v3011_v27 = vrot.slane %v14859_v63, 2  ;;  %v14860_v4 = vld [vmem:[#allocation65_spill] sm:$0xff] }
 0x339   :  { %3089 = vrot.lane.b32.xlu0 %v3025_v34, %s8122_s14  ;;  %6359 = vmatprep.mubr.f32.mxu1 %v14742_v43  ;;  %v3008_v63 = vsel %vm124_vm1, %v3006_v48, %v3007_v55  ;;  %v3018_v55 = vsel %vm124_vm1, %v3016_v14, %v3017_v53  ;;  %v14867_v48 = vld [vmem:[#allocation78_spill] sm:$0xff]  ;;  %v14873_v14 = vld [vmem:[#allocation48_spill] sm:$0xff] }
 0x33a   :  { %6193 = vmatmul.mubr.f32.gmra.mxu0 %v14852_v11  ;;  %v11024_v34 = vpop.permute.xlu1 %2817  ;;  %v3013_v45 = vsel %vm124_vm1, %v3011_v27, %v3012_v52  ;;  %v11055_v52 = vpop.permute.xlu0 %2809  ;;  %v14869_v27 = vld [vmem:[#allocation46_spill] sm:$0xff] }
 0x33b   :  { %6198 = vmatprep.mubr.f32.mxu0 %v14742_v43  ;;  %14858 = vst [vmem:[#allocation55_spill] sm:$0xff] %v11024_v34  ;;  %14868 = vst [vmem:[#allocation12_spill] sm:$0xff] %v11055_v52 }
 0x33c   :  { %3093 = vrot.lane.b32.xlu1 %v3030_v47, %s8122_s14  ;;  %6363 = vmatmul.mubr.f32.gmra.mxu1 %v14856_v19  ;;  %v3021_v47 = vrot.slane %v14861_v39, 2  ;;  %v14878_v19 = vld [vmem:[#allocation15_spill] sm:$0xff] }
 0x33d   :  { %3063 = vrot.lane.b32.xlu0 %v2993_v2, %s8122_s14  ;;  %6368 = vmatprep.mubr.f32.mxu1 %v14742_v43  ;;  %v14862_v2 = vld [vmem:[#allocation56_spill] sm:$0xff] }
 0x33e   :  { %6201 = vmatmul.mubr.f32.gmra.mxu0 %v14857_v30  ;;  %v2897_v15 = vpop.permute.xlu1 %2896 }
 0x33f   :  { %6206 = vmatprep.mubr.f32.mxu0 %v14742_v43 }
 0x340   :  { %3067 = vrot.lane.b32.xlu1 %v2998_v49, %s8122_s14  ;;  %6372 = vmatmul.mubr.f32.gmra.mxu1 %v14860_v4  ;;  %v14864_v49 = vld [vmem:[#allocation60_spill] sm:$0xff] }
 0x341   :  { %3071 = vrot.lane.b32.xlu0 %v3003_v33, %s8122_s14  ;;  %6377 = vmatprep.mubr.f32.mxu1 %v14742_v43  ;;  %v14865_v33 = vrot.slane %v14842_v26, 2  ;;  %v14866_v4 = vld [vmem:[#allocation44_spill] sm:$0xff] }
 0x342   :  { %6209 = vmatmul.mubr.f32.gmra.mxu0 %v14862_v2  ;;  %v3026_v2 = vrot.slane %v14867_v48, 2 }
 0x343   :  { %6214 = vmatprep.mubr.f32.mxu0 %v14742_v43  ;;  %v3023_v23 = vsel %vm124_vm1, %v3021_v47, %v14865_v33  ;;  %v14871_v47 = vld [vmem:[#allocation43_spill] sm:$0xff]  ;;  %v11062_v33 = vpop.permute.xlu1 %2815 }
 0x344   :  { %3075 = vrot.lane.b32.xlu1 %v3008_v63, %s8122_s14  ;;  %6381 = vmatmul.mubr.f32.gmra.mxu1 %v14864_v49  ;;  %v14870_v63 = vld [vmem:[#allocation42_spill] sm:$0xff]  ;;  %14872 = vst [vmem:[#allocation24_spill] sm:$0xff] %v11062_v33  ;;  %v3028_v53 = vsel %vm124_vm1, %v3026_v2, %v3027_v13  ;;  %v11068_v49 = vpop.permute.xlu0 %3241  ;;  %v2962_v13 = vrot.slane %v10593_v1, 2  ;;  %v14265_v2 = vrot.slane %v11016_v50, 2 }
 0x345   :  { %3079 = vrot.lane.b32.xlu0 %v3013_v45, %s8122_s14  ;;  %6386 = vmatprep.mubr.f32.mxu1 %v14742_v43  ;;  %v2959_v45 = vrot.slane %v14871_v47, 2  ;;  %v14875_v47 = vld [vmem:[#allocation17_spill] sm:$0xff] }
 0x346   :  { %6217 = vmatmul.mubr.f32.gmra.mxu0 %v14866_v4 }
 0x347   :  { %6222 = vmatprep.mubr.f32.mxu0 %v14742_v43 }
 0x348   :  { %3083 = vrot.lane.b32.xlu1 %v3018_v55, %s8122_s14  ;;  %6390 = vmatmul.mubr.f32.gmra.mxu1 %v14869_v27  ;;  %v2964_v55 = vrot.slane %v14873_v14, 2  ;;  %v14874_v27 = vld [vmem:[#allocation23_spill] sm:$0xff] }
 0x349   :  { %3087 = vrot.lane.b32.xlu0 %v3023_v23, %s8122_s14  ;;  %6395 = vmatprep.mubr.f32.mxu1 %v14742_v43  ;;  %v2957_v23 = vrot.slane %v10588_v22, 2 }
 0x34a   :  { %6225 = vmatmul.mubr.f32.gmra.mxu0 %v14870_v63  ;;  %v2974_v63 = vrot.slane %v2897_v15, 2  ;;  %v2965_v4 = vsel %vm124_vm1, %v2962_v13, %v2964_v55  ;;  %v2979_v55 = vrot.slane %v10657_v57, 2 }
 0x34b   :  { %6230 = vmatprep.mubr.f32.mxu0 %v14742_v43  ;;  %v2960_v14 = vsel %vm124_vm1, %v2957_v23, %v2959_v45 }
 0x34c   :  { %3091 = vrot.lane.b32.xlu1 %v3028_v53, %s8122_s14  ;;  %6399 = vmatmul.mubr.f32.gmra.mxu1 %v14874_v27  ;;  %v2969_v53 = vrot.slane %v2895_v25, 2  ;;  %v11083_v27 = vpop.permute.xlu1 %3245 }
 0x34d   :  { %3033 = vrot.lane.b32.xlu0 %v14842_v26, %s8122_s14  ;;  %6404 = vmatprep.mubr.f32.mxu1 %v14742_v43 }
 0x34e   :  { %6233 = vmatmul.mubr.f32.gmra.mxu0 %v10703_v21  ;;  %v14876_v21 = vrot.slane %v11024_v34, 2 }
 0x34f   :  { %6238 = vmatprep.mubr.f32.mxu0 %v14742_v43 }
 0x350   :  { %3037 = vrot.lane.b32.xlu1 %v2960_v14, %s8122_s14  ;;  %6408 = vmatmul.mubr.f32.gmra.mxu1 %v14875_v47  ;;  %v2975_v25 = vsel %vm124_vm1, %v14876_v21, %v2974_v63  ;;  %v14267_v14 = vrot.slane %v10697_v35, 2  ;;  %v2984_v47 = vrot.slane %v10700_v12, 2  ;;  %v14266_v21 = vrot.slane %v9867_v32, 2  ;;  %v14877_v63 = vld [vmem:[#allocation80_spill] sm:$0xff] }
 0x351   :  { %3041 = vrot.lane.b32.xlu0 %v2965_v4, %s8122_s14  ;;  %v11086_v15 = vpop.permute.xlu0 %3249  ;;  %6413 = vmatprep.mubr.f32.mxu1 %v14742_v43  ;;  %v2970_v4 = vsel %vm124_vm1, %v14265_v2, %v2969_v53  ;;  %v2989_v45 = vrot.slane %v14877_v63, 2  ;;  %v14879_v53 = vld [vmem:[#allocation7_spill] sm:$0xff]  ;;  %v14880_v12 = vrot.slane %v10655_v16, 2  ;;  %v14881_v2 = vld [vmem:[#allocation4_spill] sm:$0xff] }
 0x352   :  { %6241 = vmatmul.mubr.f32.gmra.mxu0 %v10740_v29 }
 0x353   :  { %6246 = vmatprep.mubr.f32.mxu0 %v14742_v43  ;;  %v2990_v63 = vsel %vm124_vm1, %v14266_v21, %v2989_v45  ;;  %v4859_v45 = vcombine.low %v11068_v49, %v11086_v15 }
 0x354   :  { %3045 = vrot.lane.b32.xlu1 %v2970_v4, %s8122_s14  ;;  %6417 = vmatmul.mubr.f32.gmra.mxu1 %v14878_v19  ;;  %v2980_v4 = vsel %vm124_vm1, %v14880_v12, %v2979_v55  ;;  %v2956_v12 = vrot.slane %v10793_v9, 2 }
 0x355   :  { %3049 = vrot.lane.b32.xlu0 %v2975_v25, %s8122_s14  ;;  %v11106_v29 = vpop.permute.xlu0 %3257  ;;  %v11108_v57 = vpop.permute.xlu1 %3253  ;;  %6422 = vmatprep.mubr.f32.mxu1 %v14742_v43  ;;  %v2985_v25 = vsel %vm124_vm1, %v14267_v14, %v2984_v47  ;;  %v2961_v47 = vrot.slane %v10815_v17, 2  ;;  %v14883_v14 = vld [vmem:[#allocation104_spill] sm:$0xff] }
 0x356   :  { %6249 = vmatmul.mubr.f32.gmra.mxu0 %v14879_v53  ;;  %v4875_v55 = vcombine.low %v11083_v27, %v11108_v57  ;;  %v2958_v30 = vsel %vm124_vm1, %v2956_v12, %v2957_v23  ;;  %v14885_v12 = vld [vmem:[#allocation103_spill] sm:$0xff] }
 0x357   :  { %6254 = vmatprep.mubr.f32.mxu0 %v14742_v43  ;;  %v2963_v11 = vsel %vm124_vm1, %v2961_v47, %v2962_v13  ;;  %v14886_v47 = vrot.slane %v11016_v50, 2 }
 0x358   :  { %3053 = vrot.lane.b32.xlu1 %v2980_v4, %s8122_s14  ;;  %6426 = vmatmul.mubr.f32.gmra.mxu1 %v14881_v2  ;;  %v14884_v2 = vld [vmem:[#allocation6_spill] sm:$0xff] }
 0x359   :  { %3057 = vrot.lane.b32.xlu0 %v2985_v25, %s8122_s14  ;;  %v11126_v19 = vpop.permute.xlu0 %3265  ;;  %6431 = vmatprep.mubr.f32.mxu1 %v14742_v43  ;;  %v14882_v25 = vld [vmem:[#allocation88_spill] sm:$0xff]  ;;  %v11161_v51 = vrot.slane %v4859_v45, %v14884_v2 }
 0x35a   :  { %v11128_v53 = vpop.permute.xlu1 %3261  ;;  %6257 = vmatmul.mubr.f32.gmra.mxu0 %v10807_v44  ;;  %v4891_v4 = vcombine.low %v11106_v29, %v11126_v19  ;;  %v11151_v44 = vrot.slane %v4875_v55, %v14884_v2 }
 0x35b   :  { %6556 = vmatprep.mubr.f32.mxu0 %v14742_v43 }
 0x35c   :  { %3061 = vrot.lane.b32.xlu1 %v2990_v63, %s8122_s14  ;;  %6435 = vmatmul.mubr.f32.gmra.mxu1 %v14882_v25  ;;  %v2966_v63 = vrot.slane %v11055_v52, 2  ;;  %v2971_v25 = vrot.slane %v11062_v33, 2  ;;  %v11165_v55 = vrot.slane %v4891_v4, %v14884_v2  ;;  %v4923_v13 = vcombine.low %v11161_v51, %v11151_v44 }
 0x35d   :  { %3031 = vrot.lane.b32.xlu0 %v14861_v39, %s8122_s14  ;;  %6440 = vmatprep.mubr.f32.mxu1 %v14742_v43  ;;  %v2981_v4 = vrot.slane %v10852_v3, 2  ;;  %v11189_v18 = vpop.permute.xlu0 %3239  ;;  %v14891_v3 = vrot.slane %v10655_v16, 2  ;;  %v4924_v50 = vcombine.high %v11161_v51, %v11151_v44 }
 0x35e   :  { %v11145_v21 = vpop.permute.xlu1 %3269  ;;  %6558 = vmatmul.mubr.f32.vlgmr.msra.gmra.mxu0 %v14883_v14 }
 0x35f   :  { %v4907_v58 = vcombine.low %v11128_v53, %v11145_v21  ;;  %6563 = vmatprep.mubr.f32.mxu0 %v14742_v43  ;;  %v4908_v17 = vcombine.high %v11128_v53, %v11145_v21  ;;  %v4892_v21 = vcombine.high %v11106_v29, %v11126_v19 }
 0x360   :  { %3035 = vrot.lane.b32.xlu1 %v2958_v30, %s8122_s14  ;;  %6444 = vmatmul.mubr.f32.gmra.mxu1 %v10835_v61  ;;  %v2976_v30 = vrot.slane %v10839_v20, 2  ;;  %v14887_v20 = vrot.slane %v11024_v34, 2 }
 0x361   :  { %3039 = vrot.lane.b32.xlu0 %v2963_v11, %s8122_s14  ;;  %v11168_v23 = vrot.slane %v4907_v58, %v14884_v2  ;;  %6719 = vmatprep.mubr.f32.mxu1 %v14742_v43  ;;  %v2968_v11 = vsel %vm124_vm1, %v2966_v63, %v14886_v47  ;;  %v2986_v63 = vrot.slane %v9936_v46, 2  ;;  %v14888_v47 = vld [vmem:[#allocation16_spill] sm:$0xff] }
 0x362   :  { %6565 = vmatmul.mubr.f32.gmra.mxu0 %v14885_v12  ;;  %v11181_v58 = vpop.permute.xlu1 %3243  ;;  %v2973_v61 = vsel %vm124_vm1, %v2971_v25, %v14887_v20  ;;  %v11202_v36 = vrot.slane %v4923_v13, %v14888_v47  ;;  %v14894_v20 = vrot.slane %v9867_v32, 2 }
 0x363   :  { %v4955_v45 = vcombine.low %v11165_v55, %v11168_v23  ;;  %6570 = vmatprep.mubr.f32.mxu0 %v14742_v43 }
 0x364   :  { %3043 = vrot.lane.b32.xlu1 %v2968_v11, %s8122_s14  ;;  %6721 = vmatmul.mubr.f32.vlgmr.msra.gmra.mxu1 %v14883_v14  ;;  %v2978_v11 = vsel %vm124_vm1, %v2976_v30, %v14891_v3  ;;  %14892 = vst [vmem:[#allocation75_spill] sm:$0xff] %v11202_v36  ;;  %v2988_v16 = vsel %vm124_vm1, %v2986_v63, %v14894_v20  ;;  %v14896_v3 = vld [vmem:[#allocation70_spill] sm:$0xff] }
 0x365   :  { %3047 = vrot.lane.b32.xlu0 %v2973_v61, %s8122_s14  ;;  %v11194_v54 = vrot.slane %v4955_v45, %v14888_v47  ;;  %6726 = vmatprep.mubr.f32.mxu1 %v14742_v43  ;;  %v14893_v61 = vrot.slane %v10697_v35, 2  ;;  %v14895_v35 = vld [vmem:[#allocation82_spill] sm:$0xff] }
 0x366   :  { %6572 = vmatmul.mubr.f32.gmra.mxu0 %v14890_v10 }
 0x367   :  { %14889 = vst [vmem:[#allocation83_spill] sm:$0xff] %v11194_v54  ;;  %v2983_v25 = vsel %vm124_vm1, %v2981_v4, %v14893_v61  ;;  %v11209_v45 = vpop.permute.xlu0 %3247  ;;  %6577 = vmatprep.mubr.f32.mxu0 %v14742_v43 }
 0x368   :  { %3051 = vrot.lane.b32.xlu1 %v2978_v11, %s8122_s14  ;;  %v11215_v30 = vpop.permute.xlu1 %3251  ;;  %6728 = vmatmul.mubr.f32.gmra.mxu1 %v14885_v12  ;;  %v3994_v61 = vcombine.low %v11189_v18, %v11209_v45 }
 0x369   :  { %3055 = vrot.lane.b32.xlu0 %v2983_v25, %s8122_s14  ;;  %6733 = vmatprep.mubr.f32.mxu1 %v14742_v43  ;;  %v4010_v25 = vcombine.low %v11181_v58, %v11215_v30 }
 0x36a   :  { %6579 = vmatmul.mubr.f32.gmra.mxu0 %v14895_v35  ;;  %v11267_v12 = vrot.slane %v3994_v61, %v14884_v2  ;;  %v14898_v61 = vld [vmem:[#allocation47_spill] sm:$0xff] }
 0x36b   :  { %6584 = vmatprep.mubr.f32.mxu0 %v14742_v43  ;;  %v11270_v14 = vrot.slane %v4010_v25, %v14884_v2 }
 0x36c   :  { %3059 = vrot.lane.b32.xlu1 %v2988_v16, %s8122_s14  ;;  %6735 = vmatmul.mubr.f32.gmra.mxu1 %v14890_v10 }
 0x36d   :  { %2867 = vrot.lane.b32.xlu0 %v9867_v32, %s8126_s22  ;;  %6740 = vmatprep.mubr.f32.mxu1 %v14742_v43  ;;  %v4058_v25 = vcombine.low %v11267_v12, %v11270_v14 }
 0x36e   :  { %v11227_v4 = vpop.permute.xlu0 %3255  ;;  %6586 = vmatmul.mubr.f32.gmra.mxu0 %v14896_v3 }
 0x36f   :  { %v11230_v63 = vpop.permute.xlu1 %3259  ;;  %6591 = vmatprep.mubr.f32.mxu0 %v14742_v43 }
 0x370   :  { %2873 = vrot.lane.b32.xlu1 %v9867_v32, %s8127_s23  ;;  %6742 = vmatmul.mubr.f32.gmra.mxu1 %v14895_v35 }
 0x371   :  { %2865 = vrot.lane.b32.xlu0 %v9936_v46, %s8126_s22  ;;  %6747 = vmatprep.mubr.f32.mxu1 %v14742_v43 }
 0x372   :  { %v11239_v11 = vpop.permute.xlu0 %3263  ;;  %6593 = vmatmul.mubr.f32.gmra.mxu0 %v14897_v38 }
 0x373   :  { %v4026_v20 = vcombine.low %v11227_v4, %v11239_v11  ;;  %6598 = vmatprep.mubr.f32.mxu0 %v14742_v43 }
 0x374   :  { %v11248_v16 = vpop.permute.xlu1 %3267  ;;  %2871 = vrot.lane.b32.xlu1 %v9936_v46, %s8127_s23  ;;  %6749 = vmatmul.mubr.f32.gmra.mxu1 %v14896_v3 }
 0x375   :  { %v4042_v13 = vcombine.low %v11230_v63, %v11248_v16  ;;  %v11257_v35 = vrot.slane %v4026_v20, %v14884_v2  ;;  %2823 = vrot.lane.b32.xlu0 %v10686_v31, %s8126_s22  ;;  %6754 = vmatprep.mubr.f32.mxu1 %v14742_v43 }
 0x376   :  { %6600 = vmatmul.mubr.f32.gmra.mxu0 %v14898_v61 }
 0x377   :  { %v11263_v10 = vrot.slane %v4042_v13, %v14884_v2  ;;  %v11272_v9 = vpop.permute.xlu0 %3310  ;;  %6605 = vmatprep.mubr.f32.mxu0 %v14742_v43 }
 0x378   :  { %2829 = vrot.lane.b32.xlu1 %v10686_v31, %s8127_s23  ;;  %v11277_v20 = vpop.permute.xlu1 %3209  ;;  %v5002_v3 = vrot.slane %v11272_v9, %v14884_v2  ;;  %6756 = vmatmul.mubr.f32.gmra.mxu1 %v14897_v38 }
 0x379   :  { %v4090_v13 = vcombine.low %v11257_v35, %v11263_v10  ;;  %2821 = vrot.lane.b32.xlu0 %v10823_v62, %s8126_s22  ;;  %6761 = vmatprep.mubr.f32.mxu1 %v14742_v43 }
 0x37a   :  { %v5010_v31 = vcombine.high %v5002_v3, %v14742_v43  ;;  %v11291_v52 = vrot.slane %v5002_v3, %v14888_v47  ;;  %6607 = vmatmul.mubr.f32.gmra.mxu0 %v10615_v0 }
 0x37b   :  { %v11293_v33 = vpop.permute.xlu0 %3213  ;;  %v11304_v34 = vrot.slane %v4090_v13, %v14888_v47  ;;  %6612 = vmatprep.mubr.f32.mxu0 %v14742_v43 }
 0x37c   :  { %14899 = vst [vmem:[#allocation96_spill] sm:$0xff] %v11291_v52  ;;  %2827 = vrot.lane.b32.xlu1 %v10823_v62, %s8127_s23  ;;  %v11299_v46 = vpop.permute.xlu1 %3217  ;;  %v5040_v38 = vcombine.high %v11291_v52, %v14742_v43  ;;  %6763 = vmatmul.mubr.f32.gmra.mxu1 %v14898_v61  ;;  %v5024_v32 = vrot.slane %v5010_v31, %v14888_v47 }
 0x37d   :  { %14900 = vst [vmem:[#allocation41_spill] sm:$0xff] %v11304_v34  ;;  %v11313_v62 = vrot.slane %v4058_v25, %v14888_v47  ;;  %6768 = vmatprep.mubr.f32.mxu1 %v14742_v43  ;;  %v4723_v52 = vcombine.low %v11277_v20, %v11299_v46 }
 0x37e   :  { %5259 = vrot.lane.b32.xlu0 %v5040_v38, %s8135_s28  ;;  %6614 = vmatmul.mubr.f32.gmra.mxu0 %v10661_v28  ;;  %v5041_v25 = vcombine.high %v5024_v32, %v14742_v43 }
 0x37f   :  { %v11309_v3 = vpop.permute.xlu0 %3221  ;;  %14901 = vst [vmem:[#allocation40_spill] sm:$0xff] %v11313_v62  ;;  %6619 = vmatprep.mubr.f32.mxu0 %v14742_v43  ;;  %v4123_v44 = vcombine.high %v11313_v62, %v11304_v34  ;;  %v4043_v62 = vcombine.high %v11230_v63, %v11248_v16 }
 0x380   :  { %6770 = vmatmul.mubr.f32.gmra.mxu1 %v10615_v0  ;;  %v4739_v13 = vcombine.low %v11293_v33, %v11309_v3 }
 0x381   :  { %v11316_v48 = vpop.permute.xlu1 %3225  ;;  %6775 = vmatprep.mubr.f32.mxu1 %v14742_v43 }
 0x382   :  { %5287 = vrot.lane.b32.xlu0 %v5024_v32, %s8136_s29  ;;  %6621 = vmatmul.mubr.f32.gmra.mxu0 %v10705_v8  ;;  %v11354_v26 = vrot.slane %v4739_v13, %v14884_v2 }
 0x383   :  { %v11324_v38 = vpop.permute.xlu0 %3229  ;;  %6626 = vmatprep.mubr.f32.mxu0 %v14742_v43 }
 0x384   :  { %6777 = vmatmul.mubr.f32.gmra.mxu1 %v10661_v28  ;;  %v4956_v28 = vcombine.high %v11165_v55, %v11168_v23  ;;  %v11368_v23 = vrot.slane %v4723_v52, %v14884_v2 }
 0x385   :  { %v11329_v31 = vpop.permute.xlu1 %3233  ;;  %6782 = vmatprep.mubr.f32.mxu1 %v14742_v43 }
 0x386   :  { %v4755_v0 = vcombine.low %v11316_v48, %v11329_v31  ;;  %5315 = vrot.lane.b32.xlu0 %v5041_v25, %s8137_s5  ;;  %v4988_v25 = vcombine.high %v11202_v36, %v11194_v54  ;;  %6628 = vmatmul.mubr.f32.gmra.mxu0 %v10742_v5  ;;  %v4787_v52 = vcombine.low %v11368_v23, %v11354_v26 }
 0x387   :  { %v11337_v61 = vpop.permute.xlu0 %3237  ;;  %6633 = vmatprep.mubr.f32.mxu0 %v14742_v43  ;;  %v11396_v36 = vrot.slane %v4924_v50, %v14888_v47 }
 0x388   :  { %v4771_v32 = vcombine.low %v11324_v38, %v11337_v61  ;;  %v11345_v39 = vrot.slane %v4755_v0, %v14884_v2  ;;  %6784 = vmatmul.mubr.f32.gmra.mxu1 %v10705_v8 }
 0x389   :  { %v3309_v24 = vpop.permute.xlu1 %3308  ;;  %6789 = vmatprep.mubr.f32.mxu1 %v14742_v43 }
 0x38a   :  { %v11357_v22 = vrot.slane %v4771_v32, %v14884_v2  ;;  %v4137_v0 = vrot.slane %v3309_v24, %v14884_v2  ;;  %5257 = vrot.lane.b32.xlu0 %v4988_v25, %s8135_s28  ;;  %v4091_v32 = vcombine.high %v11257_v35, %v11263_v10  ;;  %v11383_v25 = vrot.slane %v4956_v28, %v14888_v47 }
 0x38b   :  { %v11364_v55 = vpop.permute.xlu0 %3207  ;;  %v4059_v10 = vcombine.high %v11267_v12, %v11270_v14  ;;  %6635 = vmatmul.mubr.f32.gmra.mxu0 %v10778_v37  ;;  %v4995_v14 = vcombine.high %v11272_v9, %v14742_v43 }
 0x38c   :  { %v4819_v13 = vcombine.low %v11345_v39, %v11357_v22  ;;  %v11376_v8 = vrot.slane %v4137_v0, %v14888_v47  ;;  %6791 = vmatmul.mubr.f32.gmra.mxu1 %v10742_v5  ;;  %v4145_v35 = vcombine.high %v4137_v0, %v14742_v43  ;;  %v4989_v12 = vcombine.low %v11396_v36, %v11383_v25 }
 0x38d   :  { %v11380_v51 = vpop.permute.xlu1 %3211  ;;  %v4105_v0 = vrot.slane %v4091_v32, %v14888_v47  ;;  %6796 = vmatprep.mubr.f32.mxu1 %v14742_v43  ;;  %v5009_v32 = vrot.slane %v4995_v14, %v14884_v2  ;;  %6882 = vmatprep.mubr.f32.mxu0 %v14742_v43 }
 0x38e   :  { %14902 = vst [vmem:[#allocation38_spill] sm:$0xff] %v11376_v8  ;;  %5061 = vrot.lane.b32.xlu0 %v4123_v44, %s8135_s28  ;;  %v4175_v28 = vcombine.high %v11376_v8, %v14742_v43  ;;  %v11401_v34 = vrot.slane %v4819_v13, %v14888_v47  ;;  %v11413_v44 = vrot.slane %v4787_v52, %v14888_v47 }
 0x38f   :  { %v11393_v54 = vpop.permute.xlu0 %3215  ;;  %v4073_v13 = vrot.slane %v4059_v10, %v14888_v47  ;;  %v4159_v9 = vrot.slane %v4145_v35, %v14888_v47  ;;  %v4130_v52 = vcombine.high %v3309_v24, %v14742_v43 }
 0x390   :  { %14903 = vst [vmem:[#allocation36_spill] sm:$0xff] %v11401_v34  ;;  %5063 = vrot.lane.b32.xlu1 %v4175_v28, %s8135_s28  ;;  %14904 = vst [vmem:[#allocation18_spill] sm:$0xff] %v11413_v44  ;;  %6798 = vmatmul.mubr.f32.gmra.mxu1 %v10778_v37  ;;  %v4852_v14 = vcombine.high %v11413_v44, %v11401_v34  ;;  %v4820_v34 = vcombine.high %v11345_v39, %v11357_v22 }
 0x391   :  { %v11410_v50 = vpop.permute.xlu1 %3219  ;;  %v4124_v8 = vcombine.low %v4073_v13, %v4105_v0  ;;  %7149 = vmatprep.mubr.f32.mxu1 %v14742_v43  ;;  %v4176_v10 = vcombine.high %v4159_v9, %v14742_v43  ;;  %v11440_v37 = vrot.slane %v4130_v52, %v14884_v2  ;;  %v3858_v52 = vcombine.low %v11364_v55, %v11393_v54 }
 0x392   :  { %5285 = vrot.lane.b32.xlu0 %v4989_v12, %s8136_s29  ;;  %v5025_v12 = vcombine.high %v5009_v32, %v14742_v43  ;;  %v3874_v24 = vcombine.low %v11380_v51, %v11410_v50  ;;  %v4788_v22 = vcombine.high %v11368_v23, %v11354_v26  ;;  %v4125_v26 = vcombine.high %v4073_v13, %v4105_v0 }
 0x394   :  { %v11419_v5 = vpop.permute.xlu0 %3223  ;;  %5091 = vrot.lane.b32.xlu1 %v4159_v9, %s8136_s29  ;;  %v4027_v9 = vcombine.high %v11227_v4, %v11239_v11  ;;  %v5039_v44 = vrot.slane %v5025_v12, %v14888_v47  ;;  %v4011_v4 = vcombine.high %v11181_v58, %v11215_v30  ;;  %v11467_v39 = vrot.slane %v3874_v24, %v14884_v2 }
 0x395   :  { %v11483_v30 = vrot.slane %v3858_v52, %v14884_v2 }
 0x396   :  { %5089 = vrot.lane.b32.xlu0 %v4124_v8, %s8136_s29  ;;  %v11431_v35 = vpop.permute.xlu1 %3227  ;;  %v5032_v8 = vrot.slane %v5009_v32, %v14888_v47  ;;  %v3995_v32 = vcombine.high %v11189_v18, %v11209_v45  ;;  %v4167_v18 = vrot.slane %v11440_v37, %v14888_v47  ;;  %v11477_v58 = vrot.slane %v4027_v9, %v14884_v2 }
 0x397   :  { %v11480_v45 = vrot.slane %v4043_v62, %v14884_v2  ;;  %v11499_v62 = vrot.slane %v4011_v4, %v14884_v2  ;;  %v3922_v13 = vcombine.low %v11483_v30, %v11467_v39  ;;  %v3923_v59 = vcombine.high %v11483_v30, %v11467_v39 }
 0x398   :  { %v11434_v28 = vpop.permute.xlu0 %3231  ;;  %5119 = vrot.lane.b32.xlu1 %v4176_v10, %s8137_s5  ;;  %v11496_v24 = vrot.slane %v3995_v32, %v14884_v2  ;;  %v4177_v60 = vcombine.high %v4167_v18, %v14742_v43 }
 0x399   :  { %v3890_v10 = vcombine.low %v11419_v5, %v11434_v28  ;;  %v4106_v32 = vcombine.low %v11477_v58, %v11480_v45  ;;  %v11533_v42 = vrot.slane %v3922_v13, %v14888_v47  ;;  %v4860_v13 = vcombine.high %v11068_v49, %v11086_v15 }
 0x39a   :  { %5255 = vrot.lane.b32.xlu0 %v4852_v14, %s8135_s28  ;;  %v11462_v63 = vpop.permute.xlu1 %3235  ;;  %v11493_v14 = vrot.slane %v4820_v34, %v14888_v47  ;;  %v11511_v34 = vrot.slane %v4788_v22, %v14888_v47  ;;  %v4074_v22 = vcombine.low %v11496_v24, %v11499_v62 }
 0x39b   :  { %v3906_v16 = vcombine.low %v11431_v35, %v11462_v63  ;;  %v11486_v23 = vrot.slane %v3890_v10, %v14884_v2  ;;  %v5042_v10 = vcombine.high %v5032_v8, %v14742_v43  ;;  %14908 = vst [vmem:[#allocation29_spill] sm:$0xff] %v11533_v42  ;;  %v3907_v56 = vcombine.high %v11431_v35, %v11462_v63 }
 0x39c   :  { %5343 = vrot.lane.b32.xlu1 %v5032_v8, %s8138_s6  ;;  %v4853_v4 = vcombine.low %v11511_v34, %v11493_v14 }
 0x39d   :  { %v11489_v12 = vrot.slane %v3906_v16, %v14884_v2 }
 0x39e   :  { %v11469_v11 = vpop.permute.xlu0 %3065  ;;  %5399 = vrot.lane.b32.xlu0 %v5039_v44, %s8140_s8 }
 0x39f   :  { %14905 = vst [vmem:[#allocation19_spill] sm:$0xff] %v11469_v11  ;;  %v3954_v9 = vcombine.low %v11486_v23, %v11489_v12 }
 0x3a0   :  { %5147 = vrot.lane.b32.xlu1 %v4167_v18, %s8138_s6 }
 0x3a1   :  { %v11520_v16 = vrot.slane %v3954_v9, %v14888_v47  ;;  %v4876_v9 = vcombine.high %v11083_v27, %v11108_v57  ;;  %v4922_v27 = vrot.slane %v4908_v17, %v14884_v2 }
 0x3a2   :  { %v11501_v0 = vpop.permute.xlu1 %3069  ;;  %5117 = vrot.lane.b32.xlu0 %v4125_v26, %s8137_s5 }
 0x3a3   :  { %v11507_v52 = vpop.permute.xlu0 %3073  ;;  %14907 = vst [vmem:[#allocation14_spill] sm:$0xff] %v11520_v16  ;;  %v11565_v49 = vrot.slane %v4876_v9, %v14884_v2  ;;  %v4160_v9 = vcombine.high %v11440_v37, %v14742_v43 }
 0x3a4   :  { %14906 = vst [vmem:[#allocation8_spill] sm:$0xff] %v11507_v52  ;;  %5371 = vrot.lane.b32.xlu1 %v5042_v10, %s8139_s7  ;;  %v5043_v10 = vcombine.high %v5039_v44, %v14742_v43  ;;  %v4587_v29 = vcombine.low %v11469_v11, %v11507_v52  ;;  %v4990_v44 = vcombine.high %v11396_v36, %v11383_v25 }
 0x3a6   :  { %v11524_v26 = vpop.permute.xlu1 %3077  ;;  %5283 = vrot.lane.b32.xlu0 %v4853_v4, %s8136_s29  ;;  %v11544_v4 = vrot.slane %v4106_v32, %v14888_v47  ;;  %v4906_v32 = vrot.slane %v4892_v21, %v14884_v2  ;;  %v11583_v21 = vrot.slane %v4587_v29, %v14884_v2 }
 0x3a7   :  { %v11528_v8 = vpop.permute.xlu0 %3081  ;;  %v4603_v53 = vcombine.low %v11501_v0, %v11524_v26 }
 0x3a8   :  { %5175 = vrot.lane.b32.xlu1 %v4177_v60, %s8139_s7  ;;  %v11559_v60 = vrot.slane %v4074_v22, %v14888_v47  ;;  %v11576_v22 = vrot.slane %v4860_v13, %v14884_v2  ;;  %v4971_v36 = vcombine.low %v4906_v32, %v4922_v27  ;;  %v3987_v13 = vcombine.high %v11533_v42, %v11520_v16 }
 0x3a9   :  { %v11568_v17 = vrot.slane %v4603_v53, %v14884_v2  ;;  %v4174_v16 = vrot.slane %v4160_v9, %v14888_v47  ;;  %v4972_v30 = vcombine.high %v4906_v32, %v4922_v27 }
 0x3aa   :  { %v11551_v57 = vpop.permute.xlu1 %3085  ;;  %5427 = vrot.lane.b32.xlu0 %v5043_v10, %s8141_s9  ;;  %v4126_v10 = vcombine.low %v11559_v60, %v11544_v4  ;;  %v4979_v42 = vrot.slane %v4971_v36, %v14888_v47 }
 0x3ab   :  { %v11555_v19 = vpop.permute.xlu0 %3089  ;;  %v4651_v1 = vcombine.low %v11583_v21, %v11568_v17  ;;  %v4652_v35 = vcombine.high %v11583_v21, %v11568_v17  ;;  %v11648_v63 = vrot.slane %v4972_v30, %v14888_v47 }
 0x3ac   :  { %v4619_v15 = vcombine.low %v11528_v8, %v11555_v19  ;;  %5313 = vrot.lane.b32.xlu1 %v4990_v44, %s8137_s5  ;;  %v4939_v44 = vcombine.low %v11576_v22, %v11565_v49 }
 0x3ae   :  { %v11578_v25 = vpop.permute.xlu1 %3093  ;;  %5145 = vrot.lane.b32.xlu0 %v4126_v10, %s8138_s6  ;;  %v4627_v37 = vrot.slane %v4619_v15, %v14884_v2  ;;  %v3955_v10 = vcombine.high %v11486_v23, %v11489_v12  ;;  %v4947_v23 = vrot.slane %v4939_v44, %v14888_v47  ;;  %v4940_v44 = vcombine.high %v11576_v22, %v11565_v49 }
 0x3af   :  { %v11585_v53 = vpop.permute.xlu0 %3063  ;;  %v4635_v18 = vcombine.low %v11551_v57, %v11578_v25  ;;  %v3891_v49 = vcombine.high %v11419_v5, %v11434_v28  ;;  %v4756_v22 = vcombine.high %v11316_v48, %v11329_v31  ;;  %v4772_v5 = vcombine.high %v11324_v38, %v11337_v61 }
 0x3b0   :  { %5059 = vrot.lane.b32.xlu1 %v3987_v13, %s8135_s28  ;;  %v4991_v9 = vcombine.low %v4947_v23, %v4979_v42  ;;  %v3969_v39 = vrot.slane %v3955_v10, %v14888_v47  ;;  %v4178_v31 = vcombine.high %v4174_v16, %v14742_v43 }
 0x3b1   :  { %v4643_v29 = vrot.slane %v4635_v18, %v14884_v2  ;;  %v11611_v18 = vrot.slane %v4651_v1, %v14888_v47  ;;  %v11685_v38 = vrot.slane %v3891_v49, %v14884_v2 }
 0x3b2   :  { %v11599_v11 = vpop.permute.xlu1 %3067 }
 0x3b3   :  { %14909 = vst [vmem:[#allocation27_spill] sm:$0xff] %v11599_v11  ;;  %v4683_v52 = vcombine.low %v4627_v37, %v4643_v29  ;;  %v11603_v40 = vpop.permute.xlu0 %3071  ;;  %14910 = vst [vmem:[#allocation21_spill] sm:$0xff] %v11611_v18  ;;  %v4684_v32 = vcombine.high %v4627_v37, %v4643_v29 }
 0x3b4   :  { %5203 = vrot.lane.b32.xlu1 %v4174_v16, %s8140_s8  ;;  %v3722_v10 = vcombine.low %v11585_v53, %v11603_v40 }
 0x3b5   :  { %v11614_v15 = vrot.slane %v4683_v52, %v14888_v47  ;;  %v3937_v52 = vrot.slane %v3923_v59, %v14888_v47  ;;  %v3875_v59 = vcombine.high %v11380_v51, %v11410_v50  ;;  %v3859_v51 = vcombine.high %v11364_v55, %v11393_v54 }
 0x3b6   :  { %v11617_v12 = vpop.permute.xlu1 %3075  ;;  %v11664_v50 = vrot.slane %v3907_v56, %v14884_v2  ;;  %v11670_v28 = vrot.slane %v3722_v10, %v14884_v2  ;;  %v11677_v61 = vrot.slane %v4684_v32, %v14888_v47  ;;  %v4740_v56 = vcombine.high %v11293_v33, %v11309_v3 }
 0x3b7   :  { %14911 = vst [vmem:[#allocation102_spill] sm:$0xff] %v11614_v15  ;;  %v11619_v13 = vpop.permute.xlu0 %3079  ;;  %v4716_v36 = vcombine.high %v11611_v18, %v11614_v15  ;;  %v3738_v1 = vcombine.low %v11599_v11, %v11617_v12  ;;  %v3988_v11 = vcombine.low %v3937_v52, %v3969_v39  ;;  %v3989_v21 = vcombine.high %v3937_v52, %v3969_v39 }
 0x3b8   :  { %5341 = vrot.lane.b32.xlu1 %v4991_v9, %s8138_s6  ;;  %v4992_v9 = vcombine.high %v4947_v23, %v4979_v42  ;;  %v11682_v54 = vrot.slane %v3875_v59, %v14884_v2  ;;  %v11688_v55 = vrot.slane %v4652_v35, %v14888_v47  ;;  %v4724_v33 = vcombine.high %v11277_v20, %v11299_v46 }
 0x3b9   :  { %5253 = vrot.lane.b32.xlu0 %v4716_v36, %s8135_s28  ;;  %v11653_v37 = vrot.slane %v3738_v1, %v14884_v2  ;;  %v11699_v3 = vrot.slane %v4772_v5, %v14884_v2  ;;  %v11702_v39 = vrot.slane %v4756_v22, %v14884_v2  ;;  %v4854_v1 = vcombine.high %v11511_v34, %v11493_v14 }
 0x3ba   :  { %v11633_v41 = vpop.permute.xlu1 %3083  ;;  %v11709_v52 = vrot.slane %v3859_v51, %v14884_v2  ;;  %v3970_v32 = vcombine.low %v11685_v38, %v11664_v50  ;;  %v4717_v46 = vcombine.low %v11688_v55, %v11677_v61  ;;  %v11718_v20 = vrot.slane %v4740_v56, %v14884_v2 }
 0x3bb   :  { %v11639_v36 = vpop.permute.xlu0 %3087  ;;  %v3786_v16 = vcombine.low %v11670_v28, %v11653_v37  ;;  %v11721_v59 = vrot.slane %v4940_v44, %v14888_v47  ;;  %v11734_v35 = vrot.slane %v4724_v33, %v14884_v2  ;;  %v4835_v44 = vcombine.low %v11702_v39, %v11699_v3 }
 0x3bc   :  { %v3754_v42 = vcombine.low %v11619_v13, %v11639_v36  ;;  %5087 = vrot.lane.b32.xlu1 %v3988_v11, %s8136_s29  ;;  %v3938_v14 = vcombine.low %v11709_v52, %v11682_v54  ;;  %v11745_v51 = vrot.slane %v3970_v32, %v14888_v47  ;;  %v4127_v33 = vcombine.high %v11559_v60, %v11544_v4 }
 0x3bd   :  { %5369 = vrot.lane.b32.xlu0 %v4992_v9, %s8139_s7  ;;  %v11728_v34 = vrot.slane %v3786_v16, %v14888_v47  ;;  %v4993_v5 = vcombine.low %v11721_v59, %v11648_v63  ;;  %v3787_v27 = vcombine.high %v11670_v28, %v11653_v37 }
 0x3be   :  { %v11666_v48 = vpop.permute.xlu1 %3091  ;;  %v3762_v29 = vrot.slane %v3754_v42, %v14884_v2  ;;  %v11755_v56 = vrot.slane %v3938_v14, %v14888_v47 }
 0x3bf   :  { %v11672_v17 = vpop.permute.xlu0 %3033  ;;  %v3770_v11 = vcombine.low %v11633_v41, %v11666_v48  ;;  %14913 = vst [vmem:[#allocation31_spill] sm:$0xff] %v11728_v34 }
 0x3c0   :  { %14912 = vst [vmem:[#allocation66_spill] sm:$0xff] %v11672_v17  ;;  %5231 = vrot.lane.b32.xlu1 %v4178_v31, %s8141_s9  ;;  %v3990_v14 = vcombine.low %v11755_v56, %v11745_v51 }
 0x3c1   :  { %v3778_v23 = vrot.slane %v3770_v11, %v14884_v2  ;;  %5115 = vrot.lane.b32.xlu0 %v3989_v21, %s8137_s5  ;;  %v4803_v11 = vcombine.low %v11734_v35, %v11718_v20 }
 0x3c2   :  { %v11704_v30 = vpop.permute.xlu1 %3037 }
 0x3c3   :  { %v3818_v10 = vcombine.low %v3762_v29, %v3778_v23  ;;  %v11713_v9 = vpop.permute.xlu0 %3041  ;;  %v3819_v32 = vcombine.high %v3762_v29, %v3778_v23  ;;  %v4107_v29 = vcombine.high %v11477_v58, %v11480_v45 }
 0x3c4   :  { %5311 = vrot.lane.b32.xlu1 %v4854_v1, %s8137_s5 }
 0x3c5   :  { %5281 = vrot.lane.b32.xlu0 %v4717_v46, %s8136_s29  ;;  %v11731_v49 = vrot.slane %v3818_v10, %v14888_v47  ;;  %v4451_v10 = vcombine.low %v11672_v17, %v11713_v9  ;;  %v4718_v17 = vcombine.high %v11688_v55, %v11677_v61 }
 0x3c6   :  { %v11736_v22 = vpop.permute.xlu1 %3045 }
 0x3c7   :  { %14914 = vst [vmem:[#allocation30_spill] sm:$0xff] %v11731_v49  ;;  %v11740_v42 = vpop.permute.xlu0 %3049  ;;  %v3851_v31 = vcombine.high %v11728_v34, %v11731_v49  ;;  %v4467_v21 = vcombine.low %v11704_v30, %v11736_v22 }
 0x3c9   :  { %5397 = vrot.lane.b32.xlu0 %v4993_v5, %s8140_s8  ;;  %5057 = vrot.lane.b32.xlu1 %v3851_v31, %s8135_s28  ;;  %v4843_v5 = vrot.slane %v4835_v44, %v14888_v47  ;;  %v4811_v31 = vrot.slane %v4803_v11, %v14888_v47  ;;  %v11775_v4 = vrot.slane %v4467_v21, %v14884_v2 }
 0x3ca   :  { %v11758_v16 = vpop.permute.xlu1 %3053  ;;  %v11786_v44 = vrot.slane %v4451_v10, %v14884_v2  ;;  %v11793_v21 = vrot.slane %v3819_v32, %v14888_v47 }
 0x3cb   :  { %v11766_v46 = vpop.permute.xlu0 %3057  ;;  %v4855_v28 = vcombine.low %v4811_v31, %v4843_v5  ;;  %v4856_v18 = vcombine.high %v4811_v31, %v4843_v5  ;;  %v4620_v5 = vcombine.high %v11528_v8, %v11555_v19  ;;  %v14925_v8 = vld [vmem:[#allocation59_spill] sm:$0xff]  ;;  %v14926_v19 = vld [vmem:[#allocation85_spill] sm:$0xff] }
 0x3cc   :  { %v4483_v60 = vcombine.low %v11740_v42, %v11766_v46  ;;  %v4515_v58 = vcombine.low %v11786_v44, %v11775_v4 }
 0x3cd   :  { %5143 = vrot.lane.b32.xlu0 %v3990_v14, %s8138_s6  ;;  %5173 = vrot.lane.b32.xlu1 %v4127_v33, %s8139_s7  ;;  %v4075_v33 = vcombine.high %v11496_v24, %v11499_v62  ;;  %v3801_v14 = vrot.slane %v3787_v27, %v14888_v47  ;;  %v11815_v62 = vrot.slane %v4107_v29, %v14888_v47 }
 0x3ce   :  { %v11783_v23 = vpop.permute.xlu1 %3061  ;;  %v11800_v45 = vrot.slane %v4483_v60, %v14884_v2  ;;  %v11819_v60 = vrot.slane %v4515_v58, %v14888_v47 }
 0x3cf   :  { %v11788_v11 = vpop.permute.xlu0 %3031  ;;  %v4499_v37 = vcombine.low %v11758_v16, %v11783_v23  ;;  %v3852_v24 = vcombine.low %v3801_v14, %v11793_v21  ;;  %v11825_v27 = vrot.slane %v4075_v33, %v14888_v47  ;;  %v4604_v33 = vcombine.high %v11501_v0, %v11524_v26  ;;  %v14923_v0 = vld [vmem:[#allocation86_spill] sm:$0xff] }
 0x3d0   :  { %14915 = vst [vmem:[#allocation33_spill] sm:$0xff] %v11788_v11  ;;  %14918 = vst [vmem:[#allocation22_spill] sm:$0xff] %v11819_v60  ;;  %v14924_v26 = vld [vmem:[#allocation50_spill] sm:$0xff] }
 0x3d1   :  { %v11803_v10 = vrot.slane %v4499_v37, %v14884_v2  ;;  %5339 = vrot.lane.b32.xlu1 %v4855_v28, %s8138_s6  ;;  %v4128_v29 = vcombine.low %v11825_v27, %v11815_v62  ;;  %v4331_v31 = vcombine.low %v14924_v26, %v14923_v0  ;;  %v14936_v26 = vld [vmem:[#allocation68_spill] sm:$0xff] }
 0x3d2   :  { %v11807_v1 = vpop.permute.xlu1 %3035 }
 0x3d3   :  { %14916 = vst [vmem:[#allocation97_spill] sm:$0xff] %v11807_v1  ;;  %v4547_v32 = vcombine.low %v11800_v45, %v11803_v10  ;;  %v11811_v43 = vpop.permute.xlu0 %3039 }
 0x3d4   :  { %14917 = vst [vmem:[#allocation54_spill] sm:$0xff] %v11811_v43 }
 0x3d5   :  { %5085 = vrot.lane.b32.xlu1 %v3852_v24, %s8136_s29  ;;  %v11822_v37 = vrot.slane %v4547_v32, %v14888_v47  ;;  %v3586_v24 = vcombine.low %v11788_v11, %v11811_v43 }
 0x3d6   :  { %v11827_v28 = vpop.permute.xlu1 %3043 }
 0x3d7   :  { %14919 = vst [vmem:[#allocation37_spill] sm:$0xff] %v11822_v37  ;;  %14920 = vst [vmem:[#allocation84_spill] sm:$0xff] %v11827_v28  ;;  %v11829_v49 = vpop.permute.xlu0 %3047  ;;  %v4580_v34 = vcombine.high %v11819_v60, %v11822_v37  ;;  %v3602_v58 = vcombine.low %v11807_v1, %v11827_v28  ;;  %v4636_v1 = vcombine.high %v11551_v57, %v11578_v25  ;;  %v14927_v37 = vld [vmem:[#allocation8_spill] sm:$0xff]  ;;  %v14928_v60 = vld [vmem:[#allocation19_spill] sm:$0xff] }
 0x3d8   :  { %14921 = vst [vmem:[#allocation93_spill] sm:$0xff] %v11829_v49  ;;  %v4315_v57 = vcombine.low %v14830_v6, %v10906_v7  ;;  %v11867_v25 = vrot.slane %v3586_v24, %v14884_v2  ;;  %v4588_v6 = vcombine.high %v14928_v60, %v14927_v37  ;;  %v14931_v37 = vld [vmem:[#allocation58_spill] sm:$0xff]  ;;  %v3771_v28 = vcombine.high %v11633_v41, %v11666_v48 }
 0x3d9   :  { %5251 = vrot.lane.b32.xlu0 %v4580_v34, %s8135_s28  ;;  %5201 = vrot.lane.b32.xlu1 %v4128_v29, %s8140_s8  ;;  %v11852_v34 = vrot.slane %v3602_v58, %v14884_v2  ;;  %v3450_v58 = vcombine.low %v14926_v19, %v14925_v8  ;;  %v11882_v24 = vrot.slane %v4636_v1, %v14884_v2  ;;  %v14932_v1 = vld [vmem:[#allocation81_spill] sm:$0xff] }
 0x3da   :  { %v11839_v32 = vpop.permute.xlu1 %3051  ;;  %v3466_v19 = vcombine.low %v14932_v1, %v14931_v37  ;;  %v11899_v8 = vrot.slane %v4604_v33, %v14884_v2  ;;  %v11914_v60 = vrot.slane %v4315_v57, %v14884_v2  ;;  %v3853_v33 = vcombine.high %v3801_v14, %v11793_v21 }
 0x3db   :  { %v11845_v15 = vpop.permute.xlu0 %3055  ;;  %v3650_v7 = vcombine.low %v11867_v25, %v11852_v34  ;;  %v4836_v57 = vcombine.high %v11702_v39, %v11699_v3  ;;  %v4129_v41 = vcombine.high %v11825_v27, %v11815_v62  ;;  %v3755_v48 = vcombine.high %v11619_v13, %v11639_v36 }
 0x3dc   :  { %14922 = vst [vmem:[#allocation110_spill] sm:$0xff] %v11845_v15  ;;  %v3618_v29 = vcombine.low %v11829_v49, %v11845_v15  ;;  %v11923_v49 = vrot.slane %v3450_v58, %v14884_v2  ;;  %v11926_v15 = vrot.slane %v4588_v6, %v14884_v2  ;;  %v11942_v6 = vrot.slane %v3466_v19, %v14884_v2  ;;  %v14940_v58 = vld [vmem:[#allocation64_spill] sm:$0xff] }
 0x3dd   :  { %5367 = vrot.lane.b32.xlu0 %v4856_v18, %s8139_s7  ;;  %5309 = vrot.lane.b32.xlu1 %v4718_v17, %s8137_s5  ;;  %v4994_v17 = vcombine.high %v11721_v59, %v11648_v63  ;;  %v11892_v63 = vld [vmem:[%s14011_s0 + $0x20] sm:$0xff]  ;;  %v11936_v21 = vrot.slane %v3650_v7, %v14888_v47  ;;  %v4804_v7 = vcombine.high %v11734_v35, %v11718_v20 }
 0x3de   :  { %v11862_v61 = vpop.permute.xlu1 %3059  ;;  %v3626_v11 = vrot.slane %v3618_v29, %v14884_v2  ;;  %14929 = vst [vmem:[#allocation98_spill] sm:$0xff] %v11892_v63  ;;  %v14930_v59 = vld [vmem:[#allocation62_spill] sm:$0xff]  ;;  %v11902_v29 = vrot.slane %v4620_v5, %v14884_v2  ;;  %v11920_v5 = vrot.slane %v4331_v31, %v14884_v2  ;;  %14938 = vst [vmem:[#allocation95_spill] sm:$0xff] %v11926_v15 }
 0x3df   :  { %v3634_v55 = vcombine.low %v11839_v32, %v11862_v61  ;;  %v11871_v18 = vpop.permute.xlu0 %2867  ;;  %v14939_v31 = vld [vmem:[#allocation10_spill] sm:$0xff]  ;;  %v4667_v3 = vcombine.low %v11926_v15, %v11899_v8  ;;  %v4548_v19 = vcombine.high %v11800_v45, %v11803_v10  ;;  %v14943_v15 = vld [vmem:[#allocation27_spill] sm:$0xff]  ;;  %v3939_v13 = vcombine.high %v11709_v52, %v11682_v54 }
 0x3e0   :  { %14933 = vst [vmem:[#allocation25_spill] sm:$0xff] %v11902_v29  ;;  %v4699_v0 = vcombine.low %v11902_v29, %v11882_v24  ;;  %v3723_v29 = vcombine.high %v11585_v53, %v11603_v40  ;;  %v3739_v62 = vcombine.high %v14943_v15, %v11617_v12  ;;  %v11972_v36 = vrot.slane %v3771_v28, %v14884_v2 }
 0x3e1   :  { %v3642_v43 = vrot.slane %v3634_v55, %v14884_v2  ;;  %5425 = vrot.lane.b32.xlu1 %v4994_v17, %s8141_s9  ;;  %v11909_v17 = vld [vmem:[%s14011_s0 + $0x18] sm:$0xff]  ;;  %v4516_v35 = vcombine.high %v11786_v44, %v11775_v4  ;;  %v11978_v40 = vrot.slane %v4836_v57, %v14888_v47  ;;  %v3651_v53 = vcombine.high %v11867_v25, %v11852_v34  ;;  %v14949_v57 = vld [vmem:[#allocation78_spill] sm:$0xff] }
 0x3e2   :  { %v11904_v55 = vpop.permute.xlu1 %2873  ;;  %14935 = vst [vmem:[#allocation101_spill] sm:$0xff] %v11909_v17  ;;  %v11967_v20 = vrot.slane %v4699_v0, %v14888_v47  ;;  %v3991_v12 = vcombine.high %v11755_v56, %v11745_v51  ;;  %v11990_v54 = vrot.slane %v4667_v3, %v14888_v47  ;;  %v11993_v52 = vrot.slane %v3755_v48, %v14884_v2  ;;  %v14945_v4 = vld [vmem:[#allocation105_spill] sm:$0xff] }
 0x3e3   :  { %14934 = vst [vmem:[#allocation94_spill] sm:$0xff] %v11904_v55  ;;  %v3682_v1 = vcombine.low %v3626_v11, %v3642_v43  ;;  %v11916_v37 = vpop.permute.xlu0 %2865  ;;  %v3683_v27 = vcombine.high %v3626_v11, %v3642_v43  ;;  %v3971_v43 = vcombine.high %v11685_v38, %v11664_v50  ;;  %v4347_v44 = vcombine.low %v11871_v18, %v14945_v4  ;;  %v14946_v50 = vld [vmem:[#allocation53_spill] sm:$0xff] }
 0x3e4   :  { %14937 = vst [vmem:[#allocation107_spill] sm:$0xff] %v11916_v37  ;;  %v4363_v38 = vcombine.low %v11904_v55, %v14946_v50  ;;  %v12002_v45 = vrot.slane %v4548_v19, %v14888_v47  ;;  %v12005_v10 = vrot.slane %v3723_v29, %v14884_v2  ;;  %v12008_v51 = vrot.slane %v3739_v62, %v14884_v2  ;;  %v14948_v25 = vld [vmem:[#allocation77_spill] sm:$0xff]  ;;  %v14951_v19 = vld [vmem:[#allocation55_spill] sm:$0xff]  ;;  %v14952_v62 = vld [vmem:[#allocation76_spill] sm:$0xff] }
 0x3e5   :  { %5113 = vrot.lane.b32.xlu1 %v3853_v33, %s8137_s5  ;;  %v11939_v14 = vrot.slane %v3682_v1, %v14888_v47  ;;  %v4719_v56 = vcombine.low %v11990_v54, %v11967_v20  ;;  %v12013_v28 = vrot.slane %v3683_v27, %v14888_v47  ;;  %v3834_v34 = vcombine.low %v11993_v52, %v11972_v36 }
 0x3e6   :  { %v11948_v39 = vpop.permute.xlu1 %2871  ;;  %v3482_v0 = vcombine.low %v11916_v37, %v14948_v25  ;;  %v4530_v29 = vrot.slane %v4516_v35, %v14888_v47  ;;  %v12033_v37 = vrot.slane %v3651_v53, %v14888_v47  ;;  %v12039_v35 = vrot.slane %v4363_v38, %v14884_v2 }
 0x3e7   :  { %14941 = vst [vmem:[#allocation71_spill] sm:$0xff] %v11948_v39  ;;  %v3715_v1 = vcombine.high %v11936_v21, %v11939_v14  ;;  %v11960_v33 = vpop.permute.xlu0 %2823  ;;  %v3498_v3 = vcombine.low %v11948_v39, %v14949_v57  ;;  %v4818_v53 = vrot.slane %v4804_v7, %v14888_v47  ;;  %v12050_v39 = vrot.slane %v3971_v43, %v14888_v47 }
 0x3e8   :  { %14942 = vst [vmem:[#allocation67_spill] sm:$0xff] %v11960_v33  ;;  %v12055_v38 = vrot.slane %v3482_v0, %v14884_v2 }
 0x3e9   :  { %5055 = vrot.lane.b32.xlu0 %v3715_v1, %s8135_s28  ;;  %5229 = vrot.lane.b32.xlu1 %v4129_v41, %s8141_s9  ;;  %v14950_v41 = vld [vmem:[#allocation100_spill] sm:$0xff] }
 0x3ea   :  { %v11984_v15 = vpop.permute.xlu1 %2829  ;;  %v4227_v48 = vcombine.low %v11960_v33, %v14950_v41  ;;  %v14954_v33 = vld [vmem:[#allocation24_spill] sm:$0xff] }
 0x3eb   :  { %14944 = vst [vmem:[#allocation43_spill] sm:$0xff] %v11984_v15  ;;  %v11999_v11 = vpop.permute.xlu0 %2821  ;;  %v4211_v1 = vcombine.low %v14951_v19, %v11984_v15  ;;  %v4581_v19 = vcombine.low %v4530_v29, %v12002_v45  ;;  %v14955_v15 = vld [vmem:[#allocation12_spill] sm:$0xff] }
 0x3ec   :  { %14947 = vst [vmem:[#allocation48_spill] sm:$0xff] %v11999_v11  ;;  %v3362_v27 = vcombine.low %v11999_v11, %v14952_v62  ;;  %v14956_v11 = vld [vmem:[#allocation108_spill] sm:$0xff]  ;;  %v12067_v7 = vrot.slane %v4227_v48, %v14884_v2 }
 0x3ed   :  { %5171 = vrot.lane.b32.xlu0 %v3991_v12, %s8139_s7  ;;  %5337 = vrot.lane.b32.xlu1 %v4719_v56, %s8138_s6  ;;  %v12036_v12 = vrot.slane %v4347_v44, %v14884_v2  ;;  %v3330_v62 = vcombine.low %v14956_v11, %v14955_v15  ;;  %v3716_v56 = vcombine.low %v12033_v37, %v12013_v28 }
 0x3ee   :  { %v12029_v55 = vpop.permute.xlu1 %2827  ;;  %v3802_v44 = vcombine.low %v12005_v10, %v12008_v51  ;;  %v12064_v15 = vrot.slane %v3939_v13, %v14888_v47  ;;  %v12070_v43 = vrot.slane %v4211_v1, %v14884_v2  ;;  %v12089_v1 = vrot.slane %v3834_v34, %v14888_v47 }
 0x3ef   :  { %14953 = vst [vmem:[#allocation80_spill] sm:$0xff] %v12029_v55  ;;  %v3346_v41 = vcombine.low %v14954_v33, %v12029_v55  ;;  %v12058_v33 = vrot.slane %v3498_v3, %v14884_v2  ;;  %v12073_v55 = vrot.slane %v3362_v27, %v14884_v2  ;;  %v14959_v3 = vcombine.low %v14940_v58, %v14939_v31 }
 0x3f0   :  { %v12061_v11 = vpop.permute.xlu0 %5259  ;;  %v4411_v48 = vcombine.low %v12036_v12, %v12039_v35  ;;  %v12092_v27 = vrot.slane %v3330_v62, %v14884_v2  ;;  %v4379_v58 = vcombine.low %v11914_v60, %v11920_v5  ;;  %v12108_v34 = vrot.slane %v3802_v44, %v14888_v47 }
 0x3f1   :  { %5279 = vrot.lane.b32.xlu0 %v4581_v19, %s8136_s29  ;;  %14957 = vst [vmem:[#allocation6_spill] sm:$0xff] %v12073_v55  ;;  %v12076_v0 = vrot.slane %v3346_v41, %v14884_v2  ;;  %5083 = vrot.lane.b32.xlu1 %v3716_v56, %s8136_s29  ;;  %v12083_v13 = vrot.slane %v14959_v3, %v14884_v2 }
 0x3f2   :  { %v4857_v19 = vcombine.low %v4818_v53, %v11978_v40  ;;  %v3992_v41 = vcombine.low %v12064_v15, %v12050_v39  ;;  %v14961_v56 = vcombine.low %v11892_v63, %v14930_v59  ;;  %v14963_v62 = vcombine.low %v11909_v17, %v14936_v26 }
 0x3f3   :  { %14958 = vst [vmem:[#allocation16_spill] sm:$0xff] %v12076_v0  ;;  %14960 = vst [vmem:[#allocation8_spill] sm:$0xff] %v12083_v13  ;;  %v4275_v63 = vcombine.low %v12070_v43, %v12067_v7  ;;  %v3514_v44 = vcombine.low %v11923_v49, %v11942_v6  ;;  %v12130_v17 = vrot.slane %v4411_v48, %v14888_v47 }
 0x3f4   :  { %v12100_v3 = vrot.slane %v14961_v56, %v14884_v2  ;;  %v12105_v31 = vpop.permute.xlu0 %5287  ;;  %v12114_v57 = vrot.slane %v14963_v62, %v14884_v2  ;;  %v3546_v56 = vcombine.low %v12055_v38, %v12058_v33  ;;  %v3854_v62 = vcombine.low %v12108_v34, %v12089_v1 }
 0x3f5   :  { %5395 = vrot.lane.b32.xlu0 %v4857_v19, %s8140_s8  ;;  %v3410_v19 = vcombine.low %v12076_v0, %v12073_v55  ;;  %5199 = vrot.lane.b32.xlu1 %v3992_v41, %s8140_s8  ;;  %v4500_v0 = vcombine.high %v11758_v16, %v11783_v23  ;;  %v4582_v41 = vcombine.high %v4530_v29, %v12002_v45 }
 0x3f6   :  { %14962 = vst [vmem:[#allocation19_spill] sm:$0xff] %v12100_v3  ;;  %14964 = vst [vmem:[#allocation27_spill] sm:$0xff] %v12114_v57  ;;  %v4243_v59 = vcombine.low %v12100_v3, %v12083_v13  ;;  %v3378_v26 = vcombine.low %v12114_v57, %v12092_v27  ;;  %v4468_v55 = vcombine.high %v11704_v30, %v11736_v22 }
 0x3f7   :  { %v12143_v13 = vrot.slane %v4379_v58, %v14888_v47  ;;  %v4484_v48 = vcombine.high %v11740_v42, %v11766_v46  ;;  %v12149_v57 = vrot.slane %v3546_v56, %v14888_v47  ;;  %v12152_v16 = vrot.slane %v4275_v63, %v14888_v47  ;;  %v14966_v42 = vld [vmem:[#allocation66_spill] sm:$0xff] }
 0x3f8   :  { %v12140_v3 = vpop.permute.xlu0 %5315  ;;  %v12155_v30 = vrot.slane %v3410_v19, %v14888_v47  ;;  %v12160_v23 = vrot.slane %v3514_v44, %v14888_v47  ;;  %v12163_v58 = vrot.slane %v4243_v59, %v14888_v47  ;;  %v4452_v46 = vcombine.high %v14966_v42, %v11713_v9  ;;  %v14985_v9 = vld [vmem:[#allocation94_spill] sm:$0xff] }
 0x3f9   :  { %5141 = vrot.lane.b32.xlu0 %v3854_v62, %s8138_s6  ;;  %5307 = vrot.lane.b32.xlu1 %v4582_v41, %s8137_s5  ;;  %14965 = vst [vmem:[#allocation105_spill] sm:$0xff] %v12149_v57  ;;  %v4444_v22 = vcombine.high %v12143_v13, %v12130_v17  ;;  %v12168_v45 = vrot.slane %v4500_v0, %v14884_v2 }
 0x3fa   :  { %v4858_v63 = vcombine.high %v4818_v53, %v11978_v40  ;;  %v12172_v29 = vrot.slane %v3378_v26, %v14888_v47  ;;  %v12175_v56 = vrot.slane %v4468_v55, %v14884_v2  ;;  %v12185_v0 = vrot.slane %v4484_v48, %v14884_v2 }
 0x3fb   :  { %v4720_v53 = vcombine.high %v11990_v54, %v11967_v20  ;;  %v12197_v44 = vrot.slane %v4452_v46, %v14884_v2  ;;  %v3717_v41 = vcombine.high %v12033_v37, %v12013_v28  ;;  %v3635_v20 = vcombine.high %v11839_v32, %v11862_v61  ;;  %v14967_v32 = vld [vmem:[#allocation84_spill] sm:$0xff]  ;;  %v14968_v61 = vld [vmem:[#allocation97_spill] sm:$0xff] }
 0x3fc   :  { %v12178_v19 = vpop.permute.xlu0 %5257  ;;  %v4563_v62 = vcombine.low %v12185_v0, %v12168_v45  ;;  %v4412_v54 = vcombine.high %v12036_v12, %v12039_v35  ;;  %v3579_v42 = vcombine.high %v12160_v23, %v12149_v57  ;;  %v4380_v37 = vcombine.high %v11914_v60, %v11920_v5  ;;  %v14969_v35 = vld [vmem:[#allocation110_spill] sm:$0xff]  ;;  %v14971_v5 = vld [vmem:[#allocation25_spill] sm:$0xff] }
 0x3fd   :  { %5249 = vrot.lane.b32.xlu0 %v4444_v22, %s8135_s28  ;;  %5423 = vrot.lane.b32.xlu1 %v4858_v63, %s8141_s9  ;;  %v4531_v22 = vcombine.low %v12197_v44, %v12175_v56  ;;  %v3547_v28 = vcombine.high %v12055_v38, %v12058_v33  ;;  %v3993_v63 = vcombine.high %v12064_v15, %v12050_v39  ;;  %v14972_v15 = vld [vmem:[#allocation54_spill] sm:$0xff]  ;;  %v14973_v38 = vld [vmem:[#allocation33_spill] sm:$0xff] }
 0x3fe   :  { %v3603_v12 = vcombine.high %v14968_v61, %v14967_v32  ;;  %v3515_v60 = vcombine.high %v11923_v49, %v11942_v6  ;;  %v4700_v33 = vcombine.high %v14971_v5, %v11882_v24  ;;  %v12242_v32 = vrot.slane %v3635_v20, %v14884_v2  ;;  %v14974_v20 = vld [vmem:[#allocation95_spill] sm:$0xff] }
 0x3ff   :  { %v12237_v39 = vrot.slane %v4531_v22, %v14888_v47  ;;  %v4426_v49 = vrot.slane %v4412_v54, %v14888_v47  ;;  %v3835_v24 = vcombine.high %v11993_v52, %v11972_v36  ;;  %v4394_v22 = vrot.slane %v4380_v37, %v14888_v47  ;;  %v14975_v54 = vld [vmem:[#allocation40_spill] sm:$0xff] }
 0x400   :  { %v5062_v48 = vpop.permute.xlu0 %5061 }
 0x401   :  { %5365 = vrot.lane.b32.xlu0 %v4720_v53, %s8139_s7  ;;  %5111 = vrot.lane.b32.xlu1 %v3717_v41, %s8137_s5  ;;  %v12222_v53 = vrot.slane %v4563_v62, %v14888_v47  ;;  %v14970_v41 = vld [vmem:[#allocation93_spill] sm:$0xff]  ;;  %v3587_v62 = vcombine.high %v14973_v38, %v14972_v15  ;;  %v4714_v38 = vrot.slane %v4700_v33, %v14888_v47 }
 0x402   :  { %v12213_v46 = vpop.permute.xlu1 %5063  ;;  %v3619_v55 = vcombine.high %v14970_v41, %v14969_v35  ;;  %v4668_v35 = vcombine.high %v14974_v20, %v11899_v8  ;;  %v14976_v41 = vld [vmem:[#allocation41_spill] sm:$0xff]  ;;  %v12275_v8 = vrot.slane %v3515_v60, %v14888_v47  ;;  %v14978_v20 = vld [vmem:[#allocation18_spill] sm:$0xff]  ;;  %v4446_v59 = vcombine.high %v4394_v22, %v4426_v49 }
 0x403   :  { %v4583_v6 = vcombine.low %v12237_v39, %v12222_v53  ;;  %v14977_v36 = vcombine.low %v14975_v54, %v14976_v41  ;;  %v14979_v54 = vld [vmem:[#allocation36_spill] sm:$0xff] }
 0x404   :  { %v12229_v40 = vpop.permute.xlu0 %5285  ;;  %v14980_v41 = vcombine.low %v14978_v20, %v14979_v54 }
 0x405   :  { %5053 = vrot.lane.b32.xlu0 %v3579_v42, %s8135_s28  ;;  %5227 = vrot.lane.b32.xlu1 %v3993_v63, %s8141_s9  ;;  %v3855_v42 = vcombine.high %v12108_v34, %v12089_v1  ;;  %v12255_v63 = vrot.slane %v3547_v28, %v14888_v47  ;;  %v12260_v1 = vrot.slane %v3603_v12, %v14884_v2 }
 0x406   :  { %v12246_v61 = vpop.permute.xlu1 %5091  ;;  %v12263_v34 = vrot.slane %v3619_v55, %v14884_v2  ;;  %v5441_v52 = vsel %vm2686_vm4, %v14977_v36, %v5062_v48  ;;  %v3803_v28 = vcombine.high %v12005_v10, %v12008_v51  ;;  %v12278_v55 = vrot.slane %v3587_v62, %v14884_v2 }
 0x407   :  { %v4445_v48 = vcombine.low %v4394_v22, %v4426_v49  ;;  %v3580_v10 = vcombine.low %v12275_v8, %v12255_v63  ;;  %v12288_v51 = vrot.slane %v3835_v24, %v14888_v47 }
 0x408   :  { %v5090_v37 = vpop.permute.xlu0 %5089  ;;  %v3698_v12 = vcombine.low %v12263_v34, %v12242_v32  ;;  %v3666_v60 = vcombine.low %v12278_v55, %v12260_v1  ;;  %v12300_v24 = vrot.slane %v3803_v28, %v14888_v47  ;;  %v14983_v28 = vld [vmem:[#allocation86_spill] sm:$0xff] }
 0x409   :  { %5169 = vrot.lane.b32.xlu0 %v3855_v42, %s8139_s7  ;;  %v5448_v5 = vsel %vm2694_vm5, %v5441_v52, %v5090_v37  ;;  %5335 = vrot.lane.b32.xlu1 %v4583_v6, %s8138_s6  ;;  %v4682_v42 = vrot.slane %v4668_v35, %v14888_v47  ;;  %v8142_v6 = vmov 0  }
 0x40a   :  { %v12282_v15 = vpop.permute.xlu1 %5119  ;;  %8114 = vset.pattern.permute.xlu1 %v8142_v6  ;;  %8113 = vset.pattern.permute.xlu0 %v8142_v6  ;;  %v12303_v37 = vrot.slane %v3698_v12, %v14888_v47  ;;  %v3856_v35 = vcombine.low %v12300_v24, %v12288_v51  ;;  %v12309_v20 = vrot.slane %v3666_v60, %v14888_v47 }
 0x40b   :  { %v4721_v36 = vcombine.low %v4682_v42, %v4714_v38  ;;  %v4364_v60 = vcombine.high %v14985_v9, %v14946_v50  ;;  %v4722_v22 = vcombine.high %v4682_v42, %v4714_v38  ;;  %v3581_v42 = vcombine.high %v12275_v8, %v12255_v63 }
 0x40c   :  { %v5256_v62 = vpop.permute.xlu0 %5255  ;;  %v3718_v12 = vcombine.low %v12309_v20, %v12303_v37  ;;  %v4276_v63 = vcombine.high %v12070_v43, %v12067_v7  ;;  %v14993_v7 = vld [vmem:[#allocation85_spill] sm:$0xff] }
 0x40d   :  { %5277 = vrot.lane.b32.xlu0 %v4445_v48, %s8136_s29  ;;  %v5489_v33 = vsel %vm2686_vm4, %v14980_v41, %v5256_v62  ;;  %5081 = vrot.lane.b32.xlu1 %v3580_v10, %s8136_s29  ;;  %v14981_v62 = vld [vmem:[#allocation35_spill] sm:$0xff]  ;;  %v14984_v41 = vld [vmem:[#allocation50_spill] sm:$0xff]  ;;  %v12346_v49 = vrot.slane %v4364_v60, %v14884_v2 }
 0x40e   :  { %v5344_v52 = vpop.permute.xlu1 %5343  ;;  %v14982_v10 = vld [vmem:[#allocation39_spill] sm:$0xff]  ;;  %v4332_v6 = vcombine.high %v14984_v41, %v14983_v28  ;;  %v14986_v28 = vld [vmem:[#allocation96_spill] sm:$0xff] }
 0x40f   :  { %v4316_v54 = vcombine.high %v14982_v10, %v14981_v62  ;;  %v5491_v41 = vsel %vm2686_vm4, %v14986_v28, %v12061_v11  ;;  %v14989_v28 = vld [vmem:[#allocation71_spill] sm:$0xff] }
 0x410   :  { %v5400_v48 = vpop.permute.xlu0 %5399 }
 0x411   :  { %5393 = vrot.lane.b32.xlu0 %v4721_v36, %s8140_s8  ;;  %5197 = vrot.lane.b32.xlu1 %v3856_v35, %s8140_s8  ;;  %v4348_v36 = vcombine.high %v11871_v18, %v14945_v4  ;;  %v12326_v10 = vrot.slane %v4316_v54, %v14884_v2  ;;  %v12329_v35 = vrot.slane %v4332_v6, %v14884_v2 }
 0x412   :  { %v12318_v26 = vpop.permute.xlu1 %5147  ;;  %v5498_v18 = vsel %vm2694_vm5, %v5491_v41, %v12105_v31  ;;  %v4308_v4 = vcombine.high %v12163_v58, %v12152_v16 }
 0x413   :  { %v12343_v9 = vrot.slane %v4348_v36, %v14884_v2  ;;  %v5505_v11 = vsel %vm2702_vm6, %v5498_v18, %v12140_v3  ;;  %v4395_v31 = vcombine.low %v12326_v10, %v12329_v35  ;;  %v14987_v36 = vld [vmem:[#allocation107_spill] sm:$0xff] }
 0x414   :  { %v5118_v62 = vpop.permute.xlu0 %5117  ;;  %v3483_v60 = vcombine.high %v14987_v36, %v14948_v25  ;;  %v14990_v25 = vld [vmem:[#allocation6_spill] sm:$0xff]  ;;  %v14998_v36 = vld [vmem:[#allocation27_spill] sm:$0xff] }
 0x415   :  { %5139 = vrot.lane.b32.xlu0 %v3718_v12, %s8138_s6  ;;  %v12335_v57 = vsel %vm2702_vm6, %v5448_v5, %v5118_v62  ;;  %5305 = vrot.lane.b32.xlu1 %v4446_v59, %s8137_s5  ;;  %v5512_v5 = vsel %vm2710_vm7, %v5505_v11, %v5344_v52  ;;  %v4584_v12 = vcombine.high %v12237_v39, %v12222_v53  ;;  %v14988_v39 = vld [vmem:[#allocation78_spill] sm:$0xff] }
 0x416   :  { %v5372_v50 = vpop.permute.xlu1 %5371  ;;  %v4427_v38 = vcombine.low %v12343_v9, %v12346_v49  ;;  %v12374_v53 = vrot.slane %v4395_v31, %v14888_v47  ;;  %v3499_v41 = vcombine.high %v14989_v28, %v14988_v39  ;;  %v14994_v31 = vld [vmem:[#allocation58_spill] sm:$0xff]  ;;  %v12413_v39 = vrot.slane %v3483_v60, %v14884_v2 }
 0x417   :  { %v5519_v6 = vsel %vm2718_vm8, %v5512_v5, %v5372_v50  ;;  %v3719_v28 = vcombine.high %v12309_v20, %v12303_v37  ;;  %v4532_v20 = vcombine.high %v12197_v44, %v12175_v56 }
 0x418   :  { %v5284_v59 = vpop.permute.xlu0 %5283  ;;  %v12392_v5 = vrot.slane %v4427_v38, %v14888_v47 }
 0x419   :  { %5247 = vrot.lane.b32.xlu0 %v4308_v4, %s8135_s28  ;;  %v12355_v54 = vsel %vm2694_vm5, %v5489_v33, %v5284_v59  ;;  %5421 = vrot.lane.b32.xlu1 %v4722_v22, %s8141_s9  ;;  %v5526_v33 = vsel %vm2726_vm9, %v5519_v6, %v5400_v48  ;;  %v3443_v48 = vcombine.high %v12172_v29, %v12155_v30  ;;  %v14991_v4 = vld [vmem:[#allocation16_spill] sm:$0xff]  ;;  %v14992_v59 = vld [vmem:[#allocation59_spill] sm:$0xff]  ;;  %v14995_v6 = vld [vmem:[#allocation81_spill] sm:$0xff] }
 0x41a   :  { %v12361_v3 = vpop.permute.xlu1 %5175  ;;  %v3411_v50 = vcombine.high %v14991_v4, %v14990_v25  ;;  %v3857_v22 = vcombine.high %v12300_v24, %v12288_v51  ;;  %v3451_v43 = vcombine.high %v14993_v7, %v14992_v59  ;;  %v4564_v51 = vcombine.high %v12185_v0, %v12168_v45 }
 0x41b   :  { %v3699_v24 = vcombine.high %v12263_v34, %v12242_v32  ;;  %v12421_v0 = vrot.slane %v4276_v63, %v14888_v47  ;;  %v14999_v32 = vld [vmem:[#allocation29_spill] sm:$0xff]  ;;  %v15000_v34 = vld [vmem:[#allocation14_spill] sm:$0xff]  ;;  %v4447_v25 = vcombine.low %v12374_v53, %v12392_v5 }
 0x41c   :  { %v5428_v52 = vpop.permute.xlu0 %5427  ;;  %v12434_v4 = vrot.slane %v3451_v43, %v14884_v2 }
 0x41d   :  { %5363 = vrot.lane.b32.xlu0 %v4584_v12, %s8139_s7  ;;  %v5533_v62 = vsel %vm2734_vm10, %v5526_v33, %v5428_v52  ;;  %5109 = vrot.lane.b32.xlu1 %v3581_v42, %s8137_s5  ;;  %v3467_v12 = vcombine.high %v14995_v6, %v14994_v31  ;;  %v14996_v42 = vld [vmem:[#allocation8_spill] sm:$0xff]  ;;  %v14997_v52 = vld [vmem:[#allocation19_spill] sm:$0xff]  ;;  %v12456_v31 = vrot.slane %v4564_v51, %v14888_v47 }
 0x41e   :  { %v5642_v8 = vsel %vm5631_vm11, %v5533_v62, 0  ;;  %v12383_v18 = vpop.permute.xlu1 %5313  ;;  %v4244_v33 = vcombine.high %v14997_v52, %v14996_v42  ;;  %v3379_v62 = vcombine.high %v14998_v36, %v12092_v27  ;;  %v12416_v27 = vrot.slane %v3499_v41, %v14884_v2 }
 0x41f   :  { %v12387_v11 = vand.u32 4294901760, %v5642_v8  ;;  %v12431_v41 = vrot.slane %v3411_v50, %v14888_v47  ;;  %v12437_v37 = vrot.slane %v3467_v12, %v14884_v2  ;;  %v12460_v6 = vrot.slane %v3699_v24, %v14888_v47  ;;  %v15002_v24 = vld [vmem:[#allocation21_spill] sm:$0xff] }
 0x420   :  { %v4258_v63 = vrot.slane %v4244_v33, %v14888_v47  ;;  %v3393_v59 = vrot.slane %v3379_v62, %v14888_v47  ;;  %v3562_v7 = vcombine.low %v12413_v39, %v12416_v27  ;;  %v12452_v43 = vpop.permute.xlu0 %5145  ;;  %v12466_v42 = vrot.slane %v4532_v20, %v14888_v47  ;;  %v15006_v20 = vld [vmem:[#allocation67_spill] sm:$0xff] }
 0x421   :  { %5051 = vrot.lane.b32.xlu0 %v3443_v48, %s8135_s28  ;;  %v12408_v38 = vsub.f32 %v5642_v8, %v12387_v11  ;;  %6823 = vmatprep.subr.mxu0 %v12387_v11  ;;  %v15001_v8 = vcombine.low %v14999_v32, %v15000_v34  ;;  %v3530_v12 = vcombine.low %v12434_v4, %v12437_v37 }
 0x422   :  { %5225 = vrot.lane.b32.xlu1 %v3857_v22, %s8141_s9  ;;  %v5060_v45 = vpop.permute.xlu1 %5059  ;;  %v3667_v22 = vcombine.high %v12278_v55, %v12260_v1  ;;  %v4309_v56 = vcombine.low %v4258_v63, %v12421_v0  ;;  %v3444_v55 = vcombine.low %v3393_v59, %v12431_v41  ;;  %v4585_v36 = vcombine.low %v12466_v42, %v12456_v31 }
 0x423   :  { %v5440_v48 = vsel %vm2686_vm4, %v15001_v8, %v5060_v45  ;;  %v14370_v60 = vand.u32 4294901760, %v12408_v38  ;;  %v12477_v51 = vrot.slane %v3562_v7, %v14888_v47  ;;  %v12487_v8 = vrot.slane %v3530_v12, %v14888_v47 }
 0x424   :  { %v12470_v52 = vrot.slane %v3667_v22, %v14888_v47 }
 0x425   :  { %5167 = vrot.lane.b32.xlu0 %v3719_v28, %s8139_s7  ;;  %v7036_v50 = vsub.f32 %v12408_v38, %v14370_v60  ;;  %v15003_v28 = vld [vmem:[#allocation102_spill] sm:$0xff]  ;;  %v3582_v12 = vcombine.low %v12487_v8, %v12477_v51 }
 0x426   :  { %5333 = vrot.lane.b32.xlu1 %v4447_v25, %s8138_s6  ;;  %v5204_v44 = vpop.permute.xlu1 %5203  ;;  %v15004_v45 = vcombine.low %v15002_v24, %v15003_v28  ;;  %v3720_v34 = vcombine.low %v12470_v52, %v12460_v6  ;;  %v15005_v25 = vld [vmem:[#allocation100_spill] sm:$0xff] }
 0x427   :  { %v7037_v1 = vand.u32 4294901760, %v7036_v50  ;;  %v4228_v22 = vcombine.high %v15006_v20, %v15005_v25  ;;  %v15007_v50 = vld [vmem:[#allocation38_spill] sm:$0xff] }
 0x428   :  { %v5442_v7 = vsel %vm2686_vm4, %v15007_v50, %v12213_v46  ;;  %v4448_v46 = vcombine.high %v12374_v53, %v12392_v5  ;;  %v15010_v25 = vld [vmem:[#allocation62_spill] sm:$0xff] }
 0x429   :  { %5275 = vrot.lane.b32.xlu0 %v4309_v56, %s8136_s29  ;;  %7038 = vmatprep.subr.mxu1 %v7037_v1  ;;  %v15008_v56 = vld [vmem:[#allocation43_spill] sm:$0xff]  ;;  %v15011_v20 = vld [vmem:[#allocation98_spill] sm:$0xff] }
 0x42a   :  { %5079 = vrot.lane.b32.xlu1 %v3444_v55, %s8136_s29  ;;  %v12474_v62 = vpop.permute.xlu1 %5341  ;;  %v15009_v1 = vld [vmem:[#allocation55_spill] sm:$0xff]  ;;  %v15012_v50 = vld [vmem:[#allocation10_spill] sm:$0xff] }
 0x42b   :  { %v5254_v33 = vpop.permute.xlu0 %5253  ;;  %v4212_v55 = vcombine.high %v15009_v1, %v15008_v56 }
 0x42c   :  { %v5488_v32 = vsel %vm2686_vm4, %v15004_v45, %v5254_v33  ;;  %v5449_v33 = vsel %vm2694_vm5, %v5442_v7, %v12246_v61  ;;  %v4180_v61 = vcombine.high %v15011_v20, %v15010_v25  ;;  %v15013_v7 = vld [vmem:[#allocation64_spill] sm:$0xff] }
 0x42d   :  { %5391 = vrot.lane.b32.xlu0 %v4585_v36, %s8140_s8  ;;  %v5456_v28 = vsel %vm2702_vm6, %v5449_v33, %v12282_v15  ;;  %v4196_v56 = vcombine.high %v15013_v7, %v15012_v50  ;;  %v12520_v15 = vrot.slane %v4228_v22, %v14884_v2  ;;  %v15015_v33 = vld [vmem:[#allocation48_spill] sm:$0xff]  ;;  %v12528_v5 = vrot.slane %v4212_v55, %v14884_v2  ;;  %v12542_v55 = vpop.f32.mrf.mxu1 }
 0x42e   :  { %5195 = vrot.lane.b32.xlu1 %v3720_v34, %s8140_s8  ;;  %v5088_v36 = vpop.permute.xlu1 %5087  ;;  %v12510_v34 = vpop.f32.mrf.mxu0  ;;  %v5463_v1 = vsel %vm2710_vm7, %v5456_v28, %v12318_v26  ;;  %v15016_v25 = vld [vmem:[#allocation80_spill] sm:$0xff]  ;;  %v4310_v22 = vcombine.high %v4258_v63, %v12421_v0  ;;  %v4428_v7 = vcombine.high %v12343_v9, %v12346_v49  ;;  %15018 = vst [vmem:[#allocation53_spill] sm:$0xff] %v12542_v55 }
 0x42f   :  { %v12499_v24 = vpop.permute.xlu0 %5369  ;;  %v12506_v45 = vsel %vm2694_vm5, %v5440_v48, %v5088_v36  ;;  %v15014_v48 = vld [vmem:[#allocation76_spill] sm:$0xff]  ;;  %v5470_v53 = vsel %vm2718_vm8, %v5463_v1, %v12361_v3 }
 0x430   :  { %v3363_v36 = vcombine.high %v15015_v33, %v15014_v48  ;;  %v15017_v20 = vld [vmem:[#allocation24_spill] sm:$0xff]  ;;  %v5477_v26 = vsel %vm2726_vm9, %v5470_v53, %v5204_v44  ;;  %v12540_v1 = vpop.f32.mrf.mxu0  ;;  %v12545_v48 = vrot.slane %v4180_v61, %v14884_v2  ;;  %v12548_v44 = vrot.slane %v4196_v56, %v14884_v2  ;;  %v15022_v53 = vld [vmem:[#allocation101_spill] sm:$0xff] }
 0x431   :  { %5137 = vrot.lane.b32.xlu0 %v3582_v12, %s8138_s6  ;;  %v3347_v50 = vcombine.high %v15017_v20, %v15016_v25  ;;  %v15019_v33 = vld [vmem:[#allocation12_spill] sm:$0xff]  ;;  %v4586_v61 = vcombine.high %v12466_v42, %v12456_v31  ;;  %v12565_v20 = vpop.f32.mrf.mxu1 }
 0x432   :  { %5361 = vrot.lane.b32.xlu1 %v4448_v46, %s8139_s7  ;;  %v5232_v28 = vpop.permute.xlu1 %5231  ;;  %v3445_v46 = vcombine.high %v3393_v59, %v12431_v41  ;;  %v15020_v0 = vld [vmem:[#allocation108_spill] sm:$0xff]  ;;  %v4396_v59 = vcombine.high %v12326_v10, %v12329_v35  ;;  %v12563_v56 = vpop.f32.mrf.mxu0  ;;  %15023 = vst [vmem:[#allocation77_spill] sm:$0xff] %v12565_v20 }
 0x433   :  { %v12533_v12 = vpop.permute.xlu0 %5115  ;;  %v5484_v3 = vsel %vm2734_vm10, %v5477_v26, %v5232_v28  ;;  %v3331_v63 = vcombine.high %v15020_v0, %v15019_v33  ;;  %v15021_v49 = vld [vmem:[#allocation68_spill] sm:$0xff]  ;;  %v3563_v26 = vcombine.high %v12413_v39, %v12416_v27  ;;  %v12572_v28 = vrot.slane %v3363_v36, %v14884_v2 }
 0x434   :  { %v5639_v9 = vsel %vm5631_vm11, %v5484_v3, 0  ;;  %v3315_v41 = vcombine.high %v15022_v53, %v15021_v49  ;;  %v12575_v10 = vrot.slane %v3347_v50, %v14884_v2  ;;  %v3721_v39 = vcombine.high %v12470_v52, %v12460_v6  ;;  %v12589_v36 = vpop.f32.mrf.mxu0  ;;  %v12591_v50 = vpop.f32.mrf.mxu1 }
 0x435   :  { %5303 = vrot.lane.b32.xlu0 %v4310_v22, %s8137_s5  ;;  %v12558_v25 = vand.u32 4294901760, %v5639_v9  ;;  %v4291_v22 = vcombine.low %v12528_v5, %v12520_v15  ;;  %v4442_v27 = vrot.slane %v4428_v7, %v14888_v47  ;;  %v3531_v33 = vcombine.high %v12434_v4, %v12437_v37  ;;  %v15024_v37 = vld [vmem:[#allocation31_spill] sm:$0xff] }
 0x436   :  { %5107 = vrot.lane.b32.xlu1 %v3445_v46, %s8137_s5  ;;  %v12577_v3 = vpop.permute.xlu1 %5311  ;;  %v4259_v46 = vcombine.low %v12545_v48, %v12548_v44  ;;  %v4410_v6 = vrot.slane %v4396_v59, %v14888_v47  ;;  %v12604_v52 = vpop.f32.mrf.mxu0  ;;  %v3583_v49 = vcombine.high %v12487_v8, %v12477_v51 }
 0x437   :  { %v5282_v35 = vpop.permute.xlu0 %5281  ;;  %v12583_v42 = vsub.f32 %v5639_v9, %v12558_v25  ;;  %6825 = vmatpush1.msra.mxu0 %v12558_v25  ;;  %v12606_v7 = vpop.f32.mrf.mxu1  ;;  %v3329_v9 = vrot.slane %v3315_v41, %v14884_v2  ;;  %v4299_v4 = vrot.slane %v4291_v22, %v14888_v47 }
 0x438   :  { %v12580_v31 = vsel %vm2694_vm5, %v5488_v32, %v5282_v35  ;;  %v12596_v32 = vrot.slane %v3331_v63, %v14884_v2  ;;  %v3426_v63 = vcombine.low %v12575_v10, %v12572_v28  ;;  %v3577_v2 = vrot.slane %v3563_v26, %v14888_v47  ;;  %v12622_v41 = vpop.f32.mrf.mxu0 }
 0x439   :  { %5419 = vrot.lane.b32.xlu0 %v4586_v61, %s8141_s9  ;;  %v14371_v0 = vand.u32 4294901760, %v12583_v42  ;;  %v15025_v61 = vld [vmem:[#allocation30_spill] sm:$0xff]  ;;  %v12624_v20 = vpop.f32.mrf.mxu1  ;;  %v4267_v8 = vrot.slane %v4259_v46, %v14888_v47 }
 0x43a   :  { %5223 = vrot.lane.b32.xlu1 %v3721_v39, %s8141_s9  ;;  %v15026_v35 = vcombine.low %v15024_v37, %v15025_v61  ;;  %v4449_v39 = vcombine.low %v4410_v6, %v4442_v27  ;;  %15027 = vst [vmem:[#allocation66_spill] sm:$0xff] %v12624_v20  ;;  %v3394_v51 = vcombine.low %v3329_v9, %v12596_v32  ;;  %v12631_v37 = vpop.f32.mrf.mxu0 }
 0x43b   :  { %v5058_v53 = vpop.permute.xlu1 %5057  ;;  %v7042_v60 = vsub.f32 %v12583_v42, %v14371_v0  ;;  %15028 = vst [vmem:[#allocation84_spill] sm:$0xff] %v12631_v37  ;;  %v12633_v61 = vpop.f32.mrf.mxu1  ;;  %v4311_v26 = vcombine.low %v4267_v8, %v4299_v4  ;;  %v3434_v0 = vrot.slane %v3426_v63, %v14888_v47  ;;  %v3427_v63 = vcombine.high %v12575_v10, %v12572_v28 }
 0x43c   :  { %v5439_v59 = vsel %vm2686_vm4, %v15026_v35, %v5058_v53  ;;  %v3545_v53 = vrot.slane %v3531_v33, %v14888_v47  ;;  %15029 = vst [vmem:[#allocation97_spill] sm:$0xff] %v12633_v61  ;;  %v12638_v55 = vpop.f32.mrf.mxu0  ;;  %v5398_v46 = vpop.permute.xlu0 %5397  ;;  %v4312_v28 = vcombine.high %v4267_v8, %v4299_v4 }
 0x43d   :  { %5165 = vrot.lane.b32.xlu0 %v3583_v49, %s8139_s7  ;;  %v7043_v22 = vand.u32 4294901760, %v7042_v60  ;;  %15030 = vst [vmem:[#allocation110_spill] sm:$0xff] %v12638_v55  ;;  %v12640_v49 = vpop.f32.mrf.mxu1  ;;  %v3402_v60 = vrot.slane %v3394_v51, %v14888_v47  ;;  %v3395_v51 = vcombine.high %v3329_v9, %v12596_v32 }
 0x43e   :  { %5389 = vrot.lane.b32.xlu1 %v4449_v39, %s8140_s8  ;;  %v3584_v20 = vcombine.low %v3545_v53, %v3577_v2  ;;  %15031 = vst [vmem:[#allocation93_spill] sm:$0xff] %v12640_v49  ;;  %v12645_v33 = vpop.f32.mrf.mxu0 }
 0x43f   :  { %v12635_v35 = vpop.permute.xlu1 %5173  ;;  %7044 = vmatpush1.msra.mxu1 %v7043_v22  ;;  %15032 = vst [vmem:[#allocation25_spill] sm:$0xff] %v12645_v33  ;;  %v12647_v39 = vpop.f32.mrf.mxu1  ;;  %v3446_v37 = vcombine.low %v3402_v60, %v3434_v0  ;;  %v4450_v22 = vcombine.high %v4410_v6, %v4442_v27  ;;  %v3585_v6 = vcombine.high %v3545_v53, %v3577_v2 }
 0x440   :  { %15033 = vst [vmem:[#allocation54_spill] sm:$0xff] %v12647_v39  ;;  %v12653_v55 = vpop.f32.mrf.mxu0  ;;  %v4292_v39 = vcombine.high %v12528_v5, %v12520_v15  ;;  %v12666_v33 = vpop.permute.xlu0 %5143  ;;  %v3409_v15 = vrot.slane %v3395_v51, %v14888_v47  ;;  %v3447_v2 = vcombine.high %v3402_v60, %v3434_v0 }
 0x441   :  { %5331 = vrot.lane.b32.xlu0 %v4311_v26, %s8138_s6  ;;  %15034 = vst [vmem:[#allocation33_spill] sm:$0xff] %v12653_v55  ;;  %v12655_v49 = vpop.f32.mrf.mxu1 }
 0x442   :  { %5193 = vrot.lane.b32.xlu1 %v3584_v20, %s8140_s8  ;;  %15035 = vst [vmem:[#allocation95_spill] sm:$0xff] %v12655_v49  ;;  %v12660_v20 = vpop.f32.mrf.mxu0  ;;  %v4306_v53 = vrot.slane %v4292_v39, %v14888_v47 }
 0x443   :  { %v12649_v61 = vpop.permute.xlu1 %5339  ;;  %15036 = vst [vmem:[#allocation40_spill] sm:$0xff] %v12660_v20  ;;  %v12662_v26 = vpop.f32.mrf.mxu1 }
 0x444   :  { %15037 = vst [vmem:[#allocation41_spill] sm:$0xff] %v12662_v26  ;;  %v12672_v32 = vpop.f32.mrf.mxu0 }
 0x445   :  { %5135 = vrot.lane.b32.xlu0 %v3446_v37, %s8138_s6  ;;  %v3441_v37 = vrot.slane %v3427_v63, %v14888_v47  ;;  %15038 = vst [vmem:[#allocation18_spill] sm:$0xff] %v12672_v32  ;;  %v12674_v9 = vpop.f32.mrf.mxu1  ;;  %v15042_v63 = vld [vmem:[#allocation75_spill] sm:$0xff]  ;;  %v15081_v32 = vcombine.low %v12143_v13, %v12130_v17 }
 0x446   :  { %5417 = vrot.lane.b32.xlu1 %v4450_v22, %s8141_s9  ;;  %15039 = vst [vmem:[#allocation36_spill] sm:$0xff] %v12674_v9  ;;  %v4260_v22 = vcombine.high %v12545_v48, %v12548_v44  ;;  %v12681_v5 = vpop.f32.mrf.mxu0  ;;  %v15045_v44 = vld [vmem:[#allocation22_spill] sm:$0xff] }
 0x447   :  { %v5086_v10 = vpop.permute.xlu1 %5085  ;;  %15040 = vst [vmem:[#allocation35_spill] sm:$0xff] %v12681_v5  ;;  %v12683_v4 = vpop.f32.mrf.mxu1  ;;  %v3448_v5 = vcombine.low %v3409_v15, %v3441_v37 }
 0x448   :  { %v12669_v27 = vsel %vm2694_vm5, %v5439_v59, %v5086_v10  ;;  %15041 = vst [vmem:[#allocation39_spill] sm:$0xff] %v12683_v4  ;;  %v15043_v10 = vld [vmem:[#allocation83_spill] sm:$0xff]  ;;  %v12697_v26 = vpop.f32.mrf.mxu0  ;;  %v4274_v60 = vrot.slane %v4260_v22, %v14888_v47 }
 0x449   :  { %5359 = vrot.lane.b32.xlu0 %v4312_v28, %s8139_s7  ;;  %v15044_v9 = vcombine.low %v15042_v63, %v15043_v10  ;;  %v15046_v28 = vld [vmem:[#allocation37_spill] sm:$0xff]  ;;  %15048 = vst [vmem:[#allocation86_spill] sm:$0xff] %v12697_v26  ;;  %v12699_v4 = vpop.f32.mrf.mxu1 }
 0x44a   :  { %5221 = vrot.lane.b32.xlu1 %v3585_v6, %s8141_s9  ;;  %v15047_v6 = vcombine.low %v15045_v44, %v15046_v28  ;;  %15049 = vst [vmem:[#allocation50_spill] sm:$0xff] %v12699_v4  ;;  %v12708_v39 = vpop.f32.mrf.mxu0  ;;  %v4313_v63 = vcombine.low %v4274_v60, %v4306_v53 }
 0x44b   :  { %v5252_v59 = vpop.permute.xlu0 %5251  ;;  %v5202_v8 = vpop.permute.xlu1 %5201  ;;  %v5490_v48 = vsel %vm2686_vm4, %v15044_v9, %v12178_v19  ;;  %15050 = vst [vmem:[#allocation94_spill] sm:$0xff] %v12708_v39 }
 0x44c   :  { %v12695_v51 = vsel %vm2686_vm4, %v15047_v6, %v5252_v59  ;;  %v5497_v0 = vsel %vm2694_vm5, %v5490_v48, %v12229_v40  ;;  %v12710_v9 = vpop.f32.mrf.mxu1  ;;  %v3449_v40 = vcombine.high %v3409_v15, %v3441_v37  ;;  %v12716_v48 = vpop.f32.mrf.mxu0  ;;  %v27_v37 = vld [vmem:[%s14013_s2 + $0x8] sm:$0xff] }
 0x44d   :  { %5163 = vrot.lane.b32.xlu0 %v3447_v2, %s8139_s7  ;;  %v5504_v19 = vsel %vm2702_vm6, %v5497_v0, %v12383_v18  ;;  %15051 = vst [vmem:[#allocation96_spill] sm:$0xff] %v12710_v9  ;;  %15052 = vst [vmem:[#allocation107_spill] sm:$0xff] %v12716_v48 }
 0x44e   :  { %5191 = vrot.lane.b32.xlu1 %v3448_v5, %s8140_s8  ;;  %v5511_v59 = vsel %vm2710_vm7, %v5504_v19, %v12474_v62  ;;  %v12718_v2 = vpop.f32.mrf.mxu1  ;;  %v12724_v18 = vpop.f32.mrf.mxu0  ;;  %v4314_v5 = vcombine.high %v4274_v60, %v4306_v53 }
 0x44f   :  { %v12714_v10 = vpop.permute.xlu1 %5309  ;;  %15053 = vst [vmem:[#allocation78_spill] sm:$0xff] %v12718_v2  ;;  %v5518_v47 = vsel %vm2718_vm8, %v5511_v59, %v12499_v24  ;;  %15054 = vst [vmem:[#allocation71_spill] sm:$0xff] %v12724_v18  ;;  %v12747_v60 = vpop.permute.xlu0 %5367 }
 0x450   :  { %v12726_v22 = vpop.f32.mrf.mxu1  ;;  %v5525_v62 = vsel %vm2726_vm9, %v5518_v47, %v5398_v46  ;;  %v12733_v28 = vpop.f32.mrf.mxu0  ;;  %v26_v46 = vld [vmem:[%s14013_s2] sm:$0xff] }
 0x451   :  { %5387 = vrot.lane.b32.xlu0 %v4313_v63, %s8140_s8  ;;  %15055 = vst [vmem:[#allocation6_spill] sm:$0xff] %v12726_v22  ;;  %15056 = vst [vmem:[#allocation16_spill] sm:$0xff] %v12733_v28  ;;  %v28_v63 = vld [vmem:[%s14013_s2 + $0x10] sm:$0xff] }
 0x452   :  { %5219 = vrot.lane.b32.xlu1 %v3449_v40, %s8141_s9  ;;  %v12735_v6 = vpop.f32.mrf.mxu1  ;;  %v12743_v53 = vpop.f32.mrf.mxu0 }
 0x453   :  { %v5426_v44 = vpop.permute.xlu1 %5425  ;;  %15057 = vst [vmem:[#allocation59_spill] sm:$0xff] %v12735_v6  ;;  %15059 = vst [vmem:[#allocation58_spill] sm:$0xff] %v12743_v53 }
 0x454   :  { %v5532_v15 = vsel %vm2734_vm10, %v5525_v62, %v5426_v44  ;;  %v12745_v0 = vpop.f32.mrf.mxu1  ;;  %v12758_v40 = vpop.f32.mrf.mxu0  ;;  %v29_v44 = vld [vmem:[%s14013_s2 + $0x18] sm:$0xff] }
 0x455   :  { %5415 = vrot.lane.b32.xlu0 %v4314_v5, %s8141_s9  ;;  %v12738_v24 = vand.u32 4294901760, %v5532_v15  ;;  %15060 = vst [vmem:[#allocation81_spill] sm:$0xff] %v12745_v0  ;;  %15061 = vst [vmem:[#allocation8_spill] sm:$0xff] %v12758_v40  ;;  %v5462_v5 = vsel %vm2710_vm7, %v12335_v57, %v12452_v43  ;;  %v30_v57 = vld [vmem:[%s14013_s2 + $0x20] sm:$0xff] }
 0x456   :  { %5541 = vperm.xlu1 %8114, %v27_v37   ;;  %v12760_v47 = vpop.f32.mrf.mxu1  ;;  %v12769_v37 = vpop.f32.mrf.mxu0  ;;  %v5469_v0 = vsel %vm2718_vm8, %v5462_v5, %v12635_v35 }
 0x457   :  { %15058 = vst [vmem:[#allocation85_spill] sm:$0xff] %v12738_v24  ;;  %v12750_v19 = vsub.f32 %v5532_v15, %v12738_v24  ;;  %6827 = vmatprep.subr.mxu0 %v12738_v24  ;;  %v12753_v59 = vpop.permute.xlu1 %5113  ;;  %15062 = vst [vmem:[#allocation19_spill] sm:$0xff] %v12760_v47  ;;  %v5476_v43 = vsel %vm2726_vm9, %v5469_v0, %v5202_v8  ;;  %v31_v8 = vld [vmem:[%s14013_s2 + $0x28] sm:$0xff] }
 0x458   :  { %15063 = vst [vmem:[#allocation27_spill] sm:$0xff] %v12769_v37  ;;  %v12771_v15 = vpop.f32.mrf.mxu1  ;;  %v12786_v6 = vpop.f32.mrf.mxu0 }
 0x459   :  { %v14372_v62 = vand.u32 4294901760, %v12750_v19  ;;  %5536 = vperm.xlu0 %8113, %v26_v46   ;;  %15064 = vst [vmem:[#allocation29_spill] sm:$0xff] %v12771_v15  ;;  %15066 = vst [vmem:[#allocation14_spill] sm:$0xff] %v12786_v6 }
 0x45a   :  { %5546 = vperm.xlu1 %8114, %v28_v63   ;;  %v15065_v63 = vcombine.low %v11936_v21, %v11939_v14  ;;  %v12789_v40 = vpop.f32.mrf.mxu1  ;;  %v12796_v0 = vpop.f32.mrf.mxu0  ;;  %v32_v14 = vld [vmem:[%s14013_s2 + $0x30] sm:$0xff] }
 0x45b   :  { %v5056_v47 = vpop.permute.xlu0 %5055  ;;  %v7048_v46 = vsub.f32 %v12750_v19, %v14372_v62  ;;  %v5230_v15 = vpop.permute.xlu1 %5229  ;;  %15067 = vst [vmem:[#allocation21_spill] sm:$0xff] %v12789_v40  ;;  %15069 = vst [vmem:[#allocation100_spill] sm:$0xff] %v12796_v0  ;;  %v34_v0 = vld [vmem:[%s14013_s2 + $0x40] sm:$0xff] }
 0x45c   :  { %v5438_v37 = vsel %vm2686_vm4, %v15065_v63, %v5056_v47  ;;  %v5483_v35 = vsel %vm2734_vm10, %v5476_v43, %v5230_v15  ;;  %v12803_v47 = vpop.f32.mrf.mxu1  ;;  %v33_v63 = vld [vmem:[%s14013_s2 + $0x38] sm:$0xff] }
 0x45d   :  { %v7049_v5 = vand.u32 4294901760, %v7048_v46  ;;  %5551 = vperm.xlu0 %8113, %v29_v44   ;;  %v12791_v62 = vand.u32 4294901760, %v5483_v35  ;;  %15070 = vst [vmem:[#allocation67_spill] sm:$0xff] %v12803_v47  ;;  %v12811_v46 = vpop.f32.mrf.mxu0 }
 0x45e   :  { %5556 = vperm.xlu1 %8114, %v30_v57   ;;  %15071 = vst [vmem:[#allocation38_spill] sm:$0xff] %v12811_v46  ;;  %v12813_v57 = vpop.f32.mrf.mxu1 }
 0x45f   :  { %15068 = vst [vmem:[#allocation102_spill] sm:$0xff] %v12791_v62  ;;  %v12798_v21 = vpop.permute.xlu0 %5171  ;;  %7050 = vmatprep.subr.mxu1 %v7049_v5  ;;  %v12806_v44 = vsub.f32 %v5483_v35, %v12791_v62  ;;  %6829 = vmatpush1.msra.mxu0 %v12791_v62  ;;  %v12809_v15 = vpop.permute.xlu1 %5337  ;;  %15072 = vst [vmem:[#allocation43_spill] sm:$0xff] %v12813_v57 }
 0x460   :  { %v12819_v5 = vpop.f32.mrf.mxu0  ;;  %v12824_v47 = vpop.f32.mrf.mxu1 }
 0x461   :  { %5561 = vperm.xlu0 %8113, %v31_v8   ;;  %v14373_v43 = vand.u32 4294901760, %v12806_v44  ;;  %15073 = vst [vmem:[#allocation55_spill] sm:$0xff] %v12824_v47  ;;  %v35_v47 = vld [vmem:[%s14013_s2 + $0x48] sm:$0xff] }
 0x462   :  { %5566 = vperm.xlu1 %8114, %v32_v14   ;;  %v12833_v46 = vpop.f32.mrf.mxu0  ;;  %v12838_v6 = vpop.f32.mrf.mxu1 }
 0x463   :  { %v5280_v35 = vpop.permute.xlu0 %5279  ;;  %v7054_v8 = vsub.f32 %v12806_v44, %v14373_v43  ;;  %v5084_v57 = vpop.permute.xlu1 %5083  ;;  %15074 = vst [vmem:[#allocation62_spill] sm:$0xff] %v12838_v6 }
 0x464   :  { %v12831_v14 = vsel %vm2694_vm5, %v12695_v51, %v5280_v35  ;;  %v12836_v40 = vsel %vm2694_vm5, %v5438_v37, %v5084_v57  ;;  %v12843_v43 = vpop.f32.mrf.mxu0  ;;  %v36_v51 = vld [vmem:[%s14013_s2 + $0x50] sm:$0xff]  ;;  %v12848_v35 = vpop.f32.mrf.mxu1 }
 0x465   :  { %5571 = vperm.xlu0 %8113, %v33_v63   ;;  %v7055_v53 = vand.u32 4294901760, %v7054_v8  ;;  %15075 = vst [vmem:[#allocation98_spill] sm:$0xff] %v12848_v35 }
 0x466   :  { %5576 = vperm.xlu1 %8114, %v34_v0   ;;  %v12850_v57 = vpop.f32.mrf.mxu0  ;;  %v12852_v63 = vpop.f32.mrf.mxu1  ;;  %v37_v0 = vld [vmem:[%s14013_s2 + $0x58] sm:$0x3] }
 0x467   :  { %v5396_v22 = vpop.permute.xlu0 %5395  ;;  %7056 = vmatpush1.msra.mxu1 %v7055_v53  ;;  %v5200_v37 = vpop.permute.xlu1 %5199 }
 0x468   :  { %v12857_v8 = vpop.f32.mrf.mxu0  ;;  %v12861_v28 = vpop.f32.mrf.mxu1 }
 0x469   :  { %5581 = vperm.xlu0 %8113, %v35_v47   ;;  %15076 = vst [vmem:[#allocation10_spill] sm:$0xff] %v12857_v8  ;;  %v5503_v47 = vsel %vm2702_vm6, %v12355_v54, %v12577_v3 }
 0x46a   :  { %5586 = vperm.xlu1 %8114, %v36_v51   ;;  %v12865_v53 = vpop.f32.mrf.mxu0  ;;  %v12870_v51 = vpop.f32.mrf.mxu1  ;;  %v5510_v9 = vsel %vm2710_vm7, %v5503_v47, %v12649_v61 }
 0x46b   :  { %v12859_v2 = vpop.permute.xlu0 %5141  ;;  %v12863_v18 = vpop.permute.xlu1 %5307  ;;  %15077 = vst [vmem:[#allocation64_spill] sm:$0xff] %v12865_v53  ;;  %15078 = vst [vmem:[#allocation76_spill] sm:$0xff] %v12870_v51  ;;  %v5517_v48 = vsel %vm2718_vm8, %v5510_v9, %v12747_v60 }
 0x46c   :  { %v12874_v4 = vpop.f32.mrf.mxu0  ;;  %v12878_v26 = vpop.f32.mrf.mxu1  ;;  %v5524_v49 = vsel %vm2726_vm9, %v5517_v48, %v5396_v22 }
 0x46d   :  { %5591 = vperm.xlu0 %8113, %v37_v0   ;;  %15079 = vst [vmem:[#allocation48_spill] sm:$0xff] %v12874_v4  ;;  %15080 = vst [vmem:[#allocation80_spill] sm:$0xff] %v12878_v26 }
 0x46e   :  { %v12887_v0 = vpop.f32.mrf.mxu0  ;;  %v12890_v47 = vpop.f32.mrf.mxu1 }
 0x46f   :  { %v5250_v39 = vpop.permute.xlu0 %5249  ;;  %v5424_v3 = vpop.permute.xlu1 %5423  ;;  %15082 = vst [vmem:[#allocation24_spill] sm:$0xff] %v12887_v0  ;;  %15083 = vst [vmem:[#allocation12_spill] sm:$0xff] %v12890_v47 }
 0x470   :  { %v12885_v54 = vsel %vm2686_vm4, %v15081_v32, %v5250_v39  ;;  %v5531_v61 = vsel %vm2734_vm10, %v5524_v49, %v5424_v3  ;;  %v12894_v9 = vpop.f32.mrf.mxu0  ;;  %v12896_v20 = vpop.f32.mrf.mxu1  ;;  %v5454_v49 = vsel %vm2702_vm6, %v12506_v45, %v12533_v12 }
 0x471   :  { %v12892_v4 = vand.u32 4294901760, %v5531_v61  ;;  %15085 = vst [vmem:[#allocation68_spill] sm:$0xff] %v12894_v9  ;;  %15086 = vst [vmem:[#allocation101_spill] sm:$0xff] %v12896_v20  ;;  %v5461_v39 = vsel %vm2710_vm7, %v5454_v49, %v12666_v33 }
 0x472   :  { %v12904_v13 = vpop.f32.mrf.mxu0  ;;  %v12909_v32 = vpop.f32.mrf.mxu1 }
 0x473   :  { %15084 = vst [vmem:[#allocation108_spill] sm:$0xff] %v12892_v4  ;;  %v5366_v60 = vpop.permute.xlu0 %5365  ;;  %v12899_v48 = vsub.f32 %v5531_v61, %v12892_v4  ;;  %6831 = vmatprep.subr.mxu0 %v12892_v4  ;;  %v12902_v17 = vpop.permute.xlu1 %5111  ;;  %15087 = vst [vmem:[#allocation31_spill] sm:$0xff] %v12904_v13  ;;  %v5468_v61 = vsel %vm2718_vm8, %v5461_v39, %v12798_v21 }
 0x474   :  { %15088 = vst [vmem:[#allocation30_spill] sm:$0xff] %v12909_v32  ;;  %v12914_v3 = vpop.f32.mrf.mxu0  ;;  %v12920_v20 = vpop.f32.mrf.mxu1  ;;  %v5475_v13 = vsel %vm2726_vm9, %v5468_v61, %v5200_v37 }
 0x475   :  { %v14374_v22 = vand.u32 4294901760, %v12899_v48  ;;  %15089 = vst [vmem:[#allocation75_spill] sm:$0xff] %v12914_v3  ;;  %15090 = vst [vmem:[#allocation83_spill] sm:$0xff] %v12920_v20 }
 0x476   :  { %v12926_v12 = vpop.f32.mrf.mxu0  ;;  %v12929_v49 = vpop.f32.mrf.mxu1 }
 0x477   :  { %v12918_v9 = vpop.permute.xlu0 %5053  ;;  %v5228_v47 = vpop.permute.xlu1 %5227  ;;  %v7060_v45 = vsub.f32 %v12899_v48, %v14374_v22  ;;  %15091 = vst [vmem:[#allocation22_spill] sm:$0xff] %v12926_v12  ;;  %15092 = vst [vmem:[#allocation37_spill] sm:$0xff] %v12929_v49 }
 0x478   :  { %v5482_v33 = vsel %vm2734_vm10, %v5475_v13, %v5228_v47  ;;  %v12933_v39 = vpop.f32.mrf.mxu0  ;;  %v12935_v20 = vpop.f32.mrf.mxu1 }
 0x479   :  { %v12931_v3 = vand.u32 4294901760, %v5482_v33  ;;  %v7061_v21 = vand.u32 4294901760, %v7060_v45  ;;  %15094 = vst [vmem:[#allocation112_spill] sm:$0xff] %v12933_v39  ;;  %15095 = vst [vmem:[#allocation113_spill] sm:$0xff] %v12935_v20 }
 0x47a   :  { %v12943_v22 = vpop.f32.mrf.mxu0  ;;  %v12945_v47 = vpop.f32.mrf.mxu1 }
 0x47b   :  { %15093 = vst [vmem:[#allocation111_spill] sm:$0xff] %v12931_v3  ;;  %v5170_v32 = vpop.permute.xlu0 %5169  ;;  %v12938_v37 = vsub.f32 %v5482_v33, %v12931_v3  ;;  %6833 = vmatpush1.msra.mxu0 %v12931_v3  ;;  %7062 = vmatprep.subr.mxu1 %v7061_v21  ;;  %v12941_v61 = vpop.permute.xlu1 %5335  ;;  %15096 = vst [vmem:[#allocation114_spill] sm:$0xff] %v12943_v22 }
 0x47c   :  { %15097 = vst [vmem:[#allocation115_spill] sm:$0xff] %v12945_v47  ;;  %v12948_v45 = vpop.f32.mrf.mxu0  ;;  %v12952_v49 = vpop.f32.mrf.mxu1 }
 0x47d   :  { %v14375_v13 = vand.u32 4294901760, %v12938_v37  ;;  %15098 = vst [vmem:[#allocation116_spill] sm:$0xff] %v12948_v45  ;;  %15099 = vst [vmem:[#allocation117_spill] sm:$0xff] %v12952_v49 }
 0x47e   :  { %v12959_v21 = vpop.f32.mrf.mxu0  ;;  %v12961_v12 = vpop.f32.mrf.mxu1 }
 0x47f   :  { %v12950_v39 = vpop.permute.xlu0 %5277  ;;  %v7066_v33 = vsub.f32 %v12938_v37, %v14375_v13  ;;  %v12957_v20 = vpop.permute.xlu1 %5081  ;;  %15100 = vst [vmem:[#allocation118_spill] sm:$0xff] %v12959_v21  ;;  %15101 = vst [vmem:[#allocation119_spill] sm:$0xff] %v12961_v12 }
 0x480   :  { %v12963_v47 = vpop.f32.mrf.mxu0  ;;  %v12965_v55 = vpop.f32.mrf.mxu1 }
 0x481   :  { %v7067_v22 = vand.u32 4294901760, %v7066_v33  ;;  %15102 = vst [vmem:[#allocation120_spill] sm:$0xff] %v12963_v47  ;;  %15103 = vst [vmem:[#allocation121_spill] sm:$0xff] %v12965_v55  ;;  %v5502_v33 = vsel %vm2702_vm6, %v12580_v31, %v12714_v10 }
 0x482   :  { %v12967_v26 = vpop.f32.mrf.mxu0  ;;  %v12969_v49 = vpop.f32.mrf.mxu1 }
 0x483   :  { %v5394_v0 = vpop.permute.xlu0 %5393  ;;  %7068 = vmatpush1.msra.mxu1 %v7067_v22  ;;  %v5198_v45 = vpop.permute.xlu1 %5197  ;;  %15104 = vst [vmem:[#allocation122_spill] sm:$0xff] %v12967_v26  ;;  %15105 = vst [vmem:[#allocation123_spill] sm:$0xff] %v12969_v49  ;;  %v5509_v22 = vsel %vm2710_vm7, %v5502_v33, %v12809_v15 }
 0x484   :  { %v12973_v13 = vpop.f32.mrf.mxu1  ;;  %v12980_v47 = vpop.f32.mrf.mxu0  ;;  %v5516_v55 = vsel %vm2718_vm8, %v5509_v22, %v5366_v60 }
 0x485   :  { %15106 = vst [vmem:[#allocation124_spill] sm:$0xff] %v12973_v13  ;;  %15107 = vst [vmem:[#allocation125_spill] sm:$0xff] %v12980_v47  ;;  %v5523_v12 = vsel %vm2726_vm9, %v5516_v55, %v5394_v0  ;;  %v5453_v55 = vsel %vm2702_vm6, %v12669_v27, %v12753_v59 }
 0x486   :  { %v12987_v49 = vpop.f32.mrf.mxu1  ;;  %v12991_v53 = vpop.f32.mrf.mxu0 }
 0x487   :  { %v12971_v51 = vpop.permute.xlu0 %5139  ;;  %v12975_v3 = vpop.permute.xlu1 %5305  ;;  %15108 = vst [vmem:[#allocation126_spill] sm:$0xff] %v12987_v49  ;;  %15109 = vst [vmem:[#allocation127_spill] sm:$0xff] %v12991_v53 }
 0x488   :  { %v12995_v10 = vpop.f32.mrf.mxu1  ;;  %v13006_v0 = vpop.f32.mrf.mxu0 }
 0x489   :  { %15111 = vst [vmem:[#allocation129_spill] sm:$0xff] %v12995_v10  ;;  %15112 = vst [vmem:[#allocation130_spill] sm:$0xff] %v13006_v0 }
 0x48a   :  { %v13021_v0 = vpop.f32.mrf.mxu0 }
 0x48b   :  { %v12985_v26 = vpop.permute.xlu0 %5247  ;;  %v5422_v13 = vpop.permute.xlu1 %5421  ;;  %15114 = vst [vmem:[#allocation132_spill] sm:$0xff] %v13021_v0 }
 0x48c   :  { %v5530_v21 = vsel %vm2734_vm10, %v5523_v12, %v5422_v13  ;;  %v5460_v12 = vsel %vm2710_vm7, %v5453_v55, %v12859_v2 }
 0x48d   :  { %v12993_v8 = vand.u32 4294901760, %v5530_v21  ;;  %v5467_v33 = vsel %vm2718_vm8, %v5460_v12, %v5170_v32 }
 0x48e   :  { %v5474_v10 = vsel %vm2726_vm9, %v5467_v33, %v5198_v45  ;;  %v13031_v33 = vpop.f32.mrf.mxu0 }
 0x48f   :  { %15110 = vst [vmem:[#allocation128_spill] sm:$0xff] %v12993_v8  ;;  %v5364_v31 = vpop.permute.xlu0 %5363  ;;  %v12998_v15 = vsub.f32 %v5530_v21, %v12993_v8  ;;  %6835 = vmatprep.subr.mxu0 %v12993_v8  ;;  %v13001_v60 = vpop.permute.xlu1 %5109  ;;  %15117 = vst [vmem:[#allocation135_spill] sm:$0xff] %v13031_v33 }
 0x490   :  { %v13014_v21 = vpop.f32.mrf.mxu1 }
 0x491   :  { %v14378_v13 = vand.u32 4294901760, %v12998_v15  ;;  %15113 = vst [vmem:[#allocation131_spill] sm:$0xff] %v13014_v21 }
 0x492   :  { %v13025_v32 = vpop.f32.mrf.mxu1 }
 0x493   :  { %v13012_v22 = vpop.permute.xlu0 %5051  ;;  %v7072_v27 = vsub.f32 %v12998_v15, %v14378_v13  ;;  %15116 = vst [vmem:[#allocation134_spill] sm:$0xff] %v13025_v32 }
 0x494   :  { %v5226_v49 = vpop.permute.xlu1 %5225 }
 0x495   :  { %v5481_v59 = vsel %vm2734_vm10, %v5474_v10, %v5226_v49  ;;  %v7073_v55 = vand.u32 4294901760, %v7072_v27  ;;  %v13036_v10 = vpop.f32.mrf.mxu1 }
 0x496   :  { %v13023_v2 = vand.u32 4294901760, %v5481_v59  ;;  %15118 = vst [vmem:[#allocation136_spill] sm:$0xff] %v13036_v10 }
 0x497   :  { %v5168_v53 = vpop.permute.xlu0 %5167  ;;  %7074 = vmatprep.subr.mxu1 %v7073_v55  ;;  %v13045_v55 = vpop.f32.mrf.mxu1 }
 0x498   :  { %15115 = vst [vmem:[#allocation133_spill] sm:$0xff] %v13023_v2  ;;  %v13028_v12 = vsub.f32 %v5481_v59, %v13023_v2  ;;  %6837 = vmatpush1.msra.mxu0 %v13023_v2  ;;  %v5334_v45 = vpop.permute.xlu1 %5333  ;;  %v13043_v59 = vpop.f32.mrf.mxu0  ;;  %15120 = vst [vmem:[#allocation138_spill] sm:$0xff] %v13045_v55 }
 0x499   :  { %15119 = vst [vmem:[#allocation137_spill] sm:$0xff] %v13043_v59  ;;  %v13049_v8 = vpop.f32.mrf.mxu1 }
 0x49a   :  { %v14385_v13 = vand.u32 4294901760, %v13028_v12  ;;  %v13047_v47 = vpop.f32.mrf.mxu0  ;;  %15122 = vst [vmem:[#allocation140_spill] sm:$0xff] %v13049_v8 }
 0x49b   :  { %v13034_v49 = vpop.permute.xlu0 %5275  ;;  %15121 = vst [vmem:[#allocation139_spill] sm:$0xff] %v13047_v47 }
 0x49c   :  { %v7078_v27 = vsub.f32 %v13028_v12, %v14385_v13  ;;  %v13041_v32 = vpop.permute.xlu1 %5079  ;;  %v13051_v4 = vpop.f32.mrf.mxu0 }
 0x49d   :  { %15123 = vst [vmem:[#allocation141_spill] sm:$0xff] %v13051_v4  ;;  %v13055_v13 = vpop.f32.mrf.mxu1 }
 0x49e   :  { %v7079_v21 = vand.u32 4294901760, %v7078_v27  ;;  %15124 = vst [vmem:[#allocation142_spill] sm:$0xff] %v13055_v13  ;;  %v5501_v27 = vsel %vm2702_vm6, %v12831_v14, %v12863_v18  ;;  %v13067_v8 = vpop.f32.mrf.mxu0 }
 0x49f   :  { %v5392_v0 = vpop.permute.xlu0 %5391  ;;  %v5508_v55 = vsel %vm2710_vm7, %v5501_v27, %v12941_v61  ;;  %15125 = vst [vmem:[#allocation143_spill] sm:$0xff] %v13067_v8  ;;  %v13074_v6 = vpop.f32.mrf.mxu1 }
 0x4a0   :  { %7080 = vmatpush1.msra.mxu1 %v7079_v21  ;;  %v5196_v33 = vpop.permute.xlu1 %5195  ;;  %v5452_v21 = vsel %vm2702_vm6, %v12836_v40, %v12902_v17  ;;  %v5515_v13 = vsel %vm2718_vm8, %v5508_v55, %v5364_v31  ;;  %15126 = vst [vmem:[#allocation144_spill] sm:$0xff] %v13074_v6  ;;  %v13081_v8 = vpop.f32.mrf.mxu0 }
 0x4a1   :  { %v5459_v4 = vsel %vm2710_vm7, %v5452_v21, %v12971_v51  ;;  %v5522_v18 = vsel %vm2726_vm9, %v5515_v13, %v5392_v0  ;;  %v13089_v31 = vpop.f32.mrf.mxu1 }
 0x4a2   :  { %v5466_v47 = vsel %vm2718_vm8, %v5459_v4, %v5168_v53  ;;  %15129 = vst [vmem:[#allocation147_spill] sm:$0xff] %v13089_v31  ;;  %v13096_v13 = vpop.f32.mrf.mxu0 }
 0x4a3   :  { %v5138_v2 = vpop.permute.xlu0 %5137  ;;  %v5473_v62 = vsel %vm2726_vm9, %v5466_v47, %v5196_v33  ;;  %15130 = vst [vmem:[#allocation148_spill] sm:$0xff] %v13096_v13 }
 0x4a4   :  { %v5362_v10 = vpop.permute.xlu1 %5361 }
 0x4a7   :  { %v13053_v35 = vpop.permute.xlu0 %5303 }
 0x4a8   :  { %v13060_v59 = vpop.permute.xlu1 %5107 }
 0x4ab   :  { %v5420_v14 = vpop.permute.xlu0 %5419 }
 0x4ac   :  { %v5529_v40 = vsel %vm2734_vm10, %v5522_v18, %v5420_v14  ;;  %v5224_v17 = vpop.permute.xlu1 %5223  ;;  %v13102_v18 = vpop.f32.mrf.mxu1  ;;  %v5493_v14 = vsel %vm2694_vm5, %v12885_v54, %v12950_v39 }
 0x4ad   :  { %v13078_v61 = vand.u32 4294901760, %v5529_v40  ;;  %v5480_v27 = vsel %vm2734_vm10, %v5473_v62, %v5224_v17  ;;  %15131 = vst [vmem:[#allocation149_spill] sm:$0xff] %v13102_v18  ;;  %v15132_v18 = vld [vmem:[#allocation105_spill] sm:$0xff] }
 0x4ae   :  { %v13083_v51 = vand.u32 4294901760, %v5480_v27  ;;  %v15133_v31 = vcombine.low %v12160_v23, %v15132_v18 }
 0x4af   :  { %15127 = vst [vmem:[#allocation145_spill] sm:$0xff] %v13078_v61  ;;  %v13086_v4 = vsub.f32 %v5529_v40, %v13078_v61  ;;  %v5166_v53 = vpop.permute.xlu0 %5165  ;;  %6839 = vmatprep.subr.mxu0 %v13078_v61  ;;  %v13112_v61 = vpop.f32.mrf.mxu0 }
 0x4b0   :  { %15128 = vst [vmem:[#allocation146_spill] sm:$0xff] %v13083_v51  ;;  %v13092_v47 = vsub.f32 %v5480_v27, %v13083_v51  ;;  %6841 = vmatpush1.msra.mxu0 %v13083_v51  ;;  %v5390_v0 = vpop.permute.xlu1 %5389  ;;  %v5500_v27 = vsel %vm2702_vm6, %v5493_v14, %v12975_v3  ;;  %v5437_v54 = vsel %vm2686_vm4, %v15133_v31, %v12918_v9 }
 0x4b1   :  { %v14392_v62 = vand.u32 4294901760, %v13086_v4  ;;  %v5507_v13 = vsel %vm2710_vm7, %v5500_v27, %v5334_v45  ;;  %v5444_v3 = vsel %vm2694_vm5, %v5437_v54, %v12957_v20  ;;  %v13129_v18 = vpop.f32.mrf.mxu0 }
 0x4b2   :  { %v14393_v33 = vand.u32 4294901760, %v13092_v47  ;;  %v5514_v39 = vsel %vm2718_vm8, %v5507_v13, %v5362_v10  ;;  %v5451_v14 = vsel %vm2702_vm6, %v5444_v3, %v13001_v60 }
 0x4b3   :  { %v5332_v55 = vpop.permute.xlu0 %5331  ;;  %v7084_v21 = vsub.f32 %v13086_v4, %v14392_v62  ;;  %v5458_v9 = vsel %vm2710_vm7, %v5451_v14, %v5138_v2 }
 0x4b4   :  { %v7090_v40 = vsub.f32 %v13092_v47, %v14393_v33  ;;  %v5194_v17 = vpop.permute.xlu1 %5193  ;;  %v13121_v33 = vpop.f32.mrf.mxu1 }
 0x4b5   :  { %v7085_v51 = vand.u32 4294901760, %v7084_v21  ;;  %v5521_v21 = vsel %vm2726_vm9, %v5514_v39, %v5390_v0 }
 0x4b6   :  { %v7091_v62 = vand.u32 4294901760, %v7090_v40  ;;  %v13135_v13 = vpop.f32.mrf.mxu1  ;;  %v13143_v40 = vpop.f32.mrf.mxu0 }
 0x4b7   :  { %v5136_v6 = vpop.permute.xlu0 %5135  ;;  %7086 = vmatprep.subr.mxu1 %v7085_v51  ;;  %v5465_v51 = vsel %vm2718_vm8, %v5458_v9, %v5166_v53  ;;  %v15136_v53 = vcombine.low %v12172_v29, %v12155_v30 }
 0x4b8   :  { %7092 = vmatpush1.msra.mxu1 %v7091_v62  ;;  %v5418_v45 = vpop.permute.xlu1 %5417  ;;  %v5472_v20 = vsel %vm2726_vm9, %v5465_v51, %v5194_v17  ;;  %v13153_v39 = vpop.f32.mrf.mxu1 }
 0x4b9   :  { %v5528_v23 = vsel %vm2734_vm10, %v5521_v21, %v5418_v45  ;;  %v5436_v17 = vsel %vm2686_vm4, %v15136_v53, %v13012_v22  ;;  %v13166_v29 = vpop.f32.mrf.mxu0  ;;  %v15138_v22 = vcombine.low %v12163_v58, %v12152_v16 }
 0x4ba   :  { %v13132_v10 = vand.u32 4294901760, %v5528_v23  ;;  %v5443_v3 = vsel %vm2694_vm5, %v5436_v17, %v13041_v32 }
 0x4bb   :  { %v5360_v31 = vpop.permute.xlu0 %5359  ;;  %v5450_v30 = vsel %vm2702_vm6, %v5443_v3, %v13060_v59  ;;  %v5485_v32 = vsel %vm2686_vm4, %v15138_v22, %v12985_v26  ;;  %v13178_v59 = vpop.f32.mrf.mxu1 }
 0x4bc   :  { %15134 = vst [vmem:[#allocation105_spill] sm:$0xff] %v13132_v10  ;;  %v13139_v0 = vsub.f32 %v5528_v23, %v13132_v10  ;;  %6843 = vmatprep.subr.mxu0 %v13132_v10  ;;  %v5222_v60 = vpop.permute.xlu1 %5221  ;;  %v5457_v23 = vsel %vm2710_vm7, %v5450_v30, %v5136_v6  ;;  %v13188_v17 = vpop.f32.mrf.mxu0 }
 0x4bd   :  { %v5479_v62 = vsel %vm2734_vm10, %v5472_v20, %v5222_v60  ;;  %v5492_v20 = vsel %vm2694_vm5, %v5485_v32, %v13034_v49  ;;  %v13194_v22 = vpop.f32.mrf.mxu1 }
 0x4be   :  { %v13145_v2 = vand.u32 4294901760, %v5479_v62  ;;  %v14397_v27 = vand.u32 4294901760, %v13139_v0  ;;  %v5499_v53 = vsel %vm2702_vm6, %v5492_v20, %v13053_v35 }
 0x4bf   :  { %v5164_v54 = vpop.permute.xlu0 %5163  ;;  %v5506_v6 = vsel %vm2710_vm7, %v5499_v53, %v5332_v55  ;;  %v13209_v20 = vpop.f32.mrf.mxu1 }
 0x4c0   :  { %15135 = vst [vmem:[#allocation150_spill] sm:$0xff] %v13145_v2  ;;  %v13158_v21 = vsub.f32 %v5479_v62, %v13145_v2  ;;  %6845 = vmatpush1.msra.mxu0 %v13145_v2  ;;  %v5192_v45 = vpop.permute.xlu1 %5191  ;;  %v7096_v14 = vsub.f32 %v13139_v0, %v14397_v27  ;;  %v5464_v60 = vsel %vm2718_vm8, %v5457_v23, %v5164_v54  ;;  %v13202_v23 = vpop.f32.mrf.mxu0 }
 0x4c1   :  { %v5471_v58 = vsel %vm2726_vm9, %v5464_v60, %v5192_v45  ;;  %v5513_v54 = vsel %vm2718_vm8, %v5506_v6, %v5360_v31  ;;  %v13226_v6 = vpop.f32.mrf.mxu1 }
 0x4c2   :  { %15137 = vst [vmem:[#allocation151_spill] sm:$0xff] %v13158_v21  ;;  %v14396_v9 = vand.u32 4294901760, %v13158_v21  ;;  %v7097_v51 = vand.u32 4294901760, %v7096_v14 }
 0x4c3   :  { %v5388_v62 = vpop.permute.xlu0 %5387 }
 0x4c4   :  { %v7102_v16 = vsub.f32 %v13158_v21, %v14396_v9  ;;  %7098 = vmatprep.subr.mxu1 %v7097_v51  ;;  %v5220_v26 = vpop.permute.xlu1 %5219  ;;  %v5520_v35 = vsel %vm2726_vm9, %v5513_v54, %v5388_v62  ;;  %v15141_v62 = vld [vmem:[#allocation79_spill] sm:$0xff]  ;;  %v15143_v54 = vld [vmem:[#allocation72_spill] sm:$0xff] }
 0x4c5   :  { %v5478_v49 = vsel %vm2734_vm10, %v5471_v58, %v5220_v26  ;;  %v15142_v58 = vmov 0.0  }
 0x4c6   :  { %v13191_v3 = vand.u32 4294901760, %v5478_v49  ;;  %v7103_v14 = vand.u32 4294901760, %v7102_v16  ;;  %v13218_v16 = vpop.f32.mrf.mxu0 }
 0x4c7   :  { %v5416_v30 = vpop.permute.xlu0 %5415 }
 0x4c8   :  { %v5527_v45 = vsel %vm2734_vm10, %v5520_v35, %v5416_v30  ;;  %v13198_v32 = vsub.f32 %v5478_v49, %v13191_v3  ;;  %7104 = vmatpush1.msra.mxu1 %v7103_v14  ;;  %v13233_v30 = vpop.f32.mrf.mxu0 }
 0x4c9   :  { %v13200_v55 = vand.u32 4294901760, %v5527_v45 }
 0x4ca   :  { %15139 = vst [vmem:[#allocation152_spill] sm:$0xff] %v13198_v32  ;;  %v14394_v31 = vand.u32 4294901760, %v13198_v32 }
 0x4cb   :  { %v13206_v51 = vsub.f32 %v5527_v45, %v13200_v55  ;;  %6847 = vmatprep.subr.mxu0 %v13200_v55 }
 0x4cc   :  { %v7114_v60 = vsub.f32 %v13198_v32, %v14394_v31  ;;  %6849 = vmatpush1.msra.mxu0 %v13191_v3 }
 0x4cd   :  { %15140 = vst [vmem:[#allocation153_spill] sm:$0xff] %v13206_v51  ;;  %6888 = vmatmul.mubr.f32.vlgmr.msra.gmra.mxu0 %v15141_v62  ;;  %7254 = vmatprep.subr.mxu0 %v12408_v38  ;;  %v14395_v53 = vand.u32 4294901760, %v13206_v51 }
 0x4ce   :  { %7257 = vmatpush1.msra.mxu0 %v12583_v42  ;;  %6893 = vmatprep.mubr.f32.mxu0 %v15142_v58  ;;  %v7115_v49 = vand.u32 4294901760, %v7114_v60  ;;  %v13242_v60 = vpop.f32.mrf.mxu1 }
 0x4cf   :  { %7260 = vmatprep.subr.mxu0 %v12750_v19  ;;  %v7108_v26 = vsub.f32 %v13206_v51, %v14395_v53  ;;  %v15146_v53 = vld [vmem:[#allocation63_spill] sm:$0xff] }
 0x4d0   :  { %7263 = vmatpush1.msra.mxu0 %v12806_v44 }
 0x4d1   :  { %6899 = vmatmul.mubr.f32.gmra.mxu0 %v15143_v54  ;;  %7266 = vmatprep.subr.mxu0 %v12899_v48  ;;  %v7109_v14 = vand.u32 4294901760, %v7108_v26  ;;  %v13231_v35 = vpop.permute.xlu1 %5541 }
 0x4d2   :  { %15144 = vst [vmem:[#allocation79_spill] sm:$0xff] %v13231_v35  ;;  %7269 = vmatpush1.msra.mxu0 %v12938_v37  ;;  %6904 = vmatprep.mubr.f32.mxu0 %v15142_v58  ;;  %v5741_v45 = vadd.f32 %v12563_v56, %v13231_v35  ;;  %v5743_v62 = vadd.f32 %v12589_v36, %v13231_v35  ;;  %v15147_v56 = vld [vmem:[#allocation104_spill] sm:$0xff]  ;;  %v13271_v35 = vpop.f32.mrf.mxu1 }
 0x4d3   :  { %7110 = vmatprep.subr.mxu1 %v7109_v14  ;;  %7272 = vmatprep.subr.mxu0 %v12998_v15 }
 0x4d4   :  { %7116 = vmatpush1.msra.mxu1 %v7115_v49  ;;  %7275 = vmatpush1.msra.mxu0 %v13028_v12  ;;  %v13245_v26 = vpop.permute.xlu0 %5536  ;;  %v6000_v54 = vadd.f32 %v12591_v50, %v5741_v45  ;;  %v6002_v31 = vadd.f32 %v12606_v7, %v5743_v62  ;;  %v13257_v49 = vpop.f32.mrf.mxu0  ;;  %v15150_v45 = vld [vmem:[#allocation77_spill] sm:$0xff] }
 0x4d5   :  { %15145 = vst [vmem:[#allocation72_spill] sm:$0xff] %v13245_v26  ;;  %6910 = vmatmul.mubr.f32.gmra.mxu0 %v15146_v53  ;;  %7151 = vmatmul.mubr.f32.vlgmr.msra.gmra.mxu1 %v15147_v56  ;;  %v5730_v36 = vadd.f32 %v12510_v34, %v13245_v26  ;;  %v5732_v14 = vadd.f32 %v12540_v1, %v13245_v26  ;;  %v13255_v9 = vpop.permute.xlu1 %5546  ;;  %v15149_v34 = vld [vmem:[#allocation53_spill] sm:$0xff] }
 0x4d6   :  { %15148 = vst [vmem:[#allocation63_spill] sm:$0xff] %v13255_v9  ;;  %7278 = vmatprep.subr.mxu0 %v13086_v4  ;;  %7442 = vmatprep.subr.mxu1 %v12387_v11  ;;  %v5752_v50 = vadd.f32 %v12604_v52, %v13255_v9  ;;  %v5754_v7 = vadd.f32 %v12622_v41, %v13255_v9  ;;  %v15153_v9 = vld [vmem:[#allocation97_spill] sm:$0xff] }
 0x4d7   :  { %v6179_v53 = vadd.f32 %v12843_v43, %v6000_v54  ;;  %7281 = vmatpush1.msra.mxu0 %v13092_v47  ;;  %7444 = vmatpush1.msra.mxu1 %v12558_v25  ;;  %v5993_v1 = vadd.f32 %v15149_v34, %v5730_v36  ;;  %v5995_v62 = vadd.f32 %v15150_v45, %v5732_v14  ;;  %v15152_v43 = vld [vmem:[#allocation66_spill] sm:$0xff]  ;;  %v13285_v14 = vpop.f32.mrf.mxu0 }
 0x4d8   :  { %v6181_v27 = vadd.f32 %v12850_v57, %v6002_v31  ;;  %7284 = vmatprep.subr.mxu0 %v13139_v0  ;;  %7446 = vmatprep.subr.mxu1 %v12738_v24  ;;  %v13276_v41 = vpop.permute.xlu0 %5551  ;;  %v6007_v54 = vadd.f32 %v15152_v43, %v5752_v50  ;;  %v6009_v26 = vadd.f32 %v15153_v9, %v5754_v7  ;;  %v15156_v9 = vld [vmem:[#allocation84_spill] sm:$0xff]  ;;  %v15157_v34 = vld [vmem:[#allocation110_spill] sm:$0xff]  ;;  %v15158_v43 = vld [vmem:[#allocation49_spill] sm:$0xff] }
 0x4d9   :  { %v6356_v52 = vadd.f32 %v12852_v63, %v6179_v53  ;;  %15151 = vst [vmem:[#allocation53_spill] sm:$0xff] %v13276_v41  ;;  %6915 = vmatprep.mubr.f32.mxu0 %v15142_v58  ;;  %7156 = vmatprep.mubr.f32.mxu1 %v15142_v58  ;;  %v6171_v57 = vadd.f32 %v12819_v5, %v5993_v1  ;;  %v15154_v63 = vld [vmem:[#allocation102_spill] sm:$0xff]  ;;  %v15155_v53 = vld [vmem:[#allocation143_spill] sm:$0xff]  ;;  %v13299_v56 = vpop.permute.xlu1 %5556  ;;  %v13313_v24 = vpop.f32.mrf.mxu0 }
 0x4da   :  { %v6173_v31 = vadd.f32 %v12833_v46, %v5995_v62  ;;  %v6358_v36 = vadd.f32 %v12861_v28, %v6181_v27  ;;  %7287 = vmatpush1.msra.mxu0 %v13158_v21  ;;  %7448 = vmatpush1.msra.mxu1 %v15154_v63  ;;  %v5763_v7 = vadd.f32 %v15156_v9, %v13276_v41  ;;  %v15159_v5 = vld [vmem:[#allocation103_spill] sm:$0xff]  ;;  %v15160_v46 = vld [vmem:[#allocation62_spill] sm:$0xff]  ;;  %v13301_v63 = vpop.f32.mrf.mxu1 }
 0x4db   :  { %v6567_v50 = vadd.f32 %v15155_v53, %v6356_v52  ;;  %v5765_v45 = vadd.f32 %v15157_v34, %v13276_v41  ;;  %6921 = vmatmul.mubr.f32.gmra.mxu0 %v15158_v43  ;;  %7158 = vmatmul.mubr.f32.gmra.mxu1 %v15159_v5  ;;  %v6347_v28 = vadd.f32 %v15160_v46, %v6171_v57  ;;  %v15161_v27 = vld [vmem:[#allocation98_spill] sm:$0xff]  ;;  %v15163_v52 = vld [vmem:[#allocation108_spill] sm:$0xff]  ;;  %v15167_v57 = vld [vmem:[#allocation111_spill] sm:$0xff] }
 0x4dc   :  { %v6349_v1 = vadd.f32 %v15161_v27, %v6173_v31  ;;  %v6569_v62 = vadd.f32 %v13081_v8, %v6358_v36  ;;  %15162 = vst [vmem:[#allocation77_spill] sm:$0xff] %v13299_v56  ;;  %7290 = vmatprep.subr.mxu0 %v13206_v51  ;;  %7450 = vmatprep.subr.mxu1 %v15163_v52  ;;  %v15164_v53 = vld [vmem:[#allocation144_spill] sm:$0xff]  ;;  %v15165_v34 = vld [vmem:[#allocation10_spill] sm:$0xff]  ;;  %v15168_v31 = vld [vmem:[#allocation139_spill] sm:$0xff] }
 0x4dd   :  { %v6730_v9 = vadd.f32 %v15164_v53, %v6567_v50  ;;  %v6187_v43 = vadd.f32 %v15165_v34, %v6007_v54  ;;  %v15166_v41 = vld [vmem:[#allocation64_spill] sm:$0xff]  ;;  %7293 = vmatpush1.msra.mxu0 %v13198_v32  ;;  %7452 = vmatpush1.msra.mxu1 %v15167_v57  ;;  %v6560_v8 = vadd.f32 %v15168_v31, %v6347_v28  ;;  %v15169_v36 = vld [vmem:[#allocation141_spill] sm:$0xff]  ;;  %v15170_v27 = vld [vmem:[#allocation147_spill] sm:$0xff]  ;;  %v15172_v50 = vand.u32 4294901760, %v12408_v38  ;;  %v13322_v28 = vpop.permute.xlu0 %5561 }
 0x4de   :  { %v6189_v5 = vadd.f32 %v15166_v41, %v6009_v26  ;;  %v6562_v46 = vadd.f32 %v15169_v36, %v6349_v1  ;;  %v6732_v21 = vadd.f32 %v15170_v27, %v6569_v62  ;;  %v15171_v51 = vld [vmem:[#allocation128_spill] sm:$0xff]  ;;  %v15175_v57 = vld [vmem:[#allocation25_spill] sm:$0xff]  ;;  %15176 = vst [vmem:[#allocation66_spill] sm:$0xff] %v13322_v28  ;;  %6926 = vmatprep.mubr.f32.mxu0 %v15142_v58  ;;  %v15178_v31 = vld [vmem:[#allocation142_spill] sm:$0xff] }
 0x4df   :  { %7454 = vmatprep.subr.mxu1 %v15171_v51  ;;  %7631 = vmatprep.subr.mxu0 %v15172_v50  ;;  %v7968_v54 = vmax.f32 %v6730_v9, 0.0  ;;  %v15173_v53 = vld [vmem:[#allocation76_spill] sm:$0xff]  ;;  %v5774_v32 = vadd.f32 %v15175_v57, %v13299_v56  ;;  %v15179_v9 = vld [vmem:[#allocation33_spill] sm:$0xff] }
 0x4e0   :  { %v6365_v26 = vadd.f32 %v15173_v53, %v6187_v43  ;;  %v15174_v41 = vld [vmem:[#allocation80_spill] sm:$0xff]  ;;  %7163 = vmatprep.mubr.f32.mxu1 %v15142_v58  ;;  %v6725_v36 = vadd.f32 %v15178_v31, %v6562_v46  ;;  %v7969_v38 = vmax.f32 %v6732_v21, 0.0  ;;  %v5776_v27 = vadd.f32 %v15179_v9, %v13299_v56  ;;  %v13330_v43 = vpop.f32.mrf.mxu1  ;;  %v15184_v21 = vld [vmem:[#allocation99_spill] sm:$0xff] }
 0x4e1   :  { %v6367_v34 = vadd.f32 %v15174_v41, %v6189_v5  ;;  %v15177_v1 = vld [vmem:[#allocation140_spill] sm:$0xff]  ;;  %v15180_v5 = vld [vmem:[#allocation133_spill] sm:$0xff]  ;;  %8014 = vst [vmem:[%s14014_s3 + $0x10] sm:$0xff] %v7968_v54  ;;  %7165 = vmatmul.mubr.f32.gmra.mxu1 %v15184_v21 }
 0x4e2   :  { %v6723_v62 = vadd.f32 %v15177_v1, %v6560_v8  ;;  %7456 = vmatpush1.msra.mxu1 %v15180_v5  ;;  %v15181_v50 = vld [vmem:[#allocation32_spill] sm:$0xff]  ;;  %v15183_v41 = vld [vmem:[#allocation93_spill] sm:$0xff]  ;;  %v7965_v9 = vmax.f32 %v6725_v36, 0.0  ;;  %8015 = vst [vmem:[%s14014_s3 + $0x18] sm:$0xff] %v7969_v38  ;;  %7170 = vmatprep.mubr.f32.mxu1 %v15142_v58 }
 0x4e3   :  { %6932 = vmatmul.mubr.f32.gmra.mxu0 %v15181_v50  ;;  %v15182_v57 = vld [vmem:[#allocation148_spill] sm:$0xff]  ;;  %v6576_v8 = vadd.f32 %v13112_v61, %v6367_v34  ;;  %v6014_v46 = vadd.f32 %v15183_v41, %v5763_v7  ;;  %v15185_v1 = vld [vmem:[#allocation145_spill] sm:$0xff]  ;;  %v15186_v50 = vld [vmem:[#allocation54_spill] sm:$0xff]  ;;  %v13355_v41 = vpop.permute.xlu1 %5566 }
 0x4e4   :  { %v6574_v53 = vadd.f32 %v15182_v57, %v6365_v26  ;;  %7458 = vmatprep.subr.mxu1 %v15185_v1  ;;  %v7964_v31 = vmax.f32 %v6723_v62, 0.0  ;;  %v6016_v56 = vadd.f32 %v15186_v50, %v5765_v45  ;;  %v15187_v54 = vld [vmem:[#allocation40_spill] sm:$0xff]  ;;  %v13348_v26 = vpop.f32.mrf.mxu0  ;;  %v15188_v61 = vld [vmem:[#allocation146_spill] sm:$0xff]  ;;  %6937 = vmatprep.mubr.f32.mxu0 %v15142_v58  ;;  %v15189_v7 = vld [vmem:[#allocation149_spill] sm:$0xff]  ;;  %15191 = vst [vmem:[#allocation97_spill] sm:$0xff] %v13355_v41  ;;  %v13369_v50 = vpop.f32.mrf.mxu1 }
 0x4e5   :  { %v5785_v5 = vadd.f32 %v15187_v54, %v13322_v28  ;;  %7460 = vmatpush1.msra.mxu1 %v15188_v61  ;;  %v15190_v57 = vld [vmem:[#allocation48_spill] sm:$0xff]  ;;  %v6739_v36 = vadd.f32 %v13121_v33, %v6576_v8  ;;  %8013 = vst [vmem:[%s14014_s3 + $0x8] sm:$0xff] %v7965_v9  ;;  %v15194_v33 = vld [vmem:[#allocation95_spill] sm:$0xff]  ;;  %v15198_v9 = vld [vmem:[#allocation82_spill] sm:$0xff] }
 0x4e6   :  { %v6737_v34 = vadd.f32 %v15189_v7, %v6574_v53  ;;  %v6195_v62 = vadd.f32 %v15190_v57, %v6014_v46  ;;  %7462 = vmatprep.subr.mxu1 %v13132_v10  ;;  %8012 = vst [vmem:[%s14014_s3] sm:$0xff] %v7964_v31  ;;  %v15192_v45 = vld [vmem:[#allocation24_spill] sm:$0xff]  ;;  %v15193_v53 = vld [vmem:[#allocation18_spill] sm:$0xff]  ;;  %v6021_v8 = vadd.f32 %v15194_v33, %v5774_v32  ;;  %v15197_v10 = vld [vmem:[#allocation41_spill] sm:$0xff] }
 0x4e7   :  { %v6197_v38 = vadd.f32 %v15192_v45, %v6016_v56  ;;  %v5787_v46 = vadd.f32 %v15193_v53, %v13322_v28  ;;  %7464 = vmatpush1.msra.mxu1 %v13145_v2  ;;  %v15195_v54 = vld [vmem:[#allocation20_spill] sm:$0xff]  ;;  %v7973_v21 = vmax.f32 %v6739_v36, 0.0  ;;  %v6023_v61 = vadd.f32 %v15197_v10, %v5776_v27  ;;  %v15199_v56 = vld [vmem:[#allocation101_spill] sm:$0xff]  ;;  %v15201_v33 = vld [vmem:[#allocation35_spill] sm:$0xff]  ;;  %v13381_v2 = vpop.permute.xlu0 %5571 }
 0x4e8   :  { %6943 = vmatmul.mubr.f32.gmra.mxu0 %v15195_v54  ;;  %v7972_v7 = vmax.f32 %v6737_v34, 0.0  ;;  %v15196_v57 = vld [vmem:[#allocation12_spill] sm:$0xff]  ;;  %7172 = vmatmul.mubr.f32.gmra.mxu1 %v15198_v9  ;;  %v5796_v28 = vadd.f32 %v15201_v33, %v13355_v41  ;;  %v13383_v54 = vpop.f32.mrf.mxu0  ;;  %v15202_v27 = vld [vmem:[#allocation31_spill] sm:$0xff] }
 0x4e9   :  { %v6374_v31 = vadd.f32 %v15196_v57, %v6195_v62  ;;  %7466 = vmatprep.subr.mxu1 %v13200_v55  ;;  %v6376_v45 = vadd.f32 %v15199_v56, %v6197_v38  ;;  %v15200_v53 = vld [vmem:[#allocation68_spill] sm:$0xff]  ;;  %6948 = vmatprep.mubr.f32.mxu0 %v15142_v58  ;;  %8017 = vst [vmem:[%s14014_s3 + $0x28] sm:$0xff] %v7973_v21  ;;  %v15203_v62 = vld [vmem:[#allocation86_spill] sm:$0xff]  ;;  %v15208_v33 = vld [vmem:[#allocation39_spill] sm:$0xff] }
 0x4ea   :  { %v6203_v32 = vadd.f32 %v15200_v53, %v6021_v8  ;;  %7468 = vmatpush1.msra.mxu1 %v13191_v3  ;;  %8016 = vst [vmem:[%s14014_s3 + $0x20] sm:$0xff] %v7972_v7  ;;  %v6205_v34 = vadd.f32 %v15202_v27, %v6023_v61  ;;  %v5798_v36 = vadd.f32 %v15203_v62, %v13355_v41  ;;  %v15204_v8 = vld [vmem:[#allocation30_spill] sm:$0xff]  ;;  %v15205_v7 = vld [vmem:[#allocation36_spill] sm:$0xff]  ;;  %v15207_v61 = vld [vmem:[#allocation83_spill] sm:$0xff] }
 0x4eb   :  { %v6581_v10 = vadd.f32 %v13129_v18, %v6374_v31  ;;  %7820 = vmatprep.subr.mxu1 %v12387_v11  ;;  %7177 = vmatprep.mubr.f32.mxu1 %v15142_v58  ;;  %v6583_v38 = vadd.f32 %v13143_v40, %v6376_v45  ;;  %v6028_v56 = vadd.f32 %v15205_v7, %v5785_v5  ;;  %v13402_v18 = vpop.f32.mrf.mxu1  ;;  %v15206_v31 = vld [vmem:[#allocation13_spill] sm:$0xff]  ;;  %v15209_v11 = vld [vmem:[#allocation94_spill] sm:$0xff]  ;;  %v15211_v45 = vld [vmem:[#allocation75_spill] sm:$0xff] }
 0x4ec   :  { %v6383_v57 = vadd.f32 %v15204_v8, %v6203_v32  ;;  %6954 = vmatmul.mubr.f32.gmra.mxu0 %v15206_v31  ;;  %v6385_v53 = vadd.f32 %v15207_v61, %v6205_v34  ;;  %v6030_v27 = vadd.f32 %v15208_v33, %v5787_v46  ;;  %v5807_v62 = vadd.f32 %v15209_v11, %v13381_v2  ;;  %v15210_v41 = vld [vmem:[#allocation70_spill] sm:$0xff]  ;;  %v13415_v8 = vpop.permute.xlu1 %5576  ;;  %v15213_v31 = vld [vmem:[#allocation107_spill] sm:$0xff] }
 0x4ed   :  { %v6744_v21 = vadd.f32 %v13135_v13, %v6581_v10  ;;  %7179 = vmatmul.mubr.f32.gmra.mxu1 %v15210_v41  ;;  %6959 = vmatprep.mubr.f32.mxu0 %v15142_v58  ;;  %v6746_v5 = vadd.f32 %v13153_v39, %v6583_v38  ;;  %v6211_v32 = vadd.f32 %v15211_v45, %v6028_v56  ;;  %v13417_v13 = vpop.f32.mrf.mxu0  ;;  %v15212_v34 = vld [vmem:[#allocation22_spill] sm:$0xff]  ;;  %v15214_v39 = vld [vmem:[#allocation37_spill] sm:$0xff]  ;;  %v13427_v11 = vpop.f32.mrf.mxu1 }
 0x4ee   :  { %v6588_v40 = vadd.f32 %v13166_v29, %v6383_v57  ;;  %7184 = vmatprep.mubr.f32.mxu1 %v15142_v58  ;;  %v6590_v10 = vadd.f32 %v13188_v17, %v6385_v53  ;;  %v6213_v7 = vadd.f32 %v15212_v34, %v6030_v27  ;;  %v5809_v61 = vadd.f32 %v15213_v31, %v13381_v2  ;;  %v15215_v57 = vld [vmem:[#allocation50_spill] sm:$0xff]  ;;  %v15216_v45 = vld [vmem:[#allocation9_spill] sm:$0xff]  ;;  %v15218_v27 = vld [vmem:[#allocation96_spill] sm:$0xff] }
 0x4ef   :  { %v7976_v46 = vmax.f32 %v6744_v21, 0.0  ;;  %v7977_v33 = vmax.f32 %v6746_v5, 0.0  ;;  %v6392_v38 = vadd.f32 %v15214_v39, %v6211_v32  ;;  %v6035_v56 = vadd.f32 %v15215_v57, %v5796_v28  ;;  %v15217_v21 = vld [vmem:[#allocation113_spill] sm:$0xff]  ;;  %v13438_v32 = vpop.permute.xlu0 %5581  ;;  %v13449_v31 = vpop.f32.mrf.mxu0 }
 0x4f0   :  { %v6751_v29 = vadd.f32 %v13178_v59, %v6588_v40  ;;  %6965 = vmatmul.mubr.f32.gmra.mxu0 %v15216_v45  ;;  %v6753_v17 = vadd.f32 %v13194_v22, %v6590_v10  ;;  %v6394_v53 = vadd.f32 %v15217_v21, %v6213_v7  ;;  %v6037_v5 = vadd.f32 %v15218_v27, %v5798_v36  ;;  %v15219_v59 = vld [vmem:[#allocation71_spill] sm:$0xff]  ;;  %v15220_v28 = vld [vmem:[#allocation57_spill] sm:$0xff]  ;;  %v15221_v10 = vld [vmem:[#allocation112_spill] sm:$0xff] }
 0x4f1   :  { %8018 = vst [vmem:[%s14014_s3 + $0x30] sm:$0xff] %v7976_v46  ;;  %v5818_v40 = vadd.f32 %v15219_v59, %v13415_v8  ;;  %7186 = vmatmul.mubr.f32.gmra.mxu1 %v15220_v28  ;;  %6970 = vmatprep.mubr.f32.mxu0 %v15142_v58  ;;  %8019 = vst [vmem:[%s14014_s3 + $0x38] sm:$0xff] %v7977_v33  ;;  %v6595_v22 = vadd.f32 %v13202_v23, %v6392_v38  ;;  %v15222_v36 = vld [vmem:[#allocation16_spill] sm:$0xff]  ;;  %v15223_v45 = vld [vmem:[#allocation114_spill] sm:$0xff] }
 0x4f2   :  { %v7980_v46 = vmax.f32 %v6751_v29, 0.0  ;;  %v6219_v34 = vadd.f32 %v15221_v10, %v6035_v56  ;;  %v5820_v7 = vadd.f32 %v15222_v36, %v13415_v8  ;;  %7191 = vmatprep.mubr.f32.mxu1 %v15142_v58  ;;  %v7981_v39 = vmax.f32 %v6753_v17, 0.0  ;;  %v15224_v27 = vld [vmem:[#allocation78_spill] sm:$0xff]  ;;  %v15225_v33 = vld [vmem:[#allocation115_spill] sm:$0xff]  ;;  %v13463_v17 = vpop.f32.mrf.mxu1 }
 0x4f3   :  { %v6597_v57 = vadd.f32 %v13218_v16, %v6394_v53  ;;  %v6221_v21 = vadd.f32 %v15223_v45, %v6037_v5  ;;  %v6042_v59 = vadd.f32 %v15224_v27, %v5807_v62  ;;  %v6758_v23 = vadd.f32 %v13209_v20, %v6595_v22  ;;  %v15226_v38 = vld [vmem:[#allocation6_spill] sm:$0xff]  ;;  %v15228_v16 = vld [vmem:[#allocation109_spill] sm:$0xff]  ;;  %v15230_v20 = vld [vmem:[#allocation116_spill] sm:$0xff] }
 0x4f4   :  { %8020 = vst [vmem:[%s14014_s3 + $0x40] sm:$0xff] %v7980_v46  ;;  %v6401_v29 = vadd.f32 %v15225_v33, %v6219_v34  ;;  %v6044_v56 = vadd.f32 %v15226_v38, %v5809_v61  ;;  %v15227_v10 = vld [vmem:[#allocation58_spill] sm:$0xff]  ;;  %6976 = vmatmul.mubr.f32.gmra.mxu0 %v15228_v16  ;;  %8021 = vst [vmem:[%s14014_s3 + $0x48] sm:$0xff] %v7981_v39  ;;  %v15229_v53 = vld [vmem:[#allocation117_spill] sm:$0xff]  ;;  %v13474_v34 = vpop.permute.xlu1 %5586 }
 0x4f5   :  { %v5829_v36 = vadd.f32 %v15227_v10, %v13438_v32  ;;  %v6760_v62 = vadd.f32 %v13226_v6, %v6597_v57  ;;  %v6403_v5 = vadd.f32 %v15229_v53, %v6221_v21  ;;  %v6227_v46 = vadd.f32 %v15230_v20, %v6042_v59  ;;  %v15231_v22 = vld [vmem:[#allocation8_spill] sm:$0xff]  ;;  %v15232_v45 = vld [vmem:[#allocation47_spill] sm:$0xff]  ;;  %6981 = vmatprep.mubr.f32.mxu0 %v15142_v58  ;;  %v15233_v38 = vld [vmem:[#allocation118_spill] sm:$0xff]  ;;  %v13481_v57 = vpop.f32.mrf.mxu0 }
 0x4f6   :  { %v5831_v61 = vadd.f32 %v15231_v22, %v13438_v32  ;;  %7193 = vmatmul.mubr.f32.gmra.mxu1 %v15232_v45  ;;  %v7984_v27 = vmax.f32 %v6758_v23, 0.0  ;;  %v6602_v33 = vadd.f32 %v13233_v30, %v6401_v29  ;;  %v6229_v39 = vadd.f32 %v15233_v38, %v6044_v56  ;;  %v15234_v10 = vld [vmem:[#allocation59_spill] sm:$0xff]  ;;  %v15236_v20 = vld [vmem:[#allocation81_spill] sm:$0xff] }
 0x4f7   :  { %v6049_v6 = vadd.f32 %v15234_v10, %v5818_v40  ;;  %7198 = vmatprep.mubr.f32.mxu1 %v15142_v58  ;;  %v7985_v21 = vmax.f32 %v6760_v62, 0.0  ;;  %v6604_v59 = vadd.f32 %v13257_v49, %v6403_v5  ;;  %v15235_v16 = vld [vmem:[#allocation119_spill] sm:$0xff]  ;;  %v6051_v22 = vadd.f32 %v15236_v20, %v5820_v7  ;;  %v15237_v23 = vld [vmem:[#allocation121_spill] sm:$0xff]  ;;  %v15238_v40 = vld [vmem:[#allocation120_spill] sm:$0xff]  ;;  %v13495_v62 = vpop.f32.mrf.mxu1 }
 0x4f8   :  { %v6410_v53 = vadd.f32 %v15235_v16, %v6227_v46  ;;  %8022 = vst [vmem:[%s14014_s3 + $0x50] sm:$0xff] %v7984_v27  ;;  %v6765_v30 = vadd.f32 %v13242_v60, %v6602_v33  ;;  %v6412_v29 = vadd.f32 %v15237_v23, %v6229_v39  ;;  %v15239_v38 = vld [vmem:[#allocation27_spill] sm:$0xff]  ;;  %v15240_v49 = vld [vmem:[#allocation69_spill] sm:$0xff]  ;;  %v15241_v60 = vld [vmem:[#allocation122_spill] sm:$0xff] }
 0x4f9   :  { %v6235_v56 = vadd.f32 %v15238_v40, %v6049_v6  ;;  %v5840_v10 = vadd.f32 %v15239_v38, %v13474_v34  ;;  %6987 = vmatmul.mubr.f32.gmra.mxu0 %v15240_v49  ;;  %8023 = vst [vmem:[%s14014_s3 + $0x58] sm:$0xff] %v7985_v21  ;;  %v6767_v5 = vadd.f32 %v13271_v35, %v6604_v59  ;;  %v15242_v27 = vld [vmem:[#allocation14_spill] sm:$0xff]  ;;  %v15243_v39 = vld [vmem:[#allocation45_spill] sm:$0xff]  ;;  %v15244_v20 = vld [vmem:[#allocation123_spill] sm:$0xff]  ;;  %v13511_v38 = vpop.permute.xlu0 %5591 }
 0x4fa   :  { %v6609_v7 = vadd.f32 %v13285_v14, %v6410_v53  ;;  %v6237_v46 = vadd.f32 %v15241_v60, %v6051_v22  ;;  %v5842_v33 = vadd.f32 %v15242_v27, %v13474_v34  ;;  %7200 = vmatmul.mubr.f32.gmra.mxu1 %v15243_v39  ;;  %6992 = vmatprep.mubr.f32.mxu0 %v15142_v58  ;;  %v7988_v6 = vmax.f32 %v6765_v30, 0.0  ;;  %v15245_v40 = vld [vmem:[#allocation21_spill] sm:$0xff]  ;;  %v6631_v14 = vpop.f32.mrf.mxu0  ;;  %v15246_v53 = vld [vmem:[#allocation124_spill] sm:$0xff]  ;;  %v15247_v49 = vld [vmem:[#allocation67_spill] sm:$0xff] }
 0x4fb   :  { %v6611_v16 = vadd.f32 %v13313_v24, %v6412_v29  ;;  %v6419_v23 = vadd.f32 %v15244_v20, %v6235_v56  ;;  %v6063_v21 = vadd.f32 %v15245_v40, %v5840_v10  ;;  %7205 = vmatprep.mubr.f32.mxu1 %v15142_v58  ;;  %v7989_v35 = vmax.f32 %v6767_v5, 0.0  ;;  %v15248_v29 = vld [vmem:[#allocation19_spill] sm:$0xff]  ;;  %v15249_v10 = vld [vmem:[#allocation29_spill] sm:$0xff]  ;;  %v6794_v20 = vpop.f32.mrf.mxu1  ;;  %v15250_v5 = vld [vmem:[#allocation52_spill] sm:$0xff] }
 0x4fc   :  { %v6772_v59 = vadd.f32 %v13301_v63, %v6609_v7  ;;  %v6421_v22 = vadd.f32 %v15246_v53, %v6237_v46  ;;  %v6065_v60 = vadd.f32 %v15247_v49, %v5842_v33  ;;  %8024 = vst [vmem:[%s14014_s3 + $0x60] sm:$0xff] %v7988_v6  ;;  %v6056_v56 = vadd.f32 %v15248_v29, %v5829_v36  ;;  %v15251_v46 = vld [vmem:[#allocation100_spill] sm:$0xff]  ;;  %v15255_v40 = vld [vmem:[#allocation127_spill] sm:$0xff] }
 0x4fd   :  { %v6616_v24 = vadd.f32 %v13348_v26, %v6419_v23  ;;  %v6774_v30 = vadd.f32 %v13330_v43, %v6611_v16  ;;  %v6058_v27 = vadd.f32 %v15249_v10, %v5831_v61  ;;  %6998 = vmatmul.mubr.f32.gmra.mxu0 %v15250_v5  ;;  %8025 = vst [vmem:[%s14014_s3 + $0x68] sm:$0xff] %v7989_v35  ;;  %v15252_v26 = vld [vmem:[#allocation38_spill] sm:$0xff]  ;;  %v15253_v6 = vld [vmem:[#allocation28_spill] sm:$0xff]  ;;  %v15254_v16 = vld [vmem:[#allocation125_spill] sm:$0xff] }
 0x4fe   :  { %v7992_v63 = vmax.f32 %v6772_v59, 0.0  ;;  %v6618_v7 = vadd.f32 %v13383_v54, %v6421_v22  ;;  %v5851_v33 = vadd.f32 %v15251_v46, %v13511_v38  ;;  %v5853_v43 = vadd.f32 %v15252_v26, %v13511_v38  ;;  %7207 = vmatmul.mubr.f32.gmra.mxu1 %v15253_v6  ;;  %7003 = vmatprep.mubr.f32.mxu0 %v15142_v58  ;;  %v6636_v59 = vpop.f32.mrf.mxu0  ;;  %v15256_v53 = vld [vmem:[#allocation43_spill] sm:$0xff]  ;;  %v15261_v46 = vld [vmem:[#allocation132_spill] sm:$0xff] }
 0x4ff   :  { %v7993_v36 = vmax.f32 %v6774_v30, 0.0  ;;  %v6779_v61 = vadd.f32 %v13369_v50, %v6616_v24  ;;  %v6243_v23 = vadd.f32 %v15254_v16, %v6056_v56  ;;  %v6245_v35 = vadd.f32 %v15255_v40, %v6058_v27  ;;  %7212 = vmatprep.mubr.f32.mxu1 %v15142_v58  ;;  %v15257_v49 = vld [vmem:[#allocation55_spill] sm:$0xff]  ;;  %v15258_v30 = vld [vmem:[#allocation130_spill] sm:$0xff]  ;;  %v15260_v27 = vld [vmem:[#allocation129_spill] sm:$0xff] }
 0x500   :  { %8026 = vst [vmem:[%s14014_s3 + $0x70] sm:$0xff] %v7992_v63  ;;  %v6781_v54 = vadd.f32 %v13402_v18, %v6618_v7  ;;  %v6070_v22 = vadd.f32 %v15256_v53, %v5851_v33  ;;  %v6072_v29 = vadd.f32 %v15257_v49, %v5853_v43  ;;  %v6251_v10 = vadd.f32 %v15258_v30, %v6063_v21  ;;  %v15259_v24 = vld [vmem:[#allocation126_spill] sm:$0xff]  ;;  %v6799_v63 = vpop.f32.mrf.mxu1  ;;  %v15263_v7 = vld [vmem:[#allocation131_spill] sm:$0xff]  ;;  %v15265_v21 = vld [vmem:[#allocation137_spill] sm:$0xff] }
 0x501   :  { %8027 = vst [vmem:[%s14014_s3 + $0x78] sm:$0xff] %v7993_v36  ;;  %v7996_v50 = vmax.f32 %v6779_v61, 0.0  ;;  %v6428_v56 = vadd.f32 %v15259_v24, %v6243_v23  ;;  %v6430_v5 = vadd.f32 %v15260_v27, %v6245_v35  ;;  %v6253_v26 = vadd.f32 %v15261_v46, %v6065_v60  ;;  %v15262_v16 = vld [vmem:[#allocation34_spill] sm:$0xff]  ;;  %v15264_v43 = vld [vmem:[#allocation135_spill] sm:$0xff]  ;;  %v6638_v35 = vpop.f32.mrf.mxu0 }
 0x502   :  { %7009 = vmatmul.mubr.f32.gmra.mxu0 %v15262_v16  ;;  %v7997_v18 = vmax.f32 %v6781_v54, 0.0  ;;  %v6437_v33 = vadd.f32 %v15263_v7, %v6251_v10  ;;  %v6259_v40 = vadd.f32 %v15264_v43, %v6070_v22  ;;  %v6261_v53 = vadd.f32 %v15265_v21, %v6072_v29  ;;  %v15266_v49 = vld [vmem:[#allocation26_spill] sm:$0xff]  ;;  %v15268_v22 = vld [vmem:[#allocation136_spill] sm:$0xff]  ;;  %v6801_v24 = vpop.f32.mrf.mxu1 }
 0x503   :  { %7214 = vmatmul.mubr.f32.gmra.mxu1 %v15266_v49  ;;  %7326 = vmatprep.mubr.f32.mxu0 %v15142_v58  ;;  %8028 = vst [vmem:[%s14014_s3 + $0x80] sm:$0xff] %v7996_v50  ;;  %v6623_v60 = vadd.f32 %v13417_v13, %v6428_v56  ;;  %v6625_v36 = vadd.f32 %v13449_v31, %v6430_v5  ;;  %v15267_v61 = vld [vmem:[#allocation134_spill] sm:$0xff]  ;;  %v15278_v43 = vand.u32 4294901760, %v12938_v37  ;;  %v15280_v37 = vand.u32 4294901760, %v13028_v12  ;;  %v15283_v21 = vld [vmem:[#allocation92_spill] sm:$0xff]  ;;  %v15287_v12 = vld [vmem:[#allocation151_spill] sm:$0xff] }
 0x504   :  { %v6439_v23 = vadd.f32 %v15267_v61, %v6253_v26  ;;  %7219 = vmatprep.mubr.f32.mxu1 %v15142_v58  ;;  %8029 = vst [vmem:[%s14014_s3 + $0x88] sm:$0xff] %v7997_v18  ;;  %v6630_v54 = vadd.f32 %v13481_v57, %v6437_v33  ;;  %v6446_v29 = vadd.f32 %v15268_v22, %v6259_v40  ;;  %v15269_v30 = vld [vmem:[#allocation138_spill] sm:$0xff]  ;;  %v15271_v26 = vld [vmem:[#allocation11_spill] sm:$0xff]  ;;  %v15272_v57 = vand.u32 4294901760, %v12583_v42 }
 0x505   :  { %v6448_v10 = vadd.f32 %v15269_v30, %v6261_v53  ;;  %v6786_v50 = vadd.f32 %v13427_v11, %v6623_v60  ;;  %v6788_v13 = vadd.f32 %v13463_v17, %v6625_v36  ;;  %v15270_v56 = vld [vmem:[#allocation106_spill] sm:$0xff]  ;;  %v15273_v11 = vand.u32 4294901760, %v12750_v19  ;;  %v15286_v36 = vld [vmem:[#allocation85_spill] sm:$0xff]  ;;  %v15296_v22 = vld [vmem:[#allocation111_spill] sm:$0xff] }
 0x506   :  { %v6632_v31 = vadd.f32 %v6631_v14, %v6439_v23  ;;  %7329 = vmatmul.mubr.f32.vlgmr.msra.gmra.mxu0 %v15270_v56  ;;  %v6793_v27 = vadd.f32 %v13495_v62, %v6630_v54  ;;  %v6637_v5 = vadd.f32 %v6636_v59, %v6446_v29  ;;  %v15274_v62 = vand.u32 4294901760, %v12806_v44  ;;  %v15289_v23 = vld [vmem:[#allocation102_spill] sm:$0xff]  ;;  %v15297_v29 = vld [vmem:[#allocation133_spill] sm:$0xff] }
 0x507   :  { %v6639_v46 = vadd.f32 %v6638_v35, %v6448_v10  ;;  %7221 = vmatmul.mubr.f32.gmra.mxu1 %v15271_v26  ;;  %7635 = vmatpush1.msra.mxu0 %v15272_v57  ;;  %v8000_v16 = vmax.f32 %v6786_v50, 0.0  ;;  %v8001_v18 = vmax.f32 %v6788_v13, 0.0  ;;  %v15275_v19 = vand.u32 4294901760, %v12899_v48  ;;  %v15298_v30 = vld [vmem:[#allocation61_spill] sm:$0xff]  ;;  %v15300_v10 = vld [vmem:[#allocation146_spill] sm:$0xff]  ;;  %v15313_v57 = vld [vmem:[#allocation7_spill] sm:$0xff] }
 0x508   :  { %v6795_v7 = vadd.f32 %v6794_v20, %v6632_v31  ;;  %7639 = vmatprep.subr.mxu0 %v15273_v11  ;;  %7226 = vmatprep.mubr.f32.mxu1 %v15142_v58  ;;  %v8004_v17 = vmax.f32 %v6793_v27, 0.0  ;;  %v6800_v14 = vadd.f32 %v6799_v63, %v6637_v5  ;;  %v15276_v20 = vld [vmem:[#allocation91_spill] sm:$0xff]  ;;  %v15277_v63 = vld [vmem:[#allocation5_spill] sm:$0xff]  ;;  %v15279_v48 = vand.u32 4294901760, %v12998_v15  ;;  %v15282_v15 = vld [vmem:[#allocation90_spill] sm:$0xff] }
 0x509   :  { %v6802_v33 = vadd.f32 %v6801_v24, %v6639_v46  ;;  %7643 = vmatpush1.msra.mxu0 %v15274_v62  ;;  %7334 = vmatprep.mubr.f32.mxu0 %v15142_v58  ;;  %8030 = vst [vmem:[%s14014_s3 + $0x90] sm:$0xff] %v8000_v16  ;;  %8031 = vst [vmem:[%s14014_s3 + $0x98] sm:$0xff] %v8001_v18  ;;  %v15281_v40 = vand.u32 4294901760, %v13086_v4  ;;  %v15284_v53 = vand.u32 4294901760, %v13092_v47  ;;  %v15285_v60 = vand.u32 4294901760, %v13139_v0  ;;  %v15290_v4 = vld [vmem:[#allocation153_spill] sm:$0xff] }
 0x50a   :  { %v8005_v42 = vmax.f32 %v6795_v7, 0.0  ;;  %7647 = vmatprep.subr.mxu0 %v15275_v19  ;;  %7337 = vmatmul.mubr.f32.gmra.mxu0 %v15276_v20  ;;  %8032 = vst [vmem:[%s14014_s3 + $0xa0] sm:$0xff] %v8004_v17  ;;  %v8008_v44 = vmax.f32 %v6800_v14, 0.0  ;;  %v15288_v61 = vand.u32 4294901760, %v15287_v12  ;;  %v15291_v35 = vand.u32 4294901760, %v15290_v4  ;;  %v15293_v47 = vld [vmem:[#allocation87_spill] sm:$0xff] }
 0x50b   :  { %v8009_v59 = vmax.f32 %v6802_v33, 0.0  ;;  %7228 = vmatmul.mubr.f32.gmra.mxu1 %v15277_v63  ;;  %7651 = vmatpush1.msra.mxu0 %v15278_v43  ;;  %v15294_v0 = vld [vmem:[#allocation152_spill] sm:$0xff]  ;;  %v15301_v50 = vld [vmem:[#allocation105_spill] sm:$0xff]  ;;  %v15302_v13 = vld [vmem:[#allocation150_spill] sm:$0xff] }
 0x50c   :  { %8033 = vst [vmem:[%s14014_s3 + $0xa8] sm:$0xff] %v8005_v42  ;;  %7655 = vmatprep.subr.mxu0 %v15279_v48  ;;  %7342 = vmatprep.mubr.f32.mxu0 %v15142_v58  ;;  %8034 = vst [vmem:[%s14014_s3 + $0xb0] sm:$0x3] %v8008_v44  ;;  %v15295_v54 = vand.u32 4294901760, %v15294_v0  ;;  %v15304_v31 = vld [vmem:[#allocation65_spill] sm:$0xff]  ;;  %v15306_v24 = vld [vmem:[#allocation60_spill] sm:$0xff] }
 0x50d   :  { %8035 = vst [vmem:[%s14014_s3 + $0xb8] sm:$0x3] %v8009_v59  ;;  %7659 = vmatpush1.msra.mxu0 %v15280_v37  ;;  %7501 = vmatprep.mubr.f32.mxu1 %v15142_v58  ;;  %v15307_v56 = vld [vmem:[#allocation42_spill] sm:$0xff]  ;;  %v15312_v46 = vld [vmem:[#allocation17_spill] sm:$0xff]  ;;  %v15314_v16 = vld [vmem:[#allocation15_spill] sm:$0xff] }
 0x50e   :  { %7663 = vmatprep.subr.mxu0 %v15281_v40  ;;  %7345 = vmatmul.mubr.f32.gmra.mxu0 %v15282_v15  ;;  %v15308_v27 = vld [vmem:[#allocation46_spill] sm:$0xff]  ;;  %v15315_v18 = vld [vmem:[#allocation89_spill] sm:$0xff]  ;;  %v15316_v7 = vld [vmem:[#allocation4_spill] sm:$0xff] }
 0x50f   :  { %7505 = vmatmul.mubr.f32.vlgmr.msra.gmra.mxu1 %v15283_v21  ;;  %7667 = vmatpush1.msra.mxu0 %v15284_v53  ;;  %v15311_v5 = vld [vmem:[#allocation2_spill] sm:$0xff]  ;;  %v15317_v11 = vld [vmem:[#allocation104_spill] sm:$0xff]  ;;  %v15319_v14 = vld [vmem:[#allocation103_spill] sm:$0xff] }
 0x510   :  { %7822 = vmatpush1.msra.mxu1 %v12558_v25  ;;  %7671 = vmatprep.subr.mxu0 %v15285_v60  ;;  %v15292_v25 = vld [vmem:[#allocation73_spill] sm:$0xff]  ;;  %v15318_v17 = vld [vmem:[#allocation88_spill] sm:$0xff]  ;;  %v15320_v33 = vld [vmem:[#allocation51_spill] sm:$0xff] }
 0x511   :  { %7824 = vmatprep.subr.mxu1 %v15286_v36  ;;  %7675 = vmatpush1.msra.mxu0 %v15288_v61  ;;  %v15321_v62 = vld [vmem:[#allocation99_spill] sm:$0xff]  ;;  %v15325_v4 = vld [vmem:[#allocation53_spill] sm:$0xff] }
 0x512   :  { %7826 = vmatpush1.msra.mxu1 %v15289_v23  ;;  %7350 = vmatprep.mubr.f32.mxu0 %v15142_v58  ;;  %v15323_v43 = vld [vmem:[#allocation79_spill] sm:$0xff] }
 0x513   :  { %7510 = vmatprep.mubr.f32.mxu1 %v15142_v58  ;;  %7679 = vmatprep.subr.mxu0 %v15291_v35  ;;  %v15324_v53 = vld [vmem:[#allocation63_spill] sm:$0xff] }
 0x514   :  { %7828 = vmatprep.subr.mxu1 %v15163_v52  ;;  %7353 = vmatmul.mubr.f32.gmra.mxu0 %v15292_v25  ;;  %v15299_v52 = vld [vmem:[#allocation74_spill] sm:$0xff] }
 0x515   :  { %7514 = vmatmul.mubr.f32.gmra.mxu1 %v15293_v47  ;;  %7683 = vmatpush1.msra.mxu0 %v15295_v54 }
 0x516   :  { %7830 = vmatpush1.msra.mxu1 %v15296_v22  ;;  %7358 = vmatprep.mubr.f32.mxu0 %v15142_v58 }
 0x517   :  { %7832 = vmatprep.subr.mxu1 %v15171_v51  ;;  %7519 = vmatprep.mubr.f32.mxu1 %v15142_v58  ;;  %v15303_v51 = vld [vmem:[#allocation56_spill] sm:$0xff] }
 0x518   :  { %7834 = vmatpush1.msra.mxu1 %v15297_v29  ;;  %7361 = vmatmul.mubr.f32.gmra.mxu0 %v15298_v30 }
 0x519   :  { %7836 = vmatprep.subr.mxu1 %v15185_v1  ;;  %7523 = vmatmul.mubr.f32.gmra.mxu1 %v15299_v52  ;;  %v15305_v1 = vld [vmem:[#allocation44_spill] sm:$0xff]  ;;  %v15326_v52 = vld [vmem:[#allocation77_spill] sm:$0xff] }
 0x51a   :  { %7838 = vmatpush1.msra.mxu1 %v15300_v10  ;;  %7366 = vmatprep.mubr.f32.mxu0 %v15142_v58 }
 0x51b   :  { %7840 = vmatprep.subr.mxu1 %v15301_v50  ;;  %7528 = vmatprep.mubr.f32.mxu1 %v15142_v58 }
 0x51c   :  { %7842 = vmatpush1.msra.mxu1 %v15302_v13  ;;  %7369 = vmatmul.mubr.f32.gmra.mxu0 %v15303_v51 }
 0x51d   :  { %7844 = vmatprep.subr.mxu1 %v13200_v55  ;;  %7532 = vmatmul.mubr.f32.gmra.mxu1 %v15304_v31  ;;  %v15310_v55 = vld [vmem:[#allocation23_spill] sm:$0xff] }
 0x51e   :  { %7846 = vmatpush1.msra.mxu1 %v13191_v3  ;;  %7374 = vmatprep.mubr.f32.mxu0 %v15142_v58  ;;  %v15309_v3 = vld [vmem:[#allocation3_spill] sm:$0xff] }
 0x51f   :  { %7537 = vmatprep.mubr.f32.mxu1 %v15142_v58 }
 0x520   :  { %7377 = vmatmul.mubr.f32.gmra.mxu0 %v15305_v1 }
 0x521   :  { %7541 = vmatmul.mubr.f32.gmra.mxu1 %v15306_v24  ;;  %7382 = vmatprep.mubr.f32.mxu0 %v15142_v58 }
 0x522   :  { %7546 = vmatprep.mubr.f32.mxu1 %v15142_v58 }
 0x524   :  { %7385 = vmatmul.mubr.f32.gmra.mxu0 %v15307_v56 }
 0x525   :  { %7550 = vmatmul.mubr.f32.gmra.mxu1 %v15308_v27  ;;  %7390 = vmatprep.mubr.f32.mxu0 %v15142_v58  ;;  %v15327_v27 = vld [vmem:[#allocation66_spill] sm:$0xff] }
 0x526   :  { %7555 = vmatprep.mubr.f32.mxu1 %v15142_v58 }
 0x528   :  { %7393 = vmatmul.mubr.f32.gmra.mxu0 %v15309_v3 }
 0x529   :  { %7559 = vmatmul.mubr.f32.gmra.mxu1 %v15310_v55  ;;  %7398 = vmatprep.mubr.f32.mxu0 %v15142_v58 }
 0x52a   :  { %7564 = vmatprep.mubr.f32.mxu1 %v15142_v58 }
 0x52c   :  { %7401 = vmatmul.mubr.f32.gmra.mxu0 %v15311_v5 }
 0x52d   :  { %7568 = vmatmul.mubr.f32.gmra.mxu1 %v15312_v46  ;;  %7406 = vmatprep.mubr.f32.mxu0 %v15142_v58 }
 0x52e   :  { %7573 = vmatprep.mubr.f32.mxu1 %v15142_v58 }
 0x530   :  { %7409 = vmatmul.mubr.f32.gmra.mxu0 %v15313_v57 }
 0x531   :  { %7577 = vmatmul.mubr.f32.gmra.mxu1 %v15314_v16  ;;  %7414 = vmatprep.mubr.f32.mxu0 %v15142_v58 }
 0x532   :  { %7582 = vmatprep.mubr.f32.mxu1 %v15142_v58 }
 0x534   :  { %7417 = vmatmul.mubr.f32.gmra.mxu0 %v15315_v18 }
 0x535   :  { %7586 = vmatmul.mubr.f32.gmra.mxu1 %v15316_v7  ;;  %7716 = vmatprep.mubr.f32.mxu0 %v15142_v58 }
 0x536   :  { %7591 = vmatprep.mubr.f32.mxu1 %v15142_v58 }
 0x538   :  { %7718 = vmatmul.mubr.f32.vlgmr.msra.gmra.mxu0 %v15317_v11 }
 0x539   :  { %7595 = vmatmul.mubr.f32.gmra.mxu1 %v15318_v17  ;;  %7723 = vmatprep.mubr.f32.mxu0 %v15142_v58 }
 0x53a   :  { %7600 = vmatprep.mubr.f32.mxu1 %v15142_v58 }
 0x53c   :  { %7725 = vmatmul.mubr.f32.gmra.mxu0 %v15319_v14 }
 0x53d   :  { %7604 = vmatmul.mubr.f32.gmra.mxu1 %v15320_v33  ;;  %7730 = vmatprep.mubr.f32.mxu0 %v15142_v58 }
 0x53e   :  { %7879 = vmatprep.mubr.f32.mxu1 %v15142_v58 }
 0x540   :  { %7732 = vmatmul.mubr.f32.gmra.mxu0 %v15321_v62 }
 0x541   :  { %7881 = vmatmul.mubr.f32.vlgmr.msra.gmra.mxu1 %v15317_v11  ;;  %7737 = vmatprep.mubr.f32.mxu0 %v15142_v58  ;;  %v15328_v11 = vld [vmem:[#allocation97_spill] sm:$0xff] }
 0x542   :  { %7886 = vmatprep.mubr.f32.mxu1 %v15142_v58 }
 0x544   :  { %7739 = vmatmul.mubr.f32.gmra.mxu0 %v15198_v9 }
 0x545   :  { %7888 = vmatmul.mubr.f32.gmra.mxu1 %v15319_v14  ;;  %7744 = vmatprep.mubr.f32.mxu0 %v15142_v58 }
 0x546   :  { %7893 = vmatprep.mubr.f32.mxu1 %v15142_v58 }
 0x548   :  { %7746 = vmatmul.mubr.f32.gmra.mxu0 %v15210_v41 }
 0x549   :  { %7895 = vmatmul.mubr.f32.gmra.mxu1 %v15321_v62  ;;  %7751 = vmatprep.mubr.f32.mxu0 %v15142_v58 }
 0x54a   :  { %7900 = vmatprep.mubr.f32.mxu1 %v15142_v58 }
 0x54c   :  { %7753 = vmatmul.mubr.f32.gmra.mxu0 %v15220_v28 }
 0x54d   :  { %7902 = vmatmul.mubr.f32.gmra.mxu1 %v15198_v9  ;;  %7758 = vmatprep.mubr.f32.mxu0 %v15142_v58 }
 0x54e   :  { %7907 = vmatprep.mubr.f32.mxu1 %v15142_v58 }
 0x550   :  { %7760 = vmatmul.mubr.f32.gmra.mxu0 %v15232_v45 }
 0x551   :  { %7909 = vmatmul.mubr.f32.gmra.mxu1 %v15210_v41  ;;  %7765 = vmatprep.mubr.f32.mxu0 %v15142_v58 }
 0x552   :  { %7914 = vmatprep.mubr.f32.mxu1 %v15142_v58 }
 0x554   :  { %7767 = vmatmul.mubr.f32.gmra.mxu0 %v15243_v39 }
 0x555   :  { %7916 = vmatmul.mubr.f32.gmra.mxu1 %v15220_v28  ;;  %7772 = vmatprep.mubr.f32.mxu0 %v15142_v58 }
 0x556   :  { %7921 = vmatprep.mubr.f32.mxu1 %v15142_v58 }
 0x558   :  { %7774 = vmatmul.mubr.f32.gmra.mxu0 %v15253_v6 }
 0x559   :  { %7923 = vmatmul.mubr.f32.gmra.mxu1 %v15232_v45  ;;  %7779 = vmatprep.mubr.f32.mxu0 %v15142_v58  ;;  %v15322_v45 = vld [vmem:[#allocation72_spill] sm:$0xff] }
 0x55a   :  { %7928 = vmatprep.mubr.f32.mxu1 %v15142_v58 }
 0x55c   :  { %7781 = vmatmul.mubr.f32.gmra.mxu0 %v15266_v49 }
 0x55d   :  { %7930 = vmatmul.mubr.f32.gmra.mxu1 %v15243_v39  ;;  %7786 = vmatprep.mubr.f32.mxu0 %v15142_v58 }
 0x55e   :  { %7935 = vmatprep.mubr.f32.mxu1 %v15142_v58 }
 0x560   :  { %7788 = vmatmul.mubr.f32.gmra.mxu0 %v15271_v26 }
 0x561   :  { %7937 = vmatmul.mubr.f32.gmra.mxu1 %v15253_v6  ;;  %7793 = vmatprep.mubr.f32.mxu0 %v15142_v58 }
 0x562   :  { %7942 = vmatprep.mubr.f32.mxu1 %v15142_v58 }
 0x564   :  { %7795 = vmatmul.mubr.f32.gmra.mxu0 %v15277_v63 }
 0x565   :  { %7944 = vmatmul.mubr.f32.gmra.mxu1 %v15266_v49 }
 0x566   :  { %7949 = vmatprep.mubr.f32.mxu1 %v15142_v58 }
 0x569   :  { %7951 = vmatmul.mubr.f32.gmra.mxu1 %v15271_v26 }
 0x56a   :  { %7956 = vmatprep.mubr.f32.mxu1 %v15142_v58 }
 0x56d   :  { %7958 = vmatmul.mubr.f32.gmra.mxu1 %v15277_v63 }
 0x58d   :  { %v6889_v41 = vpop.f32.mrf.mxu0 }
 0x58e   :  { %v6890_v39 = vadd.f32 %v6889_v41, %v15322_v45 }
 0x58f   :  { %v6891_v9 = vpop.f32.mrf.mxu0 }
 0x590   :  { %v6892_v20 = vadd.f32 %v6891_v9, %v15322_v45 }
 0x591   :  { %v6900_v28 = vpop.f32.mrf.mxu0 }
 0x592   :  { %v6901_v26 = vadd.f32 %v6900_v28, %v15323_v43 }
 0x593   :  { %v6902_v6 = vpop.f32.mrf.mxu0 }
 0x594   :  { %v6903_v37 = vadd.f32 %v6902_v6, %v15323_v43 }
 0x595   :  { %v6911_v42 = vpop.f32.mrf.mxu0  ;;  %v7152_v19 = vpop.f32.mrf.mxu1 }
 0x596   :  { %v13731_v44 = vadd.f32 %v7152_v19, %v6890_v39  ;;  %v6912_v60 = vadd.f32 %v6911_v42, %v15324_v53 }
 0x597   :  { %v6913_v49 = vpop.f32.mrf.mxu0  ;;  %v7154_v59 = vpop.f32.mrf.mxu1 }
 0x598   :  { %v13734_v48 = vadd.f32 %v7154_v59, %v6892_v20  ;;  %v6914_v23 = vadd.f32 %v6913_v49, %v15324_v53 }
 0x59b   :  { %v6922_v58 = vpop.f32.mrf.mxu0  ;;  %v7159_v63 = vpop.f32.mrf.mxu1 }
 0x59c   :  { %v13737_v40 = vadd.f32 %v7159_v63, %v6901_v26  ;;  %v6923_v35 = vadd.f32 %v6922_v58, %v15325_v4 }
 0x59d   :  { %v6924_v15 = vpop.f32.mrf.mxu0  ;;  %v7161_v21 = vpop.f32.mrf.mxu1 }
 0x59e   :  { %v13740_v36 = vadd.f32 %v7161_v21, %v6903_v37  ;;  %v6925_v30 = vadd.f32 %v6924_v15, %v15325_v4 }
 0x5a1   :  { %v7166_v61 = vpop.f32.mrf.mxu1 }
 0x5a2   :  { %v13744_v25 = vadd.f32 %v7166_v61, %v6912_v60 }
 0x5a3   :  { %v6933_v12 = vpop.f32.mrf.mxu0  ;;  %v7168_v0 = vpop.f32.mrf.mxu1 }
 0x5a4   :  { %v13746_v54 = vadd.f32 %v7168_v0, %v6914_v23  ;;  %v6934_v10 = vadd.f32 %v6933_v12, %v15326_v52 }
 0x5a5   :  { %v6935_v47 = vpop.f32.mrf.mxu0 }
 0x5a6   :  { %v6936_v56 = vadd.f32 %v6935_v47, %v15326_v52 }
 0x5a8   :  { %v6944_v22 = vpop.f32.mrf.mxu0  ;;  %v7173_v29 = vpop.f32.mrf.mxu1 }
 0x5a9   :  { %v13750_v50 = vadd.f32 %v7173_v29, %v6923_v35  ;;  %v6945_v3 = vadd.f32 %v6944_v22, %v15327_v27 }
 0x5aa   :  { %v6946_v13 = vpop.f32.mrf.mxu0  ;;  %v7175_v51 = vpop.f32.mrf.mxu1 }
 0x5ab   :  { %v13752_v31 = vadd.f32 %v7175_v51, %v6925_v30  ;;  %v6947_v7 = vadd.f32 %v6946_v13, %v15327_v27 }
 0x5ac   :  { %v6955_v1 = vpop.f32.mrf.mxu0 }
 0x5ad   :  { %v7180_v24 = vpop.f32.mrf.mxu1  ;;  %v6956_v17 = vadd.f32 %v6955_v1, %v15328_v11 }
 0x5ae   :  { %v13756_v55 = vadd.f32 %v7180_v24, %v6934_v10  ;;  %v6957_v5 = vpop.f32.mrf.mxu0 }
 0x5af   :  { %v7182_v46 = vpop.f32.mrf.mxu1  ;;  %v6958_v45 = vadd.f32 %v6957_v5, %v15328_v11 }
 0x5b0   :  { %v13758_v57 = vadd.f32 %v7182_v46, %v6936_v56  ;;  %v6966_v16 = vpop.f32.mrf.mxu0 }
 0x5b1   :  { %v7187_v18 = vpop.f32.mrf.mxu1  ;;  %v6967_v39 = vadd.f32 %v6966_v16, %v13381_v2 }
 0x5b2   :  { %v13762_v14 = vadd.f32 %v7187_v18, %v6945_v3  ;;  %v6968_v33 = vpop.f32.mrf.mxu0 }
 0x5b3   :  { %v7189_v62 = vpop.f32.mrf.mxu1  ;;  %v6969_v43 = vadd.f32 %v6968_v33, %v13381_v2 }
 0x5b4   :  { %v13764_v41 = vadd.f32 %v7189_v62, %v6947_v7  ;;  %v6977_v9 = vpop.f32.mrf.mxu0 }
 0x5b5   :  { %v6978_v26 = vadd.f32 %v6977_v9, %v13415_v8 }
 0x5b6   :  { %v7194_v28 = vpop.f32.mrf.mxu1  ;;  %v6979_v42 = vpop.f32.mrf.mxu0 }
 0x5b7   :  { %v13768_v6 = vadd.f32 %v7194_v28, %v6956_v17  ;;  %v6980_v60 = vadd.f32 %v6979_v42, %v13415_v8 }
 0x5b8   :  { %v7196_v19 = vpop.f32.mrf.mxu1 }
 0x5b9   :  { %v13770_v20 = vadd.f32 %v7196_v19, %v6958_v45  ;;  %v6988_v49 = vpop.f32.mrf.mxu0 }
 0x5ba   :  { %v7201_v59 = vpop.f32.mrf.mxu1  ;;  %v6989_v12 = vadd.f32 %v6988_v49, %v13438_v32 }
 0x5bb   :  { %v13774_v58 = vadd.f32 %v7201_v59, %v6967_v39  ;;  %v6990_v63 = vpop.f32.mrf.mxu0 }
 0x5bc   :  { %v7203_v37 = vpop.f32.mrf.mxu1  ;;  %v6991_v0 = vadd.f32 %v6990_v63, %v13438_v32 }
 0x5bd   :  { %v13776_v15 = vadd.f32 %v7203_v37, %v6969_v43  ;;  %v6999_v21 = vpop.f32.mrf.mxu0 }
 0x5be   :  { %v7208_v53 = vpop.f32.mrf.mxu1  ;;  %v7000_v22 = vadd.f32 %v6999_v21, %v13474_v34 }
 0x5bf   :  { %v13780_v61 = vadd.f32 %v7208_v53, %v6978_v26  ;;  %v7001_v23 = vpop.f32.mrf.mxu0 }
 0x5c0   :  { %v7210_v4 = vpop.f32.mrf.mxu1  ;;  %v7002_v51 = vadd.f32 %v7001_v23, %v13474_v34 }
 0x5c1   :  { %15329 = vst [vmem:[#allocation143_spill] sm:$0xff] %v13780_v61  ;;  %v13782_v35 = vadd.f32 %v7210_v4, %v6980_v60 }
 0x5c2   :  { %v7010_v2 = vpop.f32.mrf.mxu0 }
 0x5c3   :  { %15330 = vst [vmem:[#allocation84_spill] sm:$0xff] %v13782_v35  ;;  %v7215_v47 = vpop.f32.mrf.mxu1  ;;  %v7011_v1 = vadd.f32 %v7010_v2, %v13511_v38 }
 0x5c4   :  { %v13786_v29 = vadd.f32 %v7215_v47, %v6989_v12  ;;  %v7012_v30 = vpop.f32.mrf.mxu0 }
 0x5c5   :  { %v7217_v52 = vpop.f32.mrf.mxu1  ;;  %v7013_v46 = vadd.f32 %v7012_v30, %v13511_v38 }
 0x5c6   :  { %15331 = vst [vmem:[#allocation110_spill] sm:$0xff] %v13786_v29  ;;  %v13788_v10 = vadd.f32 %v7217_v52, %v6991_v0  ;;  %v7330_v8 = vpop.f32.mrf.mxu0 }
 0x5c7   :  { %v7222_v13 = vpop.f32.mrf.mxu1 }
 0x5c8   :  { %15332 = vst [vmem:[#allocation49_spill] sm:$0xff] %v13788_v10  ;;  %v13792_v24 = vadd.f32 %v7222_v13, %v7000_v22  ;;  %v7332_v56 = vpop.f32.mrf.mxu0 }
 0x5c9   :  { %v7224_v27 = vpop.f32.mrf.mxu1 }
 0x5ca   :  { %15333 = vst [vmem:[#allocation62_spill] sm:$0xff] %v13792_v24  ;;  %v13794_v3 = vadd.f32 %v7224_v27, %v7002_v51  ;;  %v7338_v32 = vpop.f32.mrf.mxu0 }
 0x5cb   :  { %v7229_v5 = vpop.f32.mrf.mxu1 }
 0x5cc   :  { %15334 = vst [vmem:[#allocation98_spill] sm:$0xff] %v13794_v3  ;;  %v13797_v16 = vadd.f32 %v7229_v5, %v7011_v1  ;;  %v7340_v18 = vpop.f32.mrf.mxu0 }
 0x5cd   :  { %v7231_v7 = vpop.f32.mrf.mxu1 }
 0x5ce   :  { %15335 = vst [vmem:[#allocation108_spill] sm:$0xff] %v13797_v16  ;;  %v13799_v11 = vadd.f32 %v7231_v7, %v7013_v46  ;;  %v7346_v17 = vpop.f32.mrf.mxu0 }
 0x5cf   :  { %v7506_v34 = vpop.f32.mrf.mxu1 }
 0x5d0   :  { %15336 = vst [vmem:[#allocation144_spill] sm:$0xff] %v13799_v11  ;;  %v13801_v33 = vpop.f32.mrf.mxu0 }
 0x5d1   :  { %v7508_v62 = vpop.f32.mrf.mxu1 }
 0x5d4   :  { %v13803_v9 = vpop.f32.mrf.mxu0 }
 0x5d5   :  { %v7515_v28 = vpop.f32.mrf.mxu1 }
 0x5d6   :  { %v13805_v45 = vpop.f32.mrf.mxu0 }
 0x5d7   :  { %v7517_v39 = vpop.f32.mrf.mxu1 }
 0x5d8   :  { %v13807_v42 = vpop.f32.mrf.mxu0 }
 0x5d9   :  { %v7524_v38 = vpop.f32.mrf.mxu1 }
 0x5da   :  { %v13809_v19 = vpop.f32.mrf.mxu0 }
 0x5db   :  { %v13811_v49 = vpop.f32.mrf.mxu1 }
 0x5dc   :  { %v13813_v59 = vpop.f32.mrf.mxu0 }
 0x5dd   :  { %v13815_v43 = vpop.f32.mrf.mxu1 }
 0x5de   :  { %v13817_v26 = vpop.f32.mrf.mxu0 }
 0x5df   :  { %v13819_v63 = vpop.f32.mrf.mxu1 }
 0x5e0   :  { %v13821_v37 = vpop.f32.mrf.mxu0 }
 0x5e1   :  { %v13823_v21 = vpop.f32.mrf.mxu1 }
 0x5e2   :  { %v13825_v53 = vpop.f32.mrf.mxu0 }
 0x5e3   :  { %v13827_v60 = vpop.f32.mrf.mxu1 }
 0x5e4   :  { %v13829_v12 = vpop.f32.mrf.mxu0 }
 0x5e5   :  { %v13831_v23 = vpop.f32.mrf.mxu1 }
 0x5e6   :  { %v13833_v4 = vpop.f32.mrf.mxu0 }
 0x5e7   :  { %v13835_v2 = vpop.f32.mrf.mxu1 }
 0x5e8   :  { %v13837_v47 = vpop.f32.mrf.mxu0 }
 0x5e9   :  { %15337 = vst [vmem:[#allocation10_spill] sm:$0xff] %v13837_v47  ;;  %v13839_v0 = vpop.f32.mrf.mxu1  ;;  %v7341_v47 = vadd.f32 %v7340_v18, %v13740_v36 }
 0x5ea   :  { %v13841_v22 = vpop.f32.mrf.mxu0 }
 0x5eb   :  { %15338 = vst [vmem:[#allocation64_spill] sm:$0xff] %v13841_v22  ;;  %v13843_v30 = vpop.f32.mrf.mxu1 }
 0x5ec   :  { %v13845_v52 = vpop.f32.mrf.mxu0 }
 0x5ed   :  { %15339 = vst [vmem:[#allocation139_spill] sm:$0xff] %v13845_v52  ;;  %v13847_v13 = vpop.f32.mrf.mxu1 }
 0x5ee   :  { %15340 = vst [vmem:[#allocation141_spill] sm:$0xff] %v13847_v13  ;;  %v13849_v51 = vpop.f32.mrf.mxu0 }
 0x5ef   :  { %15341 = vst [vmem:[#allocation147_spill] sm:$0xff] %v13849_v51  ;;  %v13851_v1 = vpop.f32.mrf.mxu1 }
 0x5f0   :  { %15342 = vst [vmem:[#allocation128_spill] sm:$0xff] %v13851_v1  ;;  %v13853_v27 = vpop.f32.mrf.mxu0 }
 0x5f1   :  { %15343 = vst [vmem:[#allocation76_spill] sm:$0xff] %v13853_v27  ;;  %v13855_v5 = vpop.f32.mrf.mxu1  ;;  %v7331_v27 = vadd.f32 %v7330_v8, %v13731_v44 }
 0x5f2   :  { %15344 = vst [vmem:[#allocation80_spill] sm:$0xff] %v13855_v5  ;;  %v13857_v46 = vpop.f32.mrf.mxu0 }
 0x5f3   :  { %15345 = vst [vmem:[#allocation25_spill] sm:$0xff] %v13857_v46  ;;  %v13859_v7 = vpop.f32.mrf.mxu1 }
 0x5f4   :  { %15346 = vst [vmem:[#allocation140_spill] sm:$0xff] %v13859_v7  ;;  %v13861_v11 = vpop.f32.mrf.mxu0  ;;  %v7333_v7 = vadd.f32 %v7332_v56, %v13734_v48  ;;  %v7518_v48 = vadd.f32 %v7517_v39, %v7341_v47 }
 0x5f5   :  { %15347 = vst [vmem:[#allocation142_spill] sm:$0xff] %v13861_v11  ;;  %v13863_v16 = vpop.f32.mrf.mxu1  ;;  %v7507_v11 = vadd.f32 %v7506_v34, %v7331_v27 }
 0x5f6   :  { %15348 = vst [vmem:[#allocation33_spill] sm:$0xff] %v13863_v16  ;;  %v13865_v3 = vpop.f32.mrf.mxu0 }
 0x5f7   :  { %15349 = vst [vmem:[#allocation32_spill] sm:$0xff] %v13865_v3  ;;  %v13867_v24 = vpop.f32.mrf.mxu1  ;;  %v7339_v3 = vadd.f32 %v7338_v32, %v13737_v40  ;;  %v7349_v40 = vadd.f32 %v13801_v33, %v13746_v54  ;;  %v7357_v33 = vadd.f32 %v13805_v45, %v13752_v31 }
 0x5f8   :  { %15350 = vst [vmem:[#allocation148_spill] sm:$0xff] %v13867_v24  ;;  %v7719_v10 = vpop.f32.mrf.mxu0  ;;  %v7509_v24 = vadd.f32 %v7508_v62, %v7333_v7 }
 0x5f9   :  { %v13869_v51 = vpop.f32.mrf.mxu1  ;;  %v7720_v35 = vadd.f32 %v7719_v10, %v7507_v11 }
 0x5fa   :  { %15351 = vst [vmem:[#allocation93_spill] sm:$0xff] %v13869_v51  ;;  %v7721_v52 = vpop.f32.mrf.mxu0 }
 0x5fb   :  { %v13871_v29 = vpop.f32.mrf.mxu1  ;;  %v7722_v61 = vadd.f32 %v7721_v52, %v7509_v24 }
 0x5fc   :  { %15352 = vst [vmem:[#allocation145_spill] sm:$0xff] %v13871_v29  ;;  %v7726_v5 = vpop.f32.mrf.mxu0  ;;  %v7516_v29 = vadd.f32 %v7515_v28, %v7339_v3 }
 0x5fd   :  { %v13874_v46 = vpop.f32.mrf.mxu1 }
 0x5fe   :  { %15353 = vst [vmem:[#allocation54_spill] sm:$0xff] %v13874_v46  ;;  %v7728_v22 = vpop.f32.mrf.mxu0  ;;  %v7347_v46 = vadd.f32 %v7346_v17, %v13744_v25  ;;  %v7727_v56 = vadd.f32 %v7726_v5, %v7516_v29  ;;  %v7355_v25 = vadd.f32 %v13803_v9, %v13750_v50 }
 0x5ff   :  { %v13877_v16 = vpop.f32.mrf.mxu1  ;;  %v7729_v11 = vadd.f32 %v7728_v22, %v7518_v48  ;;  %v7536_v22 = vadd.f32 %v13819_v63, %v7357_v33  ;;  %v7371_v63 = vadd.f32 %v13813_v59, %v13762_v14 }
 0x600   :  { %15354 = vst [vmem:[#allocation40_spill] sm:$0xff] %v13877_v16  ;;  %v7733_v1 = vpop.f32.mrf.mxu0  ;;  %v7525_v32 = vadd.f32 %v7524_v38, %v7347_v46  ;;  %v7534_v28 = vadd.f32 %v13815_v43, %v7355_v25  ;;  %v7387_v25 = vadd.f32 %v13829_v12, %v13774_v58 }
 0x601   :  { %v7882_v51 = vpop.f32.mrf.mxu1 }
 0x602   :  { %v7883_v44 = vadd.f32 %v7882_v51, %v7720_v35  ;;  %v7735_v8 = vpop.f32.mrf.mxu0  ;;  %v7734_v3 = vadd.f32 %v7733_v1, %v7525_v32 }
 0x603   :  { %v7884_v13 = vpop.f32.mrf.mxu1 }
 0x604   :  { %v7966_v34 = vmax.f32 %v7883_v44, 0.0  ;;  %v7885_v27 = vadd.f32 %v7884_v13, %v7722_v61  ;;  %v7740_v16 = vpop.f32.mrf.mxu0  ;;  %v7527_v61 = vadd.f32 %v13811_v49, %v7349_v40  ;;  %v7363_v49 = vadd.f32 %v13807_v42, %v13756_v55 }
 0x605   :  { %v7889_v10 = vpop.f32.mrf.mxu1  ;;  %v7741_v52 = vadd.f32 %v7740_v16, %v7534_v28  ;;  %v7365_v13 = vadd.f32 %v13809_v19, %v13758_v57  ;;  %v15356_v28 = vld [vmem:[#allocation143_spill] sm:$0xff] }
 0x606   :  { %8068 = vst [vmem:[%s14014_s3 + $0xc0] sm:$0xff] %v7966_v34  ;;  %v7967_v36 = vmax.f32 %v7885_v27, 0.0  ;;  %v7890_v35 = vadd.f32 %v7889_v10, %v7727_v56  ;;  %v7742_v24 = vpop.f32.mrf.mxu0  ;;  %v7736_v39 = vadd.f32 %v7735_v8, %v7527_v61  ;;  %v7543_v1 = vadd.f32 %v13823_v21, %v7363_v49 }
 0x607   :  { %v7891_v29 = vpop.f32.mrf.mxu1  ;;  %v7743_v5 = vadd.f32 %v7742_v24, %v7536_v22  ;;  %v7545_v7 = vadd.f32 %v13827_v60, %v7365_v13  ;;  %v7373_v8 = vadd.f32 %v13817_v26, %v13764_v41  ;;  %v7552_v56 = vadd.f32 %v13831_v23, %v7371_v63  ;;  %v15361_v13 = vld [vmem:[#allocation80_spill] sm:$0xff]  ;;  %v15363_v63 = vld [vmem:[#allocation139_spill] sm:$0xff] }
 0x608   :  { %8069 = vst [vmem:[%s14014_s3 + $0xc8] sm:$0xff] %v7967_v36  ;;  %v7970_v54 = vmax.f32 %v7890_v35, 0.0  ;;  %v7892_v18 = vadd.f32 %v7891_v29, %v7729_v11  ;;  %v7747_v17 = vpop.f32.mrf.mxu0  ;;  %v7379_v27 = vadd.f32 %v13821_v37, %v13768_v6  ;;  %v7381_v11 = vadd.f32 %v13825_v53, %v13770_v20 }
 0x609   :  { %v7896_v62 = vpop.f32.mrf.mxu1  ;;  %v7748_v44 = vadd.f32 %v7747_v17, %v7543_v1  ;;  %v7554_v10 = vadd.f32 %v13835_v2, %v7373_v8  ;;  %v15355_v17 = vld [vmem:[#allocation141_spill] sm:$0xff] }
 0x60a   :  { %8070 = vst [vmem:[%s14014_s3 + $0xd0] sm:$0xff] %v7970_v54  ;;  %v7971_v50 = vmax.f32 %v7892_v18, 0.0  ;;  %v7897_v9 = vadd.f32 %v7896_v62, %v7734_v3  ;;  %v7749_v38 = vpop.f32.mrf.mxu0  ;;  %v7561_v35 = vadd.f32 %v13839_v0, %v7379_v27  ;;  %v7563_v61 = vadd.f32 %v13843_v30, %v7381_v11 }
 0x60b   :  { %v7898_v47 = vpop.f32.mrf.mxu1  ;;  %v7750_v34 = vadd.f32 %v7749_v38, %v7545_v7  ;;  %v7389_v54 = vadd.f32 %v13833_v4, %v13776_v15  ;;  %v7570_v33 = vadd.f32 %v15355_v17, %v7387_v25  ;;  %v15358_v38 = vld [vmem:[#allocation128_spill] sm:$0xff]  ;;  %v15371_v25 = vld [vmem:[#allocation98_spill] sm:$0xff] }
 0x60c   :  { %8071 = vst [vmem:[%s14014_s3 + $0xd8] sm:$0xff] %v7971_v50  ;;  %v7974_v31 = vmax.f32 %v7897_v9, 0.0  ;;  %v7899_v45 = vadd.f32 %v7898_v47, %v7736_v39  ;;  %v7754_v43 = vpop.f32.mrf.mxu0  ;;  %v15357_v39 = vld [vmem:[#allocation10_spill] sm:$0xff]  ;;  %v15374_v17 = vld [vmem:[#allocation108_spill] sm:$0xff] }
 0x60d   :  { %v7903_v51 = vpop.f32.mrf.mxu1  ;;  %v7755_v32 = vadd.f32 %v7754_v43, %v7552_v56  ;;  %v7395_v50 = vadd.f32 %v15357_v39, %v15356_v28  ;;  %v7572_v49 = vadd.f32 %v15358_v38, %v7389_v54  ;;  %v15365_v56 = vld [vmem:[#allocation49_spill] sm:$0xff]  ;;  %v15377_v38 = vld [vmem:[#allocation144_spill] sm:$0xff] }
 0x60e   :  { %8072 = vst [vmem:[%s14014_s3 + $0xe0] sm:$0xff] %v7974_v31  ;;  %v7975_v55 = vmax.f32 %v7899_v45, 0.0  ;;  %v7904_v16 = vadd.f32 %v7903_v51, %v7741_v52  ;;  %v7756_v42 = vpop.f32.mrf.mxu0  ;;  %v15359_v52 = vld [vmem:[#allocation84_spill] sm:$0xff] }
 0x60f   :  { %v7905_v46 = vpop.f32.mrf.mxu1  ;;  %v7757_v24 = vadd.f32 %v7756_v42, %v7554_v10  ;;  %v15360_v31 = vld [vmem:[#allocation64_spill] sm:$0xff]  ;;  %v7579_v51 = vadd.f32 %v15361_v13, %v7395_v50  ;;  %v15362_v42 = vld [vmem:[#allocation110_spill] sm:$0xff] }
 0x610   :  { %8073 = vst [vmem:[%s14014_s3 + $0xe8] sm:$0xff] %v7975_v55  ;;  %v7978_v57 = vmax.f32 %v7904_v16, 0.0  ;;  %v7906_v19 = vadd.f32 %v7905_v46, %v7743_v5  ;;  %v7761_v21 = vpop.f32.mrf.mxu0  ;;  %v7397_v45 = vadd.f32 %v15360_v31, %v15359_v52  ;;  %v7403_v46 = vadd.f32 %v15363_v63, %v15362_v42 }
 0x611   :  { %v7910_v48 = vpop.f32.mrf.mxu1  ;;  %v7762_v3 = vadd.f32 %v7761_v21, %v7561_v35  ;;  %v15370_v35 = vld [vmem:[#allocation148_spill] sm:$0xff] }
 0x612   :  { %8074 = vst [vmem:[%s14014_s3 + $0xf0] sm:$0xff] %v7978_v57  ;;  %v7979_v14 = vmax.f32 %v7906_v19, 0.0  ;;  %v7911_v59 = vadd.f32 %v7910_v48, %v7748_v44  ;;  %v7763_v60 = vpop.f32.mrf.mxu0  ;;  %v15364_v44 = vld [vmem:[#allocation140_spill] sm:$0xff] }
 0x613   :  { %v7912_v40 = vpop.f32.mrf.mxu1  ;;  %v7764_v62 = vadd.f32 %v7763_v60, %v7563_v61  ;;  %v7581_v57 = vadd.f32 %v15364_v44, %v7397_v45  ;;  %v15367_v60 = vld [vmem:[#allocation33_spill] sm:$0xff] }
 0x614   :  { %8075 = vst [vmem:[%s14014_s3 + $0xf8] sm:$0xff] %v7979_v14  ;;  %v7982_v41 = vmax.f32 %v7911_v59, 0.0  ;;  %v7913_v26 = vadd.f32 %v7912_v40, %v7750_v34  ;;  %v7768_v23 = vpop.f32.mrf.mxu0  ;;  %v15366_v34 = vld [vmem:[#allocation147_spill] sm:$0xff]  ;;  %v7588_v27 = vadd.f32 %v15367_v60, %v7403_v46 }
 0x615   :  { %v7917_v36 = vpop.f32.mrf.mxu1  ;;  %v7769_v47 = vadd.f32 %v7768_v23, %v7570_v33  ;;  %v7405_v14 = vadd.f32 %v15366_v34, %v15365_v56  ;;  %v15375_v33 = vld [vmem:[#allocation142_spill] sm:$0xff] }
 0x616   :  { %8076 = vst [vmem:[%s14014_s3 + $0x100] sm:$0xff] %v7982_v41  ;;  %v7983_v6 = vmax.f32 %v7913_v26, 0.0  ;;  %v7918_v37 = vadd.f32 %v7917_v36, %v7755_v32  ;;  %v7770_v2 = vpop.f32.mrf.mxu0  ;;  %v15368_v41 = vld [vmem:[#allocation62_spill] sm:$0xff]  ;;  %v15369_v26 = vld [vmem:[#allocation76_spill] sm:$0xff] }
 0x617   :  { %v7919_v29 = vpop.f32.mrf.mxu1  ;;  %v7771_v1 = vadd.f32 %v7770_v2, %v7572_v49  ;;  %v7411_v23 = vadd.f32 %v15369_v26, %v15368_v41  ;;  %v15378_v49 = vld [vmem:[#allocation32_spill] sm:$0xff] }
 0x618   :  { %8077 = vst [vmem:[%s14014_s3 + $0x108] sm:$0xff] %v7983_v6  ;;  %v7986_v20 = vmax.f32 %v7918_v37, 0.0  ;;  %v7920_v53 = vadd.f32 %v7919_v29, %v7757_v24  ;;  %v7775_v0 = vpop.f32.mrf.mxu0  ;;  %v7590_v24 = vadd.f32 %v15370_v35, %v7405_v14  ;;  %v15372_v29 = vld [vmem:[#allocation25_spill] sm:$0xff] }
 0x619   :  { %v7924_v18 = vpop.f32.mrf.mxu1  ;;  %v7776_v19 = vadd.f32 %v7775_v0, %v7579_v51  ;;  %v7413_v61 = vadd.f32 %v15372_v29, %v15371_v25  ;;  %v15380_v51 = vld [vmem:[#allocation40_spill] sm:$0xff] }
 0x61a   :  { %8078 = vst [vmem:[%s14014_s3 + $0x110] sm:$0xff] %v7986_v20  ;;  %v7987_v58 = vmax.f32 %v7920_v53, 0.0  ;;  %v7925_v12 = vadd.f32 %v7924_v18, %v7762_v3  ;;  %v7777_v30 = vpop.f32.mrf.mxu0  ;;  %v15373_v20 = vld [vmem:[#allocation93_spill] sm:$0xff] }
 0x61b   :  { %v7926_v9 = vpop.f32.mrf.mxu1  ;;  %v7778_v40 = vadd.f32 %v7777_v30, %v7581_v57  ;;  %v7597_v53 = vadd.f32 %v15373_v20, %v7411_v23  ;;  %v15376_v30 = vld [vmem:[#allocation145_spill] sm:$0xff] }
 0x61c   :  { %8079 = vst [vmem:[%s14014_s3 + $0x118] sm:$0xff] %v7987_v58  ;;  %v7990_v15 = vmax.f32 %v7925_v12, 0.0  ;;  %v7927_v4 = vadd.f32 %v7926_v9, %v7764_v62  ;;  %v7782_v22 = vpop.f32.mrf.mxu0  ;;  %v7419_v62 = vadd.f32 %v15375_v33, %v15374_v17  ;;  %v7599_v28 = vadd.f32 %v15376_v30, %v7413_v61 }
 0x61d   :  { %v7931_v43 = vpop.f32.mrf.mxu1  ;;  %v7783_v6 = vadd.f32 %v7782_v22, %v7588_v27 }
 0x61e   :  { %8080 = vst [vmem:[%s14014_s3 + $0x120] sm:$0xff] %v7990_v15  ;;  %v7991_v5 = vmax.f32 %v7927_v4, 0.0  ;;  %v7932_v55 = vadd.f32 %v7931_v43, %v7769_v47  ;;  %v7784_v16 = vpop.f32.mrf.mxu0  ;;  %v7421_v47 = vadd.f32 %v15378_v49, %v15377_v38  ;;  %v15379_v4 = vld [vmem:[#allocation54_spill] sm:$0xff] }
 0x61f   :  { %v7933_v7 = vpop.f32.mrf.mxu1  ;;  %v7785_v0 = vadd.f32 %v7784_v16, %v7590_v24  ;;  %v7606_v22 = vadd.f32 %v15379_v4, %v7419_v62 }
 0x620   :  { %8081 = vst [vmem:[%s14014_s3 + $0x128] sm:$0xff] %v7991_v5  ;;  %v7994_v21 = vmax.f32 %v7932_v55, 0.0  ;;  %v7934_v8 = vadd.f32 %v7933_v7, %v7771_v1  ;;  %v7789_v48 = vpop.f32.mrf.mxu0  ;;  %v7608_v1 = vadd.f32 %v15380_v51, %v7421_v47 }
 0x621   :  { %v7938_v59 = vpop.f32.mrf.mxu1  ;;  %v7790_v39 = vadd.f32 %v7789_v48, %v7597_v53 }
 0x622   :  { %8082 = vst [vmem:[%s14014_s3 + $0x130] sm:$0xff] %v7994_v21  ;;  %v7995_v10 = vmax.f32 %v7934_v8, 0.0  ;;  %v7939_v32 = vadd.f32 %v7938_v59, %v7776_v19  ;;  %v7791_v11 = vpop.f32.mrf.mxu0 }
 0x623   :  { %v7940_v36 = vpop.f32.mrf.mxu1  ;;  %v7792_v52 = vadd.f32 %v7791_v11, %v7599_v28 }
 0x624   :  { %8083 = vst [vmem:[%s14014_s3 + $0x138] sm:$0xff] %v7995_v10  ;;  %v7998_v37 = vmax.f32 %v7939_v32, 0.0  ;;  %v7941_v2 = vadd.f32 %v7940_v36, %v7778_v40  ;;  %v7796_v58 = vpop.f32.mrf.mxu0 }
 0x625   :  { %v7945_v3 = vpop.f32.mrf.mxu1  ;;  %v7797_v5 = vadd.f32 %v7796_v58, %v7606_v22 }
 0x626   :  { %8084 = vst [vmem:[%s14014_s3 + $0x140] sm:$0xff] %v7998_v37  ;;  %v7999_v54 = vmax.f32 %v7941_v2, 0.0  ;;  %v7946_v18 = vadd.f32 %v7945_v3, %v7783_v6  ;;  %v7798_v43 = vpop.f32.mrf.mxu0 }
 0x627   :  { %v7947_v12 = vpop.f32.mrf.mxu1  ;;  %v7799_v63 = vadd.f32 %v7798_v43, %v7608_v1 }
 0x628   :  { %8085 = vst [vmem:[%s14014_s3 + $0x148] sm:$0xff] %v7999_v54  ;;  %v8002_v50 = vmax.f32 %v7946_v18, 0.0  ;;  %v7948_v9 = vadd.f32 %v7947_v12, %v7785_v0 }
 0x629   :  { %v7952_v15 = vpop.f32.mrf.mxu1 }
 0x62a   :  { %8086 = vst [vmem:[%s14014_s3 + $0x150] sm:$0xff] %v8002_v50  ;;  %v8003_v31 = vmax.f32 %v7948_v9, 0.0  ;;  %v7953_v45 = vadd.f32 %v7952_v15, %v7790_v39 }
 0x62b   :  { %v7954_v13 = vpop.f32.mrf.mxu1 }
 0x62c   :  { %8087 = vst [vmem:[%s14014_s3 + $0x158] sm:$0xff] %v8003_v31  ;;  %v8006_v55 = vmax.f32 %v7953_v45, 0.0  ;;  %v7955_v16 = vadd.f32 %v7954_v13, %v7792_v52 }
 0x62d   :  { %v7959_v42 = vpop.f32.mrf.mxu1 }
 0x62e   :  { %8088 = vst [vmem:[%s14014_s3 + $0x160] sm:$0xff] %v8006_v55  ;;  %v8007_v46 = vmax.f32 %v7955_v16, 0.0  ;;  %v7960_v7 = vadd.f32 %v7959_v42, %v7797_v5 }
 0x62f   :  { %v7961_v44 = vpop.f32.mrf.mxu1 }
 0x630   :  { %8089 = vst [vmem:[%s14014_s3 + $0x168] sm:$0xff] %v8007_v46  ;;  %v8010_v57 = vmax.f32 %v7960_v7, 0.0  ;;  %v7962_v19 = vadd.f32 %v7961_v44, %v7799_v63 }
 0x632   :  { %8090 = vst [vmem:[%s14014_s3 + $0x170] sm:$0x3] %v8010_v57  ;;  %v8011_v21 = vmax.f32 %v7962_v19, 0.0 }
 0x634   :  { %8091 = vst [vmem:[%s14014_s3 + $0x178] sm:$0x3] %v8011_v21 }

</bundles_post_ra>
